<compile_context>
chip_gen: v7x
topology: tpu7x:2x2x1
jax: 0.10.0
libtpu: 0.0.40
codegen_flags: <defaults>
</compile_context>

<pallas_src>
import functools

import jax
import jax.numpy as jnp
from jax.experimental import pallas as pl
from jax.experimental.pallas import tpu as pltpu

IN_FEATURES = 4096
HID = 1200
TK = 2048            # fc1 contraction tile (4096 / 2048 = 2 grid steps)


def _mlp_encoder_kernel(x_ref, w1_ref, b1_ref, w2_hbm, b2_ref, w3_hbm, b3_ref,
                        z_ref, h1_acc, w2_vmem, w3_vmem, dma_sems):
    """Grid axis 0 tiles the 4096-wide contraction of fc1.

    fc1 is accumulated into an f32 VMEM scratch across grid steps; on the
    last step we apply ReLU and run fc2 / fc3 (whose weights were DMA'd once
    into single-buffered VMEM scratch) before writing the output tile.
    """
    k = pl.program_id(0)

    @pl.when(k == 0)
    def _():
        # Fold b1 into the accumulator init (saves an epilogue add).
        h1_acc[...] = jnp.broadcast_to(b1_ref[...], h1_acc.shape)
        # Kick off single-buffered copies of the resident fc2/fc3 weights so
        # they are in VMEM (overlapped with the fc1 steps) by the epilogue.
        pltpu.make_async_copy(w2_hbm, w2_vmem, dma_sems.at[0]).start()
        pltpu.make_async_copy(w3_hbm, w3_vmem, dma_sems.at[1]).start()

    # Partial fc1: (Bp, TK) bf16 @ (TK, 1200) bf16, accumulated in f32.
    h1_acc[...] += jnp.dot(x_ref[...], w1_ref[...],
                           preferred_element_type=jnp.float32)

    @pl.when(k == pl.num_programs(0) - 1)
    def _():
        pltpu.make_async_copy(w2_hbm, w2_vmem, dma_sems.at[0]).wait()
        pltpu.make_async_copy(w3_hbm, w3_vmem, dma_sems.at[1]).wait()
        h1 = jnp.maximum(h1_acc[...], 0.0)                       # ReLU(fc1 + b1)
        h2 = jnp.dot(h1.astype(jnp.bfloat16), w2_vmem[...],
                     preferred_element_type=jnp.float32)
        h2 = jnp.maximum(h2 + b2_ref[...], 0.0)                  # ReLU(fc2 + b2)
        h3 = jnp.dot(h2.astype(jnp.bfloat16), w3_vmem[...],
                     preferred_element_type=jnp.float32)
        z_ref[...] = (h3 + b3_ref[...]).astype(z_ref.dtype)      # fc3 + b3


@functools.partial(jax.jit, static_argnames=("output_dim",))
def mlp_encoder_forward(x, params, *, output_dim):
    """x: (B, C, H, W) with C*H*W == 4096 (e.g. (B, 1, 64, 64))."""
    w1, b1, w2, b2, w3, b3 = params
    B = x.shape[0]
    h = x.reshape(B, IN_FEATURES)                      # x.view(-1, 64*64)

    # Pad batch to a multiple of 8 sublanes (layout hygiene); sliced back below.
    Bp = max(8, -(-B // 8) * 8)
    h = jnp.pad(h, ((0, Bp - B), (0, 0))).astype(jnp.bfloat16)

    grid = (IN_FEATURES // TK,)

    z = pl.pallas_call(
        _mlp_encoder_kernel,
        out_shape=jax.ShapeDtypeStruct((Bp, output_dim), jnp.float32),
        grid_spec=pltpu.PrefetchScalarGridSpec(
            num_scalar_prefetch=0,
            grid=grid,
            in_specs=[
                pl.BlockSpec((Bp, TK), lambda k: (0, k)),          # x chunk (bf16)
                pl.BlockSpec((TK, HID), lambda k: (k, 0)),         # W1 chunk (bf16)
                pl.BlockSpec((1, HID), lambda k: (0, 0)),          # b1 (f32)
                pl.BlockSpec(memory_space=pl.ANY),                 # W2: manual DMA
                pl.BlockSpec((1, HID), lambda k: (0, 0)),          # b2 (f32)
                pl.BlockSpec(memory_space=pl.ANY),                 # W3: manual DMA
                pl.BlockSpec((1, output_dim), lambda k: (0, 0)),   # b3 (f32)
            ],
            out_specs=pl.BlockSpec((Bp, output_dim), lambda k: (0, 0)),
            scratch_shapes=[
                pltpu.VMEM((Bp, HID), jnp.float32),           # fc1 f32 accumulator
                pltpu.VMEM((HID, HID), jnp.bfloat16),         # W2, single-buffered
                pltpu.VMEM((HID, output_dim), jnp.bfloat16),  # W3, single-buffered
                pltpu.SemaphoreType.DMA((2,)),
            ],
        ),
        compiler_params=pltpu.CompilerParams(
            # Single reduction axis; at this batch size there is nothing to
            # shard across v7x's two TensorCores.
            # TODO(synk): add a "parallel" M-tile grid axis once B is large
            # enough to tile to 128/256 rows.
            dimension_semantics=("arbitrary",),
            # Actual VMEM footprint ~16 MiB; 40 MiB fits v7x (64 MiB) and
            # v5e/v6e (128 MiB).
            vmem_limit_bytes=40 << 20,
        ),
    )(h, w1, b1, w2, b2, w3, b3)
    return z[:B]


def init_params(key, output_dim):
    """Deterministic synthetic params; shapes match the nn.Linear layers.

    Weights stored as (in_features, out_features) in bfloat16 (streamed dtype);
    biases as (1, out_features) in float32 (bias/ReLU math stays f32).
    """
    ks = jax.random.split(key, 6)

    def lin(kw, kb, fan_in, fan_out):
        bound = 1.0 / (fan_in ** 0.5)
        w = jax.random.uniform(kw, (fan_in, fan_out), jnp.float32, -bound, bound)
        b = jax.random.uniform(kb, (1, fan_out), jnp.float32, -bound, bound)
        return w.astype(jnp.bfloat16), b

    w1, b1 = lin(ks[0], ks[1], IN_FEATURES, HID)
    w2, b2 = lin(ks[2], ks[3], HID, HID)
    w3, b3 = lin(ks[4], ks[5], HID, output_dim)
    return (w1, b1, w2, b2, w3, b3)


def reference_forward(x, params):
    """Pure-JAX reference with the same bf16-operand / f32-accumulate math."""
    w1, b1, w2, b2, w3, b3 = params
    h = x.reshape(x.shape[0], IN_FEATURES).astype(jnp.bfloat16)
    h1 = jnp.maximum(jnp.dot(h, w1, preferred_element_type=jnp.float32) + b1, 0.0)
    h2 = jnp.maximum(
        jnp.dot(h1.astype(jnp.bfloat16), w2, preferred_element_type=jnp.float32)
        + b2, 0.0)
    return (jnp.dot(h2.astype(jnp.bfloat16), w3,
                    preferred_element_type=jnp.float32) + b3)


if __name__ == "__main__":
    OUTPUT_DIM = 32
    key = jax.random.PRNGKey(0)
    k_x, k_p = jax.random.split(key)

    # NCHW input, 1 channel, 64x64 spatial => 4096 features per sample.
    x = jax.random.normal(k_x, (2, 1, 64, 64), jnp.float32)
    params = init_params(k_p, OUTPUT_DIM)

    z = mlp_encoder_forward(x, params, output_dim=OUTPUT_DIM)
    jax.block_until_ready(z)

    z_ref = reference_forward(x, params)
    assert z.shape == (2, OUTPUT_DIM)
    assert jnp.allclose(z, z_ref, atol=1e-2, rtol=1e-2), "mismatch vs reference"

    print("KERNEL_OK")
</pallas_src>

<mosaic_0001>
module attributes {stable_mosaic.version = 11 : i64} {
  func.func @_mlp_encoder_kernel(%arg0: i32, %arg1: memref<8x2048xbf16, #tpu.memory_space<vmem>>, %arg2: memref<2048x1200xbf16, #tpu.memory_space<vmem>>, %arg3: memref<1x1200xf32, #tpu.memory_space<vmem>>, %arg4: memref<1200x1200xbf16, #tpu.memory_space<any>>, %arg5: memref<1x1200xf32, #tpu.memory_space<vmem>>, %arg6: memref<1200x32xbf16, #tpu.memory_space<any>>, %arg7: memref<1x32xf32, #tpu.memory_space<vmem>>, %arg8: memref<8x32xf32, #tpu.memory_space<vmem>>, %arg9: memref<8x1200xf32, #tpu.memory_space<vmem>>, %arg10: memref<1200x1200xbf16, #tpu.memory_space<vmem>>, %arg11: memref<1200x32xbf16, #tpu.memory_space<vmem>>, %arg12: memref<2x!tpu.dma_semaphore, #tpu.memory_space<semaphore_mem>>) attributes {dimension_semantics = [#tpu.dimension_semantics<arbitrary>], iteration_bounds = array<i64: 2>, scalar_prefetch = 0 : i64, scratch_operands = 4 : i64, tpu.core_type = #tpu.core_type<tc>, window_params = [{transform_indices = @transform_0, window_bounds = array<i64: 8, 2048>}, {transform_indices = @transform_1, window_bounds = array<i64: 2048, 1200>}, {pipeline_mode = #tpu.pipeline_mode<synchronous>, transform_indices = @transform_2, window_bounds = array<i64: 1, 1200>}, {}, {pipeline_mode = #tpu.pipeline_mode<synchronous>, transform_indices = @transform_4, window_bounds = array<i64: 1, 1200>}, {}, {pipeline_mode = #tpu.pipeline_mode<synchronous>, transform_indices = @transform_6, window_bounds = array<i64: 1, 32>}, {pipeline_mode = #tpu.pipeline_mode<synchronous>, transform_indices = @transform_7, window_bounds = array<i64: 8, 32>}]} {
    %c0_i32 = arith.constant 0 : i32
    %0 = arith.cmpi eq, %arg0, %c0_i32 : i32
    %1 = arith.extui %0 : i1 to i32
    %c0_i32_0 = arith.constant 0 : i32
    %2 = arith.cmpi ne, %1, %c0_i32_0 : i32
    scf.if %2 {
      %c0_9 = arith.constant 0 : index
      %c0_10 = arith.constant 0 : index
      %12 = vector.load %arg3[%c0_9, %c0_10] : memref<1x1200xf32, #tpu.memory_space<vmem>>, vector<1x1200xf32>
      %13 = vector.shape_cast %12 : vector<1x1200xf32> to vector<1x1200xf32>
      %14 = vector.broadcast %13 : vector<1x1200xf32> to vector<8x1200xf32>
      %c0_11 = arith.constant 0 : index
      %c0_12 = arith.constant 0 : index
      %15 = vector.load %arg9[%c0_11, %c0_12] : memref<8x1200xf32, #tpu.memory_space<vmem>>, vector<8x1200xf32>
      tpu.vector_store %arg9[%c0_11, %c0_12], %14 {strides = array<i32>} : memref<8x1200xf32, #tpu.memory_space<vmem>>, vector<8x1200xf32>,
      %c0_i32_13 = arith.constant 0 : i32
      %16 = tpu.memref_slice %arg12[%c0_i32_13] : memref<2x!tpu.dma_semaphore, #tpu.memory_space<semaphore_mem>> -> memref<1x!tpu.dma_semaphore, #tpu.memory_space<semaphore_mem>>
      %17 = tpu.memref_squeeze %16 : memref<1x!tpu.dma_semaphore, #tpu.memory_space<semaphore_mem>> -> memref<!tpu.dma_semaphore, #tpu.memory_space<semaphore_mem>>
      tpu.enqueue_dma source(%arg4 : memref<1200x1200xbf16, #tpu.memory_space<any>>) target(%arg10 : memref<1200x1200xbf16, #tpu.memory_space<vmem>>) target_semaphore(%17 : memref<!tpu.dma_semaphore, #tpu.memory_space<semaphore_mem>>)
      %c1_i32_14 = arith.constant 1 : i32
      %18 = tpu.memref_slice %arg12[%c1_i32_14] : memref<2x!tpu.dma_semaphore, #tpu.memory_space<semaphore_mem>> -> memref<1x!tpu.dma_semaphore, #tpu.memory_space<semaphore_mem>>
      %19 = tpu.memref_squeeze %18 : memref<1x!tpu.dma_semaphore, #tpu.memory_space<semaphore_mem>> -> memref<!tpu.dma_semaphore, #tpu.memory_space<semaphore_mem>>
      tpu.enqueue_dma source(%arg6 : memref<1200x32xbf16, #tpu.memory_space<any>>) target(%arg11 : memref<1200x32xbf16, #tpu.memory_space<vmem>>) target_semaphore(%19 : memref<!tpu.dma_semaphore, #tpu.memory_space<semaphore_mem>>)
    } else {
    }
    %c0 = arith.constant 0 : index
    %c0_1 = arith.constant 0 : index
    %3 = vector.load %arg9[%c0, %c0_1] : memref<8x1200xf32, #tpu.memory_space<vmem>>, vector<8x1200xf32>
    %c0_2 = arith.constant 0 : index
    %c0_3 = arith.constant 0 : index
    %4 = vector.load %arg1[%c0_2, %c0_3] : memref<8x2048xbf16, #tpu.memory_space<vmem>>, vector<8x2048xbf16>
    %c0_4 = arith.constant 0 : index
    %c0_5 = arith.constant 0 : index
    %5 = vector.load %arg2[%c0_4, %c0_5] : memref<2048x1200xbf16, #tpu.memory_space<vmem>>, vector<2048x1200xbf16>
    %cst = arith.constant dense<0.000000e+00> : vector<8x1200xf32>
    %6 = tpu.matmul %4, %5, %cst {dimension_numbers = #tpu.dot_dimension_numbers<[1], [0], [0], [1], [0, 0, 1, 1], [], []>} : vector<8x2048xbf16>, vector<2048x1200xbf16>, vector<8x1200xf32> -> vector<8x1200xf32>
    %7 = arith.addf %3, %6 : vector<8x1200xf32>
    %c0_6 = arith.constant 0 : index
    %c0_7 = arith.constant 0 : index
    %8 = vector.load %arg9[%c0_6, %c0_7] : memref<8x1200xf32, #tpu.memory_space<vmem>>, vector<8x1200xf32>
    tpu.vector_store %arg9[%c0_6, %c0_7], %7 {strides = array<i32>} : memref<8x1200xf32, #tpu.memory_space<vmem>>, vector<8x1200xf32>,
    %c1_i32 = arith.constant 1 : i32
    %9 = arith.cmpi eq, %arg0, %c1_i32 : i32
    %10 = arith.extui %9 : i1 to i32
    %c0_i32_8 = arith.constant 0 : i32
    %11 = arith.cmpi ne, %10, %c0_i32_8 : i32
    scf.if %11 {
      %c0_i32_9 = arith.constant 0 : i32
      %12 = tpu.memref_slice %arg12[%c0_i32_9] : memref<2x!tpu.dma_semaphore, #tpu.memory_space<semaphore_mem>> -> memref<1x!tpu.dma_semaphore, #tpu.memory_space<semaphore_mem>>
      %13 = tpu.memref_squeeze %12 : memref<1x!tpu.dma_semaphore, #tpu.memory_space<semaphore_mem>> -> memref<!tpu.dma_semaphore, #tpu.memory_space<semaphore_mem>>
      tpu.wait_dma2 semaphore(%13 : memref<!tpu.dma_semaphore, #tpu.memory_space<semaphore_mem>>) src(%arg4 : memref<1200x1200xbf16, #tpu.memory_space<any>>) dst(%arg10 : memref<1200x1200xbf16, #tpu.memory_space<vmem>>)
      %c1_i32_10 = arith.constant 1 : i32
      %14 = tpu.memref_slice %arg12[%c1_i32_10] : memref<2x!tpu.dma_semaphore, #tpu.memory_space<semaphore_mem>> -> memref<1x!tpu.dma_semaphore, #tpu.memory_space<semaphore_mem>>
      %15 = tpu.memref_squeeze %14 : memref<1x!tpu.dma_semaphore, #tpu.memory_space<semaphore_mem>> -> memref<!tpu.dma_semaphore, #tpu.memory_space<semaphore_mem>>
      tpu.wait_dma2 semaphore(%15 : memref<!tpu.dma_semaphore, #tpu.memory_space<semaphore_mem>>) src(%arg6 : memref<1200x32xbf16, #tpu.memory_space<any>>) dst(%arg11 : memref<1200x32xbf16, #tpu.memory_space<vmem>>)
      %c0_11 = arith.constant 0 : index
      %c0_12 = arith.constant 0 : index
      %16 = vector.load %arg9[%c0_11, %c0_12] : memref<8x1200xf32, #tpu.memory_space<vmem>>, vector<8x1200xf32>
      %cst_13 = arith.constant 0.000000e+00 : f32
      %17 = vector.broadcast %cst_13 : f32 to vector<8x1200xf32>
      %18 = arith.maximumf %16, %17 : vector<8x1200xf32>
      %19 = arith.truncf %18 : vector<8x1200xf32> to vector<8x1200xbf16>
      %c0_14 = arith.constant 0 : index
      %c0_15 = arith.constant 0 : index
      %20 = vector.load %arg10[%c0_14, %c0_15] : memref<1200x1200xbf16, #tpu.memory_space<vmem>>, vector<1200x1200xbf16>
      %cst_16 = arith.constant dense<0.000000e+00> : vector<8x1200xf32>
      %21 = tpu.matmul %19, %20, %cst_16 {dimension_numbers = #tpu.dot_dimension_numbers<[1], [0], [0], [1], [0, 0, 1, 1], [], []>} : vector<8x1200xbf16>, vector<1200x1200xbf16>, vector<8x1200xf32> -> vector<8x1200xf32>
      %c0_17 = arith.constant 0 : index
      %c0_18 = arith.constant 0 : index
      %22 = vector.load %arg5[%c0_17, %c0_18] : memref<1x1200xf32, #tpu.memory_space<vmem>>, vector<1x1200xf32>
      %23 = vector.broadcast %22 : vector<1x1200xf32> to vector<8x1200xf32>
      %24 = arith.addf %21, %23 : vector<8x1200xf32>
      %cst_19 = arith.constant 0.000000e+00 : f32
      %25 = vector.broadcast %cst_19 : f32 to vector<8x1200xf32>
      %26 = arith.maximumf %24, %25 : vector<8x1200xf32>
      %27 = arith.truncf %26 : vector<8x1200xf32> to vector<8x1200xbf16>
      %c0_20 = arith.constant 0 : index
      %c0_21 = arith.constant 0 : index
      %28 = vector.load %arg11[%c0_20, %c0_21] : memref<1200x32xbf16, #tpu.memory_space<vmem>>, vector<1200x32xbf16>
      %cst_22 = arith.constant dense<0.000000e+00> : vector<8x32xf32>
      %29 = tpu.matmul %27, %28, %cst_22 {dimension_numbers = #tpu.dot_dimension_numbers<[1], [0], [0], [1], [0, 0, 1, 1], [], []>} : vector<8x1200xbf16>, vector<1200x32xbf16>, vector<8x32xf32> -> vector<8x32xf32>
      %c0_23 = arith.constant 0 : index
      %c0_24 = arith.constant 0 : index
      %30 = vector.load %arg7[%c0_23, %c0_24] : memref<1x32xf32, #tpu.memory_space<vmem>>, vector<1x32xf32>
      %31 = vector.broadcast %30 : vector<1x32xf32> to vector<8x32xf32>
      %32 = arith.addf %29, %31 : vector<8x32xf32>
      %c0_25 = arith.constant 0 : index
      %c0_26 = arith.constant 0 : index
      %33 = vector.load %arg8[%c0_25, %c0_26] : memref<8x32xf32, #tpu.memory_space<vmem>>, vector<8x32xf32>
      tpu.vector_store %arg8[%c0_25, %c0_26], %32 {strides = array<i32>} : memref<8x32xf32, #tpu.memory_space<vmem>>, vector<8x32xf32>,
    } else {
    }
    return
  }
  func.func @transform_0(%arg0: i32) -> (i32, i32) {
    %c0_i32 = arith.constant 0 : i32
    %c0_i32_0 = arith.constant 0 : i32
    return %c0_i32, %arg0 : i32, i32
  }
  func.func @transform_1(%arg0: i32) -> (i32, i32) {
    %c0_i32 = arith.constant 0 : i32
    %c0_i32_0 = arith.constant 0 : i32
    return %arg0, %c0_i32 : i32, i32
  }
  func.func @transform_2(%arg0: i32) -> (i32, i32) {
    %c0_i32 = arith.constant 0 : i32
    %c0_i32_0 = arith.constant 0 : i32
    %c0_i32_1 = arith.constant 0 : i32
    return %c0_i32, %c0_i32_0 : i32, i32
  }
  func.func @transform_4(%arg0: i32) -> (i32, i32) {
    %c0_i32 = arith.constant 0 : i32
    %c0_i32_0 = arith.constant 0 : i32
    %c0_i32_1 = arith.constant 0 : i32
    return %c0_i32, %c0_i32_0 : i32, i32
  }
  func.func @transform_6(%arg0: i32) -> (i32, i32) {
    %c0_i32 = arith.constant 0 : i32
    %c0_i32_0 = arith.constant 0 : i32
    %c0_i32_1 = arith.constant 0 : i32
    return %c0_i32, %c0_i32_0 : i32, i32
  }
  func.func @transform_7(%arg0: i32) -> (i32, i32) {
    %c0_i32 = arith.constant 0 : i32
    %c0_i32_0 = arith.constant 0 : i32
    %c0_i32_1 = arith.constant 0 : i32
    return %c0_i32, %c0_i32_0 : i32, i32
  }
}

</mosaic_0001>

<bundles_post_ra>
// kernel: mlp_encoder_forward.1
= control target key start
LH: loop header
LB: loop body
LE: loop exit
PB: predicated region body
PF: predicated region fallthrough
CT: control target
= control target key end

     0   :  { %s21935_s24 = smov 0   ;;  %s25374_s0 = inlined_call_operand.vmem [shape: bf16[8,4096], index: 0, kind: input, shape index: {}]   ;;  %s25375_s1 = inlined_call_operand.vmem [shape: bf16[4096,1200], index: 1, kind: input, shape index: {}]   ;;  %s25376_s2 = inlined_call_operand.vmem [shape: f32[1,1200], index: 2, kind: input, shape index: {}]   ;;  %s25377_s3 = inlined_call_operand.vmem [shape: bf16[1200,1200], index: 3, kind: input, shape index: {}]   ;;  %s25378_s4 = inlined_call_operand.vmem [shape: f32[1,1200], index: 4, kind: input, shape index: {}]   ;;  %s25379_s5 = inlined_call_operand.vmem [shape: bf16[1200,32], index: 5, kind: input, shape index: {}]   ;;  %s25380_s6 = inlined_call_operand.vmem [shape: f32[1,32], index: 6, kind: input, shape index: {}]   ;;  %s25381_s7 = inlined_call_operand.vmem [shape: f32[8,32], index: 7, kind: output, shape index: {}]  }
   0x1 LB: > { %s21941_s25 = sadd.s32 4294967295, %s21876_s24   ;;  %p18373_p0 = scmp.ge.s32.totalorder %s21876_s24, 1  ;;  %s21876_s24 = sphi %s21935_s24, %s17_s24  }
   0x2   : > { %p197_p1 = scmp.lt.s32.totalorder %s21876_s24, 3 }
   0x4   : > { %p198_p2 = pnand %p18373_p0, %p197_p1 }
   0x5   : > { %s18374_s26 = sshll.u32 (!%p198_p2), %s21941_s25, 4  ;;  %s18376_s27 = sshll.u32 (!%p198_p2), %s21941_s25, 8 }
   0x6   : > { %201 = sbr.rel (%p198_p2) target bundleno = 3355 (0xd1b), region = 40  ;;  %p227_p3 = scmp.lt.s32.totalorder (!%p198_p2), %s18374_s26, 31 }
   0x7   : > { %p233_p4 = scmp.lt.s32.totalorder (!%p198_p2), %s18376_s27, 511  ;;  %p18378_p5 = scmp.ne.s32.totalorder (!%p198_p2), %s21941_s25, 0 }
   0xd   : > { %s25385_s26 = smov (!%p227_p3, %s18374_s26), 31  ;;  %s25387_s27 = smov (!%p233_p4, %s18376_s27), 511 }
   0xe   : > { %s18375_s28 = sshll.u32 %s25385_s26, 2  ;;  %s19871_s9 = smul.u32 40, %s25387_s27  ;;  %v248_v0 = vlaneseq (!%p18378_p5)  ;;  %v244_v2 = vld [vmem:[%s25376_s2] sm:$0xff] (!%p18378_p5)  ;;  %vm307_vm0 = vcmask (!%p18378_p5), 392192   ;;  %v245_v11 = vld [vmem:[%s25376_s2 + $0x8] sm:$0x3] (!%p18378_p5) }
   0xf   : > { %s21950_s8 = scalar_lea.vmem %s25374_s0, %s18375_s28  ;;  %243 = sbr.rel (%p18378_p5) target bundleno = 578 (0x242), region = 44 }
  0x10   : > { %s21955_s12 = scalar_lea.vmem %s25375_s1, %s19871_s9  ;;  %v249_v1 = vshrl.u32 (!%p18378_p5), %v248_v0, 7  ;;  %s21965_s17 = smov (!%p18378_p5), [#allocation3]  }
  0x11   : > { %s25382_s20 = smov (!%p18378_p5), %s25377_s3  ;;  %s21972_s21 = smov (!%p18378_p5), 0  }
  0x12   : > { %v250_v3 = vsub.s32 (!%p18378_p5), 0, %v249_v1  ;;  %v254_v4 = vsub.s32 (!%p18378_p5), 1, %v249_v1  ;;  %v258_v5 = vsub.s32 (!%p18378_p5), 2, %v249_v1  ;;  %v262_v6 = vsub.s32 (!%p18378_p5), 3, %v249_v1  ;;  %s21974_s22 = smov (!%p18378_p5), 0  }
  0x13   : > { %v266_v7 = vsub.s32 (!%p18378_p5), 4, %v249_v1  ;;  %v270_v8 = vsub.s32 (!%p18378_p5), 5, %v249_v1  ;;  %v274_v9 = vsub.s32 (!%p18378_p5), 6, %v249_v1  ;;  %v278_v10 = vsub.s32 (!%p18378_p5), 7, %v249_v1 }
  0x14   : > { %v251_v12 = vrot.slane (!%p18378_p5), %v244_v2, %v250_v3  ;;  %v255_v13 = vrot.slane (!%p18378_p5), %v244_v2, %v254_v4  ;;  %v259_v14 = vrot.slane (!%p18378_p5), %v244_v2, %v258_v5  ;;  %v263_v15 = vrot.slane (!%p18378_p5), %v244_v2, %v262_v6 }
  0x15   : > { %v267_v16 = vrot.slane (!%p18378_p5), %v244_v2, %v266_v7  ;;  %v271_v17 = vrot.slane (!%p18378_p5), %v244_v2, %v270_v8  ;;  %v275_v18 = vrot.slane (!%p18378_p5), %v244_v2, %v274_v9  ;;  %v279_v19 = vrot.slane (!%p18378_p5), %v244_v2, %v278_v10 }
  0x16   : > { %298 = vst [vmem:[#allocation2] sm:$0xff] %v251_v12  ;;  %299 = vst [vmem:[#allocation2 + $0x8] sm:$0xff] %v255_v13  ;;  %v283_v20 = vrot.slane %v245_v11, %v250_v3  ;;  %v287_v21 = vrot.slane %v245_v11, %v254_v4 }
  0x17   : > { %300 = vst [vmem:[#allocation2 + $0x10] sm:$0xff] %v259_v14  ;;  %301 = vst [vmem:[#allocation2 + $0x18] sm:$0xff] %v263_v15 }
  0x18   : > { %302 = vst [vmem:[#allocation2 + $0x20] sm:$0xff] %v267_v16  ;;  %303 = vst [vmem:[#allocation2 + $0x28] sm:$0xff] %v271_v17 }
  0x19   : > { %304 = vst [vmem:[#allocation2 + $0x30] sm:$0xff] %v275_v18  ;;  %305 = vst [vmem:[#allocation2 + $0x38] sm:$0xff] %v279_v19 }
  0x1a   : > { %306 = vst [vmem:[#allocation2 + $0x40] sm:$0xff] %v283_v20  ;;  %308 = vst.msk [vmem:[#allocation2 + $0x48] sm:$0xff] %vm307_vm0, %v287_v21 }
  0x1b LB: >> { %v329_v22 = vld [vmem:[%s21884_s20] sm:$0xf]  ;;  %v331_v23 = vld [vmem:[%s21884_s20 + $0x4] sm:$0xf]  ;;  %v333_v24 = vld [vmem:[%s21884_s20 + $0x8] sm:$0xf]  ;;  %s21892_s22 = sphi %s21974_s22, %s325_s22   ;;  %s21888_s21 = sphi %s21972_s21, %s25383_s21   ;;  %s21884_s20 = sphi %s25382_s20, %s1834_s20   ;;  %s21880_s17 = sphi %s21965_s17, %s1835_s17  }
  0x1c   : >> { %330 = vst [vmem:[%s21880_s17] sm:$0xf] %v329_v22  ;;  %332 = vst [vmem:[%s21880_s17 + $0x8] sm:$0xf] %v331_v23  ;;  %v335_v25 = vld [vmem:[%s21884_s20 + $0xc] sm:$0xf]  ;;  %s1829_s23 = sadd.s32 1, %s21888_s21 }
  0x1d   : >> { %334 = vst [vmem:[%s21880_s17 + $0x10] sm:$0xf] %v333_v24  ;;  %v337_v26 = vld [vmem:[%s21884_s20 + $0x10] sm:$0xf]  ;;  %v339_v27 = vld [vmem:[%s21884_s20 + $0x14] sm:$0xf] }
  0x1e   : >> { %336 = vst [vmem:[%s21880_s17 + $0x18] sm:$0xf] %v335_v25  ;;  %338 = vst [vmem:[%s21880_s17 + $0x20] sm:$0xf] %v337_v26  ;;  %v341_v28 = vld [vmem:[%s21884_s20 + $0x18] sm:$0xf] }
  0x1f   : >> { %340 = vst [vmem:[%s21880_s17 + $0x28] sm:$0xf] %v339_v27  ;;  %v343_v29 = vld [vmem:[%s21884_s20 + $0x1c] sm:$0xf]  ;;  %v345_v30 = vld [vmem:[%s21884_s20 + $0x20] sm:$0xf] }
  0x20   : >> { %342 = vst [vmem:[%s21880_s17 + $0x30] sm:$0xf] %v341_v28  ;;  %344 = vst [vmem:[%s21880_s17 + $0x38] sm:$0xf] %v343_v29  ;;  %v347_v31 = vld [vmem:[%s21884_s20 + $0x24] sm:$0xf] }
  0x21   : >> { %346 = vst [vmem:[%s21880_s17 + $0x40] sm:$0xf] %v345_v30  ;;  %v349_v32 = vld [vmem:[%s21884_s20 + $0x50] sm:$0xf]  ;;  %v351_v33 = vld [vmem:[%s21884_s20 + $0x54] sm:$0xf] }
  0x22   : >> { %348 = vst [vmem:[%s21880_s17 + $0x48] sm:$0xf] %v347_v31  ;;  %350 = vst [vmem:[%s21880_s17 + $0x50] sm:$0xf] %v349_v32  ;;  %v353_v34 = vld [vmem:[%s21884_s20 + $0x58] sm:$0xf] }
  0x23   : >> { %352 = vst [vmem:[%s21880_s17 + $0x58] sm:$0xf] %v351_v33  ;;  %v355_v35 = vld [vmem:[%s21884_s20 + $0x5c] sm:$0xf]  ;;  %v357_v36 = vld [vmem:[%s21884_s20 + $0x60] sm:$0xf] }
  0x24   : >> { %354 = vst [vmem:[%s21880_s17 + $0x60] sm:$0xf] %v353_v34  ;;  %356 = vst [vmem:[%s21880_s17 + $0x68] sm:$0xf] %v355_v35  ;;  %v359_v37 = vld [vmem:[%s21884_s20 + $0x64] sm:$0xf] }
  0x25   : >> { %358 = vst [vmem:[%s21880_s17 + $0x70] sm:$0xf] %v357_v36  ;;  %v361_v38 = vld [vmem:[%s21884_s20 + $0x68] sm:$0xf]  ;;  %v363_v39 = vld [vmem:[%s21884_s20 + $0x6c] sm:$0xf] }
  0x26   : >> { %360 = vst [vmem:[%s21880_s17 + $0x78] sm:$0xf] %v359_v37  ;;  %362 = vst [vmem:[%s21880_s17 + $0x80] sm:$0xf] %v361_v38  ;;  %v365_v40 = vld [vmem:[%s21884_s20 + $0x70] sm:$0xf] }
  0x27   : >> { %364 = vst [vmem:[%s21880_s17 + $0x88] sm:$0xf] %v363_v39  ;;  %v367_v41 = vld [vmem:[%s21884_s20 + $0x74] sm:$0xf]  ;;  %v369_v42 = vld [vmem:[%s21884_s20 + $0xa0] sm:$0xf] }
  0x28   : >> { %366 = vst [vmem:[%s21880_s17 + $0x90] sm:$0xf] %v365_v40  ;;  %368 = vst [vmem:[%s21880_s17 + $0x98] sm:$0xf] %v367_v41  ;;  %v371_v43 = vld [vmem:[%s21884_s20 + $0xa4] sm:$0xf] }
  0x29   : >> { %370 = vst [vmem:[%s21880_s17 + $0xa0] sm:$0xf] %v369_v42  ;;  %v373_v44 = vld [vmem:[%s21884_s20 + $0xa8] sm:$0xf]  ;;  %v375_v45 = vld [vmem:[%s21884_s20 + $0xac] sm:$0xf] }
  0x2a   : >> { %372 = vst [vmem:[%s21880_s17 + $0xa8] sm:$0xf] %v371_v43  ;;  %374 = vst [vmem:[%s21880_s17 + $0xb0] sm:$0xf] %v373_v44  ;;  %v377_v46 = vld [vmem:[%s21884_s20 + $0xb0] sm:$0xf] }
  0x2b   : >> { %376 = vst [vmem:[%s21880_s17 + $0xb8] sm:$0xf] %v375_v45  ;;  %v379_v47 = vld [vmem:[%s21884_s20 + $0xb4] sm:$0xf]  ;;  %v381_v48 = vld [vmem:[%s21884_s20 + $0xb8] sm:$0xf] }
  0x2c   : >> { %378 = vst [vmem:[%s21880_s17 + $0xc0] sm:$0xf] %v377_v46  ;;  %380 = vst [vmem:[%s21880_s17 + $0xc8] sm:$0xf] %v379_v47  ;;  %v383_v49 = vld [vmem:[%s21884_s20 + $0xbc] sm:$0xf] }
  0x2d   : >> { %382 = vst [vmem:[%s21880_s17 + $0xd0] sm:$0xf] %v381_v48  ;;  %v385_v50 = vld [vmem:[%s21884_s20 + $0xc0] sm:$0xf]  ;;  %v387_v51 = vld [vmem:[%s21884_s20 + $0xc4] sm:$0xf] }
  0x2e   : >> { %384 = vst [vmem:[%s21880_s17 + $0xd8] sm:$0xf] %v383_v49  ;;  %386 = vst [vmem:[%s21880_s17 + $0xe0] sm:$0xf] %v385_v50  ;;  %v389_v52 = vld [vmem:[%s21884_s20 + $0xf0] sm:$0xf] }
  0x2f   : >> { %388 = vst [vmem:[%s21880_s17 + $0xe8] sm:$0xf] %v387_v51  ;;  %v391_v53 = vld [vmem:[%s21884_s20 + $0xf4] sm:$0xf]  ;;  %v393_v54 = vld [vmem:[%s21884_s20 + $0xf8] sm:$0xf] }
  0x30   : >> { %390 = vst [vmem:[%s21880_s17 + $0xf0] sm:$0xf] %v389_v52  ;;  %392 = vst [vmem:[%s21880_s17 + $0xf8] sm:$0xf] %v391_v53  ;;  %v395_v55 = vld [vmem:[%s21884_s20 + $0xfc] sm:$0xf] }
  0x31   : >> { %394 = vst [vmem:[%s21880_s17 + $0x100] sm:$0xf] %v393_v54  ;;  %v397_v56 = vld [vmem:[%s21884_s20 + $0x100] sm:$0xf]  ;;  %v399_v57 = vld [vmem:[%s21884_s20 + $0x104] sm:$0xf] }
  0x32   : >> { %396 = vst [vmem:[%s21880_s17 + $0x108] sm:$0xf] %v395_v55  ;;  %398 = vst [vmem:[%s21880_s17 + $0x110] sm:$0xf] %v397_v56  ;;  %v401_v58 = vld [vmem:[%s21884_s20 + $0x108] sm:$0xf] }
  0x33   : >> { %400 = vst [vmem:[%s21880_s17 + $0x118] sm:$0xf] %v399_v57  ;;  %v403_v59 = vld [vmem:[%s21884_s20 + $0x10c] sm:$0xf]  ;;  %v405_v60 = vld [vmem:[%s21884_s20 + $0x110] sm:$0xf] }
  0x34   : >> { %402 = vst [vmem:[%s21880_s17 + $0x120] sm:$0xf] %v401_v58  ;;  %404 = vst [vmem:[%s21880_s17 + $0x128] sm:$0xf] %v403_v59  ;;  %v407_v61 = vld [vmem:[%s21884_s20 + $0x114] sm:$0xf] }
  0x35   : >> { %406 = vst [vmem:[%s21880_s17 + $0x130] sm:$0xf] %v405_v60  ;;  %v409_v62 = vld [vmem:[%s21884_s20 + $0x140] sm:$0xf]  ;;  %v411_v63 = vld [vmem:[%s21884_s20 + $0x144] sm:$0xf] }
  0x36   : >> { %408 = vst [vmem:[%s21880_s17 + $0x138] sm:$0xf] %v407_v61  ;;  %410 = vst [vmem:[%s21880_s17 + $0x140] sm:$0xf] %v409_v62  ;;  %v413_v0 = vld [vmem:[%s21884_s20 + $0x148] sm:$0xf] }
  0x37   : >> { %412 = vst [vmem:[%s21880_s17 + $0x148] sm:$0xf] %v411_v63  ;;  %v415_v1 = vld [vmem:[%s21884_s20 + $0x14c] sm:$0xf]  ;;  %v417_v2 = vld [vmem:[%s21884_s20 + $0x150] sm:$0xf] }
  0x38   : >> { %414 = vst [vmem:[%s21880_s17 + $0x150] sm:$0xf] %v413_v0  ;;  %416 = vst [vmem:[%s21880_s17 + $0x158] sm:$0xf] %v415_v1  ;;  %v419_v3 = vld [vmem:[%s21884_s20 + $0x154] sm:$0xf] }
  0x39   : >> { %418 = vst [vmem:[%s21880_s17 + $0x160] sm:$0xf] %v417_v2  ;;  %v421_v4 = vld [vmem:[%s21884_s20 + $0x158] sm:$0xf]  ;;  %v423_v5 = vld [vmem:[%s21884_s20 + $0x15c] sm:$0xf] }
  0x3a   : >> { %420 = vst [vmem:[%s21880_s17 + $0x168] sm:$0xf] %v419_v3  ;;  %422 = vst [vmem:[%s21880_s17 + $0x170] sm:$0xf] %v421_v4  ;;  %v425_v6 = vld [vmem:[%s21884_s20 + $0x160] sm:$0xf] }
  0x3b   : >> { %424 = vst [vmem:[%s21880_s17 + $0x178] sm:$0xf] %v423_v5  ;;  %v427_v7 = vld [vmem:[%s21884_s20 + $0x164] sm:$0xf]  ;;  %v429_v8 = vld [vmem:[%s21884_s20 + $0x190] sm:$0xf] }
  0x3c   : >> { %426 = vst [vmem:[%s21880_s17 + $0x180] sm:$0xf] %v425_v6  ;;  %428 = vst [vmem:[%s21880_s17 + $0x188] sm:$0xf] %v427_v7  ;;  %v431_v9 = vld [vmem:[%s21884_s20 + $0x194] sm:$0xf] }
  0x3d   : >> { %430 = vst [vmem:[%s21880_s17 + $0x190] sm:$0xf] %v429_v8  ;;  %v433_v10 = vld [vmem:[%s21884_s20 + $0x198] sm:$0xf]  ;;  %v435_v11 = vld [vmem:[%s21884_s20 + $0x19c] sm:$0xf] }
  0x3e   : >> { %432 = vst [vmem:[%s21880_s17 + $0x198] sm:$0xf] %v431_v9  ;;  %434 = vst [vmem:[%s21880_s17 + $0x1a0] sm:$0xf] %v433_v10  ;;  %v437_v12 = vld [vmem:[%s21884_s20 + $0x1a0] sm:$0xf] }
  0x3f   : >> { %436 = vst [vmem:[%s21880_s17 + $0x1a8] sm:$0xf] %v435_v11  ;;  %v439_v13 = vld [vmem:[%s21884_s20 + $0x1a4] sm:$0xf]  ;;  %v441_v14 = vld [vmem:[%s21884_s20 + $0x1a8] sm:$0xf] }
  0x40   : >> { %438 = vst [vmem:[%s21880_s17 + $0x1b0] sm:$0xf] %v437_v12  ;;  %440 = vst [vmem:[%s21880_s17 + $0x1b8] sm:$0xf] %v439_v13  ;;  %v443_v15 = vld [vmem:[%s21884_s20 + $0x1ac] sm:$0xf] }
  0x41   : >> { %442 = vst [vmem:[%s21880_s17 + $0x1c0] sm:$0xf] %v441_v14  ;;  %v445_v16 = vld [vmem:[%s21884_s20 + $0x1b0] sm:$0xf]  ;;  %v447_v17 = vld [vmem:[%s21884_s20 + $0x1b4] sm:$0xf] }
  0x42   : >> { %444 = vst [vmem:[%s21880_s17 + $0x1c8] sm:$0xf] %v443_v15  ;;  %446 = vst [vmem:[%s21880_s17 + $0x1d0] sm:$0xf] %v445_v16  ;;  %v449_v18 = vld [vmem:[%s21884_s20 + $0x1e0] sm:$0xf] }
  0x43   : >> { %448 = vst [vmem:[%s21880_s17 + $0x1d8] sm:$0xf] %v447_v17  ;;  %v451_v19 = vld [vmem:[%s21884_s20 + $0x1e4] sm:$0xf]  ;;  %v453_v20 = vld [vmem:[%s21884_s20 + $0x1e8] sm:$0xf] }
  0x44   : >> { %450 = vst [vmem:[%s21880_s17 + $0x1e0] sm:$0xf] %v449_v18  ;;  %452 = vst [vmem:[%s21880_s17 + $0x1e8] sm:$0xf] %v451_v19  ;;  %v455_v21 = vld [vmem:[%s21884_s20 + $0x1ec] sm:$0xf] }
  0x45   : >> { %454 = vst [vmem:[%s21880_s17 + $0x1f0] sm:$0xf] %v453_v20  ;;  %v457_v22 = vld [vmem:[%s21884_s20 + $0x1f0] sm:$0xf]  ;;  %v459_v23 = vld [vmem:[%s21884_s20 + $0x1f4] sm:$0xf] }
  0x46   : >> { %456 = vst [vmem:[%s21880_s17 + $0x1f8] sm:$0xf] %v455_v21  ;;  %458 = vst [vmem:[%s21880_s17 + $0x200] sm:$0xf] %v457_v22  ;;  %v461_v24 = vld [vmem:[%s21884_s20 + $0x1f8] sm:$0xf] }
  0x47   : >> { %460 = vst [vmem:[%s21880_s17 + $0x208] sm:$0xf] %v459_v23  ;;  %v463_v25 = vld [vmem:[%s21884_s20 + $0x1fc] sm:$0xf]  ;;  %v465_v26 = vld [vmem:[%s21884_s20 + $0x200] sm:$0xf] }
  0x48   : >> { %462 = vst [vmem:[%s21880_s17 + $0x210] sm:$0xf] %v461_v24  ;;  %464 = vst [vmem:[%s21880_s17 + $0x218] sm:$0xf] %v463_v25  ;;  %v467_v27 = vld [vmem:[%s21884_s20 + $0x204] sm:$0xf] }
  0x49   : >> { %466 = vst [vmem:[%s21880_s17 + $0x220] sm:$0xf] %v465_v26  ;;  %v469_v28 = vld [vmem:[%s21884_s20 + $0x230] sm:$0xf]  ;;  %v471_v29 = vld [vmem:[%s21884_s20 + $0x234] sm:$0xf] }
  0x4a   : >> { %468 = vst [vmem:[%s21880_s17 + $0x228] sm:$0xf] %v467_v27  ;;  %470 = vst [vmem:[%s21880_s17 + $0x230] sm:$0xf] %v469_v28  ;;  %v473_v30 = vld [vmem:[%s21884_s20 + $0x238] sm:$0xf] }
  0x4b   : >> { %472 = vst [vmem:[%s21880_s17 + $0x238] sm:$0xf] %v471_v29  ;;  %v475_v31 = vld [vmem:[%s21884_s20 + $0x23c] sm:$0xf]  ;;  %v477_v32 = vld [vmem:[%s21884_s20 + $0x240] sm:$0xf] }
  0x4c   : >> { %474 = vst [vmem:[%s21880_s17 + $0x240] sm:$0xf] %v473_v30  ;;  %476 = vst [vmem:[%s21880_s17 + $0x248] sm:$0xf] %v475_v31  ;;  %v479_v33 = vld [vmem:[%s21884_s20 + $0x244] sm:$0xf] }
  0x4d   : >> { %478 = vst [vmem:[%s21880_s17 + $0x250] sm:$0xf] %v477_v32  ;;  %v481_v34 = vld [vmem:[%s21884_s20 + $0x248] sm:$0xf]  ;;  %v483_v35 = vld [vmem:[%s21884_s20 + $0x24c] sm:$0xf] }
  0x4e   : >> { %480 = vst [vmem:[%s21880_s17 + $0x258] sm:$0xf] %v479_v33  ;;  %482 = vst [vmem:[%s21880_s17 + $0x260] sm:$0xf] %v481_v34  ;;  %v485_v36 = vld [vmem:[%s21884_s20 + $0x250] sm:$0xf] }
  0x4f   : >> { %484 = vst [vmem:[%s21880_s17 + $0x268] sm:$0xf] %v483_v35  ;;  %v487_v37 = vld [vmem:[%s21884_s20 + $0x254] sm:$0xf]  ;;  %v489_v38 = vld [vmem:[%s21884_s20 + $0x280] sm:$0xf] }
  0x50   : >> { %486 = vst [vmem:[%s21880_s17 + $0x270] sm:$0xf] %v485_v36  ;;  %488 = vst [vmem:[%s21880_s17 + $0x278] sm:$0xf] %v487_v37  ;;  %v491_v39 = vld [vmem:[%s21884_s20 + $0x284] sm:$0xf] }
  0x51   : >> { %490 = vst [vmem:[%s21880_s17 + $0x280] sm:$0xf] %v489_v38  ;;  %v493_v40 = vld [vmem:[%s21884_s20 + $0x288] sm:$0xf]  ;;  %v495_v41 = vld [vmem:[%s21884_s20 + $0x28c] sm:$0xf] }
  0x52   : >> { %492 = vst [vmem:[%s21880_s17 + $0x288] sm:$0xf] %v491_v39  ;;  %494 = vst [vmem:[%s21880_s17 + $0x290] sm:$0xf] %v493_v40  ;;  %v497_v42 = vld [vmem:[%s21884_s20 + $0x290] sm:$0xf] }
  0x53   : >> { %496 = vst [vmem:[%s21880_s17 + $0x298] sm:$0xf] %v495_v41  ;;  %v499_v43 = vld [vmem:[%s21884_s20 + $0x294] sm:$0xf]  ;;  %v501_v44 = vld [vmem:[%s21884_s20 + $0x298] sm:$0xf] }
  0x54   : >> { %498 = vst [vmem:[%s21880_s17 + $0x2a0] sm:$0xf] %v497_v42  ;;  %500 = vst [vmem:[%s21880_s17 + $0x2a8] sm:$0xf] %v499_v43  ;;  %v503_v45 = vld [vmem:[%s21884_s20 + $0x29c] sm:$0xf] }
  0x55   : >> { %502 = vst [vmem:[%s21880_s17 + $0x2b0] sm:$0xf] %v501_v44  ;;  %v505_v46 = vld [vmem:[%s21884_s20 + $0x2a0] sm:$0xf]  ;;  %v507_v47 = vld [vmem:[%s21884_s20 + $0x2a4] sm:$0xf] }
  0x56   : >> { %504 = vst [vmem:[%s21880_s17 + $0x2b8] sm:$0xf] %v503_v45  ;;  %506 = vst [vmem:[%s21880_s17 + $0x2c0] sm:$0xf] %v505_v46  ;;  %v509_v48 = vld [vmem:[%s21884_s20 + $0x2d0] sm:$0xf] }
  0x57   : >> { %508 = vst [vmem:[%s21880_s17 + $0x2c8] sm:$0xf] %v507_v47  ;;  %v511_v49 = vld [vmem:[%s21884_s20 + $0x2d4] sm:$0xf]  ;;  %v513_v50 = vld [vmem:[%s21884_s20 + $0x2d8] sm:$0xf] }
  0x58   : >> { %510 = vst [vmem:[%s21880_s17 + $0x2d0] sm:$0xf] %v509_v48  ;;  %512 = vst [vmem:[%s21880_s17 + $0x2d8] sm:$0xf] %v511_v49  ;;  %v515_v51 = vld [vmem:[%s21884_s20 + $0x2dc] sm:$0xf] }
  0x59   : >> { %514 = vst [vmem:[%s21880_s17 + $0x2e0] sm:$0xf] %v513_v50  ;;  %v517_v52 = vld [vmem:[%s21884_s20 + $0x2e0] sm:$0xf]  ;;  %v519_v53 = vld [vmem:[%s21884_s20 + $0x2e4] sm:$0xf] }
  0x5a   : >> { %516 = vst [vmem:[%s21880_s17 + $0x2e8] sm:$0xf] %v515_v51  ;;  %518 = vst [vmem:[%s21880_s17 + $0x2f0] sm:$0xf] %v517_v52  ;;  %v521_v54 = vld [vmem:[%s21884_s20 + $0x2e8] sm:$0xf] }
  0x5b   : >> { %520 = vst [vmem:[%s21880_s17 + $0x2f8] sm:$0xf] %v519_v53  ;;  %v523_v55 = vld [vmem:[%s21884_s20 + $0x2ec] sm:$0xf]  ;;  %v525_v56 = vld [vmem:[%s21884_s20 + $0x2f0] sm:$0xf] }
  0x5c   : >> { %522 = vst [vmem:[%s21880_s17 + $0x300] sm:$0xf] %v521_v54  ;;  %524 = vst [vmem:[%s21880_s17 + $0x308] sm:$0xf] %v523_v55  ;;  %v527_v57 = vld [vmem:[%s21884_s20 + $0x2f4] sm:$0xf] }
  0x5d   : >> { %526 = vst [vmem:[%s21880_s17 + $0x310] sm:$0xf] %v525_v56  ;;  %v529_v58 = vld [vmem:[%s21884_s20 + $0x320] sm:$0xf]  ;;  %v531_v59 = vld [vmem:[%s21884_s20 + $0x324] sm:$0xf] }
  0x5e   : >> { %528 = vst [vmem:[%s21880_s17 + $0x318] sm:$0xf] %v527_v57  ;;  %530 = vst [vmem:[%s21880_s17 + $0x320] sm:$0xf] %v529_v58  ;;  %v533_v60 = vld [vmem:[%s21884_s20 + $0x328] sm:$0xf] }
  0x5f   : >> { %532 = vst [vmem:[%s21880_s17 + $0x328] sm:$0xf] %v531_v59  ;;  %v535_v61 = vld [vmem:[%s21884_s20 + $0x32c] sm:$0xf]  ;;  %v537_v62 = vld [vmem:[%s21884_s20 + $0x330] sm:$0xf] }
  0x60   : >> { %534 = vst [vmem:[%s21880_s17 + $0x330] sm:$0xf] %v533_v60  ;;  %536 = vst [vmem:[%s21880_s17 + $0x338] sm:$0xf] %v535_v61  ;;  %v539_v63 = vld [vmem:[%s21884_s20 + $0x334] sm:$0xf] }
  0x61   : >> { %538 = vst [vmem:[%s21880_s17 + $0x340] sm:$0xf] %v537_v62  ;;  %v541_v0 = vld [vmem:[%s21884_s20 + $0x338] sm:$0xf]  ;;  %v543_v1 = vld [vmem:[%s21884_s20 + $0x33c] sm:$0xf] }
  0x62   : >> { %540 = vst [vmem:[%s21880_s17 + $0x348] sm:$0xf] %v539_v63  ;;  %542 = vst [vmem:[%s21880_s17 + $0x350] sm:$0xf] %v541_v0  ;;  %v545_v2 = vld [vmem:[%s21884_s20 + $0x340] sm:$0xf] }
  0x63   : >> { %544 = vst [vmem:[%s21880_s17 + $0x358] sm:$0xf] %v543_v1  ;;  %v547_v3 = vld [vmem:[%s21884_s20 + $0x344] sm:$0xf]  ;;  %v549_v4 = vld [vmem:[%s21884_s20 + $0x370] sm:$0xf] }
  0x64   : >> { %546 = vst [vmem:[%s21880_s17 + $0x360] sm:$0xf] %v545_v2  ;;  %548 = vst [vmem:[%s21880_s17 + $0x368] sm:$0xf] %v547_v3  ;;  %v551_v5 = vld [vmem:[%s21884_s20 + $0x374] sm:$0xf] }
  0x65   : >> { %550 = vst [vmem:[%s21880_s17 + $0x370] sm:$0xf] %v549_v4  ;;  %v553_v6 = vld [vmem:[%s21884_s20 + $0x378] sm:$0xf]  ;;  %v555_v7 = vld [vmem:[%s21884_s20 + $0x37c] sm:$0xf] }
  0x66   : >> { %552 = vst [vmem:[%s21880_s17 + $0x378] sm:$0xf] %v551_v5  ;;  %554 = vst [vmem:[%s21880_s17 + $0x380] sm:$0xf] %v553_v6  ;;  %v557_v8 = vld [vmem:[%s21884_s20 + $0x380] sm:$0xf] }
  0x67   : >> { %556 = vst [vmem:[%s21880_s17 + $0x388] sm:$0xf] %v555_v7  ;;  %v559_v9 = vld [vmem:[%s21884_s20 + $0x384] sm:$0xf]  ;;  %v561_v10 = vld [vmem:[%s21884_s20 + $0x388] sm:$0xf] }
  0x68   : >> { %558 = vst [vmem:[%s21880_s17 + $0x390] sm:$0xf] %v557_v8  ;;  %560 = vst [vmem:[%s21880_s17 + $0x398] sm:$0xf] %v559_v9  ;;  %v563_v11 = vld [vmem:[%s21884_s20 + $0x38c] sm:$0xf] }
  0x69   : >> { %562 = vst [vmem:[%s21880_s17 + $0x3a0] sm:$0xf] %v561_v10  ;;  %v565_v12 = vld [vmem:[%s21884_s20 + $0x390] sm:$0xf]  ;;  %v567_v13 = vld [vmem:[%s21884_s20 + $0x394] sm:$0xf] }
  0x6a   : >> { %564 = vst [vmem:[%s21880_s17 + $0x3a8] sm:$0xf] %v563_v11  ;;  %566 = vst [vmem:[%s21880_s17 + $0x3b0] sm:$0xf] %v565_v12  ;;  %v569_v14 = vld [vmem:[%s21884_s20 + $0x3c0] sm:$0xf] }
  0x6b   : >> { %568 = vst [vmem:[%s21880_s17 + $0x3b8] sm:$0xf] %v567_v13  ;;  %v571_v15 = vld [vmem:[%s21884_s20 + $0x3c4] sm:$0xf]  ;;  %v573_v16 = vld [vmem:[%s21884_s20 + $0x3c8] sm:$0xf] }
  0x6c   : >> { %570 = vst [vmem:[%s21880_s17 + $0x3c0] sm:$0xf] %v569_v14  ;;  %572 = vst [vmem:[%s21880_s17 + $0x3c8] sm:$0xf] %v571_v15  ;;  %v575_v17 = vld [vmem:[%s21884_s20 + $0x3cc] sm:$0xf] }
  0x6d   : >> { %574 = vst [vmem:[%s21880_s17 + $0x3d0] sm:$0xf] %v573_v16  ;;  %v577_v18 = vld [vmem:[%s21884_s20 + $0x3d0] sm:$0xf]  ;;  %v579_v19 = vld [vmem:[%s21884_s20 + $0x3d4] sm:$0xf] }
  0x6e   : >> { %576 = vst [vmem:[%s21880_s17 + $0x3d8] sm:$0xf] %v575_v17  ;;  %578 = vst [vmem:[%s21880_s17 + $0x3e0] sm:$0xf] %v577_v18  ;;  %v581_v20 = vld [vmem:[%s21884_s20 + $0x3d8] sm:$0xf] }
  0x6f   : >> { %580 = vst [vmem:[%s21880_s17 + $0x3e8] sm:$0xf] %v579_v19  ;;  %v583_v21 = vld [vmem:[%s21884_s20 + $0x3dc] sm:$0xf]  ;;  %v585_v22 = vld [vmem:[%s21884_s20 + $0x3e0] sm:$0xf] }
  0x70   : >> { %582 = vst [vmem:[%s21880_s17 + $0x3f0] sm:$0xf] %v581_v20  ;;  %584 = vst [vmem:[%s21880_s17 + $0x3f8] sm:$0xf] %v583_v21  ;;  %v587_v23 = vld [vmem:[%s21884_s20 + $0x3e4] sm:$0xf] }
  0x71   : >> { %586 = vst [vmem:[%s21880_s17 + $0x400] sm:$0xf] %v585_v22  ;;  %v589_v24 = vld [vmem:[%s21884_s20 + $0x410] sm:$0xf]  ;;  %v591_v25 = vld [vmem:[%s21884_s20 + $0x414] sm:$0xf] }
  0x72   : >> { %588 = vst [vmem:[%s21880_s17 + $0x408] sm:$0xf] %v587_v23  ;;  %590 = vst [vmem:[%s21880_s17 + $0x410] sm:$0xf] %v589_v24  ;;  %v593_v26 = vld [vmem:[%s21884_s20 + $0x418] sm:$0xf] }
  0x73   : >> { %592 = vst [vmem:[%s21880_s17 + $0x418] sm:$0xf] %v591_v25  ;;  %v595_v27 = vld [vmem:[%s21884_s20 + $0x41c] sm:$0xf]  ;;  %v597_v28 = vld [vmem:[%s21884_s20 + $0x420] sm:$0xf] }
  0x74   : >> { %594 = vst [vmem:[%s21880_s17 + $0x420] sm:$0xf] %v593_v26  ;;  %596 = vst [vmem:[%s21880_s17 + $0x428] sm:$0xf] %v595_v27  ;;  %v599_v29 = vld [vmem:[%s21884_s20 + $0x424] sm:$0xf] }
  0x75   : >> { %598 = vst [vmem:[%s21880_s17 + $0x430] sm:$0xf] %v597_v28  ;;  %v601_v30 = vld [vmem:[%s21884_s20 + $0x428] sm:$0xf]  ;;  %v603_v31 = vld [vmem:[%s21884_s20 + $0x42c] sm:$0xf] }
  0x76   : >> { %600 = vst [vmem:[%s21880_s17 + $0x438] sm:$0xf] %v599_v29  ;;  %602 = vst [vmem:[%s21880_s17 + $0x440] sm:$0xf] %v601_v30  ;;  %v605_v32 = vld [vmem:[%s21884_s20 + $0x430] sm:$0xf] }
  0x77   : >> { %604 = vst [vmem:[%s21880_s17 + $0x448] sm:$0xf] %v603_v31  ;;  %v607_v33 = vld [vmem:[%s21884_s20 + $0x434] sm:$0xf]  ;;  %v609_v34 = vld [vmem:[%s21884_s20 + $0x460] sm:$0xf] }
  0x78   : >> { %606 = vst [vmem:[%s21880_s17 + $0x450] sm:$0xf] %v605_v32  ;;  %608 = vst [vmem:[%s21880_s17 + $0x458] sm:$0xf] %v607_v33  ;;  %v611_v35 = vld [vmem:[%s21884_s20 + $0x464] sm:$0xf] }
  0x79   : >> { %610 = vst [vmem:[%s21880_s17 + $0x460] sm:$0xf] %v609_v34  ;;  %v613_v36 = vld [vmem:[%s21884_s20 + $0x468] sm:$0xf]  ;;  %v615_v37 = vld [vmem:[%s21884_s20 + $0x46c] sm:$0xf] }
  0x7a   : >> { %612 = vst [vmem:[%s21880_s17 + $0x468] sm:$0xf] %v611_v35  ;;  %614 = vst [vmem:[%s21880_s17 + $0x470] sm:$0xf] %v613_v36  ;;  %v617_v38 = vld [vmem:[%s21884_s20 + $0x470] sm:$0xf] }
  0x7b   : >> { %616 = vst [vmem:[%s21880_s17 + $0x478] sm:$0xf] %v615_v37  ;;  %v619_v39 = vld [vmem:[%s21884_s20 + $0x474] sm:$0xf]  ;;  %v621_v40 = vld [vmem:[%s21884_s20 + $0x478] sm:$0xf] }
  0x7c   : >> { %618 = vst [vmem:[%s21880_s17 + $0x480] sm:$0xf] %v617_v38  ;;  %620 = vst [vmem:[%s21880_s17 + $0x488] sm:$0xf] %v619_v39  ;;  %v623_v41 = vld [vmem:[%s21884_s20 + $0x47c] sm:$0xf] }
  0x7d   : >> { %622 = vst [vmem:[%s21880_s17 + $0x490] sm:$0xf] %v621_v40  ;;  %v625_v42 = vld [vmem:[%s21884_s20 + $0x480] sm:$0xf]  ;;  %v627_v43 = vld [vmem:[%s21884_s20 + $0x484] sm:$0xf] }
  0x7e   : >> { %624 = vst [vmem:[%s21880_s17 + $0x498] sm:$0xf] %v623_v41  ;;  %626 = vst [vmem:[%s21880_s17 + $0x4a0] sm:$0xf] %v625_v42  ;;  %v629_v44 = vld [vmem:[%s21884_s20 + $0x4b0] sm:$0xf] }
  0x7f   : >> { %628 = vst [vmem:[%s21880_s17 + $0x4a8] sm:$0xf] %v627_v43  ;;  %v631_v45 = vld [vmem:[%s21884_s20 + $0x4b4] sm:$0xf]  ;;  %v633_v46 = vld [vmem:[%s21884_s20 + $0x4b8] sm:$0xf] }
  0x80   : >> { %630 = vst [vmem:[%s21880_s17 + $0x4b0] sm:$0xf] %v629_v44  ;;  %632 = vst [vmem:[%s21880_s17 + $0x4b8] sm:$0xf] %v631_v45  ;;  %v635_v47 = vld [vmem:[%s21884_s20 + $0x4bc] sm:$0xf] }
  0x81   : >> { %634 = vst [vmem:[%s21880_s17 + $0x4c0] sm:$0xf] %v633_v46  ;;  %v637_v48 = vld [vmem:[%s21884_s20 + $0x4c0] sm:$0xf]  ;;  %v639_v49 = vld [vmem:[%s21884_s20 + $0x4c4] sm:$0xf] }
  0x82   : >> { %636 = vst [vmem:[%s21880_s17 + $0x4c8] sm:$0xf] %v635_v47  ;;  %638 = vst [vmem:[%s21880_s17 + $0x4d0] sm:$0xf] %v637_v48  ;;  %v641_v50 = vld [vmem:[%s21884_s20 + $0x4c8] sm:$0xf] }
  0x83   : >> { %640 = vst [vmem:[%s21880_s17 + $0x4d8] sm:$0xf] %v639_v49  ;;  %v643_v51 = vld [vmem:[%s21884_s20 + $0x4cc] sm:$0xf]  ;;  %v645_v52 = vld [vmem:[%s21884_s20 + $0x4d0] sm:$0xf] }
  0x84   : >> { %642 = vst [vmem:[%s21880_s17 + $0x4e0] sm:$0xf] %v641_v50  ;;  %644 = vst [vmem:[%s21880_s17 + $0x4e8] sm:$0xf] %v643_v51  ;;  %v647_v53 = vld [vmem:[%s21884_s20 + $0x4d4] sm:$0xf] }
  0x85   : >> { %646 = vst [vmem:[%s21880_s17 + $0x4f0] sm:$0xf] %v645_v52  ;;  %v649_v54 = vld [vmem:[%s21884_s20 + $0x500] sm:$0xf]  ;;  %v651_v55 = vld [vmem:[%s21884_s20 + $0x504] sm:$0xf] }
  0x86   : >> { %648 = vst [vmem:[%s21880_s17 + $0x4f8] sm:$0xf] %v647_v53  ;;  %650 = vst [vmem:[%s21880_s17 + $0x500] sm:$0xf] %v649_v54  ;;  %v653_v56 = vld [vmem:[%s21884_s20 + $0x508] sm:$0xf] }
  0x87   : >> { %652 = vst [vmem:[%s21880_s17 + $0x508] sm:$0xf] %v651_v55  ;;  %v655_v57 = vld [vmem:[%s21884_s20 + $0x50c] sm:$0xf]  ;;  %v657_v58 = vld [vmem:[%s21884_s20 + $0x510] sm:$0xf] }
  0x88   : >> { %654 = vst [vmem:[%s21880_s17 + $0x510] sm:$0xf] %v653_v56  ;;  %656 = vst [vmem:[%s21880_s17 + $0x518] sm:$0xf] %v655_v57  ;;  %v659_v59 = vld [vmem:[%s21884_s20 + $0x514] sm:$0xf] }
  0x89   : >> { %658 = vst [vmem:[%s21880_s17 + $0x520] sm:$0xf] %v657_v58  ;;  %v661_v60 = vld [vmem:[%s21884_s20 + $0x518] sm:$0xf]  ;;  %v663_v61 = vld [vmem:[%s21884_s20 + $0x51c] sm:$0xf] }
  0x8a   : >> { %660 = vst [vmem:[%s21880_s17 + $0x528] sm:$0xf] %v659_v59  ;;  %662 = vst [vmem:[%s21880_s17 + $0x530] sm:$0xf] %v661_v60  ;;  %v665_v62 = vld [vmem:[%s21884_s20 + $0x520] sm:$0xf] }
  0x8b   : >> { %664 = vst [vmem:[%s21880_s17 + $0x538] sm:$0xf] %v663_v61  ;;  %v667_v63 = vld [vmem:[%s21884_s20 + $0x524] sm:$0xf]  ;;  %v669_v0 = vld [vmem:[%s21884_s20 + $0x550] sm:$0xf] }
  0x8c   : >> { %666 = vst [vmem:[%s21880_s17 + $0x540] sm:$0xf] %v665_v62  ;;  %668 = vst [vmem:[%s21880_s17 + $0x548] sm:$0xf] %v667_v63  ;;  %v671_v1 = vld [vmem:[%s21884_s20 + $0x554] sm:$0xf] }
  0x8d   : >> { %670 = vst [vmem:[%s21880_s17 + $0x550] sm:$0xf] %v669_v0  ;;  %v673_v2 = vld [vmem:[%s21884_s20 + $0x558] sm:$0xf]  ;;  %v675_v3 = vld [vmem:[%s21884_s20 + $0x55c] sm:$0xf] }
  0x8e   : >> { %672 = vst [vmem:[%s21880_s17 + $0x558] sm:$0xf] %v671_v1  ;;  %674 = vst [vmem:[%s21880_s17 + $0x560] sm:$0xf] %v673_v2  ;;  %v677_v4 = vld [vmem:[%s21884_s20 + $0x560] sm:$0xf] }
  0x8f   : >> { %676 = vst [vmem:[%s21880_s17 + $0x568] sm:$0xf] %v675_v3  ;;  %v679_v5 = vld [vmem:[%s21884_s20 + $0x564] sm:$0xf]  ;;  %v681_v6 = vld [vmem:[%s21884_s20 + $0x568] sm:$0xf] }
  0x90   : >> { %678 = vst [vmem:[%s21880_s17 + $0x570] sm:$0xf] %v677_v4  ;;  %680 = vst [vmem:[%s21880_s17 + $0x578] sm:$0xf] %v679_v5  ;;  %v683_v7 = vld [vmem:[%s21884_s20 + $0x56c] sm:$0xf] }
  0x91   : >> { %682 = vst [vmem:[%s21880_s17 + $0x580] sm:$0xf] %v681_v6  ;;  %v685_v8 = vld [vmem:[%s21884_s20 + $0x570] sm:$0xf]  ;;  %v687_v9 = vld [vmem:[%s21884_s20 + $0x574] sm:$0xf] }
  0x92   : >> { %684 = vst [vmem:[%s21880_s17 + $0x588] sm:$0xf] %v683_v7  ;;  %686 = vst [vmem:[%s21880_s17 + $0x590] sm:$0xf] %v685_v8  ;;  %v689_v10 = vld [vmem:[%s21884_s20 + $0x5a0] sm:$0xf] }
  0x93   : >> { %688 = vst [vmem:[%s21880_s17 + $0x598] sm:$0xf] %v687_v9  ;;  %v691_v11 = vld [vmem:[%s21884_s20 + $0x5a4] sm:$0xf]  ;;  %v693_v12 = vld [vmem:[%s21884_s20 + $0x5a8] sm:$0xf] }
  0x94   : >> { %690 = vst [vmem:[%s21880_s17 + $0x5a0] sm:$0xf] %v689_v10  ;;  %692 = vst [vmem:[%s21880_s17 + $0x5a8] sm:$0xf] %v691_v11  ;;  %v695_v13 = vld [vmem:[%s21884_s20 + $0x5ac] sm:$0xf] }
  0x95   : >> { %694 = vst [vmem:[%s21880_s17 + $0x5b0] sm:$0xf] %v693_v12  ;;  %v697_v14 = vld [vmem:[%s21884_s20 + $0x5b0] sm:$0xf]  ;;  %v699_v15 = vld [vmem:[%s21884_s20 + $0x5b4] sm:$0xf] }
  0x96   : >> { %696 = vst [vmem:[%s21880_s17 + $0x5b8] sm:$0xf] %v695_v13  ;;  %698 = vst [vmem:[%s21880_s17 + $0x5c0] sm:$0xf] %v697_v14  ;;  %v701_v16 = vld [vmem:[%s21884_s20 + $0x5b8] sm:$0xf] }
  0x97   : >> { %700 = vst [vmem:[%s21880_s17 + $0x5c8] sm:$0xf] %v699_v15  ;;  %v703_v17 = vld [vmem:[%s21884_s20 + $0x5bc] sm:$0xf]  ;;  %v705_v18 = vld [vmem:[%s21884_s20 + $0x5c0] sm:$0xf] }
  0x98   : >> { %702 = vst [vmem:[%s21880_s17 + $0x5d0] sm:$0xf] %v701_v16  ;;  %704 = vst [vmem:[%s21880_s17 + $0x5d8] sm:$0xf] %v703_v17  ;;  %v707_v19 = vld [vmem:[%s21884_s20 + $0x5c4] sm:$0xf] }
  0x99   : >> { %706 = vst [vmem:[%s21880_s17 + $0x5e0] sm:$0xf] %v705_v18  ;;  %v709_v20 = vld [vmem:[%s21884_s20 + $0x5f0] sm:$0xf]  ;;  %v711_v21 = vld [vmem:[%s21884_s20 + $0x5f4] sm:$0xf] }
  0x9a   : >> { %708 = vst [vmem:[%s21880_s17 + $0x5e8] sm:$0xf] %v707_v19  ;;  %710 = vst [vmem:[%s21880_s17 + $0x5f0] sm:$0xf] %v709_v20  ;;  %v713_v22 = vld [vmem:[%s21884_s20 + $0x5f8] sm:$0xf] }
  0x9b   : >> { %712 = vst [vmem:[%s21880_s17 + $0x5f8] sm:$0xf] %v711_v21  ;;  %v715_v23 = vld [vmem:[%s21884_s20 + $0x5fc] sm:$0xf]  ;;  %v717_v24 = vld [vmem:[%s21884_s20 + $0x600] sm:$0xf] }
  0x9c   : >> { %714 = vst [vmem:[%s21880_s17 + $0x600] sm:$0xf] %v713_v22  ;;  %716 = vst [vmem:[%s21880_s17 + $0x608] sm:$0xf] %v715_v23  ;;  %v719_v25 = vld [vmem:[%s21884_s20 + $0x604] sm:$0xf] }
  0x9d   : >> { %718 = vst [vmem:[%s21880_s17 + $0x610] sm:$0xf] %v717_v24  ;;  %v721_v26 = vld [vmem:[%s21884_s20 + $0x608] sm:$0xf]  ;;  %v723_v27 = vld [vmem:[%s21884_s20 + $0x60c] sm:$0xf] }
  0x9e   : >> { %720 = vst [vmem:[%s21880_s17 + $0x618] sm:$0xf] %v719_v25  ;;  %722 = vst [vmem:[%s21880_s17 + $0x620] sm:$0xf] %v721_v26  ;;  %v725_v28 = vld [vmem:[%s21884_s20 + $0x610] sm:$0xf] }
  0x9f   : >> { %724 = vst [vmem:[%s21880_s17 + $0x628] sm:$0xf] %v723_v27  ;;  %v727_v29 = vld [vmem:[%s21884_s20 + $0x614] sm:$0xf]  ;;  %v729_v30 = vld [vmem:[%s21884_s20 + $0x640] sm:$0xf] }
  0xa0   : >> { %726 = vst [vmem:[%s21880_s17 + $0x630] sm:$0xf] %v725_v28  ;;  %728 = vst [vmem:[%s21880_s17 + $0x638] sm:$0xf] %v727_v29  ;;  %v731_v31 = vld [vmem:[%s21884_s20 + $0x644] sm:$0xf] }
  0xa1   : >> { %730 = vst [vmem:[%s21880_s17 + $0x640] sm:$0xf] %v729_v30  ;;  %v733_v32 = vld [vmem:[%s21884_s20 + $0x648] sm:$0xf]  ;;  %v735_v33 = vld [vmem:[%s21884_s20 + $0x64c] sm:$0xf] }
  0xa2   : >> { %732 = vst [vmem:[%s21880_s17 + $0x648] sm:$0xf] %v731_v31  ;;  %734 = vst [vmem:[%s21880_s17 + $0x650] sm:$0xf] %v733_v32  ;;  %v737_v34 = vld [vmem:[%s21884_s20 + $0x650] sm:$0xf] }
  0xa3   : >> { %736 = vst [vmem:[%s21880_s17 + $0x658] sm:$0xf] %v735_v33  ;;  %v739_v35 = vld [vmem:[%s21884_s20 + $0x654] sm:$0xf]  ;;  %v741_v36 = vld [vmem:[%s21884_s20 + $0x658] sm:$0xf] }
  0xa4   : >> { %738 = vst [vmem:[%s21880_s17 + $0x660] sm:$0xf] %v737_v34  ;;  %740 = vst [vmem:[%s21880_s17 + $0x668] sm:$0xf] %v739_v35  ;;  %v743_v37 = vld [vmem:[%s21884_s20 + $0x65c] sm:$0xf] }
  0xa5   : >> { %742 = vst [vmem:[%s21880_s17 + $0x670] sm:$0xf] %v741_v36  ;;  %v745_v38 = vld [vmem:[%s21884_s20 + $0x660] sm:$0xf]  ;;  %v747_v39 = vld [vmem:[%s21884_s20 + $0x664] sm:$0xf] }
  0xa6   : >> { %744 = vst [vmem:[%s21880_s17 + $0x678] sm:$0xf] %v743_v37  ;;  %746 = vst [vmem:[%s21880_s17 + $0x680] sm:$0xf] %v745_v38  ;;  %v749_v40 = vld [vmem:[%s21884_s20 + $0x690] sm:$0xf] }
  0xa7   : >> { %748 = vst [vmem:[%s21880_s17 + $0x688] sm:$0xf] %v747_v39  ;;  %v751_v41 = vld [vmem:[%s21884_s20 + $0x694] sm:$0xf]  ;;  %v753_v42 = vld [vmem:[%s21884_s20 + $0x698] sm:$0xf] }
  0xa8   : >> { %750 = vst [vmem:[%s21880_s17 + $0x690] sm:$0xf] %v749_v40  ;;  %752 = vst [vmem:[%s21880_s17 + $0x698] sm:$0xf] %v751_v41  ;;  %v755_v43 = vld [vmem:[%s21884_s20 + $0x69c] sm:$0xf] }
  0xa9   : >> { %754 = vst [vmem:[%s21880_s17 + $0x6a0] sm:$0xf] %v753_v42  ;;  %v757_v44 = vld [vmem:[%s21884_s20 + $0x6a0] sm:$0xf]  ;;  %v759_v45 = vld [vmem:[%s21884_s20 + $0x6a4] sm:$0xf] }
  0xaa   : >> { %756 = vst [vmem:[%s21880_s17 + $0x6a8] sm:$0xf] %v755_v43  ;;  %758 = vst [vmem:[%s21880_s17 + $0x6b0] sm:$0xf] %v757_v44  ;;  %v761_v46 = vld [vmem:[%s21884_s20 + $0x6a8] sm:$0xf] }
  0xab   : >> { %760 = vst [vmem:[%s21880_s17 + $0x6b8] sm:$0xf] %v759_v45  ;;  %v763_v47 = vld [vmem:[%s21884_s20 + $0x6ac] sm:$0xf]  ;;  %v765_v48 = vld [vmem:[%s21884_s20 + $0x6b0] sm:$0xf] }
  0xac   : >> { %762 = vst [vmem:[%s21880_s17 + $0x6c0] sm:$0xf] %v761_v46  ;;  %764 = vst [vmem:[%s21880_s17 + $0x6c8] sm:$0xf] %v763_v47  ;;  %v767_v49 = vld [vmem:[%s21884_s20 + $0x6b4] sm:$0xf] }
  0xad   : >> { %766 = vst [vmem:[%s21880_s17 + $0x6d0] sm:$0xf] %v765_v48  ;;  %v769_v50 = vld [vmem:[%s21884_s20 + $0x6e0] sm:$0xf]  ;;  %v771_v51 = vld [vmem:[%s21884_s20 + $0x6e4] sm:$0xf] }
  0xae   : >> { %768 = vst [vmem:[%s21880_s17 + $0x6d8] sm:$0xf] %v767_v49  ;;  %770 = vst [vmem:[%s21880_s17 + $0x6e0] sm:$0xf] %v769_v50  ;;  %v773_v52 = vld [vmem:[%s21884_s20 + $0x6e8] sm:$0xf] }
  0xaf   : >> { %772 = vst [vmem:[%s21880_s17 + $0x6e8] sm:$0xf] %v771_v51  ;;  %v775_v53 = vld [vmem:[%s21884_s20 + $0x6ec] sm:$0xf]  ;;  %v777_v54 = vld [vmem:[%s21884_s20 + $0x6f0] sm:$0xf] }
  0xb0   : >> { %774 = vst [vmem:[%s21880_s17 + $0x6f0] sm:$0xf] %v773_v52  ;;  %776 = vst [vmem:[%s21880_s17 + $0x6f8] sm:$0xf] %v775_v53  ;;  %v779_v55 = vld [vmem:[%s21884_s20 + $0x6f4] sm:$0xf] }
  0xb1   : >> { %778 = vst [vmem:[%s21880_s17 + $0x700] sm:$0xf] %v777_v54  ;;  %v781_v56 = vld [vmem:[%s21884_s20 + $0x6f8] sm:$0xf]  ;;  %v783_v57 = vld [vmem:[%s21884_s20 + $0x6fc] sm:$0xf] }
  0xb2   : >> { %780 = vst [vmem:[%s21880_s17 + $0x708] sm:$0xf] %v779_v55  ;;  %782 = vst [vmem:[%s21880_s17 + $0x710] sm:$0xf] %v781_v56  ;;  %v785_v58 = vld [vmem:[%s21884_s20 + $0x700] sm:$0xf] }
  0xb3   : >> { %784 = vst [vmem:[%s21880_s17 + $0x718] sm:$0xf] %v783_v57  ;;  %v787_v59 = vld [vmem:[%s21884_s20 + $0x704] sm:$0xf]  ;;  %v789_v60 = vld [vmem:[%s21884_s20 + $0x730] sm:$0xf] }
  0xb4   : >> { %786 = vst [vmem:[%s21880_s17 + $0x720] sm:$0xf] %v785_v58  ;;  %788 = vst [vmem:[%s21880_s17 + $0x728] sm:$0xf] %v787_v59  ;;  %v791_v61 = vld [vmem:[%s21884_s20 + $0x734] sm:$0xf] }
  0xb5   : >> { %790 = vst [vmem:[%s21880_s17 + $0x730] sm:$0xf] %v789_v60  ;;  %v793_v62 = vld [vmem:[%s21884_s20 + $0x738] sm:$0xf]  ;;  %v795_v63 = vld [vmem:[%s21884_s20 + $0x73c] sm:$0xf] }
  0xb6   : >> { %792 = vst [vmem:[%s21880_s17 + $0x738] sm:$0xf] %v791_v61  ;;  %794 = vst [vmem:[%s21880_s17 + $0x740] sm:$0xf] %v793_v62  ;;  %v797_v0 = vld [vmem:[%s21884_s20 + $0x740] sm:$0xf] }
  0xb7   : >> { %796 = vst [vmem:[%s21880_s17 + $0x748] sm:$0xf] %v795_v63  ;;  %v799_v1 = vld [vmem:[%s21884_s20 + $0x744] sm:$0xf]  ;;  %v801_v2 = vld [vmem:[%s21884_s20 + $0x748] sm:$0xf] }
  0xb8   : >> { %798 = vst [vmem:[%s21880_s17 + $0x750] sm:$0xf] %v797_v0  ;;  %800 = vst [vmem:[%s21880_s17 + $0x758] sm:$0xf] %v799_v1  ;;  %v803_v3 = vld [vmem:[%s21884_s20 + $0x74c] sm:$0xf] }
  0xb9   : >> { %802 = vst [vmem:[%s21880_s17 + $0x760] sm:$0xf] %v801_v2  ;;  %v805_v4 = vld [vmem:[%s21884_s20 + $0x750] sm:$0xf]  ;;  %v807_v5 = vld [vmem:[%s21884_s20 + $0x754] sm:$0xf] }
  0xba   : >> { %804 = vst [vmem:[%s21880_s17 + $0x768] sm:$0xf] %v803_v3  ;;  %806 = vst [vmem:[%s21880_s17 + $0x770] sm:$0xf] %v805_v4  ;;  %v809_v6 = vld [vmem:[%s21884_s20 + $0x780] sm:$0xf] }
  0xbb   : >> { %808 = vst [vmem:[%s21880_s17 + $0x778] sm:$0xf] %v807_v5  ;;  %v811_v7 = vld [vmem:[%s21884_s20 + $0x784] sm:$0xf]  ;;  %v813_v8 = vld [vmem:[%s21884_s20 + $0x788] sm:$0xf] }
  0xbc   : >> { %810 = vst [vmem:[%s21880_s17 + $0x780] sm:$0xf] %v809_v6  ;;  %812 = vst [vmem:[%s21880_s17 + $0x788] sm:$0xf] %v811_v7  ;;  %v815_v9 = vld [vmem:[%s21884_s20 + $0x78c] sm:$0xf] }
  0xbd   : >> { %814 = vst [vmem:[%s21880_s17 + $0x790] sm:$0xf] %v813_v8  ;;  %v817_v10 = vld [vmem:[%s21884_s20 + $0x790] sm:$0xf]  ;;  %v819_v11 = vld [vmem:[%s21884_s20 + $0x794] sm:$0xf] }
  0xbe   : >> { %816 = vst [vmem:[%s21880_s17 + $0x798] sm:$0xf] %v815_v9  ;;  %818 = vst [vmem:[%s21880_s17 + $0x7a0] sm:$0xf] %v817_v10  ;;  %v821_v12 = vld [vmem:[%s21884_s20 + $0x798] sm:$0xf] }
  0xbf   : >> { %820 = vst [vmem:[%s21880_s17 + $0x7a8] sm:$0xf] %v819_v11  ;;  %v823_v13 = vld [vmem:[%s21884_s20 + $0x79c] sm:$0xf]  ;;  %v825_v14 = vld [vmem:[%s21884_s20 + $0x7a0] sm:$0xf] }
  0xc0   : >> { %822 = vst [vmem:[%s21880_s17 + $0x7b0] sm:$0xf] %v821_v12  ;;  %824 = vst [vmem:[%s21880_s17 + $0x7b8] sm:$0xf] %v823_v13  ;;  %v827_v15 = vld [vmem:[%s21884_s20 + $0x7a4] sm:$0xf] }
  0xc1   : >> { %826 = vst [vmem:[%s21880_s17 + $0x7c0] sm:$0xf] %v825_v14  ;;  %v829_v16 = vld [vmem:[%s21884_s20 + $0x7d0] sm:$0xf]  ;;  %v831_v17 = vld [vmem:[%s21884_s20 + $0x7d4] sm:$0xf] }
  0xc2   : >> { %828 = vst [vmem:[%s21880_s17 + $0x7c8] sm:$0xf] %v827_v15  ;;  %830 = vst [vmem:[%s21880_s17 + $0x7d0] sm:$0xf] %v829_v16  ;;  %v833_v18 = vld [vmem:[%s21884_s20 + $0x7d8] sm:$0xf] }
  0xc3   : >> { %832 = vst [vmem:[%s21880_s17 + $0x7d8] sm:$0xf] %v831_v17  ;;  %v835_v19 = vld [vmem:[%s21884_s20 + $0x7dc] sm:$0xf]  ;;  %v837_v20 = vld [vmem:[%s21884_s20 + $0x7e0] sm:$0xf] }
  0xc4   : >> { %834 = vst [vmem:[%s21880_s17 + $0x7e0] sm:$0xf] %v833_v18  ;;  %836 = vst [vmem:[%s21880_s17 + $0x7e8] sm:$0xf] %v835_v19  ;;  %v839_v21 = vld [vmem:[%s21884_s20 + $0x7e4] sm:$0xf] }
  0xc5   : >> { %838 = vst [vmem:[%s21880_s17 + $0x7f0] sm:$0xf] %v837_v20  ;;  %v841_v22 = vld [vmem:[%s21884_s20 + $0x7e8] sm:$0xf]  ;;  %v843_v23 = vld [vmem:[%s21884_s20 + $0x7ec] sm:$0xf] }
  0xc6   : >> { %840 = vst [vmem:[%s21880_s17 + $0x7f8] sm:$0xf] %v839_v21  ;;  %842 = vst [vmem:[%s21880_s17 + $0x800] sm:$0xf] %v841_v22  ;;  %v845_v24 = vld [vmem:[%s21884_s20 + $0x7f0] sm:$0xf] }
  0xc7   : >> { %844 = vst [vmem:[%s21880_s17 + $0x808] sm:$0xf] %v843_v23  ;;  %v847_v25 = vld [vmem:[%s21884_s20 + $0x7f4] sm:$0xf]  ;;  %v849_v26 = vld [vmem:[%s21884_s20 + $0x820] sm:$0xf] }
  0xc8   : >> { %846 = vst [vmem:[%s21880_s17 + $0x810] sm:$0xf] %v845_v24  ;;  %848 = vst [vmem:[%s21880_s17 + $0x818] sm:$0xf] %v847_v25  ;;  %v851_v27 = vld [vmem:[%s21884_s20 + $0x824] sm:$0xf] }
  0xc9   : >> { %850 = vst [vmem:[%s21880_s17 + $0x820] sm:$0xf] %v849_v26  ;;  %v853_v28 = vld [vmem:[%s21884_s20 + $0x828] sm:$0xf]  ;;  %v855_v29 = vld [vmem:[%s21884_s20 + $0x82c] sm:$0xf] }
  0xca   : >> { %852 = vst [vmem:[%s21880_s17 + $0x828] sm:$0xf] %v851_v27  ;;  %854 = vst [vmem:[%s21880_s17 + $0x830] sm:$0xf] %v853_v28  ;;  %v857_v30 = vld [vmem:[%s21884_s20 + $0x830] sm:$0xf] }
  0xcb   : >> { %856 = vst [vmem:[%s21880_s17 + $0x838] sm:$0xf] %v855_v29  ;;  %v859_v31 = vld [vmem:[%s21884_s20 + $0x834] sm:$0xf]  ;;  %v861_v32 = vld [vmem:[%s21884_s20 + $0x838] sm:$0xf] }
  0xcc   : >> { %858 = vst [vmem:[%s21880_s17 + $0x840] sm:$0xf] %v857_v30  ;;  %860 = vst [vmem:[%s21880_s17 + $0x848] sm:$0xf] %v859_v31  ;;  %v863_v33 = vld [vmem:[%s21884_s20 + $0x83c] sm:$0xf] }
  0xcd   : >> { %862 = vst [vmem:[%s21880_s17 + $0x850] sm:$0xf] %v861_v32  ;;  %v865_v34 = vld [vmem:[%s21884_s20 + $0x840] sm:$0xf]  ;;  %v867_v35 = vld [vmem:[%s21884_s20 + $0x844] sm:$0xf] }
  0xce   : >> { %864 = vst [vmem:[%s21880_s17 + $0x858] sm:$0xf] %v863_v33  ;;  %866 = vst [vmem:[%s21880_s17 + $0x860] sm:$0xf] %v865_v34  ;;  %v869_v36 = vld [vmem:[%s21884_s20 + $0x870] sm:$0xf] }
  0xcf   : >> { %868 = vst [vmem:[%s21880_s17 + $0x868] sm:$0xf] %v867_v35  ;;  %v871_v37 = vld [vmem:[%s21884_s20 + $0x874] sm:$0xf]  ;;  %v873_v38 = vld [vmem:[%s21884_s20 + $0x878] sm:$0xf] }
  0xd0   : >> { %870 = vst [vmem:[%s21880_s17 + $0x870] sm:$0xf] %v869_v36  ;;  %872 = vst [vmem:[%s21880_s17 + $0x878] sm:$0xf] %v871_v37  ;;  %v875_v39 = vld [vmem:[%s21884_s20 + $0x87c] sm:$0xf] }
  0xd1   : >> { %874 = vst [vmem:[%s21880_s17 + $0x880] sm:$0xf] %v873_v38  ;;  %v877_v40 = vld [vmem:[%s21884_s20 + $0x880] sm:$0xf]  ;;  %v879_v41 = vld [vmem:[%s21884_s20 + $0x884] sm:$0xf] }
  0xd2   : >> { %876 = vst [vmem:[%s21880_s17 + $0x888] sm:$0xf] %v875_v39  ;;  %878 = vst [vmem:[%s21880_s17 + $0x890] sm:$0xf] %v877_v40  ;;  %v881_v42 = vld [vmem:[%s21884_s20 + $0x888] sm:$0xf] }
  0xd3   : >> { %880 = vst [vmem:[%s21880_s17 + $0x898] sm:$0xf] %v879_v41  ;;  %v883_v43 = vld [vmem:[%s21884_s20 + $0x88c] sm:$0xf]  ;;  %v885_v44 = vld [vmem:[%s21884_s20 + $0x890] sm:$0xf] }
  0xd4   : >> { %882 = vst [vmem:[%s21880_s17 + $0x8a0] sm:$0xf] %v881_v42  ;;  %884 = vst [vmem:[%s21880_s17 + $0x8a8] sm:$0xf] %v883_v43  ;;  %v887_v45 = vld [vmem:[%s21884_s20 + $0x894] sm:$0xf] }
  0xd5   : >> { %886 = vst [vmem:[%s21880_s17 + $0x8b0] sm:$0xf] %v885_v44  ;;  %v889_v46 = vld [vmem:[%s21884_s20 + $0x8c0] sm:$0xf]  ;;  %v891_v47 = vld [vmem:[%s21884_s20 + $0x8c4] sm:$0xf] }
  0xd6   : >> { %888 = vst [vmem:[%s21880_s17 + $0x8b8] sm:$0xf] %v887_v45  ;;  %890 = vst [vmem:[%s21880_s17 + $0x8c0] sm:$0xf] %v889_v46  ;;  %v893_v48 = vld [vmem:[%s21884_s20 + $0x8c8] sm:$0xf] }
  0xd7   : >> { %892 = vst [vmem:[%s21880_s17 + $0x8c8] sm:$0xf] %v891_v47  ;;  %v895_v49 = vld [vmem:[%s21884_s20 + $0x8cc] sm:$0xf]  ;;  %v897_v50 = vld [vmem:[%s21884_s20 + $0x8d0] sm:$0xf] }
  0xd8   : >> { %894 = vst [vmem:[%s21880_s17 + $0x8d0] sm:$0xf] %v893_v48  ;;  %896 = vst [vmem:[%s21880_s17 + $0x8d8] sm:$0xf] %v895_v49  ;;  %v899_v51 = vld [vmem:[%s21884_s20 + $0x8d4] sm:$0xf] }
  0xd9   : >> { %898 = vst [vmem:[%s21880_s17 + $0x8e0] sm:$0xf] %v897_v50  ;;  %v901_v52 = vld [vmem:[%s21884_s20 + $0x8d8] sm:$0xf]  ;;  %v903_v53 = vld [vmem:[%s21884_s20 + $0x8dc] sm:$0xf] }
  0xda   : >> { %900 = vst [vmem:[%s21880_s17 + $0x8e8] sm:$0xf] %v899_v51  ;;  %902 = vst [vmem:[%s21880_s17 + $0x8f0] sm:$0xf] %v901_v52  ;;  %v905_v54 = vld [vmem:[%s21884_s20 + $0x8e0] sm:$0xf] }
  0xdb   : >> { %904 = vst [vmem:[%s21880_s17 + $0x8f8] sm:$0xf] %v903_v53  ;;  %v907_v55 = vld [vmem:[%s21884_s20 + $0x8e4] sm:$0xf]  ;;  %v909_v56 = vld [vmem:[%s21884_s20 + $0x910] sm:$0xf] }
  0xdc   : >> { %906 = vst [vmem:[%s21880_s17 + $0x900] sm:$0xf] %v905_v54  ;;  %908 = vst [vmem:[%s21880_s17 + $0x908] sm:$0xf] %v907_v55  ;;  %v911_v57 = vld [vmem:[%s21884_s20 + $0x914] sm:$0xf] }
  0xdd   : >> { %910 = vst [vmem:[%s21880_s17 + $0x910] sm:$0xf] %v909_v56  ;;  %v913_v58 = vld [vmem:[%s21884_s20 + $0x918] sm:$0xf]  ;;  %v915_v59 = vld [vmem:[%s21884_s20 + $0x91c] sm:$0xf] }
  0xde   : >> { %912 = vst [vmem:[%s21880_s17 + $0x918] sm:$0xf] %v911_v57  ;;  %914 = vst [vmem:[%s21880_s17 + $0x920] sm:$0xf] %v913_v58  ;;  %v917_v60 = vld [vmem:[%s21884_s20 + $0x920] sm:$0xf] }
  0xdf   : >> { %916 = vst [vmem:[%s21880_s17 + $0x928] sm:$0xf] %v915_v59  ;;  %v919_v61 = vld [vmem:[%s21884_s20 + $0x924] sm:$0xf]  ;;  %v921_v62 = vld [vmem:[%s21884_s20 + $0x928] sm:$0xf] }
  0xe0   : >> { %918 = vst [vmem:[%s21880_s17 + $0x930] sm:$0xf] %v917_v60  ;;  %920 = vst [vmem:[%s21880_s17 + $0x938] sm:$0xf] %v919_v61  ;;  %v923_v63 = vld [vmem:[%s21884_s20 + $0x92c] sm:$0xf] }
  0xe1   : >> { %922 = vst [vmem:[%s21880_s17 + $0x940] sm:$0xf] %v921_v62  ;;  %v925_v0 = vld [vmem:[%s21884_s20 + $0x930] sm:$0xf]  ;;  %v927_v1 = vld [vmem:[%s21884_s20 + $0x934] sm:$0xf] }
  0xe2   : >> { %924 = vst [vmem:[%s21880_s17 + $0x948] sm:$0xf] %v923_v63  ;;  %926 = vst [vmem:[%s21880_s17 + $0x950] sm:$0xf] %v925_v0  ;;  %v929_v2 = vld [vmem:[%s21884_s20 + $0x960] sm:$0xf] }
  0xe3   : >> { %928 = vst [vmem:[%s21880_s17 + $0x958] sm:$0xf] %v927_v1  ;;  %v931_v3 = vld [vmem:[%s21884_s20 + $0x964] sm:$0xf]  ;;  %v933_v4 = vld [vmem:[%s21884_s20 + $0x968] sm:$0xf] }
  0xe4   : >> { %930 = vst [vmem:[%s21880_s17 + $0x960] sm:$0xf] %v929_v2  ;;  %932 = vst [vmem:[%s21880_s17 + $0x968] sm:$0xf] %v931_v3  ;;  %v935_v5 = vld [vmem:[%s21884_s20 + $0x96c] sm:$0xf] }
  0xe5   : >> { %934 = vst [vmem:[%s21880_s17 + $0x970] sm:$0xf] %v933_v4  ;;  %v937_v6 = vld [vmem:[%s21884_s20 + $0x970] sm:$0xf]  ;;  %v939_v7 = vld [vmem:[%s21884_s20 + $0x974] sm:$0xf] }
  0xe6   : >> { %936 = vst [vmem:[%s21880_s17 + $0x978] sm:$0xf] %v935_v5  ;;  %938 = vst [vmem:[%s21880_s17 + $0x980] sm:$0xf] %v937_v6  ;;  %v941_v8 = vld [vmem:[%s21884_s20 + $0x978] sm:$0xf] }
  0xe7   : >> { %940 = vst [vmem:[%s21880_s17 + $0x988] sm:$0xf] %v939_v7  ;;  %v943_v9 = vld [vmem:[%s21884_s20 + $0x97c] sm:$0xf]  ;;  %v945_v10 = vld [vmem:[%s21884_s20 + $0x980] sm:$0xf] }
  0xe8   : >> { %942 = vst [vmem:[%s21880_s17 + $0x990] sm:$0xf] %v941_v8  ;;  %944 = vst [vmem:[%s21880_s17 + $0x998] sm:$0xf] %v943_v9  ;;  %v947_v11 = vld [vmem:[%s21884_s20 + $0x984] sm:$0xf] }
  0xe9   : >> { %946 = vst [vmem:[%s21880_s17 + $0x9a0] sm:$0xf] %v945_v10  ;;  %v949_v12 = vld [vmem:[%s21884_s20 + $0x9b0] sm:$0xf]  ;;  %v951_v13 = vld [vmem:[%s21884_s20 + $0x9b4] sm:$0xf] }
  0xea   : >> { %948 = vst [vmem:[%s21880_s17 + $0x9a8] sm:$0xf] %v947_v11  ;;  %950 = vst [vmem:[%s21880_s17 + $0x9b0] sm:$0xf] %v949_v12  ;;  %v953_v14 = vld [vmem:[%s21884_s20 + $0x9b8] sm:$0xf] }
  0xeb   : >> { %952 = vst [vmem:[%s21880_s17 + $0x9b8] sm:$0xf] %v951_v13  ;;  %v955_v15 = vld [vmem:[%s21884_s20 + $0x9bc] sm:$0xf]  ;;  %v957_v16 = vld [vmem:[%s21884_s20 + $0x9c0] sm:$0xf] }
  0xec   : >> { %954 = vst [vmem:[%s21880_s17 + $0x9c0] sm:$0xf] %v953_v14  ;;  %956 = vst [vmem:[%s21880_s17 + $0x9c8] sm:$0xf] %v955_v15  ;;  %v959_v17 = vld [vmem:[%s21884_s20 + $0x9c4] sm:$0xf] }
  0xed   : >> { %958 = vst [vmem:[%s21880_s17 + $0x9d0] sm:$0xf] %v957_v16  ;;  %v961_v18 = vld [vmem:[%s21884_s20 + $0x9c8] sm:$0xf]  ;;  %v963_v19 = vld [vmem:[%s21884_s20 + $0x9cc] sm:$0xf] }
  0xee   : >> { %960 = vst [vmem:[%s21880_s17 + $0x9d8] sm:$0xf] %v959_v17  ;;  %962 = vst [vmem:[%s21880_s17 + $0x9e0] sm:$0xf] %v961_v18  ;;  %v965_v20 = vld [vmem:[%s21884_s20 + $0x9d0] sm:$0xf] }
  0xef   : >> { %964 = vst [vmem:[%s21880_s17 + $0x9e8] sm:$0xf] %v963_v19  ;;  %v967_v21 = vld [vmem:[%s21884_s20 + $0x9d4] sm:$0xf]  ;;  %v969_v22 = vld [vmem:[%s21884_s20 + $0xa00] sm:$0xf] }
  0xf0   : >> { %966 = vst [vmem:[%s21880_s17 + $0x9f0] sm:$0xf] %v965_v20  ;;  %968 = vst [vmem:[%s21880_s17 + $0x9f8] sm:$0xf] %v967_v21  ;;  %v971_v23 = vld [vmem:[%s21884_s20 + $0xa04] sm:$0xf] }
  0xf1   : >> { %970 = vst [vmem:[%s21880_s17 + $0xa00] sm:$0xf] %v969_v22  ;;  %v973_v24 = vld [vmem:[%s21884_s20 + $0xa08] sm:$0xf]  ;;  %v975_v25 = vld [vmem:[%s21884_s20 + $0xa0c] sm:$0xf] }
  0xf2   : >> { %972 = vst [vmem:[%s21880_s17 + $0xa08] sm:$0xf] %v971_v23  ;;  %974 = vst [vmem:[%s21880_s17 + $0xa10] sm:$0xf] %v973_v24  ;;  %v977_v26 = vld [vmem:[%s21884_s20 + $0xa10] sm:$0xf] }
  0xf3   : >> { %976 = vst [vmem:[%s21880_s17 + $0xa18] sm:$0xf] %v975_v25  ;;  %v979_v27 = vld [vmem:[%s21884_s20 + $0xa14] sm:$0xf]  ;;  %v981_v28 = vld [vmem:[%s21884_s20 + $0xa18] sm:$0xf] }
  0xf4   : >> { %978 = vst [vmem:[%s21880_s17 + $0xa20] sm:$0xf] %v977_v26  ;;  %980 = vst [vmem:[%s21880_s17 + $0xa28] sm:$0xf] %v979_v27  ;;  %v983_v29 = vld [vmem:[%s21884_s20 + $0xa1c] sm:$0xf] }
  0xf5   : >> { %982 = vst [vmem:[%s21880_s17 + $0xa30] sm:$0xf] %v981_v28  ;;  %v985_v30 = vld [vmem:[%s21884_s20 + $0xa20] sm:$0xf]  ;;  %v987_v31 = vld [vmem:[%s21884_s20 + $0xa24] sm:$0xf] }
  0xf6   : >> { %984 = vst [vmem:[%s21880_s17 + $0xa38] sm:$0xf] %v983_v29  ;;  %986 = vst [vmem:[%s21880_s17 + $0xa40] sm:$0xf] %v985_v30  ;;  %v989_v32 = vld [vmem:[%s21884_s20 + $0xa50] sm:$0xf] }
  0xf7   : >> { %988 = vst [vmem:[%s21880_s17 + $0xa48] sm:$0xf] %v987_v31  ;;  %v991_v33 = vld [vmem:[%s21884_s20 + $0xa54] sm:$0xf]  ;;  %v993_v34 = vld [vmem:[%s21884_s20 + $0xa58] sm:$0xf] }
  0xf8   : >> { %990 = vst [vmem:[%s21880_s17 + $0xa50] sm:$0xf] %v989_v32  ;;  %992 = vst [vmem:[%s21880_s17 + $0xa58] sm:$0xf] %v991_v33  ;;  %v995_v35 = vld [vmem:[%s21884_s20 + $0xa5c] sm:$0xf] }
  0xf9   : >> { %994 = vst [vmem:[%s21880_s17 + $0xa60] sm:$0xf] %v993_v34  ;;  %v997_v36 = vld [vmem:[%s21884_s20 + $0xa60] sm:$0xf]  ;;  %v999_v37 = vld [vmem:[%s21884_s20 + $0xa64] sm:$0xf] }
  0xfa   : >> { %996 = vst [vmem:[%s21880_s17 + $0xa68] sm:$0xf] %v995_v35  ;;  %998 = vst [vmem:[%s21880_s17 + $0xa70] sm:$0xf] %v997_v36  ;;  %v1001_v38 = vld [vmem:[%s21884_s20 + $0xa68] sm:$0xf] }
  0xfb   : >> { %1000 = vst [vmem:[%s21880_s17 + $0xa78] sm:$0xf] %v999_v37  ;;  %v1003_v39 = vld [vmem:[%s21884_s20 + $0xa6c] sm:$0xf]  ;;  %v1005_v40 = vld [vmem:[%s21884_s20 + $0xa70] sm:$0xf] }
  0xfc   : >> { %1002 = vst [vmem:[%s21880_s17 + $0xa80] sm:$0xf] %v1001_v38  ;;  %1004 = vst [vmem:[%s21880_s17 + $0xa88] sm:$0xf] %v1003_v39  ;;  %v1007_v41 = vld [vmem:[%s21884_s20 + $0xa74] sm:$0xf] }
  0xfd   : >> { %1006 = vst [vmem:[%s21880_s17 + $0xa90] sm:$0xf] %v1005_v40  ;;  %v1009_v42 = vld [vmem:[%s21884_s20 + $0xaa0] sm:$0xf]  ;;  %v1011_v43 = vld [vmem:[%s21884_s20 + $0xaa4] sm:$0xf] }
  0xfe   : >> { %1008 = vst [vmem:[%s21880_s17 + $0xa98] sm:$0xf] %v1007_v41  ;;  %1010 = vst [vmem:[%s21880_s17 + $0xaa0] sm:$0xf] %v1009_v42  ;;  %v1013_v44 = vld [vmem:[%s21884_s20 + $0xaa8] sm:$0xf] }
  0xff   : >> { %1012 = vst [vmem:[%s21880_s17 + $0xaa8] sm:$0xf] %v1011_v43  ;;  %v1015_v45 = vld [vmem:[%s21884_s20 + $0xaac] sm:$0xf]  ;;  %v1017_v46 = vld [vmem:[%s21884_s20 + $0xab0] sm:$0xf] }
 0x100   : >> { %1014 = vst [vmem:[%s21880_s17 + $0xab0] sm:$0xf] %v1013_v44  ;;  %1016 = vst [vmem:[%s21880_s17 + $0xab8] sm:$0xf] %v1015_v45  ;;  %v1019_v47 = vld [vmem:[%s21884_s20 + $0xab4] sm:$0xf] }
 0x101   : >> { %1018 = vst [vmem:[%s21880_s17 + $0xac0] sm:$0xf] %v1017_v46  ;;  %v1021_v48 = vld [vmem:[%s21884_s20 + $0xab8] sm:$0xf]  ;;  %v1023_v49 = vld [vmem:[%s21884_s20 + $0xabc] sm:$0xf] }
 0x102   : >> { %1020 = vst [vmem:[%s21880_s17 + $0xac8] sm:$0xf] %v1019_v47  ;;  %1022 = vst [vmem:[%s21880_s17 + $0xad0] sm:$0xf] %v1021_v48  ;;  %v1025_v50 = vld [vmem:[%s21884_s20 + $0xac0] sm:$0xf] }
 0x103   : >> { %1024 = vst [vmem:[%s21880_s17 + $0xad8] sm:$0xf] %v1023_v49  ;;  %v1027_v51 = vld [vmem:[%s21884_s20 + $0xac4] sm:$0xf]  ;;  %v1029_v52 = vld [vmem:[%s21884_s20 + $0xaf0] sm:$0xf] }
 0x104   : >> { %1026 = vst [vmem:[%s21880_s17 + $0xae0] sm:$0xf] %v1025_v50  ;;  %1028 = vst [vmem:[%s21880_s17 + $0xae8] sm:$0xf] %v1027_v51  ;;  %v1031_v53 = vld [vmem:[%s21884_s20 + $0xaf4] sm:$0xf] }
 0x105   : >> { %1030 = vst [vmem:[%s21880_s17 + $0xaf0] sm:$0xf] %v1029_v52  ;;  %v1033_v54 = vld [vmem:[%s21884_s20 + $0xaf8] sm:$0xf]  ;;  %v1035_v55 = vld [vmem:[%s21884_s20 + $0xafc] sm:$0xf] }
 0x106   : >> { %1032 = vst [vmem:[%s21880_s17 + $0xaf8] sm:$0xf] %v1031_v53  ;;  %1034 = vst [vmem:[%s21880_s17 + $0xb00] sm:$0xf] %v1033_v54  ;;  %v1037_v56 = vld [vmem:[%s21884_s20 + $0xb00] sm:$0xf] }
 0x107   : >> { %1036 = vst [vmem:[%s21880_s17 + $0xb08] sm:$0xf] %v1035_v55  ;;  %v1039_v57 = vld [vmem:[%s21884_s20 + $0xb04] sm:$0xf]  ;;  %v1041_v58 = vld [vmem:[%s21884_s20 + $0xb08] sm:$0xf] }
 0x108   : >> { %1038 = vst [vmem:[%s21880_s17 + $0xb10] sm:$0xf] %v1037_v56  ;;  %1040 = vst [vmem:[%s21880_s17 + $0xb18] sm:$0xf] %v1039_v57  ;;  %v1043_v59 = vld [vmem:[%s21884_s20 + $0xb0c] sm:$0xf] }
 0x109   : >> { %1042 = vst [vmem:[%s21880_s17 + $0xb20] sm:$0xf] %v1041_v58  ;;  %v1045_v60 = vld [vmem:[%s21884_s20 + $0xb10] sm:$0xf]  ;;  %v1047_v61 = vld [vmem:[%s21884_s20 + $0xb14] sm:$0xf] }
 0x10a   : >> { %1044 = vst [vmem:[%s21880_s17 + $0xb28] sm:$0xf] %v1043_v59  ;;  %1046 = vst [vmem:[%s21880_s17 + $0xb30] sm:$0xf] %v1045_v60  ;;  %v1049_v62 = vld [vmem:[%s21884_s20 + $0xb40] sm:$0xf] }
 0x10b   : >> { %1048 = vst [vmem:[%s21880_s17 + $0xb38] sm:$0xf] %v1047_v61  ;;  %v1051_v63 = vld [vmem:[%s21884_s20 + $0xb44] sm:$0xf]  ;;  %v1053_v0 = vld [vmem:[%s21884_s20 + $0xb48] sm:$0xf] }
 0x10c   : >> { %1050 = vst [vmem:[%s21880_s17 + $0xb40] sm:$0xf] %v1049_v62  ;;  %1052 = vst [vmem:[%s21880_s17 + $0xb48] sm:$0xf] %v1051_v63  ;;  %v1055_v1 = vld [vmem:[%s21884_s20 + $0xb4c] sm:$0xf] }
 0x10d   : >> { %1054 = vst [vmem:[%s21880_s17 + $0xb50] sm:$0xf] %v1053_v0  ;;  %v1057_v2 = vld [vmem:[%s21884_s20 + $0xb50] sm:$0xf]  ;;  %v1059_v3 = vld [vmem:[%s21884_s20 + $0xb54] sm:$0xf] }
 0x10e   : >> { %1056 = vst [vmem:[%s21880_s17 + $0xb58] sm:$0xf] %v1055_v1  ;;  %1058 = vst [vmem:[%s21880_s17 + $0xb60] sm:$0xf] %v1057_v2  ;;  %v1061_v4 = vld [vmem:[%s21884_s20 + $0xb58] sm:$0xf] }
 0x10f   : >> { %1060 = vst [vmem:[%s21880_s17 + $0xb68] sm:$0xf] %v1059_v3  ;;  %v1063_v5 = vld [vmem:[%s21884_s20 + $0xb5c] sm:$0xf]  ;;  %v1065_v6 = vld [vmem:[%s21884_s20 + $0xb60] sm:$0xf] }
 0x110   : >> { %1062 = vst [vmem:[%s21880_s17 + $0xb70] sm:$0xf] %v1061_v4  ;;  %1064 = vst [vmem:[%s21880_s17 + $0xb78] sm:$0xf] %v1063_v5  ;;  %v1067_v7 = vld [vmem:[%s21884_s20 + $0xb64] sm:$0xf] }
 0x111   : >> { %1066 = vst [vmem:[%s21880_s17 + $0xb80] sm:$0xf] %v1065_v6  ;;  %v1069_v8 = vld [vmem:[%s21884_s20 + $0xb90] sm:$0xf]  ;;  %v1071_v9 = vld [vmem:[%s21884_s20 + $0xb94] sm:$0xf] }
 0x112   : >> { %1068 = vst [vmem:[%s21880_s17 + $0xb88] sm:$0xf] %v1067_v7  ;;  %1070 = vst [vmem:[%s21880_s17 + $0xb90] sm:$0xf] %v1069_v8  ;;  %v1073_v10 = vld [vmem:[%s21884_s20 + $0xb98] sm:$0xf] }
 0x113   : >> { %1072 = vst [vmem:[%s21880_s17 + $0xb98] sm:$0xf] %v1071_v9  ;;  %v1075_v11 = vld [vmem:[%s21884_s20 + $0xb9c] sm:$0xf]  ;;  %v1077_v12 = vld [vmem:[%s21884_s20 + $0xba0] sm:$0xf] }
 0x114   : >> { %1074 = vst [vmem:[%s21880_s17 + $0xba0] sm:$0xf] %v1073_v10  ;;  %1076 = vst [vmem:[%s21880_s17 + $0xba8] sm:$0xf] %v1075_v11  ;;  %v1079_v13 = vld [vmem:[%s21884_s20 + $0xba4] sm:$0xf] }
 0x115   : >> { %1078 = vst [vmem:[%s21880_s17 + $0xbb0] sm:$0xf] %v1077_v12  ;;  %v1081_v14 = vld [vmem:[%s21884_s20 + $0xba8] sm:$0xf]  ;;  %v1083_v15 = vld [vmem:[%s21884_s20 + $0xbac] sm:$0xf] }
 0x116   : >> { %1080 = vst [vmem:[%s21880_s17 + $0xbb8] sm:$0xf] %v1079_v13  ;;  %1082 = vst [vmem:[%s21880_s17 + $0xbc0] sm:$0xf] %v1081_v14  ;;  %v1085_v16 = vld [vmem:[%s21884_s20 + $0xbb0] sm:$0xf] }
 0x117   : >> { %1084 = vst [vmem:[%s21880_s17 + $0xbc8] sm:$0xf] %v1083_v15  ;;  %v1087_v17 = vld [vmem:[%s21884_s20 + $0xbb4] sm:$0xf]  ;;  %v1089_v18 = vld [vmem:[%s21884_s20 + $0xbe0] sm:$0xf] }
 0x118   : >> { %1086 = vst [vmem:[%s21880_s17 + $0xbd0] sm:$0xf] %v1085_v16  ;;  %1088 = vst [vmem:[%s21880_s17 + $0xbd8] sm:$0xf] %v1087_v17  ;;  %v1091_v19 = vld [vmem:[%s21884_s20 + $0xbe4] sm:$0xf] }
 0x119   : >> { %1090 = vst [vmem:[%s21880_s17 + $0xbe0] sm:$0xf] %v1089_v18  ;;  %v1093_v20 = vld [vmem:[%s21884_s20 + $0xbe8] sm:$0xf]  ;;  %v1095_v21 = vld [vmem:[%s21884_s20 + $0xbec] sm:$0xf] }
 0x11a   : >> { %1092 = vst [vmem:[%s21880_s17 + $0xbe8] sm:$0xf] %v1091_v19  ;;  %1094 = vst [vmem:[%s21880_s17 + $0xbf0] sm:$0xf] %v1093_v20  ;;  %v1097_v22 = vld [vmem:[%s21884_s20 + $0xbf0] sm:$0xf] }
 0x11b   : >> { %1096 = vst [vmem:[%s21880_s17 + $0xbf8] sm:$0xf] %v1095_v21  ;;  %v1099_v23 = vld [vmem:[%s21884_s20 + $0xbf4] sm:$0xf]  ;;  %v1101_v24 = vld [vmem:[%s21884_s20 + $0xbf8] sm:$0xf] }
 0x11c   : >> { %1098 = vst [vmem:[%s21880_s17 + $0xc00] sm:$0xf] %v1097_v22  ;;  %1100 = vst [vmem:[%s21880_s17 + $0xc08] sm:$0xf] %v1099_v23  ;;  %v1103_v25 = vld [vmem:[%s21884_s20 + $0xbfc] sm:$0xf] }
 0x11d   : >> { %1102 = vst [vmem:[%s21880_s17 + $0xc10] sm:$0xf] %v1101_v24  ;;  %v1105_v26 = vld [vmem:[%s21884_s20 + $0xc00] sm:$0xf]  ;;  %v1107_v27 = vld [vmem:[%s21884_s20 + $0xc04] sm:$0xf] }
 0x11e   : >> { %1104 = vst [vmem:[%s21880_s17 + $0xc18] sm:$0xf] %v1103_v25  ;;  %1106 = vst [vmem:[%s21880_s17 + $0xc20] sm:$0xf] %v1105_v26  ;;  %v1109_v28 = vld [vmem:[%s21884_s20 + $0xc30] sm:$0xf] }
 0x11f   : >> { %1108 = vst [vmem:[%s21880_s17 + $0xc28] sm:$0xf] %v1107_v27  ;;  %v1111_v29 = vld [vmem:[%s21884_s20 + $0xc34] sm:$0xf]  ;;  %v1113_v30 = vld [vmem:[%s21884_s20 + $0xc38] sm:$0xf] }
 0x120   : >> { %1110 = vst [vmem:[%s21880_s17 + $0xc30] sm:$0xf] %v1109_v28  ;;  %1112 = vst [vmem:[%s21880_s17 + $0xc38] sm:$0xf] %v1111_v29  ;;  %v1115_v31 = vld [vmem:[%s21884_s20 + $0xc3c] sm:$0xf] }
 0x121   : >> { %1114 = vst [vmem:[%s21880_s17 + $0xc40] sm:$0xf] %v1113_v30  ;;  %v1117_v32 = vld [vmem:[%s21884_s20 + $0xc40] sm:$0xf]  ;;  %v1119_v33 = vld [vmem:[%s21884_s20 + $0xc44] sm:$0xf] }
 0x122   : >> { %1116 = vst [vmem:[%s21880_s17 + $0xc48] sm:$0xf] %v1115_v31  ;;  %1118 = vst [vmem:[%s21880_s17 + $0xc50] sm:$0xf] %v1117_v32  ;;  %v1121_v34 = vld [vmem:[%s21884_s20 + $0xc48] sm:$0xf] }
 0x123   : >> { %1120 = vst [vmem:[%s21880_s17 + $0xc58] sm:$0xf] %v1119_v33  ;;  %v1123_v35 = vld [vmem:[%s21884_s20 + $0xc4c] sm:$0xf]  ;;  %v1125_v36 = vld [vmem:[%s21884_s20 + $0xc50] sm:$0xf] }
 0x124   : >> { %1122 = vst [vmem:[%s21880_s17 + $0xc60] sm:$0xf] %v1121_v34  ;;  %1124 = vst [vmem:[%s21880_s17 + $0xc68] sm:$0xf] %v1123_v35  ;;  %v1127_v37 = vld [vmem:[%s21884_s20 + $0xc54] sm:$0xf] }
 0x125   : >> { %1126 = vst [vmem:[%s21880_s17 + $0xc70] sm:$0xf] %v1125_v36  ;;  %v1129_v38 = vld [vmem:[%s21884_s20 + $0xc80] sm:$0xf]  ;;  %v1131_v39 = vld [vmem:[%s21884_s20 + $0xc84] sm:$0xf] }
 0x126   : >> { %1128 = vst [vmem:[%s21880_s17 + $0xc78] sm:$0xf] %v1127_v37  ;;  %1130 = vst [vmem:[%s21880_s17 + $0xc80] sm:$0xf] %v1129_v38  ;;  %v1133_v40 = vld [vmem:[%s21884_s20 + $0xc88] sm:$0xf] }
 0x127   : >> { %1132 = vst [vmem:[%s21880_s17 + $0xc88] sm:$0xf] %v1131_v39  ;;  %v1135_v41 = vld [vmem:[%s21884_s20 + $0xc8c] sm:$0xf]  ;;  %v1137_v42 = vld [vmem:[%s21884_s20 + $0xc90] sm:$0xf] }
 0x128   : >> { %1134 = vst [vmem:[%s21880_s17 + $0xc90] sm:$0xf] %v1133_v40  ;;  %1136 = vst [vmem:[%s21880_s17 + $0xc98] sm:$0xf] %v1135_v41  ;;  %v1139_v43 = vld [vmem:[%s21884_s20 + $0xc94] sm:$0xf] }
 0x129   : >> { %1138 = vst [vmem:[%s21880_s17 + $0xca0] sm:$0xf] %v1137_v42  ;;  %v1141_v44 = vld [vmem:[%s21884_s20 + $0xc98] sm:$0xf]  ;;  %v1143_v45 = vld [vmem:[%s21884_s20 + $0xc9c] sm:$0xf] }
 0x12a   : >> { %1140 = vst [vmem:[%s21880_s17 + $0xca8] sm:$0xf] %v1139_v43  ;;  %1142 = vst [vmem:[%s21880_s17 + $0xcb0] sm:$0xf] %v1141_v44  ;;  %v1145_v46 = vld [vmem:[%s21884_s20 + $0xca0] sm:$0xf] }
 0x12b   : >> { %1144 = vst [vmem:[%s21880_s17 + $0xcb8] sm:$0xf] %v1143_v45  ;;  %v1147_v47 = vld [vmem:[%s21884_s20 + $0xca4] sm:$0xf]  ;;  %v1149_v48 = vld [vmem:[%s21884_s20 + $0xcd0] sm:$0xf] }
 0x12c   : >> { %1146 = vst [vmem:[%s21880_s17 + $0xcc0] sm:$0xf] %v1145_v46  ;;  %1148 = vst [vmem:[%s21880_s17 + $0xcc8] sm:$0xf] %v1147_v47  ;;  %v1151_v49 = vld [vmem:[%s21884_s20 + $0xcd4] sm:$0xf] }
 0x12d   : >> { %1150 = vst [vmem:[%s21880_s17 + $0xcd0] sm:$0xf] %v1149_v48  ;;  %v1153_v50 = vld [vmem:[%s21884_s20 + $0xcd8] sm:$0xf]  ;;  %v1155_v51 = vld [vmem:[%s21884_s20 + $0xcdc] sm:$0xf] }
 0x12e   : >> { %1152 = vst [vmem:[%s21880_s17 + $0xcd8] sm:$0xf] %v1151_v49  ;;  %1154 = vst [vmem:[%s21880_s17 + $0xce0] sm:$0xf] %v1153_v50  ;;  %v1157_v52 = vld [vmem:[%s21884_s20 + $0xce0] sm:$0xf] }
 0x12f   : >> { %1156 = vst [vmem:[%s21880_s17 + $0xce8] sm:$0xf] %v1155_v51  ;;  %v1159_v53 = vld [vmem:[%s21884_s20 + $0xce4] sm:$0xf]  ;;  %v1161_v54 = vld [vmem:[%s21884_s20 + $0xce8] sm:$0xf] }
 0x130   : >> { %1158 = vst [vmem:[%s21880_s17 + $0xcf0] sm:$0xf] %v1157_v52  ;;  %1160 = vst [vmem:[%s21880_s17 + $0xcf8] sm:$0xf] %v1159_v53  ;;  %v1163_v55 = vld [vmem:[%s21884_s20 + $0xcec] sm:$0xf] }
 0x131   : >> { %1162 = vst [vmem:[%s21880_s17 + $0xd00] sm:$0xf] %v1161_v54  ;;  %v1165_v56 = vld [vmem:[%s21884_s20 + $0xcf0] sm:$0xf]  ;;  %v1167_v57 = vld [vmem:[%s21884_s20 + $0xcf4] sm:$0xf] }
 0x132   : >> { %1164 = vst [vmem:[%s21880_s17 + $0xd08] sm:$0xf] %v1163_v55  ;;  %1166 = vst [vmem:[%s21880_s17 + $0xd10] sm:$0xf] %v1165_v56  ;;  %v1169_v58 = vld [vmem:[%s21884_s20 + $0xd20] sm:$0xf] }
 0x133   : >> { %1168 = vst [vmem:[%s21880_s17 + $0xd18] sm:$0xf] %v1167_v57  ;;  %v1171_v59 = vld [vmem:[%s21884_s20 + $0xd24] sm:$0xf]  ;;  %v1173_v60 = vld [vmem:[%s21884_s20 + $0xd28] sm:$0xf] }
 0x134   : >> { %1170 = vst [vmem:[%s21880_s17 + $0xd20] sm:$0xf] %v1169_v58  ;;  %1172 = vst [vmem:[%s21880_s17 + $0xd28] sm:$0xf] %v1171_v59  ;;  %v1175_v61 = vld [vmem:[%s21884_s20 + $0xd2c] sm:$0xf] }
 0x135   : >> { %1174 = vst [vmem:[%s21880_s17 + $0xd30] sm:$0xf] %v1173_v60  ;;  %v1177_v62 = vld [vmem:[%s21884_s20 + $0xd30] sm:$0xf]  ;;  %v1179_v63 = vld [vmem:[%s21884_s20 + $0xd34] sm:$0xf] }
 0x136   : >> { %1176 = vst [vmem:[%s21880_s17 + $0xd38] sm:$0xf] %v1175_v61  ;;  %1178 = vst [vmem:[%s21880_s17 + $0xd40] sm:$0xf] %v1177_v62  ;;  %v1181_v0 = vld [vmem:[%s21884_s20 + $0xd38] sm:$0xf] }
 0x137   : >> { %1180 = vst [vmem:[%s21880_s17 + $0xd48] sm:$0xf] %v1179_v63  ;;  %v1183_v1 = vld [vmem:[%s21884_s20 + $0xd3c] sm:$0xf]  ;;  %v1185_v2 = vld [vmem:[%s21884_s20 + $0xd40] sm:$0xf] }
 0x138   : >> { %1182 = vst [vmem:[%s21880_s17 + $0xd50] sm:$0xf] %v1181_v0  ;;  %1184 = vst [vmem:[%s21880_s17 + $0xd58] sm:$0xf] %v1183_v1  ;;  %v1187_v3 = vld [vmem:[%s21884_s20 + $0xd44] sm:$0xf] }
 0x139   : >> { %1186 = vst [vmem:[%s21880_s17 + $0xd60] sm:$0xf] %v1185_v2  ;;  %v1189_v4 = vld [vmem:[%s21884_s20 + $0xd70] sm:$0xf]  ;;  %v1191_v5 = vld [vmem:[%s21884_s20 + $0xd74] sm:$0xf] }
 0x13a   : >> { %1188 = vst [vmem:[%s21880_s17 + $0xd68] sm:$0xf] %v1187_v3  ;;  %1190 = vst [vmem:[%s21880_s17 + $0xd70] sm:$0xf] %v1189_v4  ;;  %v1193_v6 = vld [vmem:[%s21884_s20 + $0xd78] sm:$0xf] }
 0x13b   : >> { %1192 = vst [vmem:[%s21880_s17 + $0xd78] sm:$0xf] %v1191_v5  ;;  %v1195_v7 = vld [vmem:[%s21884_s20 + $0xd7c] sm:$0xf]  ;;  %v1197_v8 = vld [vmem:[%s21884_s20 + $0xd80] sm:$0xf] }
 0x13c   : >> { %1194 = vst [vmem:[%s21880_s17 + $0xd80] sm:$0xf] %v1193_v6  ;;  %1196 = vst [vmem:[%s21880_s17 + $0xd88] sm:$0xf] %v1195_v7  ;;  %v1199_v9 = vld [vmem:[%s21884_s20 + $0xd84] sm:$0xf] }
 0x13d   : >> { %1198 = vst [vmem:[%s21880_s17 + $0xd90] sm:$0xf] %v1197_v8  ;;  %v1201_v10 = vld [vmem:[%s21884_s20 + $0xd88] sm:$0xf]  ;;  %v1203_v11 = vld [vmem:[%s21884_s20 + $0xd8c] sm:$0xf] }
 0x13e   : >> { %1200 = vst [vmem:[%s21880_s17 + $0xd98] sm:$0xf] %v1199_v9  ;;  %1202 = vst [vmem:[%s21880_s17 + $0xda0] sm:$0xf] %v1201_v10  ;;  %v1205_v12 = vld [vmem:[%s21884_s20 + $0xd90] sm:$0xf] }
 0x13f   : >> { %1204 = vst [vmem:[%s21880_s17 + $0xda8] sm:$0xf] %v1203_v11  ;;  %v1207_v13 = vld [vmem:[%s21884_s20 + $0xd94] sm:$0xf]  ;;  %v1209_v14 = vld [vmem:[%s21884_s20 + $0xdc0] sm:$0xf] }
 0x140   : >> { %1206 = vst [vmem:[%s21880_s17 + $0xdb0] sm:$0xf] %v1205_v12  ;;  %1208 = vst [vmem:[%s21880_s17 + $0xdb8] sm:$0xf] %v1207_v13  ;;  %v1211_v15 = vld [vmem:[%s21884_s20 + $0xdc4] sm:$0xf] }
 0x141   : >> { %1210 = vst [vmem:[%s21880_s17 + $0xdc0] sm:$0xf] %v1209_v14  ;;  %v1213_v16 = vld [vmem:[%s21884_s20 + $0xdc8] sm:$0xf]  ;;  %v1215_v17 = vld [vmem:[%s21884_s20 + $0xdcc] sm:$0xf] }
 0x142   : >> { %1212 = vst [vmem:[%s21880_s17 + $0xdc8] sm:$0xf] %v1211_v15  ;;  %1214 = vst [vmem:[%s21880_s17 + $0xdd0] sm:$0xf] %v1213_v16  ;;  %v1217_v18 = vld [vmem:[%s21884_s20 + $0xdd0] sm:$0xf] }
 0x143   : >> { %1216 = vst [vmem:[%s21880_s17 + $0xdd8] sm:$0xf] %v1215_v17  ;;  %v1219_v19 = vld [vmem:[%s21884_s20 + $0xdd4] sm:$0xf]  ;;  %v1221_v20 = vld [vmem:[%s21884_s20 + $0xdd8] sm:$0xf] }
 0x144   : >> { %1218 = vst [vmem:[%s21880_s17 + $0xde0] sm:$0xf] %v1217_v18  ;;  %1220 = vst [vmem:[%s21880_s17 + $0xde8] sm:$0xf] %v1219_v19  ;;  %v1223_v21 = vld [vmem:[%s21884_s20 + $0xddc] sm:$0xf] }
 0x145   : >> { %1222 = vst [vmem:[%s21880_s17 + $0xdf0] sm:$0xf] %v1221_v20  ;;  %v1225_v22 = vld [vmem:[%s21884_s20 + $0xde0] sm:$0xf]  ;;  %v1227_v23 = vld [vmem:[%s21884_s20 + $0xde4] sm:$0xf] }
 0x146   : >> { %1224 = vst [vmem:[%s21880_s17 + $0xdf8] sm:$0xf] %v1223_v21  ;;  %1226 = vst [vmem:[%s21880_s17 + $0xe00] sm:$0xf] %v1225_v22  ;;  %v1229_v24 = vld [vmem:[%s21884_s20 + $0xe10] sm:$0xf] }
 0x147   : >> { %1228 = vst [vmem:[%s21880_s17 + $0xe08] sm:$0xf] %v1227_v23  ;;  %v1231_v25 = vld [vmem:[%s21884_s20 + $0xe14] sm:$0xf]  ;;  %v1233_v26 = vld [vmem:[%s21884_s20 + $0xe18] sm:$0xf] }
 0x148   : >> { %1230 = vst [vmem:[%s21880_s17 + $0xe10] sm:$0xf] %v1229_v24  ;;  %1232 = vst [vmem:[%s21880_s17 + $0xe18] sm:$0xf] %v1231_v25  ;;  %v1235_v27 = vld [vmem:[%s21884_s20 + $0xe1c] sm:$0xf] }
 0x149   : >> { %1234 = vst [vmem:[%s21880_s17 + $0xe20] sm:$0xf] %v1233_v26  ;;  %v1237_v28 = vld [vmem:[%s21884_s20 + $0xe20] sm:$0xf]  ;;  %v1239_v29 = vld [vmem:[%s21884_s20 + $0xe24] sm:$0xf] }
 0x14a   : >> { %1236 = vst [vmem:[%s21880_s17 + $0xe28] sm:$0xf] %v1235_v27  ;;  %1238 = vst [vmem:[%s21880_s17 + $0xe30] sm:$0xf] %v1237_v28  ;;  %v1241_v30 = vld [vmem:[%s21884_s20 + $0xe28] sm:$0xf] }
 0x14b   : >> { %1240 = vst [vmem:[%s21880_s17 + $0xe38] sm:$0xf] %v1239_v29  ;;  %v1243_v31 = vld [vmem:[%s21884_s20 + $0xe2c] sm:$0xf]  ;;  %v1245_v32 = vld [vmem:[%s21884_s20 + $0xe30] sm:$0xf] }
 0x14c   : >> { %1242 = vst [vmem:[%s21880_s17 + $0xe40] sm:$0xf] %v1241_v30  ;;  %1244 = vst [vmem:[%s21880_s17 + $0xe48] sm:$0xf] %v1243_v31  ;;  %v1247_v33 = vld [vmem:[%s21884_s20 + $0xe34] sm:$0xf] }
 0x14d   : >> { %1246 = vst [vmem:[%s21880_s17 + $0xe50] sm:$0xf] %v1245_v32  ;;  %v1249_v34 = vld [vmem:[%s21884_s20 + $0xe60] sm:$0xf]  ;;  %v1251_v35 = vld [vmem:[%s21884_s20 + $0xe64] sm:$0xf] }
 0x14e   : >> { %1248 = vst [vmem:[%s21880_s17 + $0xe58] sm:$0xf] %v1247_v33  ;;  %1250 = vst [vmem:[%s21880_s17 + $0xe60] sm:$0xf] %v1249_v34  ;;  %v1253_v36 = vld [vmem:[%s21884_s20 + $0xe68] sm:$0xf] }
 0x14f   : >> { %1252 = vst [vmem:[%s21880_s17 + $0xe68] sm:$0xf] %v1251_v35  ;;  %v1255_v37 = vld [vmem:[%s21884_s20 + $0xe6c] sm:$0xf]  ;;  %v1257_v38 = vld [vmem:[%s21884_s20 + $0xe70] sm:$0xf] }
 0x150   : >> { %1254 = vst [vmem:[%s21880_s17 + $0xe70] sm:$0xf] %v1253_v36  ;;  %1256 = vst [vmem:[%s21880_s17 + $0xe78] sm:$0xf] %v1255_v37  ;;  %v1259_v39 = vld [vmem:[%s21884_s20 + $0xe74] sm:$0xf] }
 0x151   : >> { %1258 = vst [vmem:[%s21880_s17 + $0xe80] sm:$0xf] %v1257_v38  ;;  %v1261_v40 = vld [vmem:[%s21884_s20 + $0xe78] sm:$0xf]  ;;  %v1263_v41 = vld [vmem:[%s21884_s20 + $0xe7c] sm:$0xf] }
 0x152   : >> { %1260 = vst [vmem:[%s21880_s17 + $0xe88] sm:$0xf] %v1259_v39  ;;  %1262 = vst [vmem:[%s21880_s17 + $0xe90] sm:$0xf] %v1261_v40  ;;  %v1265_v42 = vld [vmem:[%s21884_s20 + $0xe80] sm:$0xf] }
 0x153   : >> { %1264 = vst [vmem:[%s21880_s17 + $0xe98] sm:$0xf] %v1263_v41  ;;  %v1267_v43 = vld [vmem:[%s21884_s20 + $0xe84] sm:$0xf]  ;;  %v1269_v44 = vld [vmem:[%s21884_s20 + $0xeb0] sm:$0xf] }
 0x154   : >> { %1266 = vst [vmem:[%s21880_s17 + $0xea0] sm:$0xf] %v1265_v42  ;;  %1268 = vst [vmem:[%s21880_s17 + $0xea8] sm:$0xf] %v1267_v43  ;;  %v1271_v45 = vld [vmem:[%s21884_s20 + $0xeb4] sm:$0xf] }
 0x155   : >> { %1270 = vst [vmem:[%s21880_s17 + $0xeb0] sm:$0xf] %v1269_v44  ;;  %v1273_v46 = vld [vmem:[%s21884_s20 + $0xeb8] sm:$0xf]  ;;  %v1275_v47 = vld [vmem:[%s21884_s20 + $0xebc] sm:$0xf] }
 0x156   : >> { %1272 = vst [vmem:[%s21880_s17 + $0xeb8] sm:$0xf] %v1271_v45  ;;  %1274 = vst [vmem:[%s21880_s17 + $0xec0] sm:$0xf] %v1273_v46  ;;  %v1277_v48 = vld [vmem:[%s21884_s20 + $0xec0] sm:$0xf] }
 0x157   : >> { %1276 = vst [vmem:[%s21880_s17 + $0xec8] sm:$0xf] %v1275_v47  ;;  %v1279_v49 = vld [vmem:[%s21884_s20 + $0xec4] sm:$0xf]  ;;  %v1281_v50 = vld [vmem:[%s21884_s20 + $0xec8] sm:$0xf] }
 0x158   : >> { %1278 = vst [vmem:[%s21880_s17 + $0xed0] sm:$0xf] %v1277_v48  ;;  %1280 = vst [vmem:[%s21880_s17 + $0xed8] sm:$0xf] %v1279_v49  ;;  %v1283_v51 = vld [vmem:[%s21884_s20 + $0xecc] sm:$0xf] }
 0x159   : >> { %1282 = vst [vmem:[%s21880_s17 + $0xee0] sm:$0xf] %v1281_v50  ;;  %v1285_v52 = vld [vmem:[%s21884_s20 + $0xed0] sm:$0xf]  ;;  %v1287_v53 = vld [vmem:[%s21884_s20 + $0xed4] sm:$0xf] }
 0x15a   : >> { %1284 = vst [vmem:[%s21880_s17 + $0xee8] sm:$0xf] %v1283_v51  ;;  %1286 = vst [vmem:[%s21880_s17 + $0xef0] sm:$0xf] %v1285_v52  ;;  %v1289_v54 = vld [vmem:[%s21884_s20 + $0xf00] sm:$0xf] }
 0x15b   : >> { %1288 = vst [vmem:[%s21880_s17 + $0xef8] sm:$0xf] %v1287_v53  ;;  %v1291_v55 = vld [vmem:[%s21884_s20 + $0xf04] sm:$0xf]  ;;  %v1293_v56 = vld [vmem:[%s21884_s20 + $0xf08] sm:$0xf] }
 0x15c   : >> { %1290 = vst [vmem:[%s21880_s17 + $0xf00] sm:$0xf] %v1289_v54  ;;  %1292 = vst [vmem:[%s21880_s17 + $0xf08] sm:$0xf] %v1291_v55  ;;  %v1295_v57 = vld [vmem:[%s21884_s20 + $0xf0c] sm:$0xf] }
 0x15d   : >> { %1294 = vst [vmem:[%s21880_s17 + $0xf10] sm:$0xf] %v1293_v56  ;;  %v1297_v58 = vld [vmem:[%s21884_s20 + $0xf10] sm:$0xf]  ;;  %v1299_v59 = vld [vmem:[%s21884_s20 + $0xf14] sm:$0xf] }
 0x15e   : >> { %1296 = vst [vmem:[%s21880_s17 + $0xf18] sm:$0xf] %v1295_v57  ;;  %1298 = vst [vmem:[%s21880_s17 + $0xf20] sm:$0xf] %v1297_v58  ;;  %v1301_v60 = vld [vmem:[%s21884_s20 + $0xf18] sm:$0xf] }
 0x15f   : >> { %1300 = vst [vmem:[%s21880_s17 + $0xf28] sm:$0xf] %v1299_v59  ;;  %v1303_v61 = vld [vmem:[%s21884_s20 + $0xf1c] sm:$0xf]  ;;  %v1305_v62 = vld [vmem:[%s21884_s20 + $0xf20] sm:$0xf] }
 0x160   : >> { %1302 = vst [vmem:[%s21880_s17 + $0xf30] sm:$0xf] %v1301_v60  ;;  %1304 = vst [vmem:[%s21880_s17 + $0xf38] sm:$0xf] %v1303_v61  ;;  %v1307_v63 = vld [vmem:[%s21884_s20 + $0xf24] sm:$0xf] }
 0x161   : >> { %1306 = vst [vmem:[%s21880_s17 + $0xf40] sm:$0xf] %v1305_v62  ;;  %v1309_v0 = vld [vmem:[%s21884_s20 + $0xf50] sm:$0xf]  ;;  %v1311_v1 = vld [vmem:[%s21884_s20 + $0xf54] sm:$0xf] }
 0x162   : >> { %1308 = vst [vmem:[%s21880_s17 + $0xf48] sm:$0xf] %v1307_v63  ;;  %1310 = vst [vmem:[%s21880_s17 + $0xf50] sm:$0xf] %v1309_v0  ;;  %v1313_v2 = vld [vmem:[%s21884_s20 + $0xf58] sm:$0xf] }
 0x163   : >> { %1312 = vst [vmem:[%s21880_s17 + $0xf58] sm:$0xf] %v1311_v1  ;;  %v1315_v3 = vld [vmem:[%s21884_s20 + $0xf5c] sm:$0xf]  ;;  %v1317_v4 = vld [vmem:[%s21884_s20 + $0xf60] sm:$0xf] }
 0x164   : >> { %1314 = vst [vmem:[%s21880_s17 + $0xf60] sm:$0xf] %v1313_v2  ;;  %1316 = vst [vmem:[%s21880_s17 + $0xf68] sm:$0xf] %v1315_v3  ;;  %v1319_v5 = vld [vmem:[%s21884_s20 + $0xf64] sm:$0xf] }
 0x165   : >> { %1318 = vst [vmem:[%s21880_s17 + $0xf70] sm:$0xf] %v1317_v4  ;;  %v1321_v6 = vld [vmem:[%s21884_s20 + $0xf68] sm:$0xf]  ;;  %v1323_v7 = vld [vmem:[%s21884_s20 + $0xf6c] sm:$0xf] }
 0x166   : >> { %1320 = vst [vmem:[%s21880_s17 + $0xf78] sm:$0xf] %v1319_v5  ;;  %1322 = vst [vmem:[%s21880_s17 + $0xf80] sm:$0xf] %v1321_v6  ;;  %v1325_v8 = vld [vmem:[%s21884_s20 + $0xf70] sm:$0xf] }
 0x167   : >> { %1324 = vst [vmem:[%s21880_s17 + $0xf88] sm:$0xf] %v1323_v7  ;;  %v1327_v9 = vld [vmem:[%s21884_s20 + $0xf74] sm:$0xf]  ;;  %v1329_v10 = vld [vmem:[%s21884_s20 + $0xfa0] sm:$0xf] }
 0x168   : >> { %1326 = vst [vmem:[%s21880_s17 + $0xf90] sm:$0xf] %v1325_v8  ;;  %1328 = vst [vmem:[%s21880_s17 + $0xf98] sm:$0xf] %v1327_v9  ;;  %v1331_v11 = vld [vmem:[%s21884_s20 + $0xfa4] sm:$0xf] }
 0x169   : >> { %1330 = vst [vmem:[%s21880_s17 + $0xfa0] sm:$0xf] %v1329_v10  ;;  %v1333_v12 = vld [vmem:[%s21884_s20 + $0xfa8] sm:$0xf]  ;;  %v1335_v13 = vld [vmem:[%s21884_s20 + $0xfac] sm:$0xf] }
 0x16a   : >> { %1332 = vst [vmem:[%s21880_s17 + $0xfa8] sm:$0xf] %v1331_v11  ;;  %1334 = vst [vmem:[%s21880_s17 + $0xfb0] sm:$0xf] %v1333_v12  ;;  %v1337_v14 = vld [vmem:[%s21884_s20 + $0xfb0] sm:$0xf] }
 0x16b   : >> { %1336 = vst [vmem:[%s21880_s17 + $0xfb8] sm:$0xf] %v1335_v13  ;;  %v1339_v15 = vld [vmem:[%s21884_s20 + $0xfb4] sm:$0xf]  ;;  %v1341_v16 = vld [vmem:[%s21884_s20 + $0xfb8] sm:$0xf] }
 0x16c   : >> { %1338 = vst [vmem:[%s21880_s17 + $0xfc0] sm:$0xf] %v1337_v14  ;;  %1340 = vst [vmem:[%s21880_s17 + $0xfc8] sm:$0xf] %v1339_v15  ;;  %v1343_v17 = vld [vmem:[%s21884_s20 + $0xfbc] sm:$0xf] }
 0x16d   : >> { %1342 = vst [vmem:[%s21880_s17 + $0xfd0] sm:$0xf] %v1341_v16  ;;  %v1345_v18 = vld [vmem:[%s21884_s20 + $0xfc0] sm:$0xf]  ;;  %v1347_v19 = vld [vmem:[%s21884_s20 + $0xfc4] sm:$0xf] }
 0x16e   : >> { %1344 = vst [vmem:[%s21880_s17 + $0xfd8] sm:$0xf] %v1343_v17  ;;  %1346 = vst [vmem:[%s21880_s17 + $0xfe0] sm:$0xf] %v1345_v18  ;;  %v1349_v20 = vld [vmem:[%s21884_s20 + $0xff0] sm:$0xf] }
 0x16f   : >> { %1348 = vst [vmem:[%s21880_s17 + $0xfe8] sm:$0xf] %v1347_v19  ;;  %v1351_v21 = vld [vmem:[%s21884_s20 + $0xff4] sm:$0xf]  ;;  %v1353_v22 = vld [vmem:[%s21884_s20 + $0xff8] sm:$0xf] }
 0x170   : >> { %1350 = vst [vmem:[%s21880_s17 + $0xff0] sm:$0xf] %v1349_v20  ;;  %1352 = vst [vmem:[%s21880_s17 + $0xff8] sm:$0xf] %v1351_v21  ;;  %v1355_v23 = vld [vmem:[%s21884_s20 + $0xffc] sm:$0xf] }
 0x171   : >> { %1354 = vst [vmem:[%s21880_s17 + $0x1000] sm:$0xf] %v1353_v22  ;;  %v1357_v24 = vld [vmem:[%s21884_s20 + $0x1000] sm:$0xf]  ;;  %v1359_v25 = vld [vmem:[%s21884_s20 + $0x1004] sm:$0xf] }
 0x172   : >> { %1356 = vst [vmem:[%s21880_s17 + $0x1008] sm:$0xf] %v1355_v23  ;;  %1358 = vst [vmem:[%s21880_s17 + $0x1010] sm:$0xf] %v1357_v24  ;;  %v1361_v26 = vld [vmem:[%s21884_s20 + $0x1008] sm:$0xf] }
 0x173   : >> { %1360 = vst [vmem:[%s21880_s17 + $0x1018] sm:$0xf] %v1359_v25  ;;  %v1363_v27 = vld [vmem:[%s21884_s20 + $0x100c] sm:$0xf]  ;;  %v1365_v28 = vld [vmem:[%s21884_s20 + $0x1010] sm:$0xf] }
 0x174   : >> { %1362 = vst [vmem:[%s21880_s17 + $0x1020] sm:$0xf] %v1361_v26  ;;  %1364 = vst [vmem:[%s21880_s17 + $0x1028] sm:$0xf] %v1363_v27  ;;  %v1367_v29 = vld [vmem:[%s21884_s20 + $0x1014] sm:$0xf] }
 0x175   : >> { %1366 = vst [vmem:[%s21880_s17 + $0x1030] sm:$0xf] %v1365_v28  ;;  %v1369_v30 = vld [vmem:[%s21884_s20 + $0x1040] sm:$0xf]  ;;  %v1371_v31 = vld [vmem:[%s21884_s20 + $0x1044] sm:$0xf] }
 0x176   : >> { %1368 = vst [vmem:[%s21880_s17 + $0x1038] sm:$0xf] %v1367_v29  ;;  %1370 = vst [vmem:[%s21880_s17 + $0x1040] sm:$0xf] %v1369_v30  ;;  %v1373_v32 = vld [vmem:[%s21884_s20 + $0x1048] sm:$0xf] }
 0x177   : >> { %1372 = vst [vmem:[%s21880_s17 + $0x1048] sm:$0xf] %v1371_v31  ;;  %v1375_v33 = vld [vmem:[%s21884_s20 + $0x104c] sm:$0xf]  ;;  %v1377_v34 = vld [vmem:[%s21884_s20 + $0x1050] sm:$0xf] }
 0x178   : >> { %1374 = vst [vmem:[%s21880_s17 + $0x1050] sm:$0xf] %v1373_v32  ;;  %1376 = vst [vmem:[%s21880_s17 + $0x1058] sm:$0xf] %v1375_v33  ;;  %v1379_v35 = vld [vmem:[%s21884_s20 + $0x1054] sm:$0xf] }
 0x179   : >> { %1378 = vst [vmem:[%s21880_s17 + $0x1060] sm:$0xf] %v1377_v34  ;;  %v1381_v36 = vld [vmem:[%s21884_s20 + $0x1058] sm:$0xf]  ;;  %v1383_v37 = vld [vmem:[%s21884_s20 + $0x105c] sm:$0xf] }
 0x17a   : >> { %1380 = vst [vmem:[%s21880_s17 + $0x1068] sm:$0xf] %v1379_v35  ;;  %1382 = vst [vmem:[%s21880_s17 + $0x1070] sm:$0xf] %v1381_v36  ;;  %v1385_v38 = vld [vmem:[%s21884_s20 + $0x1060] sm:$0xf] }
 0x17b   : >> { %1384 = vst [vmem:[%s21880_s17 + $0x1078] sm:$0xf] %v1383_v37  ;;  %v1387_v39 = vld [vmem:[%s21884_s20 + $0x1064] sm:$0xf]  ;;  %v1389_v40 = vld [vmem:[%s21884_s20 + $0x1090] sm:$0xf] }
 0x17c   : >> { %1386 = vst [vmem:[%s21880_s17 + $0x1080] sm:$0xf] %v1385_v38  ;;  %1388 = vst [vmem:[%s21880_s17 + $0x1088] sm:$0xf] %v1387_v39  ;;  %v1391_v41 = vld [vmem:[%s21884_s20 + $0x1094] sm:$0xf] }
 0x17d   : >> { %1390 = vst [vmem:[%s21880_s17 + $0x1090] sm:$0xf] %v1389_v40  ;;  %v1393_v42 = vld [vmem:[%s21884_s20 + $0x1098] sm:$0xf]  ;;  %v1395_v43 = vld [vmem:[%s21884_s20 + $0x109c] sm:$0xf] }
 0x17e   : >> { %1392 = vst [vmem:[%s21880_s17 + $0x1098] sm:$0xf] %v1391_v41  ;;  %1394 = vst [vmem:[%s21880_s17 + $0x10a0] sm:$0xf] %v1393_v42  ;;  %v1397_v44 = vld [vmem:[%s21884_s20 + $0x10a0] sm:$0xf] }
 0x17f   : >> { %1396 = vst [vmem:[%s21880_s17 + $0x10a8] sm:$0xf] %v1395_v43  ;;  %v1399_v45 = vld [vmem:[%s21884_s20 + $0x10a4] sm:$0xf]  ;;  %v1401_v46 = vld [vmem:[%s21884_s20 + $0x10a8] sm:$0xf] }
 0x180   : >> { %1398 = vst [vmem:[%s21880_s17 + $0x10b0] sm:$0xf] %v1397_v44  ;;  %1400 = vst [vmem:[%s21880_s17 + $0x10b8] sm:$0xf] %v1399_v45  ;;  %v1403_v47 = vld [vmem:[%s21884_s20 + $0x10ac] sm:$0xf] }
 0x181   : >> { %1402 = vst [vmem:[%s21880_s17 + $0x10c0] sm:$0xf] %v1401_v46  ;;  %v1405_v48 = vld [vmem:[%s21884_s20 + $0x10b0] sm:$0xf]  ;;  %v1407_v49 = vld [vmem:[%s21884_s20 + $0x10b4] sm:$0xf] }
 0x182   : >> { %1404 = vst [vmem:[%s21880_s17 + $0x10c8] sm:$0xf] %v1403_v47  ;;  %1406 = vst [vmem:[%s21880_s17 + $0x10d0] sm:$0xf] %v1405_v48  ;;  %v1409_v50 = vld [vmem:[%s21884_s20 + $0x10e0] sm:$0xf] }
 0x183   : >> { %1408 = vst [vmem:[%s21880_s17 + $0x10d8] sm:$0xf] %v1407_v49  ;;  %v1411_v51 = vld [vmem:[%s21884_s20 + $0x10e4] sm:$0xf]  ;;  %v1413_v52 = vld [vmem:[%s21884_s20 + $0x10e8] sm:$0xf] }
 0x184   : >> { %1410 = vst [vmem:[%s21880_s17 + $0x10e0] sm:$0xf] %v1409_v50  ;;  %1412 = vst [vmem:[%s21880_s17 + $0x10e8] sm:$0xf] %v1411_v51  ;;  %v1415_v53 = vld [vmem:[%s21884_s20 + $0x10ec] sm:$0xf] }
 0x185   : >> { %1414 = vst [vmem:[%s21880_s17 + $0x10f0] sm:$0xf] %v1413_v52  ;;  %v1417_v54 = vld [vmem:[%s21884_s20 + $0x10f0] sm:$0xf]  ;;  %v1419_v55 = vld [vmem:[%s21884_s20 + $0x10f4] sm:$0xf] }
 0x186   : >> { %1416 = vst [vmem:[%s21880_s17 + $0x10f8] sm:$0xf] %v1415_v53  ;;  %1418 = vst [vmem:[%s21880_s17 + $0x1100] sm:$0xf] %v1417_v54  ;;  %v1421_v56 = vld [vmem:[%s21884_s20 + $0x10f8] sm:$0xf] }
 0x187   : >> { %1420 = vst [vmem:[%s21880_s17 + $0x1108] sm:$0xf] %v1419_v55  ;;  %v1423_v57 = vld [vmem:[%s21884_s20 + $0x10fc] sm:$0xf]  ;;  %v1425_v58 = vld [vmem:[%s21884_s20 + $0x1100] sm:$0xf] }
 0x188   : >> { %1422 = vst [vmem:[%s21880_s17 + $0x1110] sm:$0xf] %v1421_v56  ;;  %1424 = vst [vmem:[%s21880_s17 + $0x1118] sm:$0xf] %v1423_v57  ;;  %v1427_v59 = vld [vmem:[%s21884_s20 + $0x1104] sm:$0xf] }
 0x189   : >> { %1426 = vst [vmem:[%s21880_s17 + $0x1120] sm:$0xf] %v1425_v58  ;;  %v1429_v60 = vld [vmem:[%s21884_s20 + $0x1130] sm:$0xf]  ;;  %v1431_v61 = vld [vmem:[%s21884_s20 + $0x1134] sm:$0xf] }
 0x18a   : >> { %1428 = vst [vmem:[%s21880_s17 + $0x1128] sm:$0xf] %v1427_v59  ;;  %1430 = vst [vmem:[%s21880_s17 + $0x1130] sm:$0xf] %v1429_v60  ;;  %v1433_v62 = vld [vmem:[%s21884_s20 + $0x1138] sm:$0xf] }
 0x18b   : >> { %1432 = vst [vmem:[%s21880_s17 + $0x1138] sm:$0xf] %v1431_v61  ;;  %v1435_v63 = vld [vmem:[%s21884_s20 + $0x113c] sm:$0xf]  ;;  %v1437_v0 = vld [vmem:[%s21884_s20 + $0x1140] sm:$0xf] }
 0x18c   : >> { %1434 = vst [vmem:[%s21880_s17 + $0x1140] sm:$0xf] %v1433_v62  ;;  %1436 = vst [vmem:[%s21880_s17 + $0x1148] sm:$0xf] %v1435_v63  ;;  %v1439_v1 = vld [vmem:[%s21884_s20 + $0x1144] sm:$0xf] }
 0x18d   : >> { %1438 = vst [vmem:[%s21880_s17 + $0x1150] sm:$0xf] %v1437_v0  ;;  %v1441_v2 = vld [vmem:[%s21884_s20 + $0x1148] sm:$0xf]  ;;  %v1443_v3 = vld [vmem:[%s21884_s20 + $0x114c] sm:$0xf] }
 0x18e   : >> { %1440 = vst [vmem:[%s21880_s17 + $0x1158] sm:$0xf] %v1439_v1  ;;  %1442 = vst [vmem:[%s21880_s17 + $0x1160] sm:$0xf] %v1441_v2  ;;  %v1445_v4 = vld [vmem:[%s21884_s20 + $0x1150] sm:$0xf] }
 0x18f   : >> { %1444 = vst [vmem:[%s21880_s17 + $0x1168] sm:$0xf] %v1443_v3  ;;  %v1447_v5 = vld [vmem:[%s21884_s20 + $0x1154] sm:$0xf]  ;;  %v1449_v6 = vld [vmem:[%s21884_s20 + $0x1180] sm:$0xf] }
 0x190   : >> { %1446 = vst [vmem:[%s21880_s17 + $0x1170] sm:$0xf] %v1445_v4  ;;  %1448 = vst [vmem:[%s21880_s17 + $0x1178] sm:$0xf] %v1447_v5  ;;  %v1451_v7 = vld [vmem:[%s21884_s20 + $0x1184] sm:$0xf] }
 0x191   : >> { %1450 = vst [vmem:[%s21880_s17 + $0x1180] sm:$0xf] %v1449_v6  ;;  %v1453_v8 = vld [vmem:[%s21884_s20 + $0x1188] sm:$0xf]  ;;  %v1455_v9 = vld [vmem:[%s21884_s20 + $0x118c] sm:$0xf] }
 0x192   : >> { %1452 = vst [vmem:[%s21880_s17 + $0x1188] sm:$0xf] %v1451_v7  ;;  %1454 = vst [vmem:[%s21880_s17 + $0x1190] sm:$0xf] %v1453_v8  ;;  %v1457_v10 = vld [vmem:[%s21884_s20 + $0x1190] sm:$0xf] }
 0x193   : >> { %1456 = vst [vmem:[%s21880_s17 + $0x1198] sm:$0xf] %v1455_v9  ;;  %v1459_v11 = vld [vmem:[%s21884_s20 + $0x1194] sm:$0xf]  ;;  %v1461_v12 = vld [vmem:[%s21884_s20 + $0x1198] sm:$0xf] }
 0x194   : >> { %1458 = vst [vmem:[%s21880_s17 + $0x11a0] sm:$0xf] %v1457_v10  ;;  %1460 = vst [vmem:[%s21880_s17 + $0x11a8] sm:$0xf] %v1459_v11  ;;  %v1463_v13 = vld [vmem:[%s21884_s20 + $0x119c] sm:$0xf] }
 0x195   : >> { %1462 = vst [vmem:[%s21880_s17 + $0x11b0] sm:$0xf] %v1461_v12  ;;  %v1465_v14 = vld [vmem:[%s21884_s20 + $0x11a0] sm:$0xf]  ;;  %v1467_v15 = vld [vmem:[%s21884_s20 + $0x11a4] sm:$0xf] }
 0x196   : >> { %1464 = vst [vmem:[%s21880_s17 + $0x11b8] sm:$0xf] %v1463_v13  ;;  %1466 = vst [vmem:[%s21880_s17 + $0x11c0] sm:$0xf] %v1465_v14  ;;  %v1469_v16 = vld [vmem:[%s21884_s20 + $0x11d0] sm:$0xf] }
 0x197   : >> { %1468 = vst [vmem:[%s21880_s17 + $0x11c8] sm:$0xf] %v1467_v15  ;;  %v1471_v17 = vld [vmem:[%s21884_s20 + $0x11d4] sm:$0xf]  ;;  %v1473_v18 = vld [vmem:[%s21884_s20 + $0x11d8] sm:$0xf] }
 0x198   : >> { %1470 = vst [vmem:[%s21880_s17 + $0x11d0] sm:$0xf] %v1469_v16  ;;  %1472 = vst [vmem:[%s21880_s17 + $0x11d8] sm:$0xf] %v1471_v17  ;;  %v1475_v19 = vld [vmem:[%s21884_s20 + $0x11dc] sm:$0xf] }
 0x199   : >> { %1474 = vst [vmem:[%s21880_s17 + $0x11e0] sm:$0xf] %v1473_v18  ;;  %v1477_v20 = vld [vmem:[%s21884_s20 + $0x11e0] sm:$0xf]  ;;  %v1479_v21 = vld [vmem:[%s21884_s20 + $0x11e4] sm:$0xf] }
 0x19a   : >> { %1476 = vst [vmem:[%s21880_s17 + $0x11e8] sm:$0xf] %v1475_v19  ;;  %1478 = vst [vmem:[%s21880_s17 + $0x11f0] sm:$0xf] %v1477_v20  ;;  %v1481_v22 = vld [vmem:[%s21884_s20 + $0x11e8] sm:$0xf] }
 0x19b   : >> { %1480 = vst [vmem:[%s21880_s17 + $0x11f8] sm:$0xf] %v1479_v21  ;;  %v1483_v23 = vld [vmem:[%s21884_s20 + $0x11ec] sm:$0xf]  ;;  %v1485_v24 = vld [vmem:[%s21884_s20 + $0x11f0] sm:$0xf] }
 0x19c   : >> { %1482 = vst [vmem:[%s21880_s17 + $0x1200] sm:$0xf] %v1481_v22  ;;  %1484 = vst [vmem:[%s21880_s17 + $0x1208] sm:$0xf] %v1483_v23  ;;  %v1487_v25 = vld [vmem:[%s21884_s20 + $0x11f4] sm:$0xf] }
 0x19d   : >> { %1486 = vst [vmem:[%s21880_s17 + $0x1210] sm:$0xf] %v1485_v24  ;;  %v1489_v26 = vld [vmem:[%s21884_s20 + $0x1220] sm:$0xf]  ;;  %v1491_v27 = vld [vmem:[%s21884_s20 + $0x1224] sm:$0xf] }
 0x19e   : >> { %1488 = vst [vmem:[%s21880_s17 + $0x1218] sm:$0xf] %v1487_v25  ;;  %1490 = vst [vmem:[%s21880_s17 + $0x1220] sm:$0xf] %v1489_v26  ;;  %v1493_v28 = vld [vmem:[%s21884_s20 + $0x1228] sm:$0xf] }
 0x19f   : >> { %1492 = vst [vmem:[%s21880_s17 + $0x1228] sm:$0xf] %v1491_v27  ;;  %v1495_v29 = vld [vmem:[%s21884_s20 + $0x122c] sm:$0xf]  ;;  %v1497_v30 = vld [vmem:[%s21884_s20 + $0x1230] sm:$0xf] }
 0x1a0   : >> { %1494 = vst [vmem:[%s21880_s17 + $0x1230] sm:$0xf] %v1493_v28  ;;  %1496 = vst [vmem:[%s21880_s17 + $0x1238] sm:$0xf] %v1495_v29  ;;  %v1499_v31 = vld [vmem:[%s21884_s20 + $0x1234] sm:$0xf] }
 0x1a1   : >> { %1498 = vst [vmem:[%s21880_s17 + $0x1240] sm:$0xf] %v1497_v30  ;;  %v1501_v32 = vld [vmem:[%s21884_s20 + $0x1238] sm:$0xf]  ;;  %v1503_v33 = vld [vmem:[%s21884_s20 + $0x123c] sm:$0xf] }
 0x1a2   : >> { %1500 = vst [vmem:[%s21880_s17 + $0x1248] sm:$0xf] %v1499_v31  ;;  %1502 = vst [vmem:[%s21880_s17 + $0x1250] sm:$0xf] %v1501_v32  ;;  %v1505_v34 = vld [vmem:[%s21884_s20 + $0x1240] sm:$0xf] }
 0x1a3   : >> { %1504 = vst [vmem:[%s21880_s17 + $0x1258] sm:$0xf] %v1503_v33  ;;  %v1507_v35 = vld [vmem:[%s21884_s20 + $0x1244] sm:$0xf]  ;;  %v1509_v36 = vld [vmem:[%s21884_s20 + $0x1270] sm:$0xf] }
 0x1a4   : >> { %1506 = vst [vmem:[%s21880_s17 + $0x1260] sm:$0xf] %v1505_v34  ;;  %1508 = vst [vmem:[%s21880_s17 + $0x1268] sm:$0xf] %v1507_v35  ;;  %v1511_v37 = vld [vmem:[%s21884_s20 + $0x1274] sm:$0xf] }
 0x1a5   : >> { %1510 = vst [vmem:[%s21880_s17 + $0x1270] sm:$0xf] %v1509_v36  ;;  %v1513_v38 = vld [vmem:[%s21884_s20 + $0x1278] sm:$0xf]  ;;  %v1515_v39 = vld [vmem:[%s21884_s20 + $0x127c] sm:$0xf] }
 0x1a6   : >> { %1512 = vst [vmem:[%s21880_s17 + $0x1278] sm:$0xf] %v1511_v37  ;;  %1514 = vst [vmem:[%s21880_s17 + $0x1280] sm:$0xf] %v1513_v38  ;;  %v1517_v40 = vld [vmem:[%s21884_s20 + $0x1280] sm:$0xf] }
 0x1a7   : >> { %1516 = vst [vmem:[%s21880_s17 + $0x1288] sm:$0xf] %v1515_v39  ;;  %v1519_v41 = vld [vmem:[%s21884_s20 + $0x1284] sm:$0xf]  ;;  %v1521_v42 = vld [vmem:[%s21884_s20 + $0x1288] sm:$0xf] }
 0x1a8   : >> { %1518 = vst [vmem:[%s21880_s17 + $0x1290] sm:$0xf] %v1517_v40  ;;  %1520 = vst [vmem:[%s21880_s17 + $0x1298] sm:$0xf] %v1519_v41  ;;  %v1523_v43 = vld [vmem:[%s21884_s20 + $0x128c] sm:$0xf] }
 0x1a9   : >> { %1522 = vst [vmem:[%s21880_s17 + $0x12a0] sm:$0xf] %v1521_v42  ;;  %v1525_v44 = vld [vmem:[%s21884_s20 + $0x1290] sm:$0xf]  ;;  %v1527_v45 = vld [vmem:[%s21884_s20 + $0x1294] sm:$0xf] }
 0x1aa   : >> { %1524 = vst [vmem:[%s21880_s17 + $0x12a8] sm:$0xf] %v1523_v43  ;;  %1526 = vst [vmem:[%s21880_s17 + $0x12b0] sm:$0xf] %v1525_v44  ;;  %v1529_v46 = vld [vmem:[%s21884_s20 + $0x12c0] sm:$0xf] }
 0x1ab   : >> { %1528 = vst [vmem:[%s21880_s17 + $0x12b8] sm:$0xf] %v1527_v45  ;;  %v1531_v47 = vld [vmem:[%s21884_s20 + $0x12c4] sm:$0xf]  ;;  %v1533_v48 = vld [vmem:[%s21884_s20 + $0x12c8] sm:$0xf] }
 0x1ac   : >> { %1530 = vst [vmem:[%s21880_s17 + $0x12c0] sm:$0xf] %v1529_v46  ;;  %1532 = vst [vmem:[%s21880_s17 + $0x12c8] sm:$0xf] %v1531_v47  ;;  %v1535_v49 = vld [vmem:[%s21884_s20 + $0x12cc] sm:$0xf] }
 0x1ad   : >> { %1534 = vst [vmem:[%s21880_s17 + $0x12d0] sm:$0xf] %v1533_v48  ;;  %v1537_v50 = vld [vmem:[%s21884_s20 + $0x12d0] sm:$0xf]  ;;  %v1539_v51 = vld [vmem:[%s21884_s20 + $0x12d4] sm:$0xf] }
 0x1ae   : >> { %1536 = vst [vmem:[%s21880_s17 + $0x12d8] sm:$0xf] %v1535_v49  ;;  %1538 = vst [vmem:[%s21880_s17 + $0x12e0] sm:$0xf] %v1537_v50  ;;  %v1541_v52 = vld [vmem:[%s21884_s20 + $0x12d8] sm:$0xf] }
 0x1af   : >> { %1540 = vst [vmem:[%s21880_s17 + $0x12e8] sm:$0xf] %v1539_v51  ;;  %v1543_v53 = vld [vmem:[%s21884_s20 + $0x12dc] sm:$0xf]  ;;  %v1545_v54 = vld [vmem:[%s21884_s20 + $0x12e0] sm:$0xf] }
 0x1b0   : >> { %1542 = vst [vmem:[%s21880_s17 + $0x12f0] sm:$0xf] %v1541_v52  ;;  %1544 = vst [vmem:[%s21880_s17 + $0x12f8] sm:$0xf] %v1543_v53  ;;  %v1547_v55 = vld [vmem:[%s21884_s20 + $0x12e4] sm:$0xf] }
 0x1b1   : >> { %1546 = vst [vmem:[%s21880_s17 + $0x1300] sm:$0xf] %v1545_v54  ;;  %v1549_v56 = vld [vmem:[%s21884_s20 + $0x1310] sm:$0xf]  ;;  %v1551_v57 = vld [vmem:[%s21884_s20 + $0x1314] sm:$0xf] }
 0x1b2   : >> { %1548 = vst [vmem:[%s21880_s17 + $0x1308] sm:$0xf] %v1547_v55  ;;  %1550 = vst [vmem:[%s21880_s17 + $0x1310] sm:$0xf] %v1549_v56  ;;  %v1553_v58 = vld [vmem:[%s21884_s20 + $0x1318] sm:$0xf] }
 0x1b3   : >> { %1552 = vst [vmem:[%s21880_s17 + $0x1318] sm:$0xf] %v1551_v57  ;;  %v1555_v59 = vld [vmem:[%s21884_s20 + $0x131c] sm:$0xf]  ;;  %v1557_v60 = vld [vmem:[%s21884_s20 + $0x1320] sm:$0xf] }
 0x1b4   : >> { %1554 = vst [vmem:[%s21880_s17 + $0x1320] sm:$0xf] %v1553_v58  ;;  %1556 = vst [vmem:[%s21880_s17 + $0x1328] sm:$0xf] %v1555_v59  ;;  %v1559_v61 = vld [vmem:[%s21884_s20 + $0x1324] sm:$0xf] }
 0x1b5   : >> { %1558 = vst [vmem:[%s21880_s17 + $0x1330] sm:$0xf] %v1557_v60  ;;  %v1561_v62 = vld [vmem:[%s21884_s20 + $0x1328] sm:$0xf]  ;;  %v1563_v63 = vld [vmem:[%s21884_s20 + $0x132c] sm:$0xf] }
 0x1b6   : >> { %1560 = vst [vmem:[%s21880_s17 + $0x1338] sm:$0xf] %v1559_v61  ;;  %1562 = vst [vmem:[%s21880_s17 + $0x1340] sm:$0xf] %v1561_v62  ;;  %v1565_v0 = vld [vmem:[%s21884_s20 + $0x1330] sm:$0xf] }
 0x1b7   : >> { %1564 = vst [vmem:[%s21880_s17 + $0x1348] sm:$0xf] %v1563_v63  ;;  %v1567_v1 = vld [vmem:[%s21884_s20 + $0x1334] sm:$0xf]  ;;  %v1569_v2 = vld [vmem:[%s21884_s20 + $0x1360] sm:$0xf] }
 0x1b8   : >> { %1566 = vst [vmem:[%s21880_s17 + $0x1350] sm:$0xf] %v1565_v0  ;;  %1568 = vst [vmem:[%s21880_s17 + $0x1358] sm:$0xf] %v1567_v1  ;;  %v1571_v3 = vld [vmem:[%s21884_s20 + $0x1364] sm:$0xf] }
 0x1b9   : >> { %1570 = vst [vmem:[%s21880_s17 + $0x1360] sm:$0xf] %v1569_v2  ;;  %v1573_v4 = vld [vmem:[%s21884_s20 + $0x1368] sm:$0xf]  ;;  %v1575_v5 = vld [vmem:[%s21884_s20 + $0x136c] sm:$0xf] }
 0x1ba   : >> { %1572 = vst [vmem:[%s21880_s17 + $0x1368] sm:$0xf] %v1571_v3  ;;  %1574 = vst [vmem:[%s21880_s17 + $0x1370] sm:$0xf] %v1573_v4  ;;  %v1577_v6 = vld [vmem:[%s21884_s20 + $0x1370] sm:$0xf] }
 0x1bb   : >> { %1576 = vst [vmem:[%s21880_s17 + $0x1378] sm:$0xf] %v1575_v5  ;;  %v1579_v7 = vld [vmem:[%s21884_s20 + $0x1374] sm:$0xf]  ;;  %v1581_v8 = vld [vmem:[%s21884_s20 + $0x1378] sm:$0xf] }
 0x1bc   : >> { %1578 = vst [vmem:[%s21880_s17 + $0x1380] sm:$0xf] %v1577_v6  ;;  %1580 = vst [vmem:[%s21880_s17 + $0x1388] sm:$0xf] %v1579_v7  ;;  %v1583_v9 = vld [vmem:[%s21884_s20 + $0x137c] sm:$0xf] }
 0x1bd   : >> { %1582 = vst [vmem:[%s21880_s17 + $0x1390] sm:$0xf] %v1581_v8  ;;  %v1585_v10 = vld [vmem:[%s21884_s20 + $0x1380] sm:$0xf]  ;;  %v1587_v11 = vld [vmem:[%s21884_s20 + $0x1384] sm:$0xf] }
 0x1be   : >> { %1584 = vst [vmem:[%s21880_s17 + $0x1398] sm:$0xf] %v1583_v9  ;;  %1586 = vst [vmem:[%s21880_s17 + $0x13a0] sm:$0xf] %v1585_v10  ;;  %v1589_v12 = vld [vmem:[%s21884_s20 + $0x13b0] sm:$0xf] }
 0x1bf   : >> { %1588 = vst [vmem:[%s21880_s17 + $0x13a8] sm:$0xf] %v1587_v11  ;;  %v1591_v13 = vld [vmem:[%s21884_s20 + $0x13b4] sm:$0xf]  ;;  %v1593_v14 = vld [vmem:[%s21884_s20 + $0x13b8] sm:$0xf] }
 0x1c0   : >> { %1590 = vst [vmem:[%s21880_s17 + $0x13b0] sm:$0xf] %v1589_v12  ;;  %1592 = vst [vmem:[%s21880_s17 + $0x13b8] sm:$0xf] %v1591_v13  ;;  %v1595_v15 = vld [vmem:[%s21884_s20 + $0x13bc] sm:$0xf] }
 0x1c1   : >> { %1594 = vst [vmem:[%s21880_s17 + $0x13c0] sm:$0xf] %v1593_v14  ;;  %v1597_v16 = vld [vmem:[%s21884_s20 + $0x13c0] sm:$0xf]  ;;  %v1599_v17 = vld [vmem:[%s21884_s20 + $0x13c4] sm:$0xf] }
 0x1c2   : >> { %1596 = vst [vmem:[%s21880_s17 + $0x13c8] sm:$0xf] %v1595_v15  ;;  %1598 = vst [vmem:[%s21880_s17 + $0x13d0] sm:$0xf] %v1597_v16  ;;  %v1601_v18 = vld [vmem:[%s21884_s20 + $0x13c8] sm:$0xf] }
 0x1c3   : >> { %1600 = vst [vmem:[%s21880_s17 + $0x13d8] sm:$0xf] %v1599_v17  ;;  %v1603_v19 = vld [vmem:[%s21884_s20 + $0x13cc] sm:$0xf]  ;;  %v1605_v20 = vld [vmem:[%s21884_s20 + $0x13d0] sm:$0xf] }
 0x1c4   : >> { %1602 = vst [vmem:[%s21880_s17 + $0x13e0] sm:$0xf] %v1601_v18  ;;  %1604 = vst [vmem:[%s21880_s17 + $0x13e8] sm:$0xf] %v1603_v19  ;;  %v1607_v21 = vld [vmem:[%s21884_s20 + $0x13d4] sm:$0xf] }
 0x1c5   : >> { %1606 = vst [vmem:[%s21880_s17 + $0x13f0] sm:$0xf] %v1605_v20  ;;  %v1609_v22 = vld [vmem:[%s21884_s20 + $0x1400] sm:$0xf]  ;;  %v1611_v23 = vld [vmem:[%s21884_s20 + $0x1404] sm:$0xf] }
 0x1c6   : >> { %1608 = vst [vmem:[%s21880_s17 + $0x13f8] sm:$0xf] %v1607_v21  ;;  %1610 = vst [vmem:[%s21880_s17 + $0x1400] sm:$0xf] %v1609_v22  ;;  %v1613_v24 = vld [vmem:[%s21884_s20 + $0x1408] sm:$0xf] }
 0x1c7   : >> { %1612 = vst [vmem:[%s21880_s17 + $0x1408] sm:$0xf] %v1611_v23  ;;  %v1615_v25 = vld [vmem:[%s21884_s20 + $0x140c] sm:$0xf]  ;;  %v1617_v26 = vld [vmem:[%s21884_s20 + $0x1410] sm:$0xf] }
 0x1c8   : >> { %1614 = vst [vmem:[%s21880_s17 + $0x1410] sm:$0xf] %v1613_v24  ;;  %1616 = vst [vmem:[%s21880_s17 + $0x1418] sm:$0xf] %v1615_v25  ;;  %v1619_v27 = vld [vmem:[%s21884_s20 + $0x1414] sm:$0xf] }
 0x1c9   : >> { %1618 = vst [vmem:[%s21880_s17 + $0x1420] sm:$0xf] %v1617_v26  ;;  %v1621_v28 = vld [vmem:[%s21884_s20 + $0x1418] sm:$0xf]  ;;  %v1623_v29 = vld [vmem:[%s21884_s20 + $0x141c] sm:$0xf] }
 0x1ca   : >> { %1620 = vst [vmem:[%s21880_s17 + $0x1428] sm:$0xf] %v1619_v27  ;;  %1622 = vst [vmem:[%s21880_s17 + $0x1430] sm:$0xf] %v1621_v28  ;;  %v1625_v30 = vld [vmem:[%s21884_s20 + $0x1420] sm:$0xf] }
 0x1cb   : >> { %1624 = vst [vmem:[%s21880_s17 + $0x1438] sm:$0xf] %v1623_v29  ;;  %v1627_v31 = vld [vmem:[%s21884_s20 + $0x1424] sm:$0xf]  ;;  %v1629_v32 = vld [vmem:[%s21884_s20 + $0x1450] sm:$0xf] }
 0x1cc   : >> { %1626 = vst [vmem:[%s21880_s17 + $0x1440] sm:$0xf] %v1625_v30  ;;  %1628 = vst [vmem:[%s21880_s17 + $0x1448] sm:$0xf] %v1627_v31  ;;  %v1631_v33 = vld [vmem:[%s21884_s20 + $0x1454] sm:$0xf] }
 0x1cd   : >> { %1630 = vst [vmem:[%s21880_s17 + $0x1450] sm:$0xf] %v1629_v32  ;;  %v1633_v34 = vld [vmem:[%s21884_s20 + $0x1458] sm:$0xf]  ;;  %v1635_v35 = vld [vmem:[%s21884_s20 + $0x145c] sm:$0xf] }
 0x1ce   : >> { %1632 = vst [vmem:[%s21880_s17 + $0x1458] sm:$0xf] %v1631_v33  ;;  %1634 = vst [vmem:[%s21880_s17 + $0x1460] sm:$0xf] %v1633_v34  ;;  %v1637_v36 = vld [vmem:[%s21884_s20 + $0x1460] sm:$0xf] }
 0x1cf   : >> { %1636 = vst [vmem:[%s21880_s17 + $0x1468] sm:$0xf] %v1635_v35  ;;  %v1639_v37 = vld [vmem:[%s21884_s20 + $0x1464] sm:$0xf]  ;;  %v1641_v38 = vld [vmem:[%s21884_s20 + $0x1468] sm:$0xf] }
 0x1d0   : >> { %1638 = vst [vmem:[%s21880_s17 + $0x1470] sm:$0xf] %v1637_v36  ;;  %1640 = vst [vmem:[%s21880_s17 + $0x1478] sm:$0xf] %v1639_v37  ;;  %v1643_v39 = vld [vmem:[%s21884_s20 + $0x146c] sm:$0xf] }
 0x1d1   : >> { %1642 = vst [vmem:[%s21880_s17 + $0x1480] sm:$0xf] %v1641_v38  ;;  %v1645_v40 = vld [vmem:[%s21884_s20 + $0x1470] sm:$0xf]  ;;  %v1647_v41 = vld [vmem:[%s21884_s20 + $0x1474] sm:$0xf] }
 0x1d2   : >> { %1644 = vst [vmem:[%s21880_s17 + $0x1488] sm:$0xf] %v1643_v39  ;;  %1646 = vst [vmem:[%s21880_s17 + $0x1490] sm:$0xf] %v1645_v40  ;;  %v1649_v42 = vld [vmem:[%s21884_s20 + $0x14a0] sm:$0xf] }
 0x1d3   : >> { %1648 = vst [vmem:[%s21880_s17 + $0x1498] sm:$0xf] %v1647_v41  ;;  %v1651_v43 = vld [vmem:[%s21884_s20 + $0x14a4] sm:$0xf]  ;;  %v1653_v44 = vld [vmem:[%s21884_s20 + $0x14a8] sm:$0xf] }
 0x1d4   : >> { %1650 = vst [vmem:[%s21880_s17 + $0x14a0] sm:$0xf] %v1649_v42  ;;  %1652 = vst [vmem:[%s21880_s17 + $0x14a8] sm:$0xf] %v1651_v43  ;;  %v1655_v45 = vld [vmem:[%s21884_s20 + $0x14ac] sm:$0xf] }
 0x1d5   : >> { %1654 = vst [vmem:[%s21880_s17 + $0x14b0] sm:$0xf] %v1653_v44  ;;  %v1657_v46 = vld [vmem:[%s21884_s20 + $0x14b0] sm:$0xf]  ;;  %v1659_v47 = vld [vmem:[%s21884_s20 + $0x14b4] sm:$0xf] }
 0x1d6   : >> { %1656 = vst [vmem:[%s21880_s17 + $0x14b8] sm:$0xf] %v1655_v45  ;;  %1658 = vst [vmem:[%s21880_s17 + $0x14c0] sm:$0xf] %v1657_v46  ;;  %v1661_v48 = vld [vmem:[%s21884_s20 + $0x14b8] sm:$0xf] }
 0x1d7   : >> { %1660 = vst [vmem:[%s21880_s17 + $0x14c8] sm:$0xf] %v1659_v47  ;;  %v1663_v49 = vld [vmem:[%s21884_s20 + $0x14bc] sm:$0xf]  ;;  %v1665_v50 = vld [vmem:[%s21884_s20 + $0x14c0] sm:$0xf] }
 0x1d8   : >> { %1662 = vst [vmem:[%s21880_s17 + $0x14d0] sm:$0xf] %v1661_v48  ;;  %1664 = vst [vmem:[%s21880_s17 + $0x14d8] sm:$0xf] %v1663_v49  ;;  %v1667_v51 = vld [vmem:[%s21884_s20 + $0x14c4] sm:$0xf] }
 0x1d9   : >> { %1666 = vst [vmem:[%s21880_s17 + $0x14e0] sm:$0xf] %v1665_v50  ;;  %v1669_v52 = vld [vmem:[%s21884_s20 + $0x14f0] sm:$0xf]  ;;  %v1671_v53 = vld [vmem:[%s21884_s20 + $0x14f4] sm:$0xf] }
 0x1da   : >> { %1668 = vst [vmem:[%s21880_s17 + $0x14e8] sm:$0xf] %v1667_v51  ;;  %1670 = vst [vmem:[%s21880_s17 + $0x14f0] sm:$0xf] %v1669_v52  ;;  %v1673_v54 = vld [vmem:[%s21884_s20 + $0x14f8] sm:$0xf] }
 0x1db   : >> { %1672 = vst [vmem:[%s21880_s17 + $0x14f8] sm:$0xf] %v1671_v53  ;;  %v1675_v55 = vld [vmem:[%s21884_s20 + $0x14fc] sm:$0xf]  ;;  %v1677_v56 = vld [vmem:[%s21884_s20 + $0x1500] sm:$0xf] }
 0x1dc   : >> { %1674 = vst [vmem:[%s21880_s17 + $0x1500] sm:$0xf] %v1673_v54  ;;  %1676 = vst [vmem:[%s21880_s17 + $0x1508] sm:$0xf] %v1675_v55  ;;  %v1679_v57 = vld [vmem:[%s21884_s20 + $0x1504] sm:$0xf] }
 0x1dd   : >> { %1678 = vst [vmem:[%s21880_s17 + $0x1510] sm:$0xf] %v1677_v56  ;;  %v1681_v58 = vld [vmem:[%s21884_s20 + $0x1508] sm:$0xf]  ;;  %v1683_v59 = vld [vmem:[%s21884_s20 + $0x150c] sm:$0xf] }
 0x1de   : >> { %1680 = vst [vmem:[%s21880_s17 + $0x1518] sm:$0xf] %v1679_v57  ;;  %1682 = vst [vmem:[%s21880_s17 + $0x1520] sm:$0xf] %v1681_v58  ;;  %v1685_v60 = vld [vmem:[%s21884_s20 + $0x1510] sm:$0xf] }
 0x1df   : >> { %1684 = vst [vmem:[%s21880_s17 + $0x1528] sm:$0xf] %v1683_v59  ;;  %v1687_v61 = vld [vmem:[%s21884_s20 + $0x1514] sm:$0xf]  ;;  %v1689_v62 = vld [vmem:[%s21884_s20 + $0x1540] sm:$0xf] }
 0x1e0   : >> { %1686 = vst [vmem:[%s21880_s17 + $0x1530] sm:$0xf] %v1685_v60  ;;  %1688 = vst [vmem:[%s21880_s17 + $0x1538] sm:$0xf] %v1687_v61  ;;  %v1691_v63 = vld [vmem:[%s21884_s20 + $0x1544] sm:$0xf] }
 0x1e1   : >> { %1690 = vst [vmem:[%s21880_s17 + $0x1540] sm:$0xf] %v1689_v62  ;;  %v1693_v0 = vld [vmem:[%s21884_s20 + $0x1548] sm:$0xf]  ;;  %v1695_v1 = vld [vmem:[%s21884_s20 + $0x154c] sm:$0xf] }
 0x1e2   : >> { %1692 = vst [vmem:[%s21880_s17 + $0x1548] sm:$0xf] %v1691_v63  ;;  %1694 = vst [vmem:[%s21880_s17 + $0x1550] sm:$0xf] %v1693_v0  ;;  %v1697_v2 = vld [vmem:[%s21884_s20 + $0x1550] sm:$0xf] }
 0x1e3   : >> { %1696 = vst [vmem:[%s21880_s17 + $0x1558] sm:$0xf] %v1695_v1  ;;  %v1699_v3 = vld [vmem:[%s21884_s20 + $0x1554] sm:$0xf]  ;;  %v1701_v4 = vld [vmem:[%s21884_s20 + $0x1558] sm:$0xf] }
 0x1e4   : >> { %1698 = vst [vmem:[%s21880_s17 + $0x1560] sm:$0xf] %v1697_v2  ;;  %1700 = vst [vmem:[%s21880_s17 + $0x1568] sm:$0xf] %v1699_v3  ;;  %v1703_v5 = vld [vmem:[%s21884_s20 + $0x155c] sm:$0xf] }
 0x1e5   : >> { %1702 = vst [vmem:[%s21880_s17 + $0x1570] sm:$0xf] %v1701_v4  ;;  %v1705_v6 = vld [vmem:[%s21884_s20 + $0x1560] sm:$0xf]  ;;  %v1707_v7 = vld [vmem:[%s21884_s20 + $0x1564] sm:$0xf] }
 0x1e6   : >> { %1704 = vst [vmem:[%s21880_s17 + $0x1578] sm:$0xf] %v1703_v5  ;;  %1706 = vst [vmem:[%s21880_s17 + $0x1580] sm:$0xf] %v1705_v6  ;;  %v1709_v8 = vld [vmem:[%s21884_s20 + $0x1590] sm:$0xf] }
 0x1e7   : >> { %1708 = vst [vmem:[%s21880_s17 + $0x1588] sm:$0xf] %v1707_v7  ;;  %v1711_v9 = vld [vmem:[%s21884_s20 + $0x1594] sm:$0xf]  ;;  %v1713_v10 = vld [vmem:[%s21884_s20 + $0x1598] sm:$0xf] }
 0x1e8   : >> { %1710 = vst [vmem:[%s21880_s17 + $0x1590] sm:$0xf] %v1709_v8  ;;  %1712 = vst [vmem:[%s21880_s17 + $0x1598] sm:$0xf] %v1711_v9  ;;  %v1715_v11 = vld [vmem:[%s21884_s20 + $0x159c] sm:$0xf] }
 0x1e9   : >> { %1714 = vst [vmem:[%s21880_s17 + $0x15a0] sm:$0xf] %v1713_v10  ;;  %v1717_v12 = vld [vmem:[%s21884_s20 + $0x15a0] sm:$0xf]  ;;  %v1719_v13 = vld [vmem:[%s21884_s20 + $0x15a4] sm:$0xf] }
 0x1ea   : >> { %1716 = vst [vmem:[%s21880_s17 + $0x15a8] sm:$0xf] %v1715_v11  ;;  %1718 = vst [vmem:[%s21880_s17 + $0x15b0] sm:$0xf] %v1717_v12  ;;  %v1721_v14 = vld [vmem:[%s21884_s20 + $0x15a8] sm:$0xf] }
 0x1eb   : >> { %1720 = vst [vmem:[%s21880_s17 + $0x15b8] sm:$0xf] %v1719_v13  ;;  %v1723_v15 = vld [vmem:[%s21884_s20 + $0x15ac] sm:$0xf]  ;;  %v1725_v16 = vld [vmem:[%s21884_s20 + $0x15b0] sm:$0xf] }
 0x1ec   : >> { %1722 = vst [vmem:[%s21880_s17 + $0x15c0] sm:$0xf] %v1721_v14  ;;  %1724 = vst [vmem:[%s21880_s17 + $0x15c8] sm:$0xf] %v1723_v15  ;;  %v1727_v17 = vld [vmem:[%s21884_s20 + $0x15b4] sm:$0xf] }
 0x1ed   : >> { %1726 = vst [vmem:[%s21880_s17 + $0x15d0] sm:$0xf] %v1725_v16  ;;  %v1729_v18 = vld [vmem:[%s21884_s20 + $0x15e0] sm:$0xf]  ;;  %v1731_v19 = vld [vmem:[%s21884_s20 + $0x15e4] sm:$0xf] }
 0x1ee   : >> { %1728 = vst [vmem:[%s21880_s17 + $0x15d8] sm:$0xf] %v1727_v17  ;;  %1730 = vst [vmem:[%s21880_s17 + $0x15e0] sm:$0xf] %v1729_v18  ;;  %v1733_v20 = vld [vmem:[%s21884_s20 + $0x15e8] sm:$0xf] }
 0x1ef   : >> { %1732 = vst [vmem:[%s21880_s17 + $0x15e8] sm:$0xf] %v1731_v19  ;;  %v1735_v21 = vld [vmem:[%s21884_s20 + $0x15ec] sm:$0xf]  ;;  %v1737_v22 = vld [vmem:[%s21884_s20 + $0x15f0] sm:$0xf] }
 0x1f0   : >> { %1734 = vst [vmem:[%s21880_s17 + $0x15f0] sm:$0xf] %v1733_v20  ;;  %1736 = vst [vmem:[%s21880_s17 + $0x15f8] sm:$0xf] %v1735_v21  ;;  %v1739_v23 = vld [vmem:[%s21884_s20 + $0x15f4] sm:$0xf] }
 0x1f1   : >> { %1738 = vst [vmem:[%s21880_s17 + $0x1600] sm:$0xf] %v1737_v22  ;;  %v1741_v24 = vld [vmem:[%s21884_s20 + $0x15f8] sm:$0xf]  ;;  %v1743_v25 = vld [vmem:[%s21884_s20 + $0x15fc] sm:$0xf] }
 0x1f2   : >> { %1740 = vst [vmem:[%s21880_s17 + $0x1608] sm:$0xf] %v1739_v23  ;;  %1742 = vst [vmem:[%s21880_s17 + $0x1610] sm:$0xf] %v1741_v24  ;;  %v1745_v26 = vld [vmem:[%s21884_s20 + $0x1600] sm:$0xf] }
 0x1f3   : >> { %1744 = vst [vmem:[%s21880_s17 + $0x1618] sm:$0xf] %v1743_v25  ;;  %v1747_v27 = vld [vmem:[%s21884_s20 + $0x1604] sm:$0xf]  ;;  %v1749_v28 = vld [vmem:[%s21884_s20 + $0x1630] sm:$0xf] }
 0x1f4   : >> { %1746 = vst [vmem:[%s21880_s17 + $0x1620] sm:$0xf] %v1745_v26  ;;  %1748 = vst [vmem:[%s21880_s17 + $0x1628] sm:$0xf] %v1747_v27  ;;  %v1751_v29 = vld [vmem:[%s21884_s20 + $0x1634] sm:$0xf] }
 0x1f5   : >> { %1750 = vst [vmem:[%s21880_s17 + $0x1630] sm:$0xf] %v1749_v28  ;;  %v1753_v30 = vld [vmem:[%s21884_s20 + $0x1638] sm:$0xf]  ;;  %v1755_v31 = vld [vmem:[%s21884_s20 + $0x163c] sm:$0xf] }
 0x1f6   : >> { %1752 = vst [vmem:[%s21880_s17 + $0x1638] sm:$0xf] %v1751_v29  ;;  %1754 = vst [vmem:[%s21880_s17 + $0x1640] sm:$0xf] %v1753_v30  ;;  %v1757_v32 = vld [vmem:[%s21884_s20 + $0x1640] sm:$0xf] }
 0x1f7   : >> { %1756 = vst [vmem:[%s21880_s17 + $0x1648] sm:$0xf] %v1755_v31  ;;  %v1759_v33 = vld [vmem:[%s21884_s20 + $0x1644] sm:$0xf]  ;;  %v1761_v34 = vld [vmem:[%s21884_s20 + $0x1648] sm:$0xf] }
 0x1f8   : >> { %1758 = vst [vmem:[%s21880_s17 + $0x1650] sm:$0xf] %v1757_v32  ;;  %1760 = vst [vmem:[%s21880_s17 + $0x1658] sm:$0xf] %v1759_v33  ;;  %v1763_v35 = vld [vmem:[%s21884_s20 + $0x164c] sm:$0xf] }
 0x1f9   : >> { %1762 = vst [vmem:[%s21880_s17 + $0x1660] sm:$0xf] %v1761_v34  ;;  %v1765_v36 = vld [vmem:[%s21884_s20 + $0x1650] sm:$0xf]  ;;  %v1767_v37 = vld [vmem:[%s21884_s20 + $0x1654] sm:$0xf] }
 0x1fa   : >> { %1764 = vst [vmem:[%s21880_s17 + $0x1668] sm:$0xf] %v1763_v35  ;;  %1766 = vst [vmem:[%s21880_s17 + $0x1670] sm:$0xf] %v1765_v36  ;;  %v1769_v38 = vld [vmem:[%s21884_s20 + $0x1680] sm:$0xf] }
 0x1fb   : >> { %1768 = vst [vmem:[%s21880_s17 + $0x1678] sm:$0xf] %v1767_v37  ;;  %v1771_v39 = vld [vmem:[%s21884_s20 + $0x1684] sm:$0xf]  ;;  %v1773_v40 = vld [vmem:[%s21884_s20 + $0x1688] sm:$0xf] }
 0x1fc   : >> { %1770 = vst [vmem:[%s21880_s17 + $0x1680] sm:$0xf] %v1769_v38  ;;  %1772 = vst [vmem:[%s21880_s17 + $0x1688] sm:$0xf] %v1771_v39  ;;  %v1775_v41 = vld [vmem:[%s21884_s20 + $0x168c] sm:$0xf] }
 0x1fd   : >> { %1774 = vst [vmem:[%s21880_s17 + $0x1690] sm:$0xf] %v1773_v40  ;;  %v1777_v42 = vld [vmem:[%s21884_s20 + $0x1690] sm:$0xf]  ;;  %v1779_v43 = vld [vmem:[%s21884_s20 + $0x1694] sm:$0xf] }
 0x1fe   : >> { %1776 = vst [vmem:[%s21880_s17 + $0x1698] sm:$0xf] %v1775_v41  ;;  %1778 = vst [vmem:[%s21880_s17 + $0x16a0] sm:$0xf] %v1777_v42  ;;  %v1781_v44 = vld [vmem:[%s21884_s20 + $0x1698] sm:$0xf] }
 0x1ff   : >> { %1780 = vst [vmem:[%s21880_s17 + $0x16a8] sm:$0xf] %v1779_v43  ;;  %v1783_v45 = vld [vmem:[%s21884_s20 + $0x169c] sm:$0xf]  ;;  %v1785_v46 = vld [vmem:[%s21884_s20 + $0x16a0] sm:$0xf] }
 0x200   : >> { %1782 = vst [vmem:[%s21880_s17 + $0x16b0] sm:$0xf] %v1781_v44  ;;  %1784 = vst [vmem:[%s21880_s17 + $0x16b8] sm:$0xf] %v1783_v45  ;;  %v1787_v47 = vld [vmem:[%s21884_s20 + $0x16a4] sm:$0xf] }
 0x201   : >> { %1786 = vst [vmem:[%s21880_s17 + $0x16c0] sm:$0xf] %v1785_v46  ;;  %v1789_v48 = vld [vmem:[%s21884_s20 + $0x16d0] sm:$0xf]  ;;  %v1791_v49 = vld [vmem:[%s21884_s20 + $0x16d4] sm:$0xf] }
 0x202   : >> { %1788 = vst [vmem:[%s21880_s17 + $0x16c8] sm:$0xf] %v1787_v47  ;;  %1790 = vst [vmem:[%s21880_s17 + $0x16d0] sm:$0xf] %v1789_v48  ;;  %v1793_v50 = vld [vmem:[%s21884_s20 + $0x16d8] sm:$0xf] }
 0x203   : >> { %1792 = vst [vmem:[%s21880_s17 + $0x16d8] sm:$0xf] %v1791_v49  ;;  %v1795_v51 = vld [vmem:[%s21884_s20 + $0x16dc] sm:$0xf]  ;;  %v1797_v52 = vld [vmem:[%s21884_s20 + $0x16e0] sm:$0xf] }
 0x204   : >> { %1794 = vst [vmem:[%s21880_s17 + $0x16e0] sm:$0xf] %v1793_v50  ;;  %1796 = vst [vmem:[%s21880_s17 + $0x16e8] sm:$0xf] %v1795_v51  ;;  %v1799_v53 = vld [vmem:[%s21884_s20 + $0x16e4] sm:$0xf] }
 0x205   : >> { %1798 = vst [vmem:[%s21880_s17 + $0x16f0] sm:$0xf] %v1797_v52  ;;  %v1801_v54 = vld [vmem:[%s21884_s20 + $0x16e8] sm:$0xf]  ;;  %v1803_v55 = vld [vmem:[%s21884_s20 + $0x16ec] sm:$0xf] }
 0x206   : >> { %1800 = vst [vmem:[%s21880_s17 + $0x16f8] sm:$0xf] %v1799_v53  ;;  %1802 = vst [vmem:[%s21880_s17 + $0x1700] sm:$0xf] %v1801_v54  ;;  %v1805_v56 = vld [vmem:[%s21884_s20 + $0x16f0] sm:$0xf] }
 0x207   : >> { %1804 = vst [vmem:[%s21880_s17 + $0x1708] sm:$0xf] %v1803_v55  ;;  %v1807_v57 = vld [vmem:[%s21884_s20 + $0x16f4] sm:$0xf]  ;;  %v1809_v58 = vld [vmem:[%s21884_s20 + $0x1720] sm:$0xf] }
 0x208   : >> { %1806 = vst [vmem:[%s21880_s17 + $0x1710] sm:$0xf] %v1805_v56  ;;  %1808 = vst [vmem:[%s21880_s17 + $0x1718] sm:$0xf] %v1807_v57  ;;  %v1811_v59 = vld [vmem:[%s21884_s20 + $0x1724] sm:$0xf] }
 0x209   : >> { %1810 = vst [vmem:[%s21880_s17 + $0x1720] sm:$0xf] %v1809_v58  ;;  %v1813_v60 = vld [vmem:[%s21884_s20 + $0x1728] sm:$0xf]  ;;  %v1815_v61 = vld [vmem:[%s21884_s20 + $0x172c] sm:$0xf] }
 0x20a   : >> { %1812 = vst [vmem:[%s21880_s17 + $0x1728] sm:$0xf] %v1811_v59  ;;  %1814 = vst [vmem:[%s21880_s17 + $0x1730] sm:$0xf] %v1813_v60  ;;  %v1817_v62 = vld [vmem:[%s21884_s20 + $0x1730] sm:$0xf] }
 0x20b   : >> { %1816 = vst [vmem:[%s21880_s17 + $0x1738] sm:$0xf] %v1815_v61  ;;  %v1819_v63 = vld [vmem:[%s21884_s20 + $0x1734] sm:$0xf]  ;;  %v1821_v0 = vld [vmem:[%s21884_s20 + $0x1738] sm:$0xf] }
 0x20c   : >> { %1818 = vst [vmem:[%s21880_s17 + $0x1740] sm:$0xf] %v1817_v62  ;;  %1820 = vst [vmem:[%s21880_s17 + $0x1748] sm:$0xf] %v1819_v63  ;;  %v1823_v1 = vld [vmem:[%s21884_s20 + $0x173c] sm:$0xf] }
 0x20d   : >> { %1822 = vst [vmem:[%s21880_s17 + $0x1750] sm:$0xf] %v1821_v0  ;;  %v1825_v2 = vld [vmem:[%s21884_s20 + $0x1740] sm:$0xf]  ;;  %v1827_v3 = vld [vmem:[%s21884_s20 + $0x1744] sm:$0xf] }
 0x20e   : >> { %1824 = vst [vmem:[%s21880_s17 + $0x1758] sm:$0xf] %v1823_v1  ;;  %1826 = vst [vmem:[%s21880_s17 + $0x1760] sm:$0xf] %v1825_v2  ;;  %p1830_p6 = scmp.ge.s32.totalorder %s1829_s23, 2  ;;  %s325_s22 = sadd.s32 1, %s21892_s22  }
 0x20f   : >> { %1828 = vst [vmem:[%s21880_s17 + $0x1768] sm:$0xf] %v1827_v3  ;;  %p322_p7 = scmp.ge.s32.totalorder %s325_s22, 2  }
 0x210   : >> { %s25389_s23 = smov (%p1830_p6, %s1829_s23), 0 }
 0x211   : >> { %s1832_s26 = smul.u32 40, %s25389_s23  ;;  %s18386_s27 = sshll.u32 %s25389_s23, 2 }
 0x212   : >> { %s1835_s17 = scalar_lea.vmem [#allocation3], %s18386_s27   ;;  %s25383_s21 = smov %s25389_s23 }
 0x213   : >> { %s1834_s20 = scalar_lea.vmem %s25377_s3, %s1832_s26   ;;  %324 = sbr.rel (!%p322_p7) target bundleno = 27 (0x1b), region = 213 }
 0x21a   : > { %6433 = vsyncadd [#allocation5], 96000  ;;  %v6467_v4 = vld [vmem:[%s25379_s5] sm:$0xff]  ;;  %v6469_v5 = vld [vmem:[%s25379_s5 + $0x8] sm:$0xff] }
 0x21b   : > { %6468 = vst [vmem:[#allocation4] sm:$0xff] %v6467_v4  ;;  %6470 = vst [vmem:[#allocation4 + $0x8] sm:$0xff] %v6469_v5  ;;  %v6471_v6 = vld [vmem:[%s25379_s5 + $0x10] sm:$0xff]  ;;  %v6473_v7 = vld [vmem:[%s25379_s5 + $0x18] sm:$0xff] }
 0x21c   : > { %v6475_v8 = vld [vmem:[%s25379_s5 + $0x20] sm:$0xff]  ;;  %6472 = vst [vmem:[#allocation4 + $0x10] sm:$0xff] %v6471_v6  ;;  %6474 = vst [vmem:[#allocation4 + $0x18] sm:$0xff] %v6473_v7  ;;  %v6477_v9 = vld [vmem:[%s25379_s5 + $0x28] sm:$0xff] }
 0x21d   : > { %6476 = vst [vmem:[#allocation4 + $0x20] sm:$0xff] %v6475_v8  ;;  %v6479_v10 = vld [vmem:[%s25379_s5 + $0x30] sm:$0xff]  ;;  %v6481_v11 = vld [vmem:[%s25379_s5 + $0x38] sm:$0xff]  ;;  %6478 = vst [vmem:[#allocation4 + $0x28] sm:$0xff] %v6477_v9 }
 0x21e   : > { %6480 = vst [vmem:[#allocation4 + $0x30] sm:$0xff] %v6479_v10  ;;  %6482 = vst [vmem:[#allocation4 + $0x38] sm:$0xff] %v6481_v11  ;;  %v6483_v12 = vld [vmem:[%s25379_s5 + $0x40] sm:$0xff]  ;;  %v6485_v13 = vld [vmem:[%s25379_s5 + $0x48] sm:$0xff] }
 0x21f   : > { %v6487_v14 = vld [vmem:[%s25379_s5 + $0x50] sm:$0xff]  ;;  %6484 = vst [vmem:[#allocation4 + $0x40] sm:$0xff] %v6483_v12  ;;  %6486 = vst [vmem:[#allocation4 + $0x48] sm:$0xff] %v6485_v13  ;;  %v6489_v15 = vld [vmem:[%s25379_s5 + $0x58] sm:$0xff] }
 0x220   : > { %6488 = vst [vmem:[#allocation4 + $0x50] sm:$0xff] %v6487_v14  ;;  %v6491_v16 = vld [vmem:[%s25379_s5 + $0x60] sm:$0xff]  ;;  %v6493_v17 = vld [vmem:[%s25379_s5 + $0x68] sm:$0xff]  ;;  %6490 = vst [vmem:[#allocation4 + $0x58] sm:$0xff] %v6489_v15 }
 0x221   : > { %6492 = vst [vmem:[#allocation4 + $0x60] sm:$0xff] %v6491_v16  ;;  %6494 = vst [vmem:[#allocation4 + $0x68] sm:$0xff] %v6493_v17  ;;  %v6495_v18 = vld [vmem:[%s25379_s5 + $0x70] sm:$0xff]  ;;  %v6497_v19 = vld [vmem:[%s25379_s5 + $0x78] sm:$0xff] }
 0x222   : > { %v6499_v20 = vld [vmem:[%s25379_s5 + $0x80] sm:$0xff]  ;;  %6496 = vst [vmem:[#allocation4 + $0x70] sm:$0xff] %v6495_v18  ;;  %6498 = vst [vmem:[#allocation4 + $0x78] sm:$0xff] %v6497_v19  ;;  %v6501_v21 = vld [vmem:[%s25379_s5 + $0x88] sm:$0xff] }
 0x223   : > { %6500 = vst [vmem:[#allocation4 + $0x80] sm:$0xff] %v6499_v20  ;;  %v6503_v22 = vld [vmem:[%s25379_s5 + $0x90] sm:$0xff]  ;;  %v6505_v23 = vld [vmem:[%s25379_s5 + $0x98] sm:$0xff]  ;;  %6502 = vst [vmem:[#allocation4 + $0x88] sm:$0xff] %v6501_v21 }
 0x224   : > { %6504 = vst [vmem:[#allocation4 + $0x90] sm:$0xff] %v6503_v22  ;;  %6506 = vst [vmem:[#allocation4 + $0x98] sm:$0xff] %v6505_v23  ;;  %v6507_v24 = vld [vmem:[%s25379_s5 + $0xa0] sm:$0xff]  ;;  %v6509_v25 = vld [vmem:[%s25379_s5 + $0xa8] sm:$0xff] }
 0x225   : > { %v6511_v26 = vld [vmem:[%s25379_s5 + $0xb0] sm:$0xff]  ;;  %6508 = vst [vmem:[#allocation4 + $0xa0] sm:$0xff] %v6507_v24  ;;  %6510 = vst [vmem:[#allocation4 + $0xa8] sm:$0xff] %v6509_v25  ;;  %v6513_v27 = vld [vmem:[%s25379_s5 + $0xb8] sm:$0xff] }
 0x226   : > { %6512 = vst [vmem:[#allocation4 + $0xb0] sm:$0xff] %v6511_v26  ;;  %v6515_v28 = vld [vmem:[%s25379_s5 + $0xc0] sm:$0xff]  ;;  %v6517_v29 = vld [vmem:[%s25379_s5 + $0xc8] sm:$0xff]  ;;  %6514 = vst [vmem:[#allocation4 + $0xb8] sm:$0xff] %v6513_v27 }
 0x227   : > { %6516 = vst [vmem:[#allocation4 + $0xc0] sm:$0xff] %v6515_v28  ;;  %6518 = vst [vmem:[#allocation4 + $0xc8] sm:$0xff] %v6517_v29  ;;  %v6519_v30 = vld [vmem:[%s25379_s5 + $0xd0] sm:$0xff]  ;;  %v6521_v31 = vld [vmem:[%s25379_s5 + $0xd8] sm:$0xff] }
 0x228   : > { %v6523_v32 = vld [vmem:[%s25379_s5 + $0xe0] sm:$0xff]  ;;  %6520 = vst [vmem:[#allocation4 + $0xd0] sm:$0xff] %v6519_v30  ;;  %6522 = vst [vmem:[#allocation4 + $0xd8] sm:$0xff] %v6521_v31  ;;  %v6525_v33 = vld [vmem:[%s25379_s5 + $0xe8] sm:$0xff] }
 0x229   : > { %6524 = vst [vmem:[#allocation4 + $0xe0] sm:$0xff] %v6523_v32  ;;  %v6527_v34 = vld [vmem:[%s25379_s5 + $0xf0] sm:$0xff]  ;;  %v6529_v35 = vld [vmem:[%s25379_s5 + $0xf8] sm:$0xff]  ;;  %6526 = vst [vmem:[#allocation4 + $0xe8] sm:$0xff] %v6525_v33 }
 0x22a   : > { %6528 = vst [vmem:[#allocation4 + $0xf0] sm:$0xff] %v6527_v34  ;;  %6530 = vst [vmem:[#allocation4 + $0xf8] sm:$0xff] %v6529_v35  ;;  %v6531_v36 = vld [vmem:[%s25379_s5 + $0x100] sm:$0xff]  ;;  %v6533_v37 = vld [vmem:[%s25379_s5 + $0x108] sm:$0xff] }
 0x22b   : > { %v6535_v38 = vld [vmem:[%s25379_s5 + $0x110] sm:$0xff]  ;;  %6532 = vst [vmem:[#allocation4 + $0x100] sm:$0xff] %v6531_v36  ;;  %6534 = vst [vmem:[#allocation4 + $0x108] sm:$0xff] %v6533_v37  ;;  %v6537_v39 = vld [vmem:[%s25379_s5 + $0x118] sm:$0xff] }
 0x22c   : > { %6536 = vst [vmem:[#allocation4 + $0x110] sm:$0xff] %v6535_v38  ;;  %v6539_v40 = vld [vmem:[%s25379_s5 + $0x120] sm:$0xff]  ;;  %v6541_v41 = vld [vmem:[%s25379_s5 + $0x128] sm:$0xff]  ;;  %6538 = vst [vmem:[#allocation4 + $0x118] sm:$0xff] %v6537_v39 }
 0x22d   : > { %6540 = vst [vmem:[#allocation4 + $0x120] sm:$0xff] %v6539_v40  ;;  %6542 = vst [vmem:[#allocation4 + $0x128] sm:$0xff] %v6541_v41  ;;  %v6543_v42 = vld [vmem:[%s25379_s5 + $0x130] sm:$0xff]  ;;  %v6545_v43 = vld [vmem:[%s25379_s5 + $0x138] sm:$0xff] }
 0x22e   : > { %v6547_v44 = vld [vmem:[%s25379_s5 + $0x140] sm:$0xff]  ;;  %6544 = vst [vmem:[#allocation4 + $0x130] sm:$0xff] %v6543_v42  ;;  %6546 = vst [vmem:[#allocation4 + $0x138] sm:$0xff] %v6545_v43  ;;  %v6549_v45 = vld [vmem:[%s25379_s5 + $0x148] sm:$0xff] }
 0x22f   : > { %6548 = vst [vmem:[#allocation4 + $0x140] sm:$0xff] %v6547_v44  ;;  %v6551_v46 = vld [vmem:[%s25379_s5 + $0x150] sm:$0xff]  ;;  %v6553_v47 = vld [vmem:[%s25379_s5 + $0x158] sm:$0xff]  ;;  %6550 = vst [vmem:[#allocation4 + $0x148] sm:$0xff] %v6549_v45 }
 0x230   : > { %6552 = vst [vmem:[#allocation4 + $0x150] sm:$0xff] %v6551_v46  ;;  %6554 = vst [vmem:[#allocation4 + $0x158] sm:$0xff] %v6553_v47  ;;  %v6555_v48 = vld [vmem:[%s25379_s5 + $0x160] sm:$0xff]  ;;  %v6557_v49 = vld [vmem:[%s25379_s5 + $0x168] sm:$0xff] }
 0x231   : > { %v6559_v50 = vld [vmem:[%s25379_s5 + $0x170] sm:$0xff]  ;;  %6556 = vst [vmem:[#allocation4 + $0x160] sm:$0xff] %v6555_v48  ;;  %6558 = vst [vmem:[#allocation4 + $0x168] sm:$0xff] %v6557_v49  ;;  %v6561_v51 = vld [vmem:[%s25379_s5 + $0x178] sm:$0xff] }
 0x232   : > { %6560 = vst [vmem:[#allocation4 + $0x170] sm:$0xff] %v6559_v50  ;;  %v6563_v52 = vld [vmem:[%s25379_s5 + $0x180] sm:$0xff]  ;;  %v6565_v53 = vld [vmem:[%s25379_s5 + $0x188] sm:$0xff]  ;;  %6562 = vst [vmem:[#allocation4 + $0x178] sm:$0xff] %v6561_v51 }
 0x233   : > { %6564 = vst [vmem:[#allocation4 + $0x180] sm:$0xff] %v6563_v52  ;;  %6566 = vst [vmem:[#allocation4 + $0x188] sm:$0xff] %v6565_v53  ;;  %v6567_v54 = vld [vmem:[%s25379_s5 + $0x190] sm:$0xff]  ;;  %v6569_v55 = vld [vmem:[%s25379_s5 + $0x198] sm:$0xff] }
 0x234   : > { %v6571_v56 = vld [vmem:[%s25379_s5 + $0x1a0] sm:$0xff]  ;;  %6568 = vst [vmem:[#allocation4 + $0x190] sm:$0xff] %v6567_v54  ;;  %6570 = vst [vmem:[#allocation4 + $0x198] sm:$0xff] %v6569_v55  ;;  %v6573_v57 = vld [vmem:[%s25379_s5 + $0x1a8] sm:$0xff] }
 0x235   : > { %6572 = vst [vmem:[#allocation4 + $0x1a0] sm:$0xff] %v6571_v56  ;;  %v6575_v58 = vld [vmem:[%s25379_s5 + $0x1b0] sm:$0xff]  ;;  %v6577_v59 = vld [vmem:[%s25379_s5 + $0x1b8] sm:$0xff]  ;;  %6574 = vst [vmem:[#allocation4 + $0x1a8] sm:$0xff] %v6573_v57 }
 0x236   : > { %6576 = vst [vmem:[#allocation4 + $0x1b0] sm:$0xff] %v6575_v58  ;;  %6578 = vst [vmem:[#allocation4 + $0x1b8] sm:$0xff] %v6577_v59  ;;  %v6579_v60 = vld [vmem:[%s25379_s5 + $0x1c0] sm:$0xff]  ;;  %v6581_v61 = vld [vmem:[%s25379_s5 + $0x1c8] sm:$0xff] }
 0x237   : > { %v6583_v62 = vld [vmem:[%s25379_s5 + $0x1d0] sm:$0xff]  ;;  %6580 = vst [vmem:[#allocation4 + $0x1c0] sm:$0xff] %v6579_v60  ;;  %6582 = vst [vmem:[#allocation4 + $0x1c8] sm:$0xff] %v6581_v61  ;;  %v6585_v63 = vld [vmem:[%s25379_s5 + $0x1d8] sm:$0xff] }
 0x238   : > { %6584 = vst [vmem:[#allocation4 + $0x1d0] sm:$0xff] %v6583_v62  ;;  %v6587_v0 = vld [vmem:[%s25379_s5 + $0x1e0] sm:$0xff]  ;;  %v6589_v1 = vld [vmem:[%s25379_s5 + $0x1e8] sm:$0xff]  ;;  %6586 = vst [vmem:[#allocation4 + $0x1d8] sm:$0xff] %v6585_v63 }
 0x239   : > { %6588 = vst [vmem:[#allocation4 + $0x1e0] sm:$0xff] %v6587_v0  ;;  %6590 = vst [vmem:[#allocation4 + $0x1e8] sm:$0xff] %v6589_v1  ;;  %v6591_v2 = vld [vmem:[%s25379_s5 + $0x1f0] sm:$0xff]  ;;  %v6593_v3 = vld [vmem:[%s25379_s5 + $0x1f8] sm:$0xff] }
 0x23a   : > { %v6595_v4 = vld [vmem:[%s25379_s5 + $0x200] sm:$0xff]  ;;  %6592 = vst [vmem:[#allocation4 + $0x1f0] sm:$0xff] %v6591_v2  ;;  %6594 = vst [vmem:[#allocation4 + $0x1f8] sm:$0xff] %v6593_v3  ;;  %v6597_v5 = vld [vmem:[%s25379_s5 + $0x208] sm:$0xff] }
 0x23b   : > { %6596 = vst [vmem:[#allocation4 + $0x200] sm:$0xff] %v6595_v4  ;;  %v6599_v6 = vld [vmem:[%s25379_s5 + $0x210] sm:$0xff]  ;;  %v6601_v7 = vld [vmem:[%s25379_s5 + $0x218] sm:$0xff]  ;;  %6598 = vst [vmem:[#allocation4 + $0x208] sm:$0xff] %v6597_v5 }
 0x23c   : > { %6600 = vst [vmem:[#allocation4 + $0x210] sm:$0xff] %v6599_v6  ;;  %6602 = vst [vmem:[#allocation4 + $0x218] sm:$0xff] %v6601_v7  ;;  %v6603_v8 = vld [vmem:[%s25379_s5 + $0x220] sm:$0xff]  ;;  %v6605_v9 = vld [vmem:[%s25379_s5 + $0x228] sm:$0xff] }
 0x23d   : > { %v6607_v10 = vld [vmem:[%s25379_s5 + $0x230] sm:$0xff]  ;;  %6604 = vst [vmem:[#allocation4 + $0x220] sm:$0xff] %v6603_v8  ;;  %6606 = vst [vmem:[#allocation4 + $0x228] sm:$0xff] %v6605_v9  ;;  %v6609_v11 = vld [vmem:[%s25379_s5 + $0x238] sm:$0xff] }
 0x23e   : > { %6608 = vst [vmem:[#allocation4 + $0x230] sm:$0xff] %v6607_v10  ;;  %v6611_v12 = vld [vmem:[%s25379_s5 + $0x240] sm:$0xff]  ;;  %v6613_v13 = vld [vmem:[%s25379_s5 + $0x248] sm:$0xff]  ;;  %6610 = vst [vmem:[#allocation4 + $0x238] sm:$0xff] %v6609_v11 }
 0x23f   : > { %6612 = vst [vmem:[#allocation4 + $0x240] sm:$0xff] %v6611_v12  ;;  %6614 = vst [vmem:[#allocation4 + $0x248] sm:$0xff] %v6613_v13  ;;  %v6615_v14 = vld [vmem:[%s25379_s5 + $0x250] sm:$0xff] }
 0x240   : > { %6616 = vst [vmem:[#allocation4 + $0x250] sm:$0xff] %v6615_v14 }
 0x241   : > { %6624 = vsyncadd [#allocation5 + $0x1], 9600 }
 0x242 PF: > { %v19913_v15 = vld [vmem:[%s21955_s12 + $0x4] ss:$40 sps:$4 sm:$0xff]   ;;  %v19917_v17 = vld [vmem:[%s21955_s12] ss:$40 sps:$4 sm:$0xff]   ;;  %v19919_v19 = vld [vmem:[%s21955_s12 + $0x54] ss:$40 sps:$4 sm:$0xff]  }
 0x243   : > { %v19915_v16 = vld [vmem:[%s21955_s12 + $0x504] ss:$40 sps:$4 sm:$0xff]   ;;  %14379 = vmatprep.subr.bf16.mxu0 %v19913_v15  ;;  %v19918_v18 = vld [vmem:[%s21955_s12 + $0x500] ss:$40 sps:$4 sm:$0xff]   ;;  %v19921_v20 = vld [vmem:[%s21955_s12 + $0x554] ss:$40 sps:$4 sm:$0xff]  }
 0x244   : > { %14420 = vmatprep.subr.bf16.mxu1 %v19915_v16  ;;  %14380 = vmatpush1.bf16.msra.mxu0 %v19917_v17  ;;  %v19923_v21 = vld [vmem:[%s21955_s12 + $0x50] ss:$40 sps:$4 sm:$0xff]   ;;  %v19925_v23 = vld [vmem:[%s21955_s12 + $0xa4] ss:$40 sps:$4 sm:$0xff]   ;;  %v19929_v25 = vld [vmem:[%s21955_s12 + $0xa0] ss:$40 sps:$4 sm:$0xff]  }
 0x245   : > { %14421 = vmatpush1.bf16.msra.mxu1 %v19918_v18  ;;  %14381 = vmatprep.subr.bf16.mxu0 %v19919_v19  ;;  %v19924_v22 = vld [vmem:[%s21955_s12 + $0x550] ss:$40 sps:$4 sm:$0xff]   ;;  %v19927_v24 = vld [vmem:[%s21955_s12 + $0x5a4] ss:$40 sps:$4 sm:$0xff]   ;;  %v19930_v26 = vld [vmem:[%s21955_s12 + $0x5a0] ss:$40 sps:$4 sm:$0xff]  }
 0x246   : > { %14422 = vmatprep.subr.bf16.mxu1 %v19921_v20  ;;  %v19931_v27 = vld [vmem:[%s21955_s12 + $0xf4] ss:$40 sps:$4 sm:$0xff]   ;;  %v19935_v29 = vld [vmem:[%s21955_s12 + $0xf0] ss:$40 sps:$4 sm:$0xff]   ;;  %v19937_v31 = vld [vmem:[%s21955_s12 + $0x144] ss:$40 sps:$4 sm:$0xff]  }
 0x247   : > { %v19933_v28 = vld [vmem:[%s21955_s12 + $0x5f4] ss:$40 sps:$4 sm:$0xff]   ;;  %v19936_v30 = vld [vmem:[%s21955_s12 + $0x5f0] ss:$40 sps:$4 sm:$0xff]   ;;  %v19939_v32 = vld [vmem:[%s21955_s12 + $0x644] ss:$40 sps:$4 sm:$0xff]  }
 0x248   : > { %14382 = vmatpush1.bf16.msra.mxu0 %v19923_v21  ;;  %v19941_v33 = vld [vmem:[%s21955_s12 + $0x140] ss:$40 sps:$4 sm:$0xff]   ;;  %v19943_v35 = vld [vmem:[%s21955_s12 + $0x194] ss:$40 sps:$4 sm:$0xff]   ;;  %v19947_v37 = vld [vmem:[%s21955_s12 + $0x190] ss:$40 sps:$4 sm:$0xff]  }
 0x249   : > { %14423 = vmatpush1.bf16.msra.mxu1 %v19924_v22  ;;  %14383 = vmatprep.subr.bf16.mxu0 %v19925_v23  ;;  %v19942_v34 = vld [vmem:[%s21955_s12 + $0x640] ss:$40 sps:$4 sm:$0xff]   ;;  %v19945_v36 = vld [vmem:[%s21955_s12 + $0x694] ss:$40 sps:$4 sm:$0xff]   ;;  %v19948_v38 = vld [vmem:[%s21955_s12 + $0x690] ss:$40 sps:$4 sm:$0xff]  }
 0x24a   : > { %14424 = vmatprep.subr.bf16.mxu1 %v19927_v24  ;;  %v19949_v39 = vld [vmem:[%s21955_s12 + $0x1e4] ss:$40 sps:$4 sm:$0xff]   ;;  %v19953_v41 = vld [vmem:[%s21955_s12 + $0x1e0] ss:$40 sps:$4 sm:$0xff]   ;;  %v19955_v43 = vld [vmem:[%s21955_s12 + $0x234] ss:$40 sps:$4 sm:$0xff]  }
 0x24b   : > { %v19951_v40 = vld [vmem:[%s21955_s12 + $0x6e4] ss:$40 sps:$4 sm:$0xff]   ;;  %v19954_v42 = vld [vmem:[%s21955_s12 + $0x6e0] ss:$40 sps:$4 sm:$0xff]   ;;  %v19957_v44 = vld [vmem:[%s21955_s12 + $0x734] ss:$40 sps:$4 sm:$0xff]  }
 0x24c   : > { %14384 = vmatpush1.bf16.msra.mxu0 %v19929_v25  ;;  %v19959_v45 = vld [vmem:[%s21955_s12 + $0x230] ss:$40 sps:$4 sm:$0xff]   ;;  %v19961_v47 = vld [vmem:[%s21955_s12 + $0x284] ss:$40 sps:$4 sm:$0xff]   ;;  %v19965_v49 = vld [vmem:[%s21955_s12 + $0x280] ss:$40 sps:$4 sm:$0xff]  }
 0x24d   : > { %14425 = vmatpush1.bf16.msra.mxu1 %v19930_v26  ;;  %14385 = vmatprep.subr.bf16.mxu0 %v19931_v27  ;;  %v19960_v46 = vld [vmem:[%s21955_s12 + $0x730] ss:$40 sps:$4 sm:$0xff]   ;;  %v19963_v48 = vld [vmem:[%s21955_s12 + $0x784] ss:$40 sps:$4 sm:$0xff]   ;;  %v19966_v50 = vld [vmem:[%s21955_s12 + $0x780] ss:$40 sps:$4 sm:$0xff]  }
 0x24e   : > { %14426 = vmatprep.subr.bf16.mxu1 %v19933_v28  ;;  %v19967_v51 = vld [vmem:[%s21955_s12 + $0x2d4] ss:$40 sps:$4 sm:$0xff]   ;;  %v19971_v53 = vld [vmem:[%s21955_s12 + $0x2d0] ss:$40 sps:$4 sm:$0xff]   ;;  %v19973_v55 = vld [vmem:[%s21955_s12 + $0x324] ss:$40 sps:$4 sm:$0xff]  }
 0x24f   : > { %v19969_v52 = vld [vmem:[%s21955_s12 + $0x7d4] ss:$40 sps:$4 sm:$0xff]   ;;  %v19972_v54 = vld [vmem:[%s21955_s12 + $0x7d0] ss:$40 sps:$4 sm:$0xff]   ;;  %v19975_v56 = vld [vmem:[%s21955_s12 + $0x824] ss:$40 sps:$4 sm:$0xff]  }
 0x250   : > { %14386 = vmatpush1.bf16.msra.mxu0 %v19935_v29  ;;  %v19977_v57 = vld [vmem:[%s21955_s12 + $0x320] ss:$40 sps:$4 sm:$0xff]   ;;  %v19979_v59 = vld [vmem:[%s21955_s12 + $0x374] ss:$40 sps:$4 sm:$0xff]   ;;  %v19983_v0 = vld [vmem:[%s21955_s12 + $0x370] ss:$40 sps:$4 sm:$0xff]  }
 0x251   : > { %14427 = vmatpush1.bf16.msra.mxu1 %v19936_v30  ;;  %14387 = vmatprep.subr.bf16.mxu0 %v19937_v31  ;;  %v19978_v58 = vld [vmem:[%s21955_s12 + $0x820] ss:$40 sps:$4 sm:$0xff]   ;;  %v19981_v60 = vld [vmem:[%s21955_s12 + $0x874] ss:$40 sps:$4 sm:$0xff]   ;;  %v19984_v1 = vld [vmem:[%s21955_s12 + $0x870] ss:$40 sps:$4 sm:$0xff]  }
 0x252   : > { %14428 = vmatprep.subr.bf16.mxu1 %v19939_v32  ;;  %v6635_v61 = vld [vmem:[%s21950_s8] sm:$0xff]  ;;  %v6636_v63 = vld [vmem:[%s21950_s8 + $0x8] sm:$0xff]  ;;  %v19991_v7 = vld [vmem:[%s21955_s12 + $0x414] ss:$40 sps:$4 sm:$0xff]   ;;  %vm16038_vm1 = vcmask 392192   ;;  %p19683_p8 = scmp.ne.s32.totalorder %s21941_s25, 1 }
 0x253   : > { %v23773_v62 = vcombine.high %v6635_v61, %v6635_v61  ;;  %v23778_v2 = vcombine.high %v6636_v63, %v6636_v63  ;;  %v19985_v3 = vld [vmem:[%s21955_s12 + $0x3c4] ss:$40 sps:$4 sm:$0xff]   ;;  %v19989_v5 = vld [vmem:[%s21955_s12 + $0x3c0] ss:$40 sps:$4 sm:$0xff]   ;;  %v19993_v8 = vld [vmem:[%s21955_s12 + $0x914] ss:$40 sps:$4 sm:$0xff]   ;;  %v23800_v21 = vcombine.low %v6635_v61, %v6635_v61  ;;  %v23802_v22 = vcombine.low %v6636_v63, %v6636_v63 }
 0x254   : > { %14388 = vmatpush1.bf16.msra.mxu0 %v19941_v33  ;;  %v19987_v4 = vld [vmem:[%s21955_s12 + $0x8c4] ss:$40 sps:$4 sm:$0xff]   ;;  %v19990_v6 = vld [vmem:[%s21955_s12 + $0x8c0] ss:$40 sps:$4 sm:$0xff]   ;;  %v19995_v9 = vld [vmem:[%s21955_s12 + $0x410] ss:$40 sps:$4 sm:$0xff]  }
 0x255   : > { %14429 = vmatpush1.bf16.msra.mxu1 %v19942_v34  ;;  %14389 = vmatprep.subr.bf16.mxu0 %v19943_v35  ;;  %v19996_v10 = vld [vmem:[%s21955_s12 + $0x910] ss:$40 sps:$4 sm:$0xff]   ;;  %v19997_v11 = vld [vmem:[%s21955_s12 + $0x464] ss:$40 sps:$4 sm:$0xff]   ;;  %v20001_v13 = vld [vmem:[%s21955_s12 + $0x460] ss:$40 sps:$4 sm:$0xff]  }
 0x256   : > { %14430 = vmatprep.subr.bf16.mxu1 %v19945_v36  ;;  %14411 = vmatprep.mubr.bf16.mxu0 %v23773_v62  ;;  %v19999_v12 = vld [vmem:[%s21955_s12 + $0x964] ss:$40 sps:$4 sm:$0xff]   ;;  %v20002_v14 = vld [vmem:[%s21955_s12 + $0x960] ss:$40 sps:$4 sm:$0xff]   ;;  %v20003_v15 = vld [vmem:[%s21955_s12 + $0x4b4] ss:$40 sps:$4 sm:$0xff]  }
 0x257   : > { %14452 = vmatprep.mubr.bf16.mxu1 %v23778_v2  ;;  %v20005_v16 = vld [vmem:[%s21955_s12 + $0x9b4] ss:$40 sps:$4 sm:$0xff]   ;;  %v20007_v17 = vld [vmem:[%s21955_s12 + $0x4b0] ss:$40 sps:$4 sm:$0xff]   ;;  %v20015_v19 = vld [vmem:[%s21955_s12 + $0xa04] ss:$40 sps:$4 sm:$0xff]  }
 0x258   : > { %14390 = vmatpush1.bf16.msra.mxu0 %v19947_v37  ;;  %v20008_v18 = vld [vmem:[%s21955_s12 + $0x9b0] ss:$40 sps:$4 sm:$0xff]   ;;  %v20018_v20 = vld [vmem:[%s21955_s12 + $0xf04] ss:$40 sps:$4 sm:$0xff]   ;;  %v20013_v23 = vld [vmem:[%s21955_s12 + $0xa00] ss:$40 sps:$4 sm:$0xff]  }
 0x259   : > { %14431 = vmatpush1.bf16.msra.mxu1 %v19948_v38  ;;  %14391 = vmatprep.subr.bf16.mxu0 %v19949_v39  ;;  %v20016_v24 = vld [vmem:[%s21955_s12 + $0xf00] ss:$40 sps:$4 sm:$0xff]   ;;  %v20021_v25 = vld [vmem:[%s21955_s12 + $0xa54] ss:$40 sps:$4 sm:$0xff]   ;;  %v20019_v27 = vld [vmem:[%s21955_s12 + $0xa50] ss:$40 sps:$4 sm:$0xff]  }
 0x25a   : > { %14432 = vmatprep.subr.bf16.mxu1 %v19951_v40  ;;  %v20024_v26 = vld [vmem:[%s21955_s12 + $0xf54] ss:$40 sps:$4 sm:$0xff]   ;;  %v20022_v28 = vld [vmem:[%s21955_s12 + $0xf50] ss:$40 sps:$4 sm:$0xff]   ;;  %v20027_v29 = vld [vmem:[%s21955_s12 + $0xaa4] ss:$40 sps:$4 sm:$0xff]  }
 0x25b   : > { %v20030_v30 = vld [vmem:[%s21955_s12 + $0xfa4] ss:$40 sps:$4 sm:$0xff]   ;;  %v20025_v31 = vld [vmem:[%s21955_s12 + $0xaa0] ss:$40 sps:$4 sm:$0xff]   ;;  %v20033_v33 = vld [vmem:[%s21955_s12 + $0xaf4] ss:$40 sps:$4 sm:$0xff]  }
 0x25c   : > { %14392 = vmatpush1.bf16.msra.mxu0 %v19953_v41  ;;  %v20028_v32 = vld [vmem:[%s21955_s12 + $0xfa0] ss:$40 sps:$4 sm:$0xff]   ;;  %v20036_v34 = vld [vmem:[%s21955_s12 + $0xff4] ss:$40 sps:$4 sm:$0xff]   ;;  %v20031_v35 = vld [vmem:[%s21955_s12 + $0xaf0] ss:$40 sps:$4 sm:$0xff]  }
 0x25d   : > { %14433 = vmatpush1.bf16.msra.mxu1 %v19954_v42  ;;  %14393 = vmatprep.subr.bf16.mxu0 %v19955_v43  ;;  %v20034_v36 = vld [vmem:[%s21955_s12 + $0xff0] ss:$40 sps:$4 sm:$0xff]   ;;  %v20039_v37 = vld [vmem:[%s21955_s12 + $0xb44] ss:$40 sps:$4 sm:$0xff]   ;;  %v20037_v39 = vld [vmem:[%s21955_s12 + $0xb40] ss:$40 sps:$4 sm:$0xff]  }
 0x25e   : > { %14434 = vmatprep.subr.bf16.mxu1 %v19957_v44  ;;  %v20042_v38 = vld [vmem:[%s21955_s12 + $0x1044] ss:$40 sps:$4 sm:$0xff]   ;;  %v20040_v40 = vld [vmem:[%s21955_s12 + $0x1040] ss:$40 sps:$4 sm:$0xff]   ;;  %v20045_v41 = vld [vmem:[%s21955_s12 + $0xb94] ss:$40 sps:$4 sm:$0xff]  }
 0x25f   : > { %v20048_v42 = vld [vmem:[%s21955_s12 + $0x1094] ss:$40 sps:$4 sm:$0xff]   ;;  %v20043_v43 = vld [vmem:[%s21955_s12 + $0xb90] ss:$40 sps:$4 sm:$0xff]  }
 0x260   : > { %14394 = vmatpush1.bf16.msra.mxu0 %v19959_v45  ;;  %v20046_v44 = vld [vmem:[%s21955_s12 + $0x1090] ss:$40 sps:$4 sm:$0xff]   ;;  %v20051_v45 = vld [vmem:[%s21955_s12 + $0xbe4] ss:$40 sps:$4 sm:$0xff]   ;;  %v20069_v61 = vld [vmem:[%s21955_s12 + $0xcd4] ss:$40 sps:$4 sm:$0xff]  }
 0x261   : > { %14435 = vmatpush1.bf16.msra.mxu1 %v19960_v46  ;;  %14395 = vmatprep.subr.bf16.mxu0 %v19961_v47  ;;  %v20054_v46 = vld [vmem:[%s21955_s12 + $0x10e4] ss:$40 sps:$4 sm:$0xff]   ;;  %v23831_v47 = vld [vmem:[%s21950_s8 + $0x10] sm:$0xff] }
 0x262   : > { %14436 = vmatprep.subr.bf16.mxu1 %v19963_v48  ;;  %v23834_v48 = vld [vmem:[%s21950_s8 + $0x18] sm:$0xff] }
 0x263   : > { %v20072_v63 = vld [vmem:[%s21955_s12 + $0x11d4] ss:$40 sps:$4 sm:$0xff]  }
 0x264   : > { %14396 = vmatpush1.bf16.msra.mxu0 %v19965_v49  ;;  %v20049_v49 = vld [vmem:[%s21955_s12 + $0xbe0] ss:$40 sps:$4 sm:$0xff]  }
 0x265   : > { %14437 = vmatpush1.bf16.msra.mxu1 %v19966_v50  ;;  %14397 = vmatprep.subr.bf16.mxu0 %v19967_v51  ;;  %v20052_v50 = vld [vmem:[%s21955_s12 + $0x10e0] ss:$40 sps:$4 sm:$0xff]   ;;  %v23840_v51 = vcombine.high %v23831_v47, %v23831_v47 }
 0x266   : > { %14438 = vmatprep.subr.bf16.mxu1 %v19969_v52  ;;  %v23844_v52 = vcombine.high %v23834_v48, %v23834_v48 }
 0x268   : > { %14398 = vmatpush1.bf16.msra.mxu0 %v19971_v53  ;;  %v20057_v53 = vld [vmem:[%s21955_s12 + $0xc34] ss:$40 sps:$4 sm:$0xff]  }
 0x269   : > { %14439 = vmatpush1.bf16.msra.mxu1 %v19972_v54  ;;  %14399 = vmatprep.subr.bf16.mxu0 %v19973_v55  ;;  %v20060_v54 = vld [vmem:[%s21955_s12 + $0x1134] ss:$40 sps:$4 sm:$0xff]   ;;  %v20055_v55 = vld [vmem:[%s21955_s12 + $0xc30] ss:$40 sps:$4 sm:$0xff]  }
 0x26a   : > { %14440 = vmatprep.subr.bf16.mxu1 %v19975_v56  ;;  %v20058_v56 = vld [vmem:[%s21955_s12 + $0x1130] ss:$40 sps:$4 sm:$0xff]  }
 0x26c   : > { %14400 = vmatpush1.bf16.msra.mxu0 %v19977_v57  ;;  %v20063_v57 = vld [vmem:[%s21955_s12 + $0xc84] ss:$40 sps:$4 sm:$0xff]  }
 0x26d   : > { %14441 = vmatpush1.bf16.msra.mxu1 %v19978_v58  ;;  %14401 = vmatprep.subr.bf16.mxu0 %v19979_v59  ;;  %v20066_v58 = vld [vmem:[%s21955_s12 + $0x1184] ss:$40 sps:$4 sm:$0xff]   ;;  %v20061_v59 = vld [vmem:[%s21955_s12 + $0xc80] ss:$40 sps:$4 sm:$0xff]  }
 0x26e   : > { %14442 = vmatprep.subr.bf16.mxu1 %v19981_v60  ;;  %v20064_v60 = vld [vmem:[%s21955_s12 + $0x1180] ss:$40 sps:$4 sm:$0xff]  }
 0x270   : > { %14402 = vmatpush1.bf16.msra.mxu0 %v19983_v0  ;;  %v20067_v0 = vld [vmem:[%s21955_s12 + $0xcd0] ss:$40 sps:$4 sm:$0xff]  }
 0x271   : > { %14443 = vmatpush1.bf16.msra.mxu1 %v19984_v1  ;;  %14403 = vmatprep.subr.bf16.mxu0 %v19985_v3  ;;  %v20070_v1 = vld [vmem:[%s21955_s12 + $0x11d0] ss:$40 sps:$4 sm:$0xff]   ;;  %v20075_v3 = vld [vmem:[%s21955_s12 + $0xd24] ss:$40 sps:$4 sm:$0xff]  }
 0x272   : > { %14444 = vmatprep.subr.bf16.mxu1 %v19987_v4  ;;  %v20078_v4 = vld [vmem:[%s21955_s12 + $0x1224] ss:$40 sps:$4 sm:$0xff]  }
 0x274   : > { %14404 = vmatpush1.bf16.msra.mxu0 %v19989_v5  ;;  %v20073_v5 = vld [vmem:[%s21955_s12 + $0xd20] ss:$40 sps:$4 sm:$0xff]  }
 0x275   : > { %14445 = vmatpush1.bf16.msra.mxu1 %v19990_v6  ;;  %14405 = vmatprep.subr.bf16.mxu0 %v19991_v7  ;;  %v20076_v6 = vld [vmem:[%s21955_s12 + $0x1220] ss:$40 sps:$4 sm:$0xff]   ;;  %v20081_v7 = vld [vmem:[%s21955_s12 + $0xd74] ss:$40 sps:$4 sm:$0xff]  }
 0x276   : > { %14446 = vmatprep.subr.bf16.mxu1 %v19993_v8  ;;  %v20084_v8 = vld [vmem:[%s21955_s12 + $0x1274] ss:$40 sps:$4 sm:$0xff]  }
 0x278   : > { %14406 = vmatpush1.bf16.msra.mxu0 %v19995_v9  ;;  %v20079_v9 = vld [vmem:[%s21955_s12 + $0xd70] ss:$40 sps:$4 sm:$0xff]  }
 0x279   : > { %14447 = vmatpush1.bf16.msra.mxu1 %v19996_v10  ;;  %14407 = vmatprep.subr.bf16.mxu0 %v19997_v11  ;;  %v20082_v10 = vld [vmem:[%s21955_s12 + $0x1270] ss:$40 sps:$4 sm:$0xff]   ;;  %v20087_v11 = vld [vmem:[%s21955_s12 + $0xdc4] ss:$40 sps:$4 sm:$0xff]  }
 0x27a   : > { %14448 = vmatprep.subr.bf16.mxu1 %v19999_v12  ;;  %v20090_v12 = vld [vmem:[%s21955_s12 + $0x12c4] ss:$40 sps:$4 sm:$0xff]  }
 0x27c   : > { %14408 = vmatpush1.bf16.msra.mxu0 %v20001_v13  ;;  %v20085_v13 = vld [vmem:[%s21955_s12 + $0xdc0] ss:$40 sps:$4 sm:$0xff]  }
 0x27d   : > { %14449 = vmatpush1.bf16.msra.mxu1 %v20002_v14  ;;  %14409 = vmatprep.subr.bf16.mxu0 %v20003_v15  ;;  %v20088_v14 = vld [vmem:[%s21955_s12 + $0x12c0] ss:$40 sps:$4 sm:$0xff]   ;;  %v20093_v15 = vld [vmem:[%s21955_s12 + $0xe14] ss:$40 sps:$4 sm:$0xff]  }
 0x27e   : > { %14450 = vmatprep.subr.bf16.mxu1 %v20005_v16  ;;  %v20096_v16 = vld [vmem:[%s21955_s12 + $0x1314] ss:$40 sps:$4 sm:$0xff]  }
 0x280   : > { %14410 = vmatpush1.bf16.msra.mxu0 %v20007_v17  ;;  %v20091_v17 = vld [vmem:[%s21955_s12 + $0xe10] ss:$40 sps:$4 sm:$0xff]  }
 0x281   : > { %14451 = vmatpush1.bf16.msra.mxu1 %v20008_v18  ;;  %14461 = vmatprep.subr.bf16.mxu0 %v20015_v19  ;;  %v20094_v18 = vld [vmem:[%s21955_s12 + $0x1310] ss:$40 sps:$4 sm:$0xff]   ;;  %v20099_v19 = vld [vmem:[%s21955_s12 + $0xe64] ss:$40 sps:$4 sm:$0xff]  }
 0x282   : > { %14502 = vmatprep.subr.bf16.mxu1 %v20018_v20  ;;  %v20102_v20 = vld [vmem:[%s21955_s12 + $0x1364] ss:$40 sps:$4 sm:$0xff]  }
 0x283   : > { %14412 = vmatmul.mubr.bf16.vlgmr.msra.gmra.mrb[0].mxu0 %v23800_v21 }
 0x284   : > { %14453 = vmatmul.mubr.bf16.vlgmr.msra.gmra.mrb[0].mxu1 %v23802_v22  ;;  %14462 = vmatpush1.bf16.msra.mxu0 %v20013_v23  ;;  %v20097_v23 = vld [vmem:[%s21955_s12 + $0xe60] ss:$40 sps:$4 sm:$0xff]  }
 0x285   : > { %14503 = vmatpush1.bf16.msra.mxu1 %v20016_v24  ;;  %14463 = vmatprep.subr.bf16.mxu0 %v20021_v25  ;;  %v20100_v24 = vld [vmem:[%s21955_s12 + $0x1360] ss:$40 sps:$4 sm:$0xff]   ;;  %v20105_v25 = vld [vmem:[%s21955_s12 + $0xeb4] ss:$40 sps:$4 sm:$0xff]  }
 0x286   : > { %14504 = vmatprep.subr.bf16.mxu1 %v20024_v26  ;;  %14493 = vmatprep.mubr.bf16.mxu0 %v23840_v51  ;;  %v20108_v26 = vld [vmem:[%s21955_s12 + $0x13b4] ss:$40 sps:$4 sm:$0xff]  }
 0x287   : > { %14534 = vmatprep.mubr.bf16.mxu1 %v23844_v52 }
 0x288   : > { %14464 = vmatpush1.bf16.msra.mxu0 %v20019_v27  ;;  %v20103_v27 = vld [vmem:[%s21955_s12 + $0xeb0] ss:$40 sps:$4 sm:$0xff]  }
 0x289   : > { %14505 = vmatpush1.bf16.msra.mxu1 %v20022_v28  ;;  %14465 = vmatprep.subr.bf16.mxu0 %v20027_v29  ;;  %v20106_v28 = vld [vmem:[%s21955_s12 + $0x13b0] ss:$40 sps:$4 sm:$0xff]   ;;  %v20115_v29 = vld [vmem:[%s21955_s12 + $0x1404] ss:$40 sps:$4 sm:$0xff]  }
 0x28a   : > { %14506 = vmatprep.subr.bf16.mxu1 %v20030_v30  ;;  %v20118_v30 = vld [vmem:[%s21955_s12 + $0x1904] ss:$40 sps:$4 sm:$0xff]  }
 0x28c   : > { %14466 = vmatpush1.bf16.msra.mxu0 %v20025_v31  ;;  %v23888_v31 = vcombine.low %v23831_v47, %v23831_v47  ;;  %v20133_v47 = vld [vmem:[%s21955_s12 + $0x14f4] ss:$40 sps:$4 sm:$0xff]  }
 0x28d   : > { %14507 = vmatpush1.bf16.msra.mxu1 %v20028_v32  ;;  %14467 = vmatprep.subr.bf16.mxu0 %v20033_v33  ;;  %v23892_v32 = vcombine.low %v23834_v48, %v23834_v48  ;;  %v20113_v33 = vld [vmem:[%s21955_s12 + $0x1400] ss:$40 sps:$4 sm:$0xff]   ;;  %v20136_v48 = vld [vmem:[%s21955_s12 + $0x19f4] ss:$40 sps:$4 sm:$0xff]  }
 0x28e   : > { %14508 = vmatprep.subr.bf16.mxu1 %v20036_v34  ;;  %v20116_v34 = vld [vmem:[%s21955_s12 + $0x1900] ss:$40 sps:$4 sm:$0xff]  }
 0x290   : > { %14468 = vmatpush1.bf16.msra.mxu0 %v20031_v35  ;;  %v20121_v35 = vld [vmem:[%s21955_s12 + $0x1454] ss:$40 sps:$4 sm:$0xff]  }
 0x291   : > { %14509 = vmatpush1.bf16.msra.mxu1 %v20034_v36  ;;  %14469 = vmatprep.subr.bf16.mxu0 %v20039_v37  ;;  %v20124_v36 = vld [vmem:[%s21955_s12 + $0x1954] ss:$40 sps:$4 sm:$0xff]   ;;  %v23899_v37 = vld [vmem:[%s21950_s8 + $0x20] sm:$0xff] }
 0x292   : > { %14510 = vmatprep.subr.bf16.mxu1 %v20042_v38  ;;  %v23902_v38 = vld [vmem:[%s21950_s8 + $0x28] sm:$0xff] }
 0x294   : > { %14470 = vmatpush1.bf16.msra.mxu0 %v20037_v39  ;;  %v23906_v39 = vcombine.high %v23899_v37, %v23899_v37 }
 0x295   : > { %14511 = vmatpush1.bf16.msra.mxu1 %v20040_v40  ;;  %14471 = vmatprep.subr.bf16.mxu0 %v20045_v41  ;;  %v23910_v40 = vcombine.high %v23902_v38, %v23902_v38  ;;  %v20119_v41 = vld [vmem:[%s21955_s12 + $0x1450] ss:$40 sps:$4 sm:$0xff]  }
 0x296   : > { %14512 = vmatprep.subr.bf16.mxu1 %v20048_v42  ;;  %v20122_v42 = vld [vmem:[%s21955_s12 + $0x1950] ss:$40 sps:$4 sm:$0xff]  }
 0x298   : > { %14472 = vmatpush1.bf16.msra.mxu0 %v20043_v43  ;;  %v20127_v43 = vld [vmem:[%s21955_s12 + $0x14a4] ss:$40 sps:$4 sm:$0xff]  }
 0x299   : > { %14513 = vmatpush1.bf16.msra.mxu1 %v20046_v44  ;;  %14473 = vmatprep.subr.bf16.mxu0 %v20051_v45  ;;  %v20130_v44 = vld [vmem:[%s21955_s12 + $0x19a4] ss:$40 sps:$4 sm:$0xff]   ;;  %v20125_v45 = vld [vmem:[%s21955_s12 + $0x14a0] ss:$40 sps:$4 sm:$0xff]  }
 0x29a   : > { %14514 = vmatprep.subr.bf16.mxu1 %v20054_v46  ;;  %v20128_v46 = vld [vmem:[%s21955_s12 + $0x19a0] ss:$40 sps:$4 sm:$0xff]  }
 0x29c   : > { %14474 = vmatpush1.bf16.msra.mxu0 %v20049_v49  ;;  %v20131_v49 = vld [vmem:[%s21955_s12 + $0x14f0] ss:$40 sps:$4 sm:$0xff]  }
 0x29d   : > { %14515 = vmatpush1.bf16.msra.mxu1 %v20052_v50  ;;  %14475 = vmatprep.subr.bf16.mxu0 %v20057_v53  ;;  %v20134_v50 = vld [vmem:[%s21955_s12 + $0x19f0] ss:$40 sps:$4 sm:$0xff]   ;;  %v20139_v53 = vld [vmem:[%s21955_s12 + $0x1544] ss:$40 sps:$4 sm:$0xff]  }
 0x29e   : > { %14516 = vmatprep.subr.bf16.mxu1 %v20060_v54  ;;  %v20142_v54 = vld [vmem:[%s21955_s12 + $0x1a44] ss:$40 sps:$4 sm:$0xff]  }
 0x2a0   : > { %14476 = vmatpush1.bf16.msra.mxu0 %v20055_v55  ;;  %v20137_v55 = vld [vmem:[%s21955_s12 + $0x1540] ss:$40 sps:$4 sm:$0xff]  }
 0x2a1   : > { %14517 = vmatpush1.bf16.msra.mxu1 %v20058_v56  ;;  %14477 = vmatprep.subr.bf16.mxu0 %v20063_v57  ;;  %v20140_v56 = vld [vmem:[%s21955_s12 + $0x1a40] ss:$40 sps:$4 sm:$0xff]   ;;  %v20145_v57 = vld [vmem:[%s21955_s12 + $0x1594] ss:$40 sps:$4 sm:$0xff]  }
 0x2a2   : > { %14518 = vmatprep.subr.bf16.mxu1 %v20066_v58  ;;  %v20148_v58 = vld [vmem:[%s21955_s12 + $0x1a94] ss:$40 sps:$4 sm:$0xff]  }
 0x2a4   : > { %14478 = vmatpush1.bf16.msra.mxu0 %v20061_v59  ;;  %v20143_v59 = vld [vmem:[%s21955_s12 + $0x1590] ss:$40 sps:$4 sm:$0xff]  }
 0x2a5   : > { %14519 = vmatpush1.bf16.msra.mxu1 %v20064_v60  ;;  %14479 = vmatprep.subr.bf16.mxu0 %v20069_v61  ;;  %v20146_v60 = vld [vmem:[%s21955_s12 + $0x1a90] ss:$40 sps:$4 sm:$0xff]   ;;  %v20151_v61 = vld [vmem:[%s21955_s12 + $0x15e4] ss:$40 sps:$4 sm:$0xff]  }
 0x2a6   : > { %14520 = vmatprep.subr.bf16.mxu1 %v20072_v63  ;;  %v20154_v63 = vld [vmem:[%s21955_s12 + $0x1ae4] ss:$40 sps:$4 sm:$0xff]  }
 0x2a8   : > { %14480 = vmatpush1.bf16.msra.mxu0 %v20067_v0  ;;  %v20149_v0 = vld [vmem:[%s21955_s12 + $0x15e0] ss:$40 sps:$4 sm:$0xff]  }
 0x2a9   : > { %14521 = vmatpush1.bf16.msra.mxu1 %v20070_v1  ;;  %14481 = vmatprep.subr.bf16.mxu0 %v20075_v3  ;;  %v20152_v1 = vld [vmem:[%s21955_s12 + $0x1ae0] ss:$40 sps:$4 sm:$0xff]   ;;  %v20157_v3 = vld [vmem:[%s21955_s12 + $0x1634] ss:$40 sps:$4 sm:$0xff]  }
 0x2aa   : > { %14522 = vmatprep.subr.bf16.mxu1 %v20078_v4  ;;  %v20160_v4 = vld [vmem:[%s21955_s12 + $0x1b34] ss:$40 sps:$4 sm:$0xff]  }
 0x2ac   : > { %14482 = vmatpush1.bf16.msra.mxu0 %v20073_v5  ;;  %v20155_v5 = vld [vmem:[%s21955_s12 + $0x1630] ss:$40 sps:$4 sm:$0xff]  }
 0x2ad   : > { %14523 = vmatpush1.bf16.msra.mxu1 %v20076_v6  ;;  %14483 = vmatprep.subr.bf16.mxu0 %v20081_v7  ;;  %v20158_v6 = vld [vmem:[%s21955_s12 + $0x1b30] ss:$40 sps:$4 sm:$0xff]   ;;  %v20163_v7 = vld [vmem:[%s21955_s12 + $0x1684] ss:$40 sps:$4 sm:$0xff]  }
 0x2ae   : > { %14524 = vmatprep.subr.bf16.mxu1 %v20084_v8  ;;  %v20166_v8 = vld [vmem:[%s21955_s12 + $0x1b84] ss:$40 sps:$4 sm:$0xff]  }
 0x2b0   : > { %14484 = vmatpush1.bf16.msra.mxu0 %v20079_v9  ;;  %v20161_v9 = vld [vmem:[%s21955_s12 + $0x1680] ss:$40 sps:$4 sm:$0xff]  }
 0x2b1   : > { %14525 = vmatpush1.bf16.msra.mxu1 %v20082_v10  ;;  %14485 = vmatprep.subr.bf16.mxu0 %v20087_v11  ;;  %v20164_v10 = vld [vmem:[%s21955_s12 + $0x1b80] ss:$40 sps:$4 sm:$0xff]   ;;  %v20169_v11 = vld [vmem:[%s21955_s12 + $0x16d4] ss:$40 sps:$4 sm:$0xff]  }
 0x2b2   : > { %14526 = vmatprep.subr.bf16.mxu1 %v20090_v12  ;;  %v20172_v12 = vld [vmem:[%s21955_s12 + $0x1bd4] ss:$40 sps:$4 sm:$0xff]  }
 0x2b4   : > { %14486 = vmatpush1.bf16.msra.mxu0 %v20085_v13  ;;  %v20167_v13 = vld [vmem:[%s21955_s12 + $0x16d0] ss:$40 sps:$4 sm:$0xff]  }
 0x2b5   : > { %14527 = vmatpush1.bf16.msra.mxu1 %v20088_v14  ;;  %14487 = vmatprep.subr.bf16.mxu0 %v20093_v15  ;;  %v20170_v14 = vld [vmem:[%s21955_s12 + $0x1bd0] ss:$40 sps:$4 sm:$0xff]   ;;  %v20175_v15 = vld [vmem:[%s21955_s12 + $0x1724] ss:$40 sps:$4 sm:$0xff]  }
 0x2b6   : > { %14528 = vmatprep.subr.bf16.mxu1 %v20096_v16  ;;  %v20178_v16 = vld [vmem:[%s21955_s12 + $0x1c24] ss:$40 sps:$4 sm:$0xff]  }
 0x2b8   : > { %14488 = vmatpush1.bf16.msra.mxu0 %v20091_v17  ;;  %v20173_v17 = vld [vmem:[%s21955_s12 + $0x1720] ss:$40 sps:$4 sm:$0xff]  }
 0x2b9   : > { %14529 = vmatpush1.bf16.msra.mxu1 %v20094_v18  ;;  %14489 = vmatprep.subr.bf16.mxu0 %v20099_v19  ;;  %v20176_v18 = vld [vmem:[%s21955_s12 + $0x1c20] ss:$40 sps:$4 sm:$0xff]   ;;  %v20181_v19 = vld [vmem:[%s21955_s12 + $0x1774] ss:$40 sps:$4 sm:$0xff]  }
 0x2ba   : > { %14530 = vmatprep.subr.bf16.mxu1 %v20102_v20  ;;  %v20184_v20 = vld [vmem:[%s21955_s12 + $0x1c74] ss:$40 sps:$4 sm:$0xff]  }
 0x2bc   : > { %14490 = vmatpush1.bf16.msra.mxu0 %v20097_v23  ;;  %v20179_v23 = vld [vmem:[%s21955_s12 + $0x1770] ss:$40 sps:$4 sm:$0xff]  }
 0x2bd   : > { %14531 = vmatpush1.bf16.msra.mxu1 %v20100_v24  ;;  %14491 = vmatprep.subr.bf16.mxu0 %v20105_v25  ;;  %v20182_v24 = vld [vmem:[%s21955_s12 + $0x1c70] ss:$40 sps:$4 sm:$0xff]   ;;  %v20187_v25 = vld [vmem:[%s21955_s12 + $0x17c4] ss:$40 sps:$4 sm:$0xff]  }
 0x2be   : > { %14532 = vmatprep.subr.bf16.mxu1 %v20108_v26  ;;  %v20190_v26 = vld [vmem:[%s21955_s12 + $0x1cc4] ss:$40 sps:$4 sm:$0xff]  }
 0x2c0   : > { %14492 = vmatpush1.bf16.msra.mxu0 %v20103_v27  ;;  %v20185_v27 = vld [vmem:[%s21955_s12 + $0x17c0] ss:$40 sps:$4 sm:$0xff]  }
 0x2c1   : > { %14533 = vmatpush1.bf16.msra.mxu1 %v20106_v28  ;;  %14543 = vmatprep.subr.bf16.mxu0 %v20115_v29  ;;  %v20188_v28 = vld [vmem:[%s21955_s12 + $0x1cc0] ss:$40 sps:$4 sm:$0xff]   ;;  %v20193_v29 = vld [vmem:[%s21955_s12 + $0x1814] ss:$40 sps:$4 sm:$0xff]  }
 0x2c2   : > { %14584 = vmatprep.subr.bf16.mxu1 %v20118_v30  ;;  %v20196_v30 = vld [vmem:[%s21955_s12 + $0x1d14] ss:$40 sps:$4 sm:$0xff]  }
 0x2c3   : > { %14494 = vmatmul.mubr.bf16.vlgmr.msra.gmra.mrb[4].mxu0 %v23888_v31 }
 0x2c4   : > { %14535 = vmatmul.mubr.bf16.vlgmr.msra.gmra.mrb[4].mxu1 %v23892_v32  ;;  %14544 = vmatpush1.bf16.msra.mxu0 %v20113_v33  ;;  %v20191_v33 = vld [vmem:[%s21955_s12 + $0x1810] ss:$40 sps:$4 sm:$0xff]  }
 0x2c5   : > { %14585 = vmatpush1.bf16.msra.mxu1 %v20116_v34  ;;  %14545 = vmatprep.subr.bf16.mxu0 %v20121_v35  ;;  %v20194_v34 = vld [vmem:[%s21955_s12 + $0x1d10] ss:$40 sps:$4 sm:$0xff]   ;;  %v20199_v35 = vld [vmem:[%s21955_s12 + $0x1864] ss:$40 sps:$4 sm:$0xff]  }
 0x2c6   : > { %14586 = vmatprep.subr.bf16.mxu1 %v20124_v36  ;;  %14575 = vmatprep.mubr.bf16.mxu0 %v23906_v39  ;;  %v20202_v36 = vld [vmem:[%s21955_s12 + $0x1d64] ss:$40 sps:$4 sm:$0xff]  }
 0x2c7   : > { %14616 = vmatprep.mubr.bf16.mxu1 %v23910_v40 }
 0x2c8   : > { %14546 = vmatpush1.bf16.msra.mxu0 %v20119_v41  ;;  %v20197_v41 = vld [vmem:[%s21955_s12 + $0x1860] ss:$40 sps:$4 sm:$0xff]  }
 0x2c9   : > { %14587 = vmatpush1.bf16.msra.mxu1 %v20122_v42  ;;  %14547 = vmatprep.subr.bf16.mxu0 %v20127_v43  ;;  %v20200_v42 = vld [vmem:[%s21955_s12 + $0x1d60] ss:$40 sps:$4 sm:$0xff]   ;;  %v20205_v43 = vld [vmem:[%s21955_s12 + $0x18b4] ss:$40 sps:$4 sm:$0xff]  }
 0x2ca   : > { %14588 = vmatprep.subr.bf16.mxu1 %v20130_v44  ;;  %v20208_v44 = vld [vmem:[%s21955_s12 + $0x1db4] ss:$40 sps:$4 sm:$0xff]  }
 0x2cc   : > { %14548 = vmatpush1.bf16.msra.mxu0 %v20125_v45  ;;  %v20203_v45 = vld [vmem:[%s21955_s12 + $0x18b0] ss:$40 sps:$4 sm:$0xff]  }
 0x2cd   : > { %14589 = vmatpush1.bf16.msra.mxu1 %v20128_v46  ;;  %14549 = vmatprep.subr.bf16.mxu0 %v20133_v47  ;;  %v20206_v46 = vld [vmem:[%s21955_s12 + $0x1db0] ss:$40 sps:$4 sm:$0xff]   ;;  %v20215_v47 = vld [vmem:[%s21955_s12 + $0x1e04] ss:$40 sps:$4 sm:$0xff]  }
 0x2ce   : > { %14590 = vmatprep.subr.bf16.mxu1 %v20136_v48  ;;  %v20218_v48 = vld [vmem:[%s21955_s12 + $0x2304] ss:$40 sps:$4 sm:$0xff]  }
 0x2d0   : > { %14550 = vmatpush1.bf16.msra.mxu0 %v20131_v49  ;;  %v20213_v49 = vld [vmem:[%s21955_s12 + $0x1e00] ss:$40 sps:$4 sm:$0xff]  }
 0x2d1   : > { %14591 = vmatpush1.bf16.msra.mxu1 %v20134_v50  ;;  %14551 = vmatprep.subr.bf16.mxu0 %v20139_v53  ;;  %v20216_v50 = vld [vmem:[%s21955_s12 + $0x2300] ss:$40 sps:$4 sm:$0xff]   ;;  %v23980_v53 = vcombine.low %v23899_v37, %v23899_v37 }
 0x2d2   : > { %14592 = vmatprep.subr.bf16.mxu1 %v20142_v54  ;;  %v23984_v54 = vcombine.low %v23902_v38, %v23902_v38 }
 0x2d4   : > { %14552 = vmatpush1.bf16.msra.mxu0 %v20137_v55  ;;  %v23987_v55 = vld [vmem:[%s21950_s8 + $0x30] sm:$0xff] }
 0x2d5   : > { %14593 = vmatpush1.bf16.msra.mxu1 %v20140_v56  ;;  %14553 = vmatprep.subr.bf16.mxu0 %v20145_v57  ;;  %v23990_v56 = vld [vmem:[%s21950_s8 + $0x38] sm:$0xff]  ;;  %v23996_v37 = vcombine.high %v23987_v55, %v23987_v55 }
 0x2d6   : > { %14594 = vmatprep.subr.bf16.mxu1 %v20148_v58  ;;  %v20221_v57 = vld [vmem:[%s21955_s12 + $0x1e54] ss:$40 sps:$4 sm:$0xff]   ;;  %v24000_v38 = vcombine.high %v23990_v56, %v23990_v56 }
 0x2d7   : > { %v20224_v58 = vld [vmem:[%s21955_s12 + $0x2354] ss:$40 sps:$4 sm:$0xff]  }
 0x2d8   : > { %14554 = vmatpush1.bf16.msra.mxu0 %v20143_v59  ;;  %v20219_v59 = vld [vmem:[%s21955_s12 + $0x1e50] ss:$40 sps:$4 sm:$0xff]  }
 0x2d9   : > { %14595 = vmatpush1.bf16.msra.mxu1 %v20146_v60  ;;  %14555 = vmatprep.subr.bf16.mxu0 %v20151_v61  ;;  %v20222_v60 = vld [vmem:[%s21955_s12 + $0x2350] ss:$40 sps:$4 sm:$0xff]   ;;  %v20227_v61 = vld [vmem:[%s21955_s12 + $0x1ea4] ss:$40 sps:$4 sm:$0xff]  }
 0x2da   : > { %14596 = vmatprep.subr.bf16.mxu1 %v20154_v63  ;;  %v20230_v63 = vld [vmem:[%s21955_s12 + $0x23a4] ss:$40 sps:$4 sm:$0xff]  }
 0x2dc   : > { %14556 = vmatpush1.bf16.msra.mxu0 %v20149_v0  ;;  %v20225_v0 = vld [vmem:[%s21955_s12 + $0x1ea0] ss:$40 sps:$4 sm:$0xff]  }
 0x2dd   : > { %14597 = vmatpush1.bf16.msra.mxu1 %v20152_v1  ;;  %14557 = vmatprep.subr.bf16.mxu0 %v20157_v3  ;;  %v20228_v1 = vld [vmem:[%s21955_s12 + $0x23a0] ss:$40 sps:$4 sm:$0xff]   ;;  %v20233_v3 = vld [vmem:[%s21955_s12 + $0x1ef4] ss:$40 sps:$4 sm:$0xff]  }
 0x2de   : > { %14598 = vmatprep.subr.bf16.mxu1 %v20160_v4  ;;  %v20236_v4 = vld [vmem:[%s21955_s12 + $0x23f4] ss:$40 sps:$4 sm:$0xff]  }
 0x2e0   : > { %14558 = vmatpush1.bf16.msra.mxu0 %v20155_v5  ;;  %v20231_v5 = vld [vmem:[%s21955_s12 + $0x1ef0] ss:$40 sps:$4 sm:$0xff]  }
 0x2e1   : > { %14599 = vmatpush1.bf16.msra.mxu1 %v20158_v6  ;;  %14559 = vmatprep.subr.bf16.mxu0 %v20163_v7  ;;  %v20234_v6 = vld [vmem:[%s21955_s12 + $0x23f0] ss:$40 sps:$4 sm:$0xff]   ;;  %v20239_v7 = vld [vmem:[%s21955_s12 + $0x1f44] ss:$40 sps:$4 sm:$0xff]  }
 0x2e2   : > { %14600 = vmatprep.subr.bf16.mxu1 %v20166_v8  ;;  %v20242_v8 = vld [vmem:[%s21955_s12 + $0x2444] ss:$40 sps:$4 sm:$0xff]  }
 0x2e4   : > { %14560 = vmatpush1.bf16.msra.mxu0 %v20161_v9  ;;  %v20237_v9 = vld [vmem:[%s21955_s12 + $0x1f40] ss:$40 sps:$4 sm:$0xff]  }
 0x2e5   : > { %14601 = vmatpush1.bf16.msra.mxu1 %v20164_v10  ;;  %14561 = vmatprep.subr.bf16.mxu0 %v20169_v11  ;;  %v20240_v10 = vld [vmem:[%s21955_s12 + $0x2440] ss:$40 sps:$4 sm:$0xff]   ;;  %v20245_v11 = vld [vmem:[%s21955_s12 + $0x1f94] ss:$40 sps:$4 sm:$0xff]  }
 0x2e6   : > { %14602 = vmatprep.subr.bf16.mxu1 %v20172_v12  ;;  %v20248_v12 = vld [vmem:[%s21955_s12 + $0x2494] ss:$40 sps:$4 sm:$0xff]  }
 0x2e8   : > { %14562 = vmatpush1.bf16.msra.mxu0 %v20167_v13  ;;  %v20243_v13 = vld [vmem:[%s21955_s12 + $0x1f90] ss:$40 sps:$4 sm:$0xff]  }
 0x2e9   : > { %14603 = vmatpush1.bf16.msra.mxu1 %v20170_v14  ;;  %14563 = vmatprep.subr.bf16.mxu0 %v20175_v15  ;;  %v20246_v14 = vld [vmem:[%s21955_s12 + $0x2490] ss:$40 sps:$4 sm:$0xff]   ;;  %v20251_v15 = vld [vmem:[%s21955_s12 + $0x1fe4] ss:$40 sps:$4 sm:$0xff]  }
 0x2ea   : > { %14604 = vmatprep.subr.bf16.mxu1 %v20178_v16  ;;  %v20254_v16 = vld [vmem:[%s21955_s12 + $0x24e4] ss:$40 sps:$4 sm:$0xff]  }
 0x2ec   : > { %14564 = vmatpush1.bf16.msra.mxu0 %v20173_v17  ;;  %v20249_v17 = vld [vmem:[%s21955_s12 + $0x1fe0] ss:$40 sps:$4 sm:$0xff]  }
 0x2ed   : > { %14605 = vmatpush1.bf16.msra.mxu1 %v20176_v18  ;;  %14565 = vmatprep.subr.bf16.mxu0 %v20181_v19  ;;  %v20252_v18 = vld [vmem:[%s21955_s12 + $0x24e0] ss:$40 sps:$4 sm:$0xff]   ;;  %v20257_v19 = vld [vmem:[%s21955_s12 + $0x2034] ss:$40 sps:$4 sm:$0xff]  }
 0x2ee   : > { %14606 = vmatprep.subr.bf16.mxu1 %v20184_v20  ;;  %v20260_v20 = vld [vmem:[%s21955_s12 + $0x2534] ss:$40 sps:$4 sm:$0xff]  }
 0x2f0   : > { %14566 = vmatpush1.bf16.msra.mxu0 %v20179_v23  ;;  %v20255_v23 = vld [vmem:[%s21955_s12 + $0x2030] ss:$40 sps:$4 sm:$0xff]  }
 0x2f1   : > { %14607 = vmatpush1.bf16.msra.mxu1 %v20182_v24  ;;  %14567 = vmatprep.subr.bf16.mxu0 %v20187_v25  ;;  %v20258_v24 = vld [vmem:[%s21955_s12 + $0x2530] ss:$40 sps:$4 sm:$0xff]   ;;  %v20263_v25 = vld [vmem:[%s21955_s12 + $0x2084] ss:$40 sps:$4 sm:$0xff]  }
 0x2f2   : > { %14608 = vmatprep.subr.bf16.mxu1 %v20190_v26  ;;  %v20266_v26 = vld [vmem:[%s21955_s12 + $0x2584] ss:$40 sps:$4 sm:$0xff]  }
 0x2f4   : > { %14568 = vmatpush1.bf16.msra.mxu0 %v20185_v27  ;;  %v20261_v27 = vld [vmem:[%s21955_s12 + $0x2080] ss:$40 sps:$4 sm:$0xff]  }
 0x2f5   : > { %14609 = vmatpush1.bf16.msra.mxu1 %v20188_v28  ;;  %14569 = vmatprep.subr.bf16.mxu0 %v20193_v29  ;;  %v20264_v28 = vld [vmem:[%s21955_s12 + $0x2580] ss:$40 sps:$4 sm:$0xff]   ;;  %v20269_v29 = vld [vmem:[%s21955_s12 + $0x20d4] ss:$40 sps:$4 sm:$0xff]  }
 0x2f6   : > { %14610 = vmatprep.subr.bf16.mxu1 %v20196_v30  ;;  %v20272_v30 = vld [vmem:[%s21955_s12 + $0x25d4] ss:$40 sps:$4 sm:$0xff]  }
 0x2f8   : > { %14570 = vmatpush1.bf16.msra.mxu0 %v20191_v33  ;;  %v20267_v33 = vld [vmem:[%s21955_s12 + $0x20d0] ss:$40 sps:$4 sm:$0xff]  }
 0x2f9   : > { %14611 = vmatpush1.bf16.msra.mxu1 %v20194_v34  ;;  %14571 = vmatprep.subr.bf16.mxu0 %v20199_v35  ;;  %v20270_v34 = vld [vmem:[%s21955_s12 + $0x25d0] ss:$40 sps:$4 sm:$0xff]   ;;  %v20275_v35 = vld [vmem:[%s21955_s12 + $0x2124] ss:$40 sps:$4 sm:$0xff]  }
 0x2fa   : > { %14612 = vmatprep.subr.bf16.mxu1 %v20202_v36  ;;  %v20278_v36 = vld [vmem:[%s21955_s12 + $0x2624] ss:$40 sps:$4 sm:$0xff]  }
 0x2fc   : > { %14572 = vmatpush1.bf16.msra.mxu0 %v20197_v41  ;;  %v20273_v41 = vld [vmem:[%s21955_s12 + $0x2120] ss:$40 sps:$4 sm:$0xff]  }
 0x2fd   : > { %14613 = vmatpush1.bf16.msra.mxu1 %v20200_v42  ;;  %14573 = vmatprep.subr.bf16.mxu0 %v20205_v43  ;;  %v20276_v42 = vld [vmem:[%s21955_s12 + $0x2620] ss:$40 sps:$4 sm:$0xff]   ;;  %v20281_v43 = vld [vmem:[%s21955_s12 + $0x2174] ss:$40 sps:$4 sm:$0xff]  }
 0x2fe   : > { %14614 = vmatprep.subr.bf16.mxu1 %v20208_v44  ;;  %v20284_v44 = vld [vmem:[%s21955_s12 + $0x2674] ss:$40 sps:$4 sm:$0xff]  }
 0x300   : > { %14574 = vmatpush1.bf16.msra.mxu0 %v20203_v45  ;;  %v20279_v45 = vld [vmem:[%s21955_s12 + $0x2170] ss:$40 sps:$4 sm:$0xff]  }
 0x301   : > { %14615 = vmatpush1.bf16.msra.mxu1 %v20206_v46  ;;  %14625 = vmatprep.subr.bf16.mxu0 %v20215_v47  ;;  %v20282_v46 = vld [vmem:[%s21955_s12 + $0x2670] ss:$40 sps:$4 sm:$0xff]   ;;  %v20287_v47 = vld [vmem:[%s21955_s12 + $0x21c4] ss:$40 sps:$4 sm:$0xff]  }
 0x302   : > { %14666 = vmatprep.subr.bf16.mxu1 %v20218_v48  ;;  %v20290_v48 = vld [vmem:[%s21955_s12 + $0x26c4] ss:$40 sps:$4 sm:$0xff]  }
 0x303   : > { %14576 = vmatmul.mubr.bf16.vlgmr.msra.gmra.mrb[8].mxu0 %v23980_v53 }
 0x304   : > { %14617 = vmatmul.mubr.bf16.vlgmr.msra.gmra.mrb[8].mxu1 %v23984_v54  ;;  %14626 = vmatpush1.bf16.msra.mxu0 %v20213_v49  ;;  %v20285_v49 = vld [vmem:[%s21955_s12 + $0x21c0] ss:$40 sps:$4 sm:$0xff]  }
 0x305   : > { %14667 = vmatpush1.bf16.msra.mxu1 %v20216_v50  ;;  %14627 = vmatprep.subr.bf16.mxu0 %v20221_v57  ;;  %v20288_v50 = vld [vmem:[%s21955_s12 + $0x26c0] ss:$40 sps:$4 sm:$0xff]   ;;  %v20293_v57 = vld [vmem:[%s21955_s12 + $0x2214] ss:$40 sps:$4 sm:$0xff]  }
 0x306   : > { %14668 = vmatprep.subr.bf16.mxu1 %v20224_v58  ;;  %14657 = vmatprep.mubr.bf16.mxu0 %v23996_v37  ;;  %v20296_v58 = vld [vmem:[%s21955_s12 + $0x2714] ss:$40 sps:$4 sm:$0xff]  }
 0x307   : > { %14698 = vmatprep.mubr.bf16.mxu1 %v24000_v38 }
 0x308   : > { %14628 = vmatpush1.bf16.msra.mxu0 %v20219_v59  ;;  %v20291_v59 = vld [vmem:[%s21955_s12 + $0x2210] ss:$40 sps:$4 sm:$0xff]  }
 0x309   : > { %14669 = vmatpush1.bf16.msra.mxu1 %v20222_v60  ;;  %14629 = vmatprep.subr.bf16.mxu0 %v20227_v61  ;;  %v20294_v60 = vld [vmem:[%s21955_s12 + $0x2710] ss:$40 sps:$4 sm:$0xff]   ;;  %v20299_v61 = vld [vmem:[%s21955_s12 + $0x2264] ss:$40 sps:$4 sm:$0xff]  }
 0x30a   : > { %14670 = vmatprep.subr.bf16.mxu1 %v20230_v63  ;;  %v20302_v63 = vld [vmem:[%s21955_s12 + $0x2764] ss:$40 sps:$4 sm:$0xff]  }
 0x30c   : > { %14630 = vmatpush1.bf16.msra.mxu0 %v20225_v0  ;;  %v20297_v0 = vld [vmem:[%s21955_s12 + $0x2260] ss:$40 sps:$4 sm:$0xff]  }
 0x30d   : > { %14671 = vmatpush1.bf16.msra.mxu1 %v20228_v1  ;;  %14631 = vmatprep.subr.bf16.mxu0 %v20233_v3  ;;  %v20300_v1 = vld [vmem:[%s21955_s12 + $0x2760] ss:$40 sps:$4 sm:$0xff]   ;;  %v20305_v3 = vld [vmem:[%s21955_s12 + $0x22b4] ss:$40 sps:$4 sm:$0xff]  }
 0x30e   : > { %14672 = vmatprep.subr.bf16.mxu1 %v20236_v4  ;;  %v20308_v4 = vld [vmem:[%s21955_s12 + $0x27b4] ss:$40 sps:$4 sm:$0xff]  }
 0x310   : > { %14632 = vmatpush1.bf16.msra.mxu0 %v20231_v5  ;;  %v20303_v5 = vld [vmem:[%s21955_s12 + $0x22b0] ss:$40 sps:$4 sm:$0xff]  }
 0x311   : > { %14673 = vmatpush1.bf16.msra.mxu1 %v20234_v6  ;;  %14633 = vmatprep.subr.bf16.mxu0 %v20239_v7  ;;  %v20306_v6 = vld [vmem:[%s21955_s12 + $0x27b0] ss:$40 sps:$4 sm:$0xff]   ;;  %v20315_v7 = vld [vmem:[%s21955_s12 + $0xc] ss:$40 sps:$4 sm:$0xff]  }
 0x312   : > { %14674 = vmatprep.subr.bf16.mxu1 %v20242_v8  ;;  %v20318_v8 = vld [vmem:[%s21955_s12 + $0x50c] ss:$40 sps:$4 sm:$0xff]  }
 0x314   : > { %14634 = vmatpush1.bf16.msra.mxu0 %v20237_v9  ;;  %v24068_v9 = vcombine.low %v23987_v55, %v23987_v55  ;;  %v20319_v55 = vld [vmem:[%s21955_s12 + $0x58] ss:$40 sps:$4 sm:$0xff]  }
 0x315   : > { %14675 = vmatpush1.bf16.msra.mxu1 %v20240_v10  ;;  %14635 = vmatprep.subr.bf16.mxu0 %v20245_v11  ;;  %v24072_v10 = vcombine.low %v23990_v56, %v23990_v56  ;;  %v20313_v11 = vld [vmem:[%s21955_s12 + $0x8] ss:$40 sps:$4 sm:$0xff]   ;;  %v20327_v56 = vld [vmem:[%s21955_s12 + $0xac] ss:$40 sps:$4 sm:$0xff]  }
 0x316   : > { %14676 = vmatprep.subr.bf16.mxu1 %v20248_v12  ;;  %v20316_v12 = vld [vmem:[%s21955_s12 + $0x508] ss:$40 sps:$4 sm:$0xff]  }
 0x318   : > { %14636 = vmatpush1.bf16.msra.mxu0 %v20243_v13  ;;  %v20321_v13 = vld [vmem:[%s21955_s12 + $0x5c] ss:$40 sps:$4 sm:$0xff]  }
 0x319   : > { %14677 = vmatpush1.bf16.msra.mxu1 %v20246_v14  ;;  %14637 = vmatprep.subr.bf16.mxu0 %v20251_v15  ;;  %v20324_v14 = vld [vmem:[%s21955_s12 + $0x55c] ss:$40 sps:$4 sm:$0xff]   ;;  %v20322_v15 = vld [vmem:[%s21955_s12 + $0x558] ss:$40 sps:$4 sm:$0xff]  }
 0x31a   : > { %14678 = vmatprep.subr.bf16.mxu1 %v20254_v16  ;;  %v20330_v16 = vld [vmem:[%s21955_s12 + $0x5ac] ss:$40 sps:$4 sm:$0xff]  }
 0x31c   : > { %14638 = vmatpush1.bf16.msra.mxu0 %v20249_v17  ;;  %v20325_v17 = vld [vmem:[%s21955_s12 + $0xa8] ss:$40 sps:$4 sm:$0xff]  }
 0x31d   : > { %14679 = vmatpush1.bf16.msra.mxu1 %v20252_v18  ;;  %14639 = vmatprep.subr.bf16.mxu0 %v20257_v19  ;;  %v20328_v18 = vld [vmem:[%s21955_s12 + $0x5a8] ss:$40 sps:$4 sm:$0xff]   ;;  %v20333_v19 = vld [vmem:[%s21955_s12 + $0xfc] ss:$40 sps:$4 sm:$0xff]  }
 0x31e   : > { %14680 = vmatprep.subr.bf16.mxu1 %v20260_v20  ;;  %v20336_v20 = vld [vmem:[%s21955_s12 + $0x5fc] ss:$40 sps:$4 sm:$0xff]  }
 0x320   : > { %14640 = vmatpush1.bf16.msra.mxu0 %v20255_v23  ;;  %v20331_v23 = vld [vmem:[%s21955_s12 + $0xf8] ss:$40 sps:$4 sm:$0xff]  }
 0x321   : > { %14681 = vmatpush1.bf16.msra.mxu1 %v20258_v24  ;;  %14641 = vmatprep.subr.bf16.mxu0 %v20263_v25  ;;  %v20334_v24 = vld [vmem:[%s21955_s12 + $0x5f8] ss:$40 sps:$4 sm:$0xff]   ;;  %v20339_v25 = vld [vmem:[%s21955_s12 + $0x14c] ss:$40 sps:$4 sm:$0xff]  }
 0x322   : > { %14682 = vmatprep.subr.bf16.mxu1 %v20266_v26  ;;  %v20342_v26 = vld [vmem:[%s21955_s12 + $0x64c] ss:$40 sps:$4 sm:$0xff]  }
 0x324   : > { %14642 = vmatpush1.bf16.msra.mxu0 %v20261_v27  ;;  %v20337_v27 = vld [vmem:[%s21955_s12 + $0x148] ss:$40 sps:$4 sm:$0xff]  }
 0x325   : > { %14683 = vmatpush1.bf16.msra.mxu1 %v20264_v28  ;;  %14643 = vmatprep.subr.bf16.mxu0 %v20269_v29  ;;  %v20340_v28 = vld [vmem:[%s21955_s12 + $0x648] ss:$40 sps:$4 sm:$0xff]   ;;  %v20345_v29 = vld [vmem:[%s21955_s12 + $0x19c] ss:$40 sps:$4 sm:$0xff]  }
 0x326   : > { %14684 = vmatprep.subr.bf16.mxu1 %v20272_v30  ;;  %v20348_v30 = vld [vmem:[%s21955_s12 + $0x69c] ss:$40 sps:$4 sm:$0xff]  }
 0x328   : > { %14644 = vmatpush1.bf16.msra.mxu0 %v20267_v33  ;;  %v20343_v33 = vld [vmem:[%s21955_s12 + $0x198] ss:$40 sps:$4 sm:$0xff]  }
 0x329   : > { %14685 = vmatpush1.bf16.msra.mxu1 %v20270_v34  ;;  %14645 = vmatprep.subr.bf16.mxu0 %v20275_v35  ;;  %v20346_v34 = vld [vmem:[%s21955_s12 + $0x698] ss:$40 sps:$4 sm:$0xff]   ;;  %v20351_v35 = vld [vmem:[%s21955_s12 + $0x1ec] ss:$40 sps:$4 sm:$0xff]  }
 0x32a   : > { %14686 = vmatprep.subr.bf16.mxu1 %v20278_v36  ;;  %v20354_v36 = vld [vmem:[%s21955_s12 + $0x6ec] ss:$40 sps:$4 sm:$0xff]  }
 0x32c   : > { %14646 = vmatpush1.bf16.msra.mxu0 %v20273_v41 }
 0x32d   : > { %14687 = vmatpush1.bf16.msra.mxu1 %v20276_v42  ;;  %14647 = vmatprep.subr.bf16.mxu0 %v20281_v43  ;;  %v20349_v43 = vld [vmem:[%s21955_s12 + $0x1e8] ss:$40 sps:$4 sm:$0xff]  }
 0x32e   : > { %14688 = vmatprep.subr.bf16.mxu1 %v20284_v44  ;;  %v20352_v44 = vld [vmem:[%s21955_s12 + $0x6e8] ss:$40 sps:$4 sm:$0xff]  }
 0x330   : > { %14648 = vmatpush1.bf16.msra.mxu0 %v20279_v45 }
 0x331   : > { %14689 = vmatpush1.bf16.msra.mxu1 %v20282_v46  ;;  %14649 = vmatprep.subr.bf16.mxu0 %v20287_v47 }
 0x332   : > { %14690 = vmatprep.subr.bf16.mxu1 %v20290_v48 }
 0x334   : > { %14650 = vmatpush1.bf16.msra.mxu0 %v20285_v49 }
 0x335   : > { %14691 = vmatpush1.bf16.msra.mxu1 %v20288_v50  ;;  %14651 = vmatprep.subr.bf16.mxu0 %v20293_v57 }
 0x336   : > { %14692 = vmatprep.subr.bf16.mxu1 %v20296_v58 }
 0x338   : > { %14652 = vmatpush1.bf16.msra.mxu0 %v20291_v59  ;;  %v20357_v59 = vld [vmem:[%s21955_s12 + $0x23c] ss:$40 sps:$4 sm:$0xff]  }
 0x339   : > { %14693 = vmatpush1.bf16.msra.mxu1 %v20294_v60  ;;  %14653 = vmatprep.subr.bf16.mxu0 %v20299_v61  ;;  %v20360_v60 = vld [vmem:[%s21955_s12 + $0x73c] ss:$40 sps:$4 sm:$0xff]   ;;  %v20355_v61 = vld [vmem:[%s21955_s12 + $0x238] ss:$40 sps:$4 sm:$0xff]  }
 0x33a   : > { %14694 = vmatprep.subr.bf16.mxu1 %v20302_v63  ;;  %v20358_v63 = vld [vmem:[%s21955_s12 + $0x738] ss:$40 sps:$4 sm:$0xff]  }
 0x33c   : > { %14654 = vmatpush1.bf16.msra.mxu0 %v20297_v0  ;;  %v20363_v0 = vld [vmem:[%s21955_s12 + $0x28c] ss:$40 sps:$4 sm:$0xff]  }
 0x33d   : > { %14695 = vmatpush1.bf16.msra.mxu1 %v20300_v1  ;;  %14655 = vmatprep.subr.bf16.mxu0 %v20305_v3  ;;  %v20366_v1 = vld [vmem:[%s21955_s12 + $0x78c] ss:$40 sps:$4 sm:$0xff]   ;;  %v20361_v3 = vld [vmem:[%s21955_s12 + $0x288] ss:$40 sps:$4 sm:$0xff]  }
 0x33e   : > { %14696 = vmatprep.subr.bf16.mxu1 %v20308_v4  ;;  %v20364_v4 = vld [vmem:[%s21955_s12 + $0x788] ss:$40 sps:$4 sm:$0xff]  }
 0x340   : > { %14656 = vmatpush1.bf16.msra.mxu0 %v20303_v5  ;;  %v20369_v5 = vld [vmem:[%s21955_s12 + $0x2dc] ss:$40 sps:$4 sm:$0xff]  }
 0x341   : > { %14697 = vmatpush1.bf16.msra.mxu1 %v20306_v6  ;;  %14707 = vmatprep.subr.bf16.mxu0 %v20315_v7  ;;  %v20372_v6 = vld [vmem:[%s21955_s12 + $0x7dc] ss:$40 sps:$4 sm:$0xff]   ;;  %v20367_v7 = vld [vmem:[%s21955_s12 + $0x2d8] ss:$40 sps:$4 sm:$0xff]  }
 0x342   : > { %14748 = vmatprep.subr.bf16.mxu1 %v20318_v8  ;;  %v20370_v8 = vld [vmem:[%s21955_s12 + $0x7d8] ss:$40 sps:$4 sm:$0xff]  }
 0x343   : > { %14658 = vmatmul.mubr.bf16.vlgmr.msra.gmra.mrb[12].mxu0 %v24068_v9 }
 0x344   : > { %14699 = vmatmul.mubr.bf16.vlgmr.msra.gmra.mrb[12].mxu1 %v24072_v10  ;;  %14708 = vmatpush1.bf16.msra.mxu0 %v20313_v11  ;;  %v20375_v11 = vld [vmem:[%s21955_s12 + $0x32c] ss:$40 sps:$4 sm:$0xff]  }
 0x345   : > { %14749 = vmatpush1.bf16.msra.mxu1 %v20316_v12  ;;  %14709 = vmatprep.subr.bf16.mxu0 %v20321_v13  ;;  %v20378_v12 = vld [vmem:[%s21955_s12 + $0x82c] ss:$40 sps:$4 sm:$0xff]   ;;  %v20373_v13 = vld [vmem:[%s21955_s12 + $0x328] ss:$40 sps:$4 sm:$0xff]  }
 0x346   : > { %14750 = vmatprep.subr.bf16.mxu1 %v20324_v14  ;;  %14739 = vmatprep.mubr.bf16.mxu0 %v23773_v62  ;;  %v20376_v14 = vld [vmem:[%s21955_s12 + $0x828] ss:$40 sps:$4 sm:$0xff]  }
 0x347   : > { %14780 = vmatprep.mubr.bf16.mxu1 %v23778_v2 }
 0x348   : > { %14710 = vmatpush1.bf16.msra.mxu0 %v20319_v55  ;;  %v20381_v55 = vld [vmem:[%s21955_s12 + $0x37c] ss:$40 sps:$4 sm:$0xff]  }
 0x349   : > { %14751 = vmatpush1.bf16.msra.mxu1 %v20322_v15  ;;  %14711 = vmatprep.subr.bf16.mxu0 %v20327_v56  ;;  %v20384_v15 = vld [vmem:[%s21955_s12 + $0x87c] ss:$40 sps:$4 sm:$0xff]   ;;  %v20379_v56 = vld [vmem:[%s21955_s12 + $0x378] ss:$40 sps:$4 sm:$0xff]  }
 0x34a   : > { %14752 = vmatprep.subr.bf16.mxu1 %v20330_v16  ;;  %v20382_v16 = vld [vmem:[%s21955_s12 + $0x878] ss:$40 sps:$4 sm:$0xff]  }
 0x34c   : > { %14712 = vmatpush1.bf16.msra.mxu0 %v20325_v17  ;;  %v20387_v17 = vld [vmem:[%s21955_s12 + $0x3cc] ss:$40 sps:$4 sm:$0xff]  }
 0x34d   : > { %14753 = vmatpush1.bf16.msra.mxu1 %v20328_v18  ;;  %14713 = vmatprep.subr.bf16.mxu0 %v20333_v19  ;;  %v20390_v18 = vld [vmem:[%s21955_s12 + $0x8cc] ss:$40 sps:$4 sm:$0xff]   ;;  %v20385_v19 = vld [vmem:[%s21955_s12 + $0x3c8] ss:$40 sps:$4 sm:$0xff]  }
 0x34e   : > { %14754 = vmatprep.subr.bf16.mxu1 %v20336_v20  ;;  %v20388_v20 = vld [vmem:[%s21955_s12 + $0x8c8] ss:$40 sps:$4 sm:$0xff]  }
 0x350   : > { %14714 = vmatpush1.bf16.msra.mxu0 %v20331_v23  ;;  %v20393_v23 = vld [vmem:[%s21955_s12 + $0x41c] ss:$40 sps:$4 sm:$0xff]  }
 0x351   : > { %14755 = vmatpush1.bf16.msra.mxu1 %v20334_v24  ;;  %14715 = vmatprep.subr.bf16.mxu0 %v20339_v25  ;;  %v20396_v24 = vld [vmem:[%s21955_s12 + $0x91c] ss:$40 sps:$4 sm:$0xff]   ;;  %v20391_v25 = vld [vmem:[%s21955_s12 + $0x418] ss:$40 sps:$4 sm:$0xff]  }
 0x352   : > { %14756 = vmatprep.subr.bf16.mxu1 %v20342_v26  ;;  %v20394_v26 = vld [vmem:[%s21955_s12 + $0x918] ss:$40 sps:$4 sm:$0xff]  }
 0x354   : > { %14716 = vmatpush1.bf16.msra.mxu0 %v20337_v27  ;;  %v20399_v27 = vld [vmem:[%s21955_s12 + $0x46c] ss:$40 sps:$4 sm:$0xff]  }
 0x355   : > { %14757 = vmatpush1.bf16.msra.mxu1 %v20340_v28  ;;  %14717 = vmatprep.subr.bf16.mxu0 %v20345_v29  ;;  %v20402_v28 = vld [vmem:[%s21955_s12 + $0x96c] ss:$40 sps:$4 sm:$0xff]   ;;  %v20397_v29 = vld [vmem:[%s21955_s12 + $0x468] ss:$40 sps:$4 sm:$0xff]  }
 0x356   : > { %14758 = vmatprep.subr.bf16.mxu1 %v20348_v30  ;;  %v14413_v41 = vpop.f32.mrb[0].mxu0  ;;  %v20400_v30 = vld [vmem:[%s21955_s12 + $0x968] ss:$40 sps:$4 sm:$0xff]  }
 0x357   : > { %v14454_v42 = vpop.f32.mrb[0].mxu1  ;;  %v14415_v46 = vpop.f32.mrb[1].mxu0 }
 0x358   : > { %v24104_v45 = vadd.f32 %v14454_v42, %v14413_v41  ;;  %v14456_v47 = vpop.f32.mrb[1].mxu1  ;;  %v14417_v49 = vpop.f32.mrb[2].mxu0  ;;  %14718 = vmatpush1.bf16.msra.mxu0 %v20343_v33  ;;  %v20405_v33 = vld [vmem:[%s21955_s12 + $0x4bc] ss:$40 sps:$4 sm:$0xff]   ;;  %v20411_v41 = vld [vmem:[%s21955_s12 + $0xa0c] ss:$40 sps:$4 sm:$0xff]  }
 0x359   : > { %v24106_v48 = vadd.f32 %v14456_v47, %v14415_v46  ;;  %v14458_v50 = vpop.f32.mrb[2].mxu1  ;;  %14759 = vmatpush1.bf16.msra.mxu1 %v20346_v34  ;;  %v14418_v57 = vpop.f32.mrb[3].mxu0  ;;  %14719 = vmatprep.subr.bf16.mxu0 %v20351_v35  ;;  %v20408_v34 = vld [vmem:[%s21955_s12 + $0x9bc] ss:$40 sps:$4 sm:$0xff]   ;;  %v20403_v35 = vld [vmem:[%s21955_s12 + $0x4b8] ss:$40 sps:$4 sm:$0xff]  }
 0x35a   : > { %v14459_v58 = vpop.f32.mrb[3].mxu1  ;;  %14760 = vmatprep.subr.bf16.mxu1 %v20354_v36  ;;  %v20406_v36 = vld [vmem:[%s21955_s12 + $0x9b8] ss:$40 sps:$4 sm:$0xff]   ;;  %v20414_v42 = vld [vmem:[%s21955_s12 + $0xf0c] ss:$40 sps:$4 sm:$0xff]  }
 0x35b   : > { %v20417_v46 = vld [vmem:[%s21955_s12 + $0xa5c] ss:$40 sps:$4 sm:$0xff]   ;;  %v20415_v49 = vld [vmem:[%s21955_s12 + $0xa58] ss:$40 sps:$4 sm:$0xff]   ;;  %v20423_v57 = vld [vmem:[%s21955_s12 + $0xaac] ss:$40 sps:$4 sm:$0xff]  }
 0x35c   : > { %14720 = vmatpush1.bf16.msra.mxu0 %v20349_v43  ;;  %v20409_v43 = vld [vmem:[%s21955_s12 + $0xa08] ss:$40 sps:$4 sm:$0xff]   ;;  %v20420_v47 = vld [vmem:[%s21955_s12 + $0xf5c] ss:$40 sps:$4 sm:$0xff]   ;;  %v20418_v50 = vld [vmem:[%s21955_s12 + $0xf58] ss:$40 sps:$4 sm:$0xff]  }
 0x35d   : > { %14761 = vmatpush1.bf16.msra.mxu1 %v20352_v44  ;;  %14721 = vmatprep.subr.bf16.mxu0 %v20357_v59  ;;  %v20412_v44 = vld [vmem:[%s21955_s12 + $0xf08] ss:$40 sps:$4 sm:$0xff]   ;;  %v20426_v58 = vld [vmem:[%s21955_s12 + $0xfac] ss:$40 sps:$4 sm:$0xff]  }
 0x35e   : > { %14762 = vmatprep.subr.bf16.mxu1 %v20360_v60  ;;  %v20421_v59 = vld [vmem:[%s21955_s12 + $0xaa8] ss:$40 sps:$4 sm:$0xff]  }
 0x35f   : > { %v20424_v60 = vld [vmem:[%s21955_s12 + $0xfa8] ss:$40 sps:$4 sm:$0xff]  }
 0x360   : > { %14722 = vmatpush1.bf16.msra.mxu0 %v20355_v61  ;;  %v20429_v61 = vld [vmem:[%s21955_s12 + $0xafc] ss:$40 sps:$4 sm:$0xff]  }
 0x361   : > { %14763 = vmatpush1.bf16.msra.mxu1 %v20358_v63  ;;  %14723 = vmatprep.subr.bf16.mxu0 %v20363_v0  ;;  %v20432_v63 = vld [vmem:[%s21955_s12 + $0xffc] ss:$40 sps:$4 sm:$0xff]   ;;  %v20427_v0 = vld [vmem:[%s21955_s12 + $0xaf8] ss:$40 sps:$4 sm:$0xff]  }
 0x362   : > { %14764 = vmatprep.subr.bf16.mxu1 %v20366_v1  ;;  %v20430_v1 = vld [vmem:[%s21955_s12 + $0xff8] ss:$40 sps:$4 sm:$0xff]  }
 0x364   : > { %14724 = vmatpush1.bf16.msra.mxu0 %v20361_v3  ;;  %v20435_v3 = vld [vmem:[%s21955_s12 + $0xb4c] ss:$40 sps:$4 sm:$0xff]  }
 0x365   : > { %14765 = vmatpush1.bf16.msra.mxu1 %v20364_v4  ;;  %14725 = vmatprep.subr.bf16.mxu0 %v20369_v5  ;;  %v20438_v4 = vld [vmem:[%s21955_s12 + $0x104c] ss:$40 sps:$4 sm:$0xff]   ;;  %v20433_v5 = vld [vmem:[%s21955_s12 + $0xb48] ss:$40 sps:$4 sm:$0xff]  }
 0x366   : > { %14766 = vmatprep.subr.bf16.mxu1 %v20372_v6  ;;  %v20436_v6 = vld [vmem:[%s21955_s12 + $0x1048] ss:$40 sps:$4 sm:$0xff]  }
 0x368   : > { %14726 = vmatpush1.bf16.msra.mxu0 %v20367_v7  ;;  %v20441_v7 = vld [vmem:[%s21955_s12 + $0xb9c] ss:$40 sps:$4 sm:$0xff]  }
 0x369   : > { %14767 = vmatpush1.bf16.msra.mxu1 %v20370_v8  ;;  %14727 = vmatprep.subr.bf16.mxu0 %v20375_v11  ;;  %v20444_v8 = vld [vmem:[%s21955_s12 + $0x109c] ss:$40 sps:$4 sm:$0xff]   ;;  %v20439_v11 = vld [vmem:[%s21955_s12 + $0xb98] ss:$40 sps:$4 sm:$0xff]  }
 0x36a   : > { %14768 = vmatprep.subr.bf16.mxu1 %v20378_v12  ;;  %v20442_v12 = vld [vmem:[%s21955_s12 + $0x1098] ss:$40 sps:$4 sm:$0xff]  }
 0x36c   : > { %14728 = vmatpush1.bf16.msra.mxu0 %v20373_v13  ;;  %v20447_v13 = vld [vmem:[%s21955_s12 + $0xbec] ss:$40 sps:$4 sm:$0xff]  }
 0x36d   : > { %14769 = vmatpush1.bf16.msra.mxu1 %v20376_v14  ;;  %14729 = vmatprep.subr.bf16.mxu0 %v20381_v55  ;;  %v20450_v14 = vld [vmem:[%s21955_s12 + $0x10ec] ss:$40 sps:$4 sm:$0xff]  }
 0x36e   : > { %14770 = vmatprep.subr.bf16.mxu1 %v20384_v15 }
 0x370   : > { %14730 = vmatpush1.bf16.msra.mxu0 %v20379_v56  ;;  %v20445_v56 = vld [vmem:[%s21955_s12 + $0xbe8] ss:$40 sps:$4 sm:$0xff]  }
 0x371   : > { %14771 = vmatpush1.bf16.msra.mxu1 %v20382_v16  ;;  %14731 = vmatprep.subr.bf16.mxu0 %v20387_v17 }
 0x372   : > { %14772 = vmatprep.subr.bf16.mxu1 %v20390_v18 }
 0x374   : > { %14732 = vmatpush1.bf16.msra.mxu0 %v20385_v19  ;;  %v20448_v19 = vld [vmem:[%s21955_s12 + $0x10e8] ss:$40 sps:$4 sm:$0xff]  }
 0x375   : > { %14773 = vmatpush1.bf16.msra.mxu1 %v20388_v20  ;;  %14733 = vmatprep.subr.bf16.mxu0 %v20393_v23 }
 0x376   : > { %14774 = vmatprep.subr.bf16.mxu1 %v20396_v24 }
 0x378   : > { %14734 = vmatpush1.bf16.msra.mxu0 %v20391_v25 }
 0x379   : > { %14775 = vmatpush1.bf16.msra.mxu1 %v20394_v26  ;;  %14735 = vmatprep.subr.bf16.mxu0 %v20399_v27 }
 0x37a   : > { %14776 = vmatprep.subr.bf16.mxu1 %v20402_v28  ;;  %v20456_v28 = vld [vmem:[%s21955_s12 + $0x113c] ss:$40 sps:$4 sm:$0xff]  }
 0x37c   : > { %14736 = vmatpush1.bf16.msra.mxu0 %v20397_v29 }
 0x37d   : > { %14777 = vmatpush1.bf16.msra.mxu1 %v20400_v30  ;;  %14737 = vmatprep.subr.bf16.mxu0 %v20405_v33  ;;  %v20454_v30 = vld [vmem:[%s21955_s12 + $0x1138] ss:$40 sps:$4 sm:$0xff]   ;;  %v20459_v33 = vld [vmem:[%s21955_s12 + $0xc8c] ss:$40 sps:$4 sm:$0xff]  }
 0x37e   : > { %14778 = vmatprep.subr.bf16.mxu1 %v20408_v34  ;;  %v20462_v34 = vld [vmem:[%s21955_s12 + $0x118c] ss:$40 sps:$4 sm:$0xff]  }
 0x380   : > { %14738 = vmatpush1.bf16.msra.mxu0 %v20403_v35  ;;  %v20457_v35 = vld [vmem:[%s21955_s12 + $0xc88] ss:$40 sps:$4 sm:$0xff]  }
 0x381   : > { %14779 = vmatpush1.bf16.msra.mxu1 %v20406_v36  ;;  %14789 = vmatprep.subr.bf16.mxu0 %v20411_v41  ;;  %v20460_v36 = vld [vmem:[%s21955_s12 + $0x1188] ss:$40 sps:$4 sm:$0xff]   ;;  %v20465_v41 = vld [vmem:[%s21955_s12 + $0xcdc] ss:$40 sps:$4 sm:$0xff]  }
 0x382   : > { %14830 = vmatprep.subr.bf16.mxu1 %v20414_v42  ;;  %v20468_v42 = vld [vmem:[%s21955_s12 + $0x11dc] ss:$40 sps:$4 sm:$0xff]  }
 0x383   : > { %14740 = vmatmul.mubr.bf16.vlgmr.msra.gmra.mrb[16].mxu0 %v23800_v21 }
 0x384   : > { %14781 = vmatmul.mubr.bf16.vlgmr.msra.gmra.mrb[16].mxu1 %v23802_v22  ;;  %14790 = vmatpush1.bf16.msra.mxu0 %v20409_v43  ;;  %v20463_v43 = vld [vmem:[%s21955_s12 + $0xcd8] ss:$40 sps:$4 sm:$0xff]  }
 0x385   : > { %14831 = vmatpush1.bf16.msra.mxu1 %v20412_v44  ;;  %14791 = vmatprep.subr.bf16.mxu0 %v20417_v46  ;;  %v20466_v44 = vld [vmem:[%s21955_s12 + $0x11d8] ss:$40 sps:$4 sm:$0xff]   ;;  %v20471_v46 = vld [vmem:[%s21955_s12 + $0xd2c] ss:$40 sps:$4 sm:$0xff]  }
 0x386   : > { %14832 = vmatprep.subr.bf16.mxu1 %v20420_v47  ;;  %14821 = vmatprep.mubr.bf16.mxu0 %v23840_v51  ;;  %v20474_v47 = vld [vmem:[%s21955_s12 + $0x122c] ss:$40 sps:$4 sm:$0xff]  }
 0x387   : > { %14862 = vmatprep.mubr.bf16.mxu1 %v23844_v52 }
 0x388   : > { %14792 = vmatpush1.bf16.msra.mxu0 %v20415_v49  ;;  %v20469_v49 = vld [vmem:[%s21955_s12 + $0xd28] ss:$40 sps:$4 sm:$0xff]  }
 0x389   : > { %14833 = vmatpush1.bf16.msra.mxu1 %v20418_v50  ;;  %14793 = vmatprep.subr.bf16.mxu0 %v20423_v57  ;;  %v20472_v50 = vld [vmem:[%s21955_s12 + $0x1228] ss:$40 sps:$4 sm:$0xff]   ;;  %v20477_v57 = vld [vmem:[%s21955_s12 + $0xd7c] ss:$40 sps:$4 sm:$0xff]  }
 0x38a   : > { %14834 = vmatprep.subr.bf16.mxu1 %v20426_v58  ;;  %v20480_v58 = vld [vmem:[%s21955_s12 + $0x127c] ss:$40 sps:$4 sm:$0xff]  }
 0x38c   : > { %14794 = vmatpush1.bf16.msra.mxu0 %v20421_v59  ;;  %v20475_v59 = vld [vmem:[%s21955_s12 + $0xd78] ss:$40 sps:$4 sm:$0xff]  }
 0x38d   : > { %14835 = vmatpush1.bf16.msra.mxu1 %v20424_v60  ;;  %14795 = vmatprep.subr.bf16.mxu0 %v20429_v61  ;;  %v20478_v60 = vld [vmem:[%s21955_s12 + $0x1278] ss:$40 sps:$4 sm:$0xff]   ;;  %v20483_v61 = vld [vmem:[%s21955_s12 + $0xdcc] ss:$40 sps:$4 sm:$0xff]  }
 0x38e   : > { %14836 = vmatprep.subr.bf16.mxu1 %v20432_v63  ;;  %v20486_v63 = vld [vmem:[%s21955_s12 + $0x12cc] ss:$40 sps:$4 sm:$0xff]  }
 0x390   : > { %14796 = vmatpush1.bf16.msra.mxu0 %v20427_v0  ;;  %v20481_v0 = vld [vmem:[%s21955_s12 + $0xdc8] ss:$40 sps:$4 sm:$0xff]  }
 0x391   : > { %14837 = vmatpush1.bf16.msra.mxu1 %v20430_v1  ;;  %14797 = vmatprep.subr.bf16.mxu0 %v20435_v3  ;;  %v20484_v1 = vld [vmem:[%s21955_s12 + $0x12c8] ss:$40 sps:$4 sm:$0xff]   ;;  %v20489_v3 = vld [vmem:[%s21955_s12 + $0xe1c] ss:$40 sps:$4 sm:$0xff]  }
 0x392   : > { %14838 = vmatprep.subr.bf16.mxu1 %v20438_v4  ;;  %v20492_v4 = vld [vmem:[%s21955_s12 + $0x131c] ss:$40 sps:$4 sm:$0xff]  }
 0x394   : > { %14798 = vmatpush1.bf16.msra.mxu0 %v20433_v5  ;;  %v20487_v5 = vld [vmem:[%s21955_s12 + $0xe18] ss:$40 sps:$4 sm:$0xff]  }
 0x395   : > { %14839 = vmatpush1.bf16.msra.mxu1 %v20436_v6  ;;  %14799 = vmatprep.subr.bf16.mxu0 %v20441_v7  ;;  %v20490_v6 = vld [vmem:[%s21955_s12 + $0x1318] ss:$40 sps:$4 sm:$0xff]   ;;  %v20495_v7 = vld [vmem:[%s21955_s12 + $0xe6c] ss:$40 sps:$4 sm:$0xff]  }
 0x396   : > { %14840 = vmatprep.subr.bf16.mxu1 %v20444_v8  ;;  %v14495_v55 = vpop.f32.mrb[4].mxu0  ;;  %v20498_v8 = vld [vmem:[%s21955_s12 + $0x136c] ss:$40 sps:$4 sm:$0xff]  }
 0x397   : > { %v14536_v15 = vpop.f32.mrb[4].mxu1  ;;  %v14496_v16 = vadd.f32 %v14495_v55, %v24104_v45  ;;  %v14497_v17 = vpop.f32.mrb[5].mxu0  ;;  %v20453_v45 = vld [vmem:[%s21955_s12 + $0xc3c] ss:$40 sps:$4 sm:$0xff]   ;;  %v20499_v55 = vld [vmem:[%s21955_s12 + $0xeb8] ss:$40 sps:$4 sm:$0xff]  }
 0x398   : > { %v14538_v18 = vpop.f32.mrb[5].mxu1  ;;  %v14498_v20 = vadd.f32 %v14497_v17, %v24106_v48  ;;  %v14499_v23 = vpop.f32.mrb[6].mxu0  ;;  %14800 = vmatpush1.bf16.msra.mxu0 %v20439_v11  ;;  %v20451_v48 = vld [vmem:[%s21955_s12 + $0xc38] ss:$40 sps:$4 sm:$0xff]   ;;  %v20493_v11 = vld [vmem:[%s21955_s12 + $0xe68] ss:$40 sps:$4 sm:$0xff]  }
 0x399   : > { %v14540_v24 = vpop.f32.mrb[6].mxu1  ;;  %14841 = vmatpush1.bf16.msra.mxu1 %v20442_v12  ;;  %v24178_v25 = vadd.f32 %v14536_v15, %v14496_v16  ;;  %v14500_v26 = vpop.f32.mrb[7].mxu0  ;;  %14801 = vmatprep.subr.bf16.mxu0 %v20447_v13  ;;  %v20496_v12 = vld [vmem:[%s21955_s12 + $0x1368] ss:$40 sps:$4 sm:$0xff]   ;;  %v20501_v13 = vld [vmem:[%s21955_s12 + $0xebc] ss:$40 sps:$4 sm:$0xff]  }
 0x39a   : > { %v14541_v27 = vpop.f32.mrb[7].mxu1  ;;  %14842 = vmatprep.subr.bf16.mxu1 %v20450_v14  ;;  %v24182_v29 = vadd.f32 %v14538_v18, %v14498_v20  ;;  %v20504_v14 = vld [vmem:[%s21955_s12 + $0x13bc] ss:$40 sps:$4 sm:$0xff]   ;;  %v20502_v15 = vld [vmem:[%s21955_s12 + $0x13b8] ss:$40 sps:$4 sm:$0xff]  }
 0x39b   : > { %v20510_v16 = vld [vmem:[%s21955_s12 + $0x190c] ss:$40 sps:$4 sm:$0xff]   ;;  %v20505_v17 = vld [vmem:[%s21955_s12 + $0x1408] ss:$40 sps:$4 sm:$0xff]   ;;  %v20516_v20 = vld [vmem:[%s21955_s12 + $0x195c] ss:$40 sps:$4 sm:$0xff]  }
 0x39c   : > { %14802 = vmatpush1.bf16.msra.mxu0 %v20445_v56  ;;  %v20507_v56 = vld [vmem:[%s21955_s12 + $0x140c] ss:$40 sps:$4 sm:$0xff]   ;;  %v20508_v18 = vld [vmem:[%s21955_s12 + $0x1908] ss:$40 sps:$4 sm:$0xff]   ;;  %v20511_v23 = vld [vmem:[%s21955_s12 + $0x1458] ss:$40 sps:$4 sm:$0xff]  }
 0x39d   : > { %14843 = vmatpush1.bf16.msra.mxu1 %v20448_v19  ;;  %14803 = vmatprep.subr.bf16.mxu0 %v20453_v45  ;;  %v20513_v19 = vld [vmem:[%s21955_s12 + $0x145c] ss:$40 sps:$4 sm:$0xff]   ;;  %v20514_v24 = vld [vmem:[%s21955_s12 + $0x1958] ss:$40 sps:$4 sm:$0xff]   ;;  %v20519_v26 = vld [vmem:[%s21955_s12 + $0x14ac] ss:$40 sps:$4 sm:$0xff]  }
 0x39e   : > { %14844 = vmatprep.subr.bf16.mxu1 %v20456_v28  ;;  %v20522_v27 = vld [vmem:[%s21955_s12 + $0x19ac] ss:$40 sps:$4 sm:$0xff]   ;;  %v20517_v45 = vld [vmem:[%s21955_s12 + $0x14a8] ss:$40 sps:$4 sm:$0xff]  }
 0x39f   : > { %v20520_v28 = vld [vmem:[%s21955_s12 + $0x19a8] ss:$40 sps:$4 sm:$0xff]  }
 0x3a0   : > { %14804 = vmatpush1.bf16.msra.mxu0 %v20451_v48  ;;  %v20525_v48 = vld [vmem:[%s21955_s12 + $0x14fc] ss:$40 sps:$4 sm:$0xff]  }
 0x3a1   : > { %14845 = vmatpush1.bf16.msra.mxu1 %v20454_v30  ;;  %14805 = vmatprep.subr.bf16.mxu0 %v20459_v33  ;;  %v20528_v30 = vld [vmem:[%s21955_s12 + $0x19fc] ss:$40 sps:$4 sm:$0xff]   ;;  %v20523_v33 = vld [vmem:[%s21955_s12 + $0x14f8] ss:$40 sps:$4 sm:$0xff]  }
 0x3a2   : > { %14846 = vmatprep.subr.bf16.mxu1 %v20462_v34  ;;  %v20526_v34 = vld [vmem:[%s21955_s12 + $0x19f8] ss:$40 sps:$4 sm:$0xff]  }
 0x3a4   : > { %14806 = vmatpush1.bf16.msra.mxu0 %v20457_v35  ;;  %v20531_v35 = vld [vmem:[%s21955_s12 + $0x154c] ss:$40 sps:$4 sm:$0xff]  }
 0x3a5   : > { %14847 = vmatpush1.bf16.msra.mxu1 %v20460_v36  ;;  %14807 = vmatprep.subr.bf16.mxu0 %v20465_v41  ;;  %v20534_v36 = vld [vmem:[%s21955_s12 + $0x1a4c] ss:$40 sps:$4 sm:$0xff]   ;;  %v20529_v41 = vld [vmem:[%s21955_s12 + $0x1548] ss:$40 sps:$4 sm:$0xff]  }
 0x3a6   : > { %14848 = vmatprep.subr.bf16.mxu1 %v20468_v42  ;;  %v20532_v42 = vld [vmem:[%s21955_s12 + $0x1a48] ss:$40 sps:$4 sm:$0xff]  }
 0x3a8   : > { %14808 = vmatpush1.bf16.msra.mxu0 %v20463_v43  ;;  %v20537_v43 = vld [vmem:[%s21955_s12 + $0x159c] ss:$40 sps:$4 sm:$0xff]  }
 0x3a9   : > { %14849 = vmatpush1.bf16.msra.mxu1 %v20466_v44  ;;  %14809 = vmatprep.subr.bf16.mxu0 %v20471_v46  ;;  %v20540_v44 = vld [vmem:[%s21955_s12 + $0x1a9c] ss:$40 sps:$4 sm:$0xff]   ;;  %v20535_v46 = vld [vmem:[%s21955_s12 + $0x1598] ss:$40 sps:$4 sm:$0xff]  }
 0x3aa   : > { %14850 = vmatprep.subr.bf16.mxu1 %v20474_v47  ;;  %v20538_v47 = vld [vmem:[%s21955_s12 + $0x1a98] ss:$40 sps:$4 sm:$0xff]  }
 0x3ac   : > { %14810 = vmatpush1.bf16.msra.mxu0 %v20469_v49  ;;  %v20543_v49 = vld [vmem:[%s21955_s12 + $0x15ec] ss:$40 sps:$4 sm:$0xff]  }
 0x3ad   : > { %14851 = vmatpush1.bf16.msra.mxu1 %v20472_v50  ;;  %14811 = vmatprep.subr.bf16.mxu0 %v20477_v57  ;;  %v20546_v50 = vld [vmem:[%s21955_s12 + $0x1aec] ss:$40 sps:$4 sm:$0xff]  }
 0x3ae   : > { %14852 = vmatprep.subr.bf16.mxu1 %v20480_v58 }
 0x3b0   : > { %14812 = vmatpush1.bf16.msra.mxu0 %v20475_v59  ;;  %v20541_v59 = vld [vmem:[%s21955_s12 + $0x15e8] ss:$40 sps:$4 sm:$0xff]  }
 0x3b1   : > { %14853 = vmatpush1.bf16.msra.mxu1 %v20478_v60  ;;  %14813 = vmatprep.subr.bf16.mxu0 %v20483_v61  ;;  %v20544_v60 = vld [vmem:[%s21955_s12 + $0x1ae8] ss:$40 sps:$4 sm:$0xff]  }
 0x3b2   : > { %14854 = vmatprep.subr.bf16.mxu1 %v20486_v63 }
 0x3b4   : > { %14814 = vmatpush1.bf16.msra.mxu0 %v20481_v0 }
 0x3b5   : > { %14855 = vmatpush1.bf16.msra.mxu1 %v20484_v1  ;;  %14815 = vmatprep.subr.bf16.mxu0 %v20489_v3 }
 0x3b6   : > { %14856 = vmatprep.subr.bf16.mxu1 %v20492_v4 }
 0x3b8   : > { %14816 = vmatpush1.bf16.msra.mxu0 %v20487_v5 }
 0x3b9   : > { %14857 = vmatpush1.bf16.msra.mxu1 %v20490_v6  ;;  %14817 = vmatprep.subr.bf16.mxu0 %v20495_v7 }
 0x3ba   : > { %14858 = vmatprep.subr.bf16.mxu1 %v20498_v8  ;;  %v20552_v8 = vld [vmem:[%s21955_s12 + $0x1b3c] ss:$40 sps:$4 sm:$0xff]  }
 0x3bc   : > { %14818 = vmatpush1.bf16.msra.mxu0 %v20493_v11 }
 0x3bd   : > { %14859 = vmatpush1.bf16.msra.mxu1 %v20496_v12  ;;  %14819 = vmatprep.subr.bf16.mxu0 %v20501_v13  ;;  %v20550_v12 = vld [vmem:[%s21955_s12 + $0x1b38] ss:$40 sps:$4 sm:$0xff]   ;;  %v20555_v13 = vld [vmem:[%s21955_s12 + $0x168c] ss:$40 sps:$4 sm:$0xff]  }
 0x3be   : > { %14860 = vmatprep.subr.bf16.mxu1 %v20504_v14  ;;  %v20558_v14 = vld [vmem:[%s21955_s12 + $0x1b8c] ss:$40 sps:$4 sm:$0xff]  }
 0x3c0   : > { %14820 = vmatpush1.bf16.msra.mxu0 %v20499_v55  ;;  %v20553_v55 = vld [vmem:[%s21955_s12 + $0x1688] ss:$40 sps:$4 sm:$0xff]  }
 0x3c1   : > { %14861 = vmatpush1.bf16.msra.mxu1 %v20502_v15  ;;  %14871 = vmatprep.subr.bf16.mxu0 %v20507_v56  ;;  %v20556_v15 = vld [vmem:[%s21955_s12 + $0x1b88] ss:$40 sps:$4 sm:$0xff]   ;;  %v20561_v56 = vld [vmem:[%s21955_s12 + $0x16dc] ss:$40 sps:$4 sm:$0xff]  }
 0x3c2   : > { %14912 = vmatprep.subr.bf16.mxu1 %v20510_v16  ;;  %v20564_v16 = vld [vmem:[%s21955_s12 + $0x1bdc] ss:$40 sps:$4 sm:$0xff]  }
 0x3c3   : > { %14822 = vmatmul.mubr.bf16.vlgmr.msra.gmra.mrb[20].mxu0 %v23888_v31 }
 0x3c4   : > { %14863 = vmatmul.mubr.bf16.vlgmr.msra.gmra.mrb[20].mxu1 %v23892_v32  ;;  %14872 = vmatpush1.bf16.msra.mxu0 %v20505_v17  ;;  %v20559_v17 = vld [vmem:[%s21955_s12 + $0x16d8] ss:$40 sps:$4 sm:$0xff]  }
 0x3c5   : > { %14913 = vmatpush1.bf16.msra.mxu1 %v20508_v18  ;;  %14873 = vmatprep.subr.bf16.mxu0 %v20513_v19  ;;  %v20562_v18 = vld [vmem:[%s21955_s12 + $0x1bd8] ss:$40 sps:$4 sm:$0xff]   ;;  %v20567_v19 = vld [vmem:[%s21955_s12 + $0x172c] ss:$40 sps:$4 sm:$0xff]  }
 0x3c6   : > { %14914 = vmatprep.subr.bf16.mxu1 %v20516_v20  ;;  %14903 = vmatprep.mubr.bf16.mxu0 %v23906_v39  ;;  %v20570_v20 = vld [vmem:[%s21955_s12 + $0x1c2c] ss:$40 sps:$4 sm:$0xff]  }
 0x3c7   : > { %14944 = vmatprep.mubr.bf16.mxu1 %v23910_v40 }
 0x3c8   : > { %14874 = vmatpush1.bf16.msra.mxu0 %v20511_v23  ;;  %v20565_v23 = vld [vmem:[%s21955_s12 + $0x1728] ss:$40 sps:$4 sm:$0xff]  }
 0x3c9   : > { %14915 = vmatpush1.bf16.msra.mxu1 %v20514_v24  ;;  %14875 = vmatprep.subr.bf16.mxu0 %v20519_v26  ;;  %v20568_v24 = vld [vmem:[%s21955_s12 + $0x1c28] ss:$40 sps:$4 sm:$0xff]   ;;  %v20573_v26 = vld [vmem:[%s21955_s12 + $0x177c] ss:$40 sps:$4 sm:$0xff]  }
 0x3ca   : > { %14916 = vmatprep.subr.bf16.mxu1 %v20522_v27  ;;  %v20576_v27 = vld [vmem:[%s21955_s12 + $0x1c7c] ss:$40 sps:$4 sm:$0xff]  }
 0x3cc   : > { %14876 = vmatpush1.bf16.msra.mxu0 %v20517_v45  ;;  %v20571_v45 = vld [vmem:[%s21955_s12 + $0x1778] ss:$40 sps:$4 sm:$0xff]  }
 0x3cd   : > { %14917 = vmatpush1.bf16.msra.mxu1 %v20520_v28  ;;  %14877 = vmatprep.subr.bf16.mxu0 %v20525_v48  ;;  %v20574_v28 = vld [vmem:[%s21955_s12 + $0x1c78] ss:$40 sps:$4 sm:$0xff]   ;;  %v20579_v48 = vld [vmem:[%s21955_s12 + $0x17cc] ss:$40 sps:$4 sm:$0xff]  }
 0x3ce   : > { %14918 = vmatprep.subr.bf16.mxu1 %v20528_v30  ;;  %v20582_v30 = vld [vmem:[%s21955_s12 + $0x1ccc] ss:$40 sps:$4 sm:$0xff]  }
 0x3d0   : > { %14878 = vmatpush1.bf16.msra.mxu0 %v20523_v33  ;;  %v20577_v33 = vld [vmem:[%s21955_s12 + $0x17c8] ss:$40 sps:$4 sm:$0xff]  }
 0x3d1   : > { %14919 = vmatpush1.bf16.msra.mxu1 %v20526_v34  ;;  %14879 = vmatprep.subr.bf16.mxu0 %v20531_v35  ;;  %v20580_v34 = vld [vmem:[%s21955_s12 + $0x1cc8] ss:$40 sps:$4 sm:$0xff]   ;;  %v20585_v35 = vld [vmem:[%s21955_s12 + $0x181c] ss:$40 sps:$4 sm:$0xff]  }
 0x3d2   : > { %14920 = vmatprep.subr.bf16.mxu1 %v20534_v36  ;;  %v20588_v36 = vld [vmem:[%s21955_s12 + $0x1d1c] ss:$40 sps:$4 sm:$0xff]  }
 0x3d4   : > { %14880 = vmatpush1.bf16.msra.mxu0 %v20529_v41  ;;  %v20583_v41 = vld [vmem:[%s21955_s12 + $0x1818] ss:$40 sps:$4 sm:$0xff]  }
 0x3d5   : > { %14921 = vmatpush1.bf16.msra.mxu1 %v20532_v42  ;;  %14881 = vmatprep.subr.bf16.mxu0 %v20537_v43  ;;  %v20586_v42 = vld [vmem:[%s21955_s12 + $0x1d18] ss:$40 sps:$4 sm:$0xff]   ;;  %v20591_v43 = vld [vmem:[%s21955_s12 + $0x186c] ss:$40 sps:$4 sm:$0xff]  }
 0x3d6   : > { %14922 = vmatprep.subr.bf16.mxu1 %v20540_v44  ;;  %v14577_v57 = vpop.f32.mrb[8].mxu0  ;;  %v20594_v44 = vld [vmem:[%s21955_s12 + $0x1d6c] ss:$40 sps:$4 sm:$0xff]  }
 0x3d7   : > { %v14618_v58 = vpop.f32.mrb[8].mxu1  ;;  %v14578_v61 = vadd.f32 %v14577_v57, %v24178_v25  ;;  %v14579_v63 = vpop.f32.mrb[9].mxu0  ;;  %v20549_v25 = vld [vmem:[%s21955_s12 + $0x163c] ss:$40 sps:$4 sm:$0xff]   ;;  %v20595_v57 = vld [vmem:[%s21955_s12 + $0x18b8] ss:$40 sps:$4 sm:$0xff]  }
 0x3d8   : > { %v14620_v0 = vpop.f32.mrb[9].mxu1  ;;  %v14580_v1 = vadd.f32 %v14579_v63, %v24182_v29  ;;  %v14581_v3 = vpop.f32.mrb[10].mxu0  ;;  %14882 = vmatpush1.bf16.msra.mxu0 %v20535_v46  ;;  %v20547_v29 = vld [vmem:[%s21955_s12 + $0x1638] ss:$40 sps:$4 sm:$0xff]   ;;  %v20589_v46 = vld [vmem:[%s21955_s12 + $0x1868] ss:$40 sps:$4 sm:$0xff]  }
 0x3d9   : > { %v14622_v4 = vpop.f32.mrb[10].mxu1  ;;  %14923 = vmatpush1.bf16.msra.mxu1 %v20538_v47  ;;  %v24252_v5 = vadd.f32 %v14618_v58, %v14578_v61  ;;  %v14582_v6 = vpop.f32.mrb[11].mxu0  ;;  %14883 = vmatprep.subr.bf16.mxu0 %v20543_v49  ;;  %v20592_v47 = vld [vmem:[%s21955_s12 + $0x1d68] ss:$40 sps:$4 sm:$0xff]   ;;  %v20597_v49 = vld [vmem:[%s21955_s12 + $0x18bc] ss:$40 sps:$4 sm:$0xff]  }
 0x3da   : > { %v14623_v7 = vpop.f32.mrb[11].mxu1  ;;  %14924 = vmatprep.subr.bf16.mxu1 %v20546_v50  ;;  %v24256_v11 = vadd.f32 %v14620_v0, %v14580_v1  ;;  %v20600_v50 = vld [vmem:[%s21955_s12 + $0x1dbc] ss:$40 sps:$4 sm:$0xff]   ;;  %v20598_v58 = vld [vmem:[%s21955_s12 + $0x1db8] ss:$40 sps:$4 sm:$0xff]  }
 0x3db   : > { %v20601_v61 = vld [vmem:[%s21955_s12 + $0x1e08] ss:$40 sps:$4 sm:$0xff]   ;;  %v20609_v0 = vld [vmem:[%s21955_s12 + $0x1e5c] ss:$40 sps:$4 sm:$0xff]   ;;  %v20607_v3 = vld [vmem:[%s21955_s12 + $0x1e58] ss:$40 sps:$4 sm:$0xff]  }
 0x3dc   : > { %14884 = vmatpush1.bf16.msra.mxu0 %v20541_v59  ;;  %v20603_v59 = vld [vmem:[%s21955_s12 + $0x1e0c] ss:$40 sps:$4 sm:$0xff]   ;;  %v20604_v63 = vld [vmem:[%s21955_s12 + $0x2308] ss:$40 sps:$4 sm:$0xff]   ;;  %v20612_v1 = vld [vmem:[%s21955_s12 + $0x235c] ss:$40 sps:$4 sm:$0xff]  }
 0x3dd   : > { %14925 = vmatpush1.bf16.msra.mxu1 %v20544_v60  ;;  %14885 = vmatprep.subr.bf16.mxu0 %v20549_v25  ;;  %v20606_v60 = vld [vmem:[%s21955_s12 + $0x230c] ss:$40 sps:$4 sm:$0xff]   ;;  %v20610_v4 = vld [vmem:[%s21955_s12 + $0x2358] ss:$40 sps:$4 sm:$0xff]   ;;  %v20613_v25 = vld [vmem:[%s21955_s12 + $0x1ea8] ss:$40 sps:$4 sm:$0xff]  }
 0x3de   : > { %14926 = vmatprep.subr.bf16.mxu1 %v20552_v8  ;;  %v20615_v6 = vld [vmem:[%s21955_s12 + $0x1eac] ss:$40 sps:$4 sm:$0xff]   ;;  %v20616_v8 = vld [vmem:[%s21955_s12 + $0x23a8] ss:$40 sps:$4 sm:$0xff]  }
 0x3df   : > { %v20618_v7 = vld [vmem:[%s21955_s12 + $0x23ac] ss:$40 sps:$4 sm:$0xff]  }
 0x3e0   : > { %14886 = vmatpush1.bf16.msra.mxu0 %v20547_v29  ;;  %v20621_v29 = vld [vmem:[%s21955_s12 + $0x1efc] ss:$40 sps:$4 sm:$0xff]  }
 0x3e1   : > { %14927 = vmatpush1.bf16.msra.mxu1 %v20550_v12  ;;  %14887 = vmatprep.subr.bf16.mxu0 %v20555_v13  ;;  %v20624_v12 = vld [vmem:[%s21955_s12 + $0x23fc] ss:$40 sps:$4 sm:$0xff]   ;;  %v20619_v13 = vld [vmem:[%s21955_s12 + $0x1ef8] ss:$40 sps:$4 sm:$0xff]  }
 0x3e2   : > { %14928 = vmatprep.subr.bf16.mxu1 %v20558_v14  ;;  %v20622_v14 = vld [vmem:[%s21955_s12 + $0x23f8] ss:$40 sps:$4 sm:$0xff]  }
 0x3e4   : > { %14888 = vmatpush1.bf16.msra.mxu0 %v20553_v55  ;;  %v20627_v55 = vld [vmem:[%s21955_s12 + $0x1f4c] ss:$40 sps:$4 sm:$0xff]  }
 0x3e5   : > { %14929 = vmatpush1.bf16.msra.mxu1 %v20556_v15  ;;  %14889 = vmatprep.subr.bf16.mxu0 %v20561_v56  ;;  %v20630_v15 = vld [vmem:[%s21955_s12 + $0x244c] ss:$40 sps:$4 sm:$0xff]   ;;  %v20625_v56 = vld [vmem:[%s21955_s12 + $0x1f48] ss:$40 sps:$4 sm:$0xff]  }
 0x3e6   : > { %14930 = vmatprep.subr.bf16.mxu1 %v20564_v16  ;;  %v20628_v16 = vld [vmem:[%s21955_s12 + $0x2448] ss:$40 sps:$4 sm:$0xff]  }
 0x3e8   : > { %14890 = vmatpush1.bf16.msra.mxu0 %v20559_v17  ;;  %v20633_v17 = vld [vmem:[%s21955_s12 + $0x1f9c] ss:$40 sps:$4 sm:$0xff]  }
 0x3e9   : > { %14931 = vmatpush1.bf16.msra.mxu1 %v20562_v18  ;;  %14891 = vmatprep.subr.bf16.mxu0 %v20567_v19  ;;  %v20636_v18 = vld [vmem:[%s21955_s12 + $0x249c] ss:$40 sps:$4 sm:$0xff]   ;;  %v20631_v19 = vld [vmem:[%s21955_s12 + $0x1f98] ss:$40 sps:$4 sm:$0xff]  }
 0x3ea   : > { %14932 = vmatprep.subr.bf16.mxu1 %v20570_v20  ;;  %v20634_v20 = vld [vmem:[%s21955_s12 + $0x2498] ss:$40 sps:$4 sm:$0xff]  }
 0x3ec   : > { %14892 = vmatpush1.bf16.msra.mxu0 %v20565_v23  ;;  %v20639_v23 = vld [vmem:[%s21955_s12 + $0x1fec] ss:$40 sps:$4 sm:$0xff]  }
 0x3ed   : > { %14933 = vmatpush1.bf16.msra.mxu1 %v20568_v24  ;;  %14893 = vmatprep.subr.bf16.mxu0 %v20573_v26  ;;  %v20642_v24 = vld [vmem:[%s21955_s12 + $0x24ec] ss:$40 sps:$4 sm:$0xff]  }
 0x3ee   : > { %14934 = vmatprep.subr.bf16.mxu1 %v20576_v27  ;;  %v6625_v27 = vld [vmem:[#allocation2] sm:$0xff] }
 0x3f0   : > { %14894 = vmatpush1.bf16.msra.mxu0 %v20571_v45 }
 0x3f1   : > { %14935 = vmatpush1.bf16.msra.mxu1 %v20574_v28  ;;  %14895 = vmatprep.subr.bf16.mxu0 %v20579_v48  ;;  %v20637_v28 = vld [vmem:[%s21955_s12 + $0x1fe8] ss:$40 sps:$4 sm:$0xff]  }
 0x3f2   : > { %14936 = vmatprep.subr.bf16.mxu1 %v20582_v30  ;;  %v20640_v48 = vld [vmem:[%s21955_s12 + $0x24e8] ss:$40 sps:$4 sm:$0xff]  }
 0x3f4   : > { %14896 = vmatpush1.bf16.msra.mxu0 %v20577_v33 }
 0x3f5   : > { %14937 = vmatpush1.bf16.msra.mxu1 %v20580_v34  ;;  %14897 = vmatprep.subr.bf16.mxu0 %v20585_v35  ;;  %v6626_v34 = vld [vmem:[#allocation2 + $0x8] sm:$0xff] }
 0x3f6   : > { %14938 = vmatprep.subr.bf16.mxu1 %v20588_v36 }
 0x3f8   : > { %14898 = vmatpush1.bf16.msra.mxu0 %v20583_v41 }
 0x3f9   : > { %14939 = vmatpush1.bf16.msra.mxu1 %v20586_v42  ;;  %14899 = vmatprep.subr.bf16.mxu0 %v20591_v43 }
 0x3fa   : > { %14940 = vmatprep.subr.bf16.mxu1 %v20594_v44 }
 0x3fc   : > { %14900 = vmatpush1.bf16.msra.mxu0 %v20589_v46 }
 0x3fd   : > { %14941 = vmatpush1.bf16.msra.mxu1 %v20592_v47  ;;  %14901 = vmatprep.subr.bf16.mxu0 %v20597_v49  ;;  %v20645_v47 = vld [vmem:[%s21955_s12 + $0x203c] ss:$40 sps:$4 sm:$0xff]  }
 0x3fe   : > { %14942 = vmatprep.subr.bf16.mxu1 %v20600_v50 }
 0x400   : > { %14902 = vmatpush1.bf16.msra.mxu0 %v20595_v57  ;;  %v20643_v57 = vld [vmem:[%s21955_s12 + $0x2038] ss:$40 sps:$4 sm:$0xff]  }
 0x401   : > { %14943 = vmatpush1.bf16.msra.mxu1 %v20598_v58  ;;  %14953 = vmatprep.subr.bf16.mxu0 %v20603_v59  ;;  %v20646_v58 = vld [vmem:[%s21955_s12 + $0x2538] ss:$40 sps:$4 sm:$0xff]   ;;  %v20651_v59 = vld [vmem:[%s21955_s12 + $0x208c] ss:$40 sps:$4 sm:$0xff]  }
 0x402   : > { %14994 = vmatprep.subr.bf16.mxu1 %v20606_v60  ;;  %v20654_v60 = vld [vmem:[%s21955_s12 + $0x258c] ss:$40 sps:$4 sm:$0xff]  }
 0x403   : > { %14904 = vmatmul.mubr.bf16.vlgmr.msra.gmra.mrb[24].mxu0 %v23980_v53 }
 0x404   : > { %14945 = vmatmul.mubr.bf16.vlgmr.msra.gmra.mrb[24].mxu1 %v23984_v54  ;;  %14954 = vmatpush1.bf16.msra.mxu0 %v20601_v61  ;;  %v20649_v61 = vld [vmem:[%s21955_s12 + $0x2088] ss:$40 sps:$4 sm:$0xff]  }
 0x405   : > { %14995 = vmatpush1.bf16.msra.mxu1 %v20604_v63  ;;  %14955 = vmatprep.subr.bf16.mxu0 %v20609_v0  ;;  %v20652_v63 = vld [vmem:[%s21955_s12 + $0x2588] ss:$40 sps:$4 sm:$0xff]   ;;  %v20657_v0 = vld [vmem:[%s21955_s12 + $0x20dc] ss:$40 sps:$4 sm:$0xff]  }
 0x406   : > { %14996 = vmatprep.subr.bf16.mxu1 %v20612_v1  ;;  %14985 = vmatprep.mubr.bf16.mxu0 %v23996_v37  ;;  %v20660_v1 = vld [vmem:[%s21955_s12 + $0x25dc] ss:$40 sps:$4 sm:$0xff]  }
 0x407   : > { %15026 = vmatprep.mubr.bf16.mxu1 %v24000_v38 }
 0x408   : > { %14956 = vmatpush1.bf16.msra.mxu0 %v20607_v3  ;;  %v20655_v3 = vld [vmem:[%s21955_s12 + $0x20d8] ss:$40 sps:$4 sm:$0xff]  }
 0x409   : > { %14997 = vmatpush1.bf16.msra.mxu1 %v20610_v4  ;;  %14957 = vmatprep.subr.bf16.mxu0 %v20615_v6  ;;  %v20658_v4 = vld [vmem:[%s21955_s12 + $0x25d8] ss:$40 sps:$4 sm:$0xff]   ;;  %v20663_v6 = vld [vmem:[%s21955_s12 + $0x212c] ss:$40 sps:$4 sm:$0xff]  }
 0x40a   : > { %14998 = vmatprep.subr.bf16.mxu1 %v20618_v7  ;;  %v20666_v7 = vld [vmem:[%s21955_s12 + $0x262c] ss:$40 sps:$4 sm:$0xff]  }
 0x40c   : > { %14958 = vmatpush1.bf16.msra.mxu0 %v20613_v25  ;;  %v20661_v25 = vld [vmem:[%s21955_s12 + $0x2128] ss:$40 sps:$4 sm:$0xff]  }
 0x40d   : > { %14999 = vmatpush1.bf16.msra.mxu1 %v20616_v8  ;;  %14959 = vmatprep.subr.bf16.mxu0 %v20621_v29  ;;  %v20664_v8 = vld [vmem:[%s21955_s12 + $0x2628] ss:$40 sps:$4 sm:$0xff]   ;;  %v20669_v29 = vld [vmem:[%s21955_s12 + $0x217c] ss:$40 sps:$4 sm:$0xff]  }
 0x40e   : > { %15000 = vmatprep.subr.bf16.mxu1 %v20624_v12  ;;  %v20672_v12 = vld [vmem:[%s21955_s12 + $0x267c] ss:$40 sps:$4 sm:$0xff]  }
 0x410   : > { %14960 = vmatpush1.bf16.msra.mxu0 %v20619_v13  ;;  %v20667_v13 = vld [vmem:[%s21955_s12 + $0x2178] ss:$40 sps:$4 sm:$0xff]  }
 0x411   : > { %15001 = vmatpush1.bf16.msra.mxu1 %v20622_v14  ;;  %14961 = vmatprep.subr.bf16.mxu0 %v20627_v55  ;;  %v20670_v14 = vld [vmem:[%s21955_s12 + $0x2678] ss:$40 sps:$4 sm:$0xff]   ;;  %v20675_v55 = vld [vmem:[%s21955_s12 + $0x21cc] ss:$40 sps:$4 sm:$0xff]  }
 0x412   : > { %15002 = vmatprep.subr.bf16.mxu1 %v20630_v15  ;;  %v20678_v15 = vld [vmem:[%s21955_s12 + $0x26cc] ss:$40 sps:$4 sm:$0xff]  }
 0x414   : > { %14962 = vmatpush1.bf16.msra.mxu0 %v20625_v56  ;;  %v20673_v56 = vld [vmem:[%s21955_s12 + $0x21c8] ss:$40 sps:$4 sm:$0xff]  }
 0x415   : > { %15003 = vmatpush1.bf16.msra.mxu1 %v20628_v16  ;;  %14963 = vmatprep.subr.bf16.mxu0 %v20633_v17  ;;  %v20676_v16 = vld [vmem:[%s21955_s12 + $0x26c8] ss:$40 sps:$4 sm:$0xff]   ;;  %v20681_v17 = vld [vmem:[%s21955_s12 + $0x221c] ss:$40 sps:$4 sm:$0xff]  }
 0x416   : > { %15004 = vmatprep.subr.bf16.mxu1 %v20636_v18  ;;  %v14659_v26 = vpop.f32.mrb[12].mxu0  ;;  %v20684_v18 = vld [vmem:[%s21955_s12 + $0x271c] ss:$40 sps:$4 sm:$0xff]  }
 0x417   : > { %v14700_v45 = vpop.f32.mrb[12].mxu1  ;;  %v14660_v30 = vadd.f32 %v14659_v26, %v24252_v5  ;;  %v14661_v33 = vpop.f32.mrb[13].mxu0  ;;  %v20648_v5 = vld [vmem:[%s21955_s12 + $0x253c] ss:$40 sps:$4 sm:$0xff]   ;;  %v20685_v26 = vld [vmem:[%s21955_s12 + $0x2268] ss:$40 sps:$4 sm:$0xff]  }
 0x418   : > { %v14702_v35 = vpop.f32.mrb[13].mxu1  ;;  %v14662_v36 = vadd.f32 %v14661_v33, %v24256_v11  ;;  %v14663_v41 = vpop.f32.mrb[14].mxu0  ;;  %14964 = vmatpush1.bf16.msra.mxu0 %v20631_v19  ;;  %v20679_v19 = vld [vmem:[%s21955_s12 + $0x2218] ss:$40 sps:$4 sm:$0xff]   ;;  %v20699_v33 = vld [vmem:[%s21955_s12 + $0x14] ss:$40 sps:$4 sm:$0xff]  }
 0x419   : > { %v14704_v42 = vpop.f32.mrb[14].mxu1  ;;  %15005 = vmatpush1.bf16.msra.mxu1 %v20634_v20  ;;  %v14701_v43 = vadd.f32 %v14700_v45, %v14660_v30  ;;  %v14664_v44 = vpop.f32.mrb[15].mxu0  ;;  %14965 = vmatprep.subr.bf16.mxu0 %v20639_v23  ;;  %v20682_v20 = vld [vmem:[%s21955_s12 + $0x2718] ss:$40 sps:$4 sm:$0xff]   ;;  %v20687_v23 = vld [vmem:[%s21955_s12 + $0x226c] ss:$40 sps:$4 sm:$0xff]  }
 0x41a   : > { %v14705_v46 = vpop.f32.mrb[15].mxu1  ;;  %15006 = vmatprep.subr.bf16.mxu1 %v20642_v24  ;;  %v14703_v49 = vadd.f32 %v14702_v35, %v14662_v36  ;;  %v20690_v24 = vld [vmem:[%s21955_s12 + $0x276c] ss:$40 sps:$4 sm:$0xff]   ;;  %v20693_v45 = vld [vmem:[%s21955_s12 + $0x22bc] ss:$40 sps:$4 sm:$0xff]  }
 0x41b   : > { %v16019_v50 = vadd.f32 %v14701_v43, %v6625_v27  ;;  %v20688_v27 = vld [vmem:[%s21955_s12 + $0x2768] ss:$40 sps:$4 sm:$0xff]   ;;  %v20694_v30 = vld [vmem:[%s21955_s12 + $0x27b8] ss:$40 sps:$4 sm:$0xff]   ;;  %v20705_v41 = vld [vmem:[%s21955_s12 + $0x64] ss:$40 sps:$4 sm:$0xff]  }
 0x41c   : > { %v16020_v11 = vadd.f32 %v14703_v49, %v6626_v34  ;;  %14966 = vmatpush1.bf16.msra.mxu0 %v20637_v28  ;;  %v20696_v28 = vld [vmem:[%s21955_s12 + $0x27bc] ss:$40 sps:$4 sm:$0xff]   ;;  %v20697_v35 = vld [vmem:[%s21955_s12 + $0x10] ss:$40 sps:$4 sm:$0xff]   ;;  %v20703_v43 = vld [vmem:[%s21955_s12 + $0x60] ss:$40 sps:$4 sm:$0xff]  }
 0x41d   : > { %15007 = vmatpush1.bf16.msra.mxu1 %v20640_v48  ;;  %16029 = vst [vmem:[#allocation2] sm:$0xff] %v16019_v50  ;;  %14967 = vmatprep.subr.bf16.mxu0 %v20645_v47  ;;  %v20691_v48 = vld [vmem:[%s21955_s12 + $0x22b8] ss:$40 sps:$4 sm:$0xff]   ;;  %v20702_v34 = vld [vmem:[%s21955_s12 + $0x514] ss:$40 sps:$4 sm:$0xff]  }
 0x41e   : > { %15008 = vmatprep.subr.bf16.mxu1 %v20648_v5  ;;  %16030 = vst [vmem:[#allocation2 + $0x8] sm:$0xff] %v16020_v11  ;;  %v20700_v36 = vld [vmem:[%s21955_s12 + $0x510] ss:$40 sps:$4 sm:$0xff]   ;;  %v20708_v42 = vld [vmem:[%s21955_s12 + $0x564] ss:$40 sps:$4 sm:$0xff]  }
 0x41f   : > { %v20706_v44 = vld [vmem:[%s21955_s12 + $0x560] ss:$40 sps:$4 sm:$0xff]   ;;  %v20711_v46 = vld [vmem:[%s21955_s12 + $0xb4] ss:$40 sps:$4 sm:$0xff]   ;;  %v20709_v5 = vld [vmem:[%s21955_s12 + $0xb0] ss:$40 sps:$4 sm:$0xff]  }
 0x420   : > { %14968 = vmatpush1.bf16.msra.mxu0 %v20643_v57  ;;  %v20714_v47 = vld [vmem:[%s21955_s12 + $0x5b4] ss:$40 sps:$4 sm:$0xff]   ;;  %v20712_v49 = vld [vmem:[%s21955_s12 + $0x5b0] ss:$40 sps:$4 sm:$0xff]   ;;  %v20717_v50 = vld [vmem:[%s21955_s12 + $0x104] ss:$40 sps:$4 sm:$0xff]  }
 0x421   : > { %15009 = vmatpush1.bf16.msra.mxu1 %v20646_v58  ;;  %14969 = vmatprep.subr.bf16.mxu0 %v20651_v59  ;;  %v20720_v11 = vld [vmem:[%s21955_s12 + $0x604] ss:$40 sps:$4 sm:$0xff]   ;;  %v20715_v57 = vld [vmem:[%s21955_s12 + $0x100] ss:$40 sps:$4 sm:$0xff]   ;;  %v20723_v59 = vld [vmem:[%s21955_s12 + $0x154] ss:$40 sps:$4 sm:$0xff]  }
 0x422   : > { %15010 = vmatprep.subr.bf16.mxu1 %v20654_v60  ;;  %v20718_v58 = vld [vmem:[%s21955_s12 + $0x600] ss:$40 sps:$4 sm:$0xff]   ;;  %v20726_v60 = vld [vmem:[%s21955_s12 + $0x654] ss:$40 sps:$4 sm:$0xff]  }
 0x424   : > { %14970 = vmatpush1.bf16.msra.mxu0 %v20649_v61  ;;  %v20721_v61 = vld [vmem:[%s21955_s12 + $0x150] ss:$40 sps:$4 sm:$0xff]  }
 0x425   : > { %15011 = vmatpush1.bf16.msra.mxu1 %v20652_v63  ;;  %14971 = vmatprep.subr.bf16.mxu0 %v20657_v0  ;;  %v20724_v63 = vld [vmem:[%s21955_s12 + $0x650] ss:$40 sps:$4 sm:$0xff]   ;;  %v20729_v0 = vld [vmem:[%s21955_s12 + $0x1a4] ss:$40 sps:$4 sm:$0xff]  }
 0x426   : > { %15012 = vmatprep.subr.bf16.mxu1 %v20660_v1  ;;  %v20732_v1 = vld [vmem:[%s21955_s12 + $0x6a4] ss:$40 sps:$4 sm:$0xff]  }
 0x428   : > { %14972 = vmatpush1.bf16.msra.mxu0 %v20655_v3  ;;  %v20727_v3 = vld [vmem:[%s21955_s12 + $0x1a0] ss:$40 sps:$4 sm:$0xff]  }
 0x429   : > { %15013 = vmatpush1.bf16.msra.mxu1 %v20658_v4  ;;  %14973 = vmatprep.subr.bf16.mxu0 %v20663_v6  ;;  %v20730_v4 = vld [vmem:[%s21955_s12 + $0x6a0] ss:$40 sps:$4 sm:$0xff]   ;;  %v20735_v6 = vld [vmem:[%s21955_s12 + $0x1f4] ss:$40 sps:$4 sm:$0xff]  }
 0x42a   : > { %15014 = vmatprep.subr.bf16.mxu1 %v20666_v7  ;;  %v20738_v7 = vld [vmem:[%s21955_s12 + $0x6f4] ss:$40 sps:$4 sm:$0xff]  }
 0x42c   : > { %14974 = vmatpush1.bf16.msra.mxu0 %v20661_v25 }
 0x42d   : > { %15015 = vmatpush1.bf16.msra.mxu1 %v20664_v8  ;;  %14975 = vmatprep.subr.bf16.mxu0 %v20669_v29  ;;  %v20733_v29 = vld [vmem:[%s21955_s12 + $0x1f0] ss:$40 sps:$4 sm:$0xff]  }
 0x42e   : > { %15016 = vmatprep.subr.bf16.mxu1 %v20672_v12  ;;  %v20736_v12 = vld [vmem:[%s21955_s12 + $0x6f0] ss:$40 sps:$4 sm:$0xff]  }
 0x430   : > { %14976 = vmatpush1.bf16.msra.mxu0 %v20667_v13 }
 0x431   : > { %15017 = vmatpush1.bf16.msra.mxu1 %v20670_v14  ;;  %14977 = vmatprep.subr.bf16.mxu0 %v20675_v55 }
 0x432   : > { %15018 = vmatprep.subr.bf16.mxu1 %v20678_v15 }
 0x434   : > { %14978 = vmatpush1.bf16.msra.mxu0 %v20673_v56 }
 0x435   : > { %15019 = vmatpush1.bf16.msra.mxu1 %v20676_v16  ;;  %14979 = vmatprep.subr.bf16.mxu0 %v20681_v17 }
 0x436   : > { %15020 = vmatprep.subr.bf16.mxu1 %v20684_v18 }
 0x438   : > { %14980 = vmatpush1.bf16.msra.mxu0 %v20679_v19  ;;  %v20741_v19 = vld [vmem:[%s21955_s12 + $0x244] ss:$40 sps:$4 sm:$0xff]  }
 0x439   : > { %15021 = vmatpush1.bf16.msra.mxu1 %v20682_v20  ;;  %14981 = vmatprep.subr.bf16.mxu0 %v20687_v23  ;;  %v20744_v20 = vld [vmem:[%s21955_s12 + $0x744] ss:$40 sps:$4 sm:$0xff]   ;;  %v20739_v23 = vld [vmem:[%s21955_s12 + $0x240] ss:$40 sps:$4 sm:$0xff]  }
 0x43a   : > { %15022 = vmatprep.subr.bf16.mxu1 %v20690_v24  ;;  %v20742_v24 = vld [vmem:[%s21955_s12 + $0x740] ss:$40 sps:$4 sm:$0xff]  }
 0x43c   : > { %14982 = vmatpush1.bf16.msra.mxu0 %v20685_v26  ;;  %v20747_v26 = vld [vmem:[%s21955_s12 + $0x294] ss:$40 sps:$4 sm:$0xff]  }
 0x43d   : > { %15023 = vmatpush1.bf16.msra.mxu1 %v20688_v27  ;;  %14983 = vmatprep.subr.bf16.mxu0 %v20693_v45  ;;  %v20750_v27 = vld [vmem:[%s21955_s12 + $0x794] ss:$40 sps:$4 sm:$0xff]   ;;  %v20745_v45 = vld [vmem:[%s21955_s12 + $0x290] ss:$40 sps:$4 sm:$0xff]  }
 0x43e   : > { %15024 = vmatprep.subr.bf16.mxu1 %v20696_v28  ;;  %v20748_v28 = vld [vmem:[%s21955_s12 + $0x790] ss:$40 sps:$4 sm:$0xff]  }
 0x440   : > { %14984 = vmatpush1.bf16.msra.mxu0 %v20691_v48  ;;  %v20753_v48 = vld [vmem:[%s21955_s12 + $0x2e4] ss:$40 sps:$4 sm:$0xff]  }
 0x441   : > { %15025 = vmatpush1.bf16.msra.mxu1 %v20694_v30  ;;  %15035 = vmatprep.subr.bf16.mxu0 %v20699_v33  ;;  %v20756_v30 = vld [vmem:[%s21955_s12 + $0x7e4] ss:$40 sps:$4 sm:$0xff]   ;;  %v20751_v33 = vld [vmem:[%s21955_s12 + $0x2e0] ss:$40 sps:$4 sm:$0xff]  }
 0x442   : > { %15076 = vmatprep.subr.bf16.mxu1 %v20702_v34  ;;  %v20754_v34 = vld [vmem:[%s21955_s12 + $0x7e0] ss:$40 sps:$4 sm:$0xff]  }
 0x443   : > { %14986 = vmatmul.mubr.bf16.vlgmr.msra.gmra.mrb[28].mxu0 %v24068_v9 }
 0x444   : > { %15027 = vmatmul.mubr.bf16.vlgmr.msra.gmra.mrb[28].mxu1 %v24072_v10  ;;  %15036 = vmatpush1.bf16.msra.mxu0 %v20697_v35  ;;  %v20759_v35 = vld [vmem:[%s21955_s12 + $0x334] ss:$40 sps:$4 sm:$0xff]  }
 0x445   : > { %15077 = vmatpush1.bf16.msra.mxu1 %v20700_v36  ;;  %15037 = vmatprep.subr.bf16.mxu0 %v20705_v41  ;;  %v20762_v36 = vld [vmem:[%s21955_s12 + $0x834] ss:$40 sps:$4 sm:$0xff]   ;;  %v20757_v41 = vld [vmem:[%s21955_s12 + $0x330] ss:$40 sps:$4 sm:$0xff]  }
 0x446   : > { %15078 = vmatprep.subr.bf16.mxu1 %v20708_v42  ;;  %15067 = vmatprep.mubr.bf16.mxu0 %v23773_v62  ;;  %v20760_v42 = vld [vmem:[%s21955_s12 + $0x830] ss:$40 sps:$4 sm:$0xff]  }
 0x447   : > { %15108 = vmatprep.mubr.bf16.mxu1 %v23778_v2 }
 0x448   : > { %15038 = vmatpush1.bf16.msra.mxu0 %v20703_v43  ;;  %v20765_v43 = vld [vmem:[%s21955_s12 + $0x384] ss:$40 sps:$4 sm:$0xff]  }
 0x449   : > { %15079 = vmatpush1.bf16.msra.mxu1 %v20706_v44  ;;  %15039 = vmatprep.subr.bf16.mxu0 %v20711_v46  ;;  %v20768_v44 = vld [vmem:[%s21955_s12 + $0x884] ss:$40 sps:$4 sm:$0xff]   ;;  %v20763_v46 = vld [vmem:[%s21955_s12 + $0x380] ss:$40 sps:$4 sm:$0xff]  }
 0x44a   : > { %15080 = vmatprep.subr.bf16.mxu1 %v20714_v47  ;;  %v20766_v47 = vld [vmem:[%s21955_s12 + $0x880] ss:$40 sps:$4 sm:$0xff]  }
 0x44c   : > { %15040 = vmatpush1.bf16.msra.mxu0 %v20709_v5  ;;  %v20771_v5 = vld [vmem:[%s21955_s12 + $0x3d4] ss:$40 sps:$4 sm:$0xff]  }
 0x44d   : > { %15081 = vmatpush1.bf16.msra.mxu1 %v20712_v49  ;;  %15041 = vmatprep.subr.bf16.mxu0 %v20717_v50  ;;  %v20774_v49 = vld [vmem:[%s21955_s12 + $0x8d4] ss:$40 sps:$4 sm:$0xff]   ;;  %v20769_v50 = vld [vmem:[%s21955_s12 + $0x3d0] ss:$40 sps:$4 sm:$0xff]  }
 0x44e   : > { %15082 = vmatprep.subr.bf16.mxu1 %v20720_v11  ;;  %v20772_v11 = vld [vmem:[%s21955_s12 + $0x8d0] ss:$40 sps:$4 sm:$0xff]  }
 0x450   : > { %15042 = vmatpush1.bf16.msra.mxu0 %v20715_v57  ;;  %v20777_v57 = vld [vmem:[%s21955_s12 + $0x424] ss:$40 sps:$4 sm:$0xff]  }
 0x451   : > { %15083 = vmatpush1.bf16.msra.mxu1 %v20718_v58  ;;  %15043 = vmatprep.subr.bf16.mxu0 %v20723_v59  ;;  %v20780_v58 = vld [vmem:[%s21955_s12 + $0x924] ss:$40 sps:$4 sm:$0xff]   ;;  %v20775_v59 = vld [vmem:[%s21955_s12 + $0x420] ss:$40 sps:$4 sm:$0xff]  }
 0x452   : > { %15084 = vmatprep.subr.bf16.mxu1 %v20726_v60  ;;  %v20778_v60 = vld [vmem:[%s21955_s12 + $0x920] ss:$40 sps:$4 sm:$0xff]  }
 0x454   : > { %15044 = vmatpush1.bf16.msra.mxu0 %v20721_v61  ;;  %v20783_v61 = vld [vmem:[%s21955_s12 + $0x474] ss:$40 sps:$4 sm:$0xff]  }
 0x455   : > { %15085 = vmatpush1.bf16.msra.mxu1 %v20724_v63  ;;  %15045 = vmatprep.subr.bf16.mxu0 %v20729_v0  ;;  %v20786_v63 = vld [vmem:[%s21955_s12 + $0x974] ss:$40 sps:$4 sm:$0xff]   ;;  %v20781_v0 = vld [vmem:[%s21955_s12 + $0x470] ss:$40 sps:$4 sm:$0xff]  }
 0x456   : > { %15086 = vmatprep.subr.bf16.mxu1 %v20732_v1  ;;  %v14741_v25 = vpop.f32.mrb[16].mxu0  ;;  %v20784_v1 = vld [vmem:[%s21955_s12 + $0x970] ss:$40 sps:$4 sm:$0xff]  }
 0x457   : > { %v14782_v8 = vpop.f32.mrb[16].mxu1  ;;  %v14743_v14 = vpop.f32.mrb[17].mxu0 }
 0x458   : > { %v24394_v13 = vadd.f32 %v14782_v8, %v14741_v25  ;;  %v14784_v55 = vpop.f32.mrb[17].mxu1  ;;  %v14745_v56 = vpop.f32.mrb[18].mxu0  ;;  %15046 = vmatpush1.bf16.msra.mxu0 %v20727_v3  ;;  %v20789_v3 = vld [vmem:[%s21955_s12 + $0x4c4] ss:$40 sps:$4 sm:$0xff]   ;;  %v20795_v25 = vld [vmem:[%s21955_s12 + $0xa14] ss:$40 sps:$4 sm:$0xff]  }
 0x459   : > { %v24396_v15 = vadd.f32 %v14784_v55, %v14743_v14  ;;  %v14786_v16 = vpop.f32.mrb[18].mxu1  ;;  %15087 = vmatpush1.bf16.msra.mxu1 %v20730_v4  ;;  %v14746_v17 = vpop.f32.mrb[19].mxu0  ;;  %15047 = vmatprep.subr.bf16.mxu0 %v20735_v6  ;;  %v20792_v4 = vld [vmem:[%s21955_s12 + $0x9c4] ss:$40 sps:$4 sm:$0xff]   ;;  %v20787_v6 = vld [vmem:[%s21955_s12 + $0x4c0] ss:$40 sps:$4 sm:$0xff]  }
 0x45a   : > { %v14787_v18 = vpop.f32.mrb[19].mxu1  ;;  %15088 = vmatprep.subr.bf16.mxu1 %v20738_v7  ;;  %v20790_v7 = vld [vmem:[%s21955_s12 + $0x9c0] ss:$40 sps:$4 sm:$0xff]   ;;  %v20798_v8 = vld [vmem:[%s21955_s12 + $0xf14] ss:$40 sps:$4 sm:$0xff]  }
 0x45b   : > { %v20801_v14 = vld [vmem:[%s21955_s12 + $0xa64] ss:$40 sps:$4 sm:$0xff]   ;;  %v20799_v56 = vld [vmem:[%s21955_s12 + $0xa60] ss:$40 sps:$4 sm:$0xff]   ;;  %v20807_v17 = vld [vmem:[%s21955_s12 + $0xab4] ss:$40 sps:$4 sm:$0xff]  }
 0x45c   : > { %15048 = vmatpush1.bf16.msra.mxu0 %v20733_v29  ;;  %v20793_v29 = vld [vmem:[%s21955_s12 + $0xa10] ss:$40 sps:$4 sm:$0xff]   ;;  %v20804_v55 = vld [vmem:[%s21955_s12 + $0xf64] ss:$40 sps:$4 sm:$0xff]   ;;  %v20802_v16 = vld [vmem:[%s21955_s12 + $0xf60] ss:$40 sps:$4 sm:$0xff]  }
 0x45d   : > { %15089 = vmatpush1.bf16.msra.mxu1 %v20736_v12  ;;  %15049 = vmatprep.subr.bf16.mxu0 %v20741_v19  ;;  %v20796_v12 = vld [vmem:[%s21955_s12 + $0xf10] ss:$40 sps:$4 sm:$0xff]   ;;  %v20810_v18 = vld [vmem:[%s21955_s12 + $0xfb4] ss:$40 sps:$4 sm:$0xff]  }
 0x45e   : > { %15090 = vmatprep.subr.bf16.mxu1 %v20744_v20  ;;  %v20805_v19 = vld [vmem:[%s21955_s12 + $0xab0] ss:$40 sps:$4 sm:$0xff]  }
 0x45f   : > { %v20808_v20 = vld [vmem:[%s21955_s12 + $0xfb0] ss:$40 sps:$4 sm:$0xff]  }
 0x460   : > { %15050 = vmatpush1.bf16.msra.mxu0 %v20739_v23  ;;  %v20813_v23 = vld [vmem:[%s21955_s12 + $0xb04] ss:$40 sps:$4 sm:$0xff]  }
 0x461   : > { %15091 = vmatpush1.bf16.msra.mxu1 %v20742_v24  ;;  %15051 = vmatprep.subr.bf16.mxu0 %v20747_v26  ;;  %v20816_v24 = vld [vmem:[%s21955_s12 + $0x1004] ss:$40 sps:$4 sm:$0xff]   ;;  %v20811_v26 = vld [vmem:[%s21955_s12 + $0xb00] ss:$40 sps:$4 sm:$0xff]  }
 0x462   : > { %15092 = vmatprep.subr.bf16.mxu1 %v20750_v27  ;;  %v20814_v27 = vld [vmem:[%s21955_s12 + $0x1000] ss:$40 sps:$4 sm:$0xff]  }
 0x464   : > { %15052 = vmatpush1.bf16.msra.mxu0 %v20745_v45  ;;  %v20819_v45 = vld [vmem:[%s21955_s12 + $0xb54] ss:$40 sps:$4 sm:$0xff]  }
 0x465   : > { %15093 = vmatpush1.bf16.msra.mxu1 %v20748_v28  ;;  %15053 = vmatprep.subr.bf16.mxu0 %v20753_v48  ;;  %v20822_v28 = vld [vmem:[%s21955_s12 + $0x1054] ss:$40 sps:$4 sm:$0xff]   ;;  %v20817_v48 = vld [vmem:[%s21955_s12 + $0xb50] ss:$40 sps:$4 sm:$0xff]  }
 0x466   : > { %15094 = vmatprep.subr.bf16.mxu1 %v20756_v30  ;;  %v20820_v30 = vld [vmem:[%s21955_s12 + $0x1050] ss:$40 sps:$4 sm:$0xff]  }
 0x468   : > { %15054 = vmatpush1.bf16.msra.mxu0 %v20751_v33  ;;  %v20825_v33 = vld [vmem:[%s21955_s12 + $0xba4] ss:$40 sps:$4 sm:$0xff]  }
 0x469   : > { %15095 = vmatpush1.bf16.msra.mxu1 %v20754_v34  ;;  %15055 = vmatprep.subr.bf16.mxu0 %v20759_v35  ;;  %v20828_v34 = vld [vmem:[%s21955_s12 + $0x10a4] ss:$40 sps:$4 sm:$0xff]   ;;  %v20823_v35 = vld [vmem:[%s21955_s12 + $0xba0] ss:$40 sps:$4 sm:$0xff]  }
 0x46a   : > { %15096 = vmatprep.subr.bf16.mxu1 %v20762_v36  ;;  %v20826_v36 = vld [vmem:[%s21955_s12 + $0x10a0] ss:$40 sps:$4 sm:$0xff]  }
 0x46c   : > { %15056 = vmatpush1.bf16.msra.mxu0 %v20757_v41  ;;  %v20831_v41 = vld [vmem:[%s21955_s12 + $0xbf4] ss:$40 sps:$4 sm:$0xff]  }
 0x46d   : > { %15097 = vmatpush1.bf16.msra.mxu1 %v20760_v42  ;;  %15057 = vmatprep.subr.bf16.mxu0 %v20765_v43  ;;  %v20834_v42 = vld [vmem:[%s21955_s12 + $0x10f4] ss:$40 sps:$4 sm:$0xff]  }
 0x46e   : > { %15098 = vmatprep.subr.bf16.mxu1 %v20768_v44 }
 0x470   : > { %15058 = vmatpush1.bf16.msra.mxu0 %v20763_v46  ;;  %v20829_v46 = vld [vmem:[%s21955_s12 + $0xbf0] ss:$40 sps:$4 sm:$0xff]  }
 0x471   : > { %15099 = vmatpush1.bf16.msra.mxu1 %v20766_v47  ;;  %15059 = vmatprep.subr.bf16.mxu0 %v20771_v5 }
 0x472   : > { %15100 = vmatprep.subr.bf16.mxu1 %v20774_v49 }
 0x474   : > { %15060 = vmatpush1.bf16.msra.mxu0 %v20769_v50  ;;  %v20832_v50 = vld [vmem:[%s21955_s12 + $0x10f0] ss:$40 sps:$4 sm:$0xff]  }
 0x475   : > { %15101 = vmatpush1.bf16.msra.mxu1 %v20772_v11  ;;  %15061 = vmatprep.subr.bf16.mxu0 %v20777_v57 }
 0x476   : > { %15102 = vmatprep.subr.bf16.mxu1 %v20780_v58 }
 0x478   : > { %15062 = vmatpush1.bf16.msra.mxu0 %v20775_v59 }
 0x479   : > { %15103 = vmatpush1.bf16.msra.mxu1 %v20778_v60  ;;  %15063 = vmatprep.subr.bf16.mxu0 %v20783_v61 }
 0x47a   : > { %15104 = vmatprep.subr.bf16.mxu1 %v20786_v63  ;;  %v20840_v63 = vld [vmem:[%s21955_s12 + $0x1144] ss:$40 sps:$4 sm:$0xff]  }
 0x47c   : > { %15064 = vmatpush1.bf16.msra.mxu0 %v20781_v0 }
 0x47d   : > { %15105 = vmatpush1.bf16.msra.mxu1 %v20784_v1  ;;  %15065 = vmatprep.subr.bf16.mxu0 %v20789_v3  ;;  %v20838_v1 = vld [vmem:[%s21955_s12 + $0x1140] ss:$40 sps:$4 sm:$0xff]   ;;  %v20843_v3 = vld [vmem:[%s21955_s12 + $0xc94] ss:$40 sps:$4 sm:$0xff]  }
 0x47e   : > { %15106 = vmatprep.subr.bf16.mxu1 %v20792_v4  ;;  %v20846_v4 = vld [vmem:[%s21955_s12 + $0x1194] ss:$40 sps:$4 sm:$0xff]  }
 0x480   : > { %15066 = vmatpush1.bf16.msra.mxu0 %v20787_v6  ;;  %v20841_v6 = vld [vmem:[%s21955_s12 + $0xc90] ss:$40 sps:$4 sm:$0xff]  }
 0x481   : > { %15107 = vmatpush1.bf16.msra.mxu1 %v20790_v7  ;;  %15117 = vmatprep.subr.bf16.mxu0 %v20795_v25  ;;  %v20844_v7 = vld [vmem:[%s21955_s12 + $0x1190] ss:$40 sps:$4 sm:$0xff]   ;;  %v20849_v25 = vld [vmem:[%s21955_s12 + $0xce4] ss:$40 sps:$4 sm:$0xff]  }
 0x482   : > { %15158 = vmatprep.subr.bf16.mxu1 %v20798_v8  ;;  %v20852_v8 = vld [vmem:[%s21955_s12 + $0x11e4] ss:$40 sps:$4 sm:$0xff]  }
 0x483   : > { %15068 = vmatmul.mubr.bf16.vlgmr.msra.gmra.mrb[32].mxu0 %v23800_v21 }
 0x484   : > { %15109 = vmatmul.mubr.bf16.vlgmr.msra.gmra.mrb[32].mxu1 %v23802_v22  ;;  %15118 = vmatpush1.bf16.msra.mxu0 %v20793_v29  ;;  %v20847_v29 = vld [vmem:[%s21955_s12 + $0xce0] ss:$40 sps:$4 sm:$0xff]  }
 0x485   : > { %15159 = vmatpush1.bf16.msra.mxu1 %v20796_v12  ;;  %15119 = vmatprep.subr.bf16.mxu0 %v20801_v14  ;;  %v20850_v12 = vld [vmem:[%s21955_s12 + $0x11e0] ss:$40 sps:$4 sm:$0xff]   ;;  %v20855_v14 = vld [vmem:[%s21955_s12 + $0xd34] ss:$40 sps:$4 sm:$0xff]  }
 0x486   : > { %15160 = vmatprep.subr.bf16.mxu1 %v20804_v55  ;;  %15149 = vmatprep.mubr.bf16.mxu0 %v23840_v51  ;;  %v20858_v55 = vld [vmem:[%s21955_s12 + $0x1234] ss:$40 sps:$4 sm:$0xff]  }
 0x487   : > { %15190 = vmatprep.mubr.bf16.mxu1 %v23844_v52 }
 0x488   : > { %15120 = vmatpush1.bf16.msra.mxu0 %v20799_v56  ;;  %v20853_v56 = vld [vmem:[%s21955_s12 + $0xd30] ss:$40 sps:$4 sm:$0xff]  }
 0x489   : > { %15161 = vmatpush1.bf16.msra.mxu1 %v20802_v16  ;;  %15121 = vmatprep.subr.bf16.mxu0 %v20807_v17  ;;  %v20856_v16 = vld [vmem:[%s21955_s12 + $0x1230] ss:$40 sps:$4 sm:$0xff]   ;;  %v20861_v17 = vld [vmem:[%s21955_s12 + $0xd84] ss:$40 sps:$4 sm:$0xff]  }
 0x48a   : > { %15162 = vmatprep.subr.bf16.mxu1 %v20810_v18  ;;  %v20864_v18 = vld [vmem:[%s21955_s12 + $0x1284] ss:$40 sps:$4 sm:$0xff]  }
 0x48c   : > { %15122 = vmatpush1.bf16.msra.mxu0 %v20805_v19  ;;  %v20859_v19 = vld [vmem:[%s21955_s12 + $0xd80] ss:$40 sps:$4 sm:$0xff]  }
 0x48d   : > { %15163 = vmatpush1.bf16.msra.mxu1 %v20808_v20  ;;  %15123 = vmatprep.subr.bf16.mxu0 %v20813_v23  ;;  %v20862_v20 = vld [vmem:[%s21955_s12 + $0x1280] ss:$40 sps:$4 sm:$0xff]   ;;  %v20867_v23 = vld [vmem:[%s21955_s12 + $0xdd4] ss:$40 sps:$4 sm:$0xff]  }
 0x48e   : > { %15164 = vmatprep.subr.bf16.mxu1 %v20816_v24  ;;  %v20870_v24 = vld [vmem:[%s21955_s12 + $0x12d4] ss:$40 sps:$4 sm:$0xff]  }
 0x490   : > { %15124 = vmatpush1.bf16.msra.mxu0 %v20811_v26  ;;  %v20865_v26 = vld [vmem:[%s21955_s12 + $0xdd0] ss:$40 sps:$4 sm:$0xff]  }
 0x491   : > { %15165 = vmatpush1.bf16.msra.mxu1 %v20814_v27  ;;  %15125 = vmatprep.subr.bf16.mxu0 %v20819_v45  ;;  %v20868_v27 = vld [vmem:[%s21955_s12 + $0x12d0] ss:$40 sps:$4 sm:$0xff]   ;;  %v20873_v45 = vld [vmem:[%s21955_s12 + $0xe24] ss:$40 sps:$4 sm:$0xff]  }
 0x492   : > { %15166 = vmatprep.subr.bf16.mxu1 %v20822_v28  ;;  %v20876_v28 = vld [vmem:[%s21955_s12 + $0x1324] ss:$40 sps:$4 sm:$0xff]  }
 0x494   : > { %15126 = vmatpush1.bf16.msra.mxu0 %v20817_v48  ;;  %v20871_v48 = vld [vmem:[%s21955_s12 + $0xe20] ss:$40 sps:$4 sm:$0xff]  }
 0x495   : > { %15167 = vmatpush1.bf16.msra.mxu1 %v20820_v30  ;;  %15127 = vmatprep.subr.bf16.mxu0 %v20825_v33  ;;  %v20874_v30 = vld [vmem:[%s21955_s12 + $0x1320] ss:$40 sps:$4 sm:$0xff]   ;;  %v20879_v33 = vld [vmem:[%s21955_s12 + $0xe74] ss:$40 sps:$4 sm:$0xff]  }
 0x496   : > { %15168 = vmatprep.subr.bf16.mxu1 %v20828_v34  ;;  %v14823_v43 = vpop.f32.mrb[20].mxu0  ;;  %v20882_v34 = vld [vmem:[%s21955_s12 + $0x1374] ss:$40 sps:$4 sm:$0xff]  }
 0x497   : > { %v14864_v44 = vpop.f32.mrb[20].mxu1  ;;  %v14824_v47 = vadd.f32 %v14823_v43, %v24394_v13  ;;  %v14825_v5 = vpop.f32.mrb[21].mxu0  ;;  %v20837_v13 = vld [vmem:[%s21955_s12 + $0xc44] ss:$40 sps:$4 sm:$0xff]   ;;  %v20883_v43 = vld [vmem:[%s21955_s12 + $0xec0] ss:$40 sps:$4 sm:$0xff]  }
 0x498   : > { %v14866_v49 = vpop.f32.mrb[21].mxu1  ;;  %v14826_v11 = vadd.f32 %v14825_v5, %v24396_v15  ;;  %v14827_v57 = vpop.f32.mrb[22].mxu0  ;;  %15128 = vmatpush1.bf16.msra.mxu0 %v20823_v35  ;;  %v20835_v15 = vld [vmem:[%s21955_s12 + $0xc40] ss:$40 sps:$4 sm:$0xff]   ;;  %v20877_v35 = vld [vmem:[%s21955_s12 + $0xe70] ss:$40 sps:$4 sm:$0xff]  }
 0x499   : > { %v14868_v58 = vpop.f32.mrb[22].mxu1  ;;  %15169 = vmatpush1.bf16.msra.mxu1 %v20826_v36  ;;  %v24468_v59 = vadd.f32 %v14864_v44, %v14824_v47  ;;  %v14828_v60 = vpop.f32.mrb[23].mxu0  ;;  %15129 = vmatprep.subr.bf16.mxu0 %v20831_v41  ;;  %v20880_v36 = vld [vmem:[%s21955_s12 + $0x1370] ss:$40 sps:$4 sm:$0xff]   ;;  %v20885_v41 = vld [vmem:[%s21955_s12 + $0xec4] ss:$40 sps:$4 sm:$0xff]  }
 0x49a   : > { %v14869_v61 = vpop.f32.mrb[23].mxu1  ;;  %15170 = vmatprep.subr.bf16.mxu1 %v20834_v42  ;;  %v24472_v0 = vadd.f32 %v14866_v49, %v14826_v11  ;;  %v20888_v42 = vld [vmem:[%s21955_s12 + $0x13c4] ss:$40 sps:$4 sm:$0xff]   ;;  %v20886_v44 = vld [vmem:[%s21955_s12 + $0x13c0] ss:$40 sps:$4 sm:$0xff]  }
 0x49b   : > { %v20894_v47 = vld [vmem:[%s21955_s12 + $0x1914] ss:$40 sps:$4 sm:$0xff]   ;;  %v20889_v5 = vld [vmem:[%s21955_s12 + $0x1410] ss:$40 sps:$4 sm:$0xff]   ;;  %v20900_v11 = vld [vmem:[%s21955_s12 + $0x1964] ss:$40 sps:$4 sm:$0xff]  }
 0x49c   : > { %15130 = vmatpush1.bf16.msra.mxu0 %v20829_v46  ;;  %v20891_v46 = vld [vmem:[%s21955_s12 + $0x1414] ss:$40 sps:$4 sm:$0xff]   ;;  %v20892_v49 = vld [vmem:[%s21955_s12 + $0x1910] ss:$40 sps:$4 sm:$0xff]   ;;  %v20895_v57 = vld [vmem:[%s21955_s12 + $0x1460] ss:$40 sps:$4 sm:$0xff]  }
 0x49d   : > { %15171 = vmatpush1.bf16.msra.mxu1 %v20832_v50  ;;  %15131 = vmatprep.subr.bf16.mxu0 %v20837_v13  ;;  %v20897_v50 = vld [vmem:[%s21955_s12 + $0x1464] ss:$40 sps:$4 sm:$0xff]   ;;  %v20898_v58 = vld [vmem:[%s21955_s12 + $0x1960] ss:$40 sps:$4 sm:$0xff]   ;;  %v20903_v60 = vld [vmem:[%s21955_s12 + $0x14b4] ss:$40 sps:$4 sm:$0xff]  }
 0x49e   : > { %15172 = vmatprep.subr.bf16.mxu1 %v20840_v63  ;;  %v20906_v61 = vld [vmem:[%s21955_s12 + $0x19b4] ss:$40 sps:$4 sm:$0xff]   ;;  %v20901_v13 = vld [vmem:[%s21955_s12 + $0x14b0] ss:$40 sps:$4 sm:$0xff]  }
 0x49f   : > { %v20904_v63 = vld [vmem:[%s21955_s12 + $0x19b0] ss:$40 sps:$4 sm:$0xff]  }
 0x4a0   : > { %15132 = vmatpush1.bf16.msra.mxu0 %v20835_v15  ;;  %v20909_v15 = vld [vmem:[%s21955_s12 + $0x1504] ss:$40 sps:$4 sm:$0xff]  }
 0x4a1   : > { %15173 = vmatpush1.bf16.msra.mxu1 %v20838_v1  ;;  %15133 = vmatprep.subr.bf16.mxu0 %v20843_v3  ;;  %v20912_v1 = vld [vmem:[%s21955_s12 + $0x1a04] ss:$40 sps:$4 sm:$0xff]   ;;  %v20907_v3 = vld [vmem:[%s21955_s12 + $0x1500] ss:$40 sps:$4 sm:$0xff]  }
 0x4a2   : > { %15174 = vmatprep.subr.bf16.mxu1 %v20846_v4  ;;  %v20910_v4 = vld [vmem:[%s21955_s12 + $0x1a00] ss:$40 sps:$4 sm:$0xff]  }
 0x4a4   : > { %15134 = vmatpush1.bf16.msra.mxu0 %v20841_v6  ;;  %v20915_v6 = vld [vmem:[%s21955_s12 + $0x1554] ss:$40 sps:$4 sm:$0xff]  }
 0x4a5   : > { %15175 = vmatpush1.bf16.msra.mxu1 %v20844_v7  ;;  %15135 = vmatprep.subr.bf16.mxu0 %v20849_v25  ;;  %v20918_v7 = vld [vmem:[%s21955_s12 + $0x1a54] ss:$40 sps:$4 sm:$0xff]   ;;  %v20913_v25 = vld [vmem:[%s21955_s12 + $0x1550] ss:$40 sps:$4 sm:$0xff]  }
 0x4a6   : > { %15176 = vmatprep.subr.bf16.mxu1 %v20852_v8  ;;  %v20916_v8 = vld [vmem:[%s21955_s12 + $0x1a50] ss:$40 sps:$4 sm:$0xff]  }
 0x4a8   : > { %15136 = vmatpush1.bf16.msra.mxu0 %v20847_v29  ;;  %v20921_v29 = vld [vmem:[%s21955_s12 + $0x15a4] ss:$40 sps:$4 sm:$0xff]  }
 0x4a9   : > { %15177 = vmatpush1.bf16.msra.mxu1 %v20850_v12  ;;  %15137 = vmatprep.subr.bf16.mxu0 %v20855_v14  ;;  %v20924_v12 = vld [vmem:[%s21955_s12 + $0x1aa4] ss:$40 sps:$4 sm:$0xff]   ;;  %v20919_v14 = vld [vmem:[%s21955_s12 + $0x15a0] ss:$40 sps:$4 sm:$0xff]  }
 0x4aa   : > { %15178 = vmatprep.subr.bf16.mxu1 %v20858_v55  ;;  %v20922_v55 = vld [vmem:[%s21955_s12 + $0x1aa0] ss:$40 sps:$4 sm:$0xff]  }
 0x4ac   : > { %15138 = vmatpush1.bf16.msra.mxu0 %v20853_v56  ;;  %v20927_v56 = vld [vmem:[%s21955_s12 + $0x15f4] ss:$40 sps:$4 sm:$0xff]  }
 0x4ad   : > { %15179 = vmatpush1.bf16.msra.mxu1 %v20856_v16  ;;  %15139 = vmatprep.subr.bf16.mxu0 %v20861_v17  ;;  %v20930_v16 = vld [vmem:[%s21955_s12 + $0x1af4] ss:$40 sps:$4 sm:$0xff]  }
 0x4ae   : > { %15180 = vmatprep.subr.bf16.mxu1 %v20864_v18 }
 0x4b0   : > { %15140 = vmatpush1.bf16.msra.mxu0 %v20859_v19  ;;  %v20925_v19 = vld [vmem:[%s21955_s12 + $0x15f0] ss:$40 sps:$4 sm:$0xff]  }
 0x4b1   : > { %15181 = vmatpush1.bf16.msra.mxu1 %v20862_v20  ;;  %15141 = vmatprep.subr.bf16.mxu0 %v20867_v23  ;;  %v20928_v20 = vld [vmem:[%s21955_s12 + $0x1af0] ss:$40 sps:$4 sm:$0xff]  }
 0x4b2   : > { %15182 = vmatprep.subr.bf16.mxu1 %v20870_v24 }
 0x4b4   : > { %15142 = vmatpush1.bf16.msra.mxu0 %v20865_v26 }
 0x4b5   : > { %15183 = vmatpush1.bf16.msra.mxu1 %v20868_v27  ;;  %15143 = vmatprep.subr.bf16.mxu0 %v20873_v45 }
 0x4b6   : > { %15184 = vmatprep.subr.bf16.mxu1 %v20876_v28 }
 0x4b8   : > { %15144 = vmatpush1.bf16.msra.mxu0 %v20871_v48 }
 0x4b9   : > { %15185 = vmatpush1.bf16.msra.mxu1 %v20874_v30  ;;  %15145 = vmatprep.subr.bf16.mxu0 %v20879_v33 }
 0x4ba   : > { %15186 = vmatprep.subr.bf16.mxu1 %v20882_v34  ;;  %v20936_v34 = vld [vmem:[%s21955_s12 + $0x1b44] ss:$40 sps:$4 sm:$0xff]  }
 0x4bc   : > { %15146 = vmatpush1.bf16.msra.mxu0 %v20877_v35 }
 0x4bd   : > { %15187 = vmatpush1.bf16.msra.mxu1 %v20880_v36  ;;  %15147 = vmatprep.subr.bf16.mxu0 %v20885_v41  ;;  %v20934_v36 = vld [vmem:[%s21955_s12 + $0x1b40] ss:$40 sps:$4 sm:$0xff]   ;;  %v20939_v41 = vld [vmem:[%s21955_s12 + $0x1694] ss:$40 sps:$4 sm:$0xff]  }
 0x4be   : > { %15188 = vmatprep.subr.bf16.mxu1 %v20888_v42  ;;  %v20942_v42 = vld [vmem:[%s21955_s12 + $0x1b94] ss:$40 sps:$4 sm:$0xff]  }
 0x4c0   : > { %15148 = vmatpush1.bf16.msra.mxu0 %v20883_v43  ;;  %v20937_v43 = vld [vmem:[%s21955_s12 + $0x1690] ss:$40 sps:$4 sm:$0xff]  }
 0x4c1   : > { %15189 = vmatpush1.bf16.msra.mxu1 %v20886_v44  ;;  %15199 = vmatprep.subr.bf16.mxu0 %v20891_v46  ;;  %v20940_v44 = vld [vmem:[%s21955_s12 + $0x1b90] ss:$40 sps:$4 sm:$0xff]   ;;  %v20945_v46 = vld [vmem:[%s21955_s12 + $0x16e4] ss:$40 sps:$4 sm:$0xff]  }
 0x4c2   : > { %15240 = vmatprep.subr.bf16.mxu1 %v20894_v47  ;;  %v20948_v47 = vld [vmem:[%s21955_s12 + $0x1be4] ss:$40 sps:$4 sm:$0xff]  }
 0x4c3   : > { %15150 = vmatmul.mubr.bf16.vlgmr.msra.gmra.mrb[36].mxu0 %v23888_v31 }
 0x4c4   : > { %15191 = vmatmul.mubr.bf16.vlgmr.msra.gmra.mrb[36].mxu1 %v23892_v32  ;;  %15200 = vmatpush1.bf16.msra.mxu0 %v20889_v5  ;;  %v20943_v5 = vld [vmem:[%s21955_s12 + $0x16e0] ss:$40 sps:$4 sm:$0xff]  }
 0x4c5   : > { %15241 = vmatpush1.bf16.msra.mxu1 %v20892_v49  ;;  %15201 = vmatprep.subr.bf16.mxu0 %v20897_v50  ;;  %v20946_v49 = vld [vmem:[%s21955_s12 + $0x1be0] ss:$40 sps:$4 sm:$0xff]   ;;  %v20951_v50 = vld [vmem:[%s21955_s12 + $0x1734] ss:$40 sps:$4 sm:$0xff]  }
 0x4c6   : > { %15242 = vmatprep.subr.bf16.mxu1 %v20900_v11  ;;  %15231 = vmatprep.mubr.bf16.mxu0 %v23906_v39  ;;  %v20954_v11 = vld [vmem:[%s21955_s12 + $0x1c34] ss:$40 sps:$4 sm:$0xff]  }
 0x4c7   : > { %15272 = vmatprep.mubr.bf16.mxu1 %v23910_v40 }
 0x4c8   : > { %15202 = vmatpush1.bf16.msra.mxu0 %v20895_v57  ;;  %v20949_v57 = vld [vmem:[%s21955_s12 + $0x1730] ss:$40 sps:$4 sm:$0xff]  }
 0x4c9   : > { %15243 = vmatpush1.bf16.msra.mxu1 %v20898_v58  ;;  %15203 = vmatprep.subr.bf16.mxu0 %v20903_v60  ;;  %v20952_v58 = vld [vmem:[%s21955_s12 + $0x1c30] ss:$40 sps:$4 sm:$0xff]   ;;  %v20957_v60 = vld [vmem:[%s21955_s12 + $0x1784] ss:$40 sps:$4 sm:$0xff]  }
 0x4ca   : > { %15244 = vmatprep.subr.bf16.mxu1 %v20906_v61  ;;  %v20960_v61 = vld [vmem:[%s21955_s12 + $0x1c84] ss:$40 sps:$4 sm:$0xff]  }
 0x4cc   : > { %15204 = vmatpush1.bf16.msra.mxu0 %v20901_v13  ;;  %v20955_v13 = vld [vmem:[%s21955_s12 + $0x1780] ss:$40 sps:$4 sm:$0xff]  }
 0x4cd   : > { %15245 = vmatpush1.bf16.msra.mxu1 %v20904_v63  ;;  %15205 = vmatprep.subr.bf16.mxu0 %v20909_v15  ;;  %v20958_v63 = vld [vmem:[%s21955_s12 + $0x1c80] ss:$40 sps:$4 sm:$0xff]   ;;  %v20963_v15 = vld [vmem:[%s21955_s12 + $0x17d4] ss:$40 sps:$4 sm:$0xff]  }
 0x4ce   : > { %15246 = vmatprep.subr.bf16.mxu1 %v20912_v1  ;;  %v20966_v1 = vld [vmem:[%s21955_s12 + $0x1cd4] ss:$40 sps:$4 sm:$0xff]  }
 0x4d0   : > { %15206 = vmatpush1.bf16.msra.mxu0 %v20907_v3  ;;  %v20961_v3 = vld [vmem:[%s21955_s12 + $0x17d0] ss:$40 sps:$4 sm:$0xff]  }
 0x4d1   : > { %15247 = vmatpush1.bf16.msra.mxu1 %v20910_v4  ;;  %15207 = vmatprep.subr.bf16.mxu0 %v20915_v6  ;;  %v20964_v4 = vld [vmem:[%s21955_s12 + $0x1cd0] ss:$40 sps:$4 sm:$0xff]   ;;  %v20969_v6 = vld [vmem:[%s21955_s12 + $0x1824] ss:$40 sps:$4 sm:$0xff]  }
 0x4d2   : > { %15248 = vmatprep.subr.bf16.mxu1 %v20918_v7  ;;  %v20972_v7 = vld [vmem:[%s21955_s12 + $0x1d24] ss:$40 sps:$4 sm:$0xff]  }
 0x4d4   : > { %15208 = vmatpush1.bf16.msra.mxu0 %v20913_v25  ;;  %v20967_v25 = vld [vmem:[%s21955_s12 + $0x1820] ss:$40 sps:$4 sm:$0xff]  }
 0x4d5   : > { %15249 = vmatpush1.bf16.msra.mxu1 %v20916_v8  ;;  %15209 = vmatprep.subr.bf16.mxu0 %v20921_v29  ;;  %v20970_v8 = vld [vmem:[%s21955_s12 + $0x1d20] ss:$40 sps:$4 sm:$0xff]   ;;  %v20975_v29 = vld [vmem:[%s21955_s12 + $0x1874] ss:$40 sps:$4 sm:$0xff]  }
 0x4d6   : > { %15250 = vmatprep.subr.bf16.mxu1 %v20924_v12  ;;  %v14905_v17 = vpop.f32.mrb[24].mxu0  ;;  %v20978_v12 = vld [vmem:[%s21955_s12 + $0x1d74] ss:$40 sps:$4 sm:$0xff]  }
 0x4d7   : > { %v14946_v18 = vpop.f32.mrb[24].mxu1  ;;  %v14906_v23 = vadd.f32 %v14905_v17, %v24468_v59  ;;  %v14907_v24 = vpop.f32.mrb[25].mxu0  ;;  %v20933_v59 = vld [vmem:[%s21955_s12 + $0x1644] ss:$40 sps:$4 sm:$0xff]   ;;  %v20979_v17 = vld [vmem:[%s21955_s12 + $0x18c0] ss:$40 sps:$4 sm:$0xff]  }
 0x4d8   : > { %v14948_v26 = vpop.f32.mrb[25].mxu1  ;;  %v14908_v27 = vadd.f32 %v14907_v24, %v24472_v0  ;;  %v14909_v45 = vpop.f32.mrb[26].mxu0  ;;  %15210 = vmatpush1.bf16.msra.mxu0 %v20919_v14  ;;  %v20931_v0 = vld [vmem:[%s21955_s12 + $0x1640] ss:$40 sps:$4 sm:$0xff]   ;;  %v20973_v14 = vld [vmem:[%s21955_s12 + $0x1870] ss:$40 sps:$4 sm:$0xff]  }
 0x4d9   : > { %v14950_v28 = vpop.f32.mrb[26].mxu1  ;;  %15251 = vmatpush1.bf16.msra.mxu1 %v20922_v55  ;;  %v24542_v48 = vadd.f32 %v14946_v18, %v14906_v23  ;;  %v14910_v30 = vpop.f32.mrb[27].mxu0  ;;  %15211 = vmatprep.subr.bf16.mxu0 %v20927_v56  ;;  %v20976_v55 = vld [vmem:[%s21955_s12 + $0x1d70] ss:$40 sps:$4 sm:$0xff]   ;;  %v20981_v56 = vld [vmem:[%s21955_s12 + $0x18c4] ss:$40 sps:$4 sm:$0xff]  }
 0x4da   : > { %v14951_v33 = vpop.f32.mrb[27].mxu1  ;;  %15252 = vmatprep.subr.bf16.mxu1 %v20930_v16  ;;  %v24546_v35 = vadd.f32 %v14948_v26, %v14908_v27  ;;  %v20984_v16 = vld [vmem:[%s21955_s12 + $0x1dc4] ss:$40 sps:$4 sm:$0xff]   ;;  %v20982_v18 = vld [vmem:[%s21955_s12 + $0x1dc0] ss:$40 sps:$4 sm:$0xff]  }
 0x4db   : > { %v20985_v23 = vld [vmem:[%s21955_s12 + $0x1e10] ss:$40 sps:$4 sm:$0xff]   ;;  %v20993_v26 = vld [vmem:[%s21955_s12 + $0x1e64] ss:$40 sps:$4 sm:$0xff]   ;;  %v20991_v45 = vld [vmem:[%s21955_s12 + $0x1e60] ss:$40 sps:$4 sm:$0xff]  }
 0x4dc   : > { %15212 = vmatpush1.bf16.msra.mxu0 %v20925_v19  ;;  %v20987_v19 = vld [vmem:[%s21955_s12 + $0x1e14] ss:$40 sps:$4 sm:$0xff]   ;;  %v20988_v24 = vld [vmem:[%s21955_s12 + $0x2310] ss:$40 sps:$4 sm:$0xff]   ;;  %v20996_v27 = vld [vmem:[%s21955_s12 + $0x2364] ss:$40 sps:$4 sm:$0xff]  }
 0x4dd   : > { %15253 = vmatpush1.bf16.msra.mxu1 %v20928_v20  ;;  %15213 = vmatprep.subr.bf16.mxu0 %v20933_v59  ;;  %v20990_v20 = vld [vmem:[%s21955_s12 + $0x2314] ss:$40 sps:$4 sm:$0xff]   ;;  %v20994_v28 = vld [vmem:[%s21955_s12 + $0x2360] ss:$40 sps:$4 sm:$0xff]   ;;  %v20997_v59 = vld [vmem:[%s21955_s12 + $0x1eb0] ss:$40 sps:$4 sm:$0xff]  }
 0x4de   : > { %15254 = vmatprep.subr.bf16.mxu1 %v20936_v34  ;;  %v20999_v30 = vld [vmem:[%s21955_s12 + $0x1eb4] ss:$40 sps:$4 sm:$0xff]   ;;  %v21000_v34 = vld [vmem:[%s21955_s12 + $0x23b0] ss:$40 sps:$4 sm:$0xff]  }
 0x4df   : > { %v21002_v33 = vld [vmem:[%s21955_s12 + $0x23b4] ss:$40 sps:$4 sm:$0xff]  }
 0x4e0   : > { %15214 = vmatpush1.bf16.msra.mxu0 %v20931_v0  ;;  %v21005_v0 = vld [vmem:[%s21955_s12 + $0x1f04] ss:$40 sps:$4 sm:$0xff]  }
 0x4e1   : > { %15255 = vmatpush1.bf16.msra.mxu1 %v20934_v36  ;;  %15215 = vmatprep.subr.bf16.mxu0 %v20939_v41  ;;  %v21008_v36 = vld [vmem:[%s21955_s12 + $0x2404] ss:$40 sps:$4 sm:$0xff]   ;;  %v21003_v41 = vld [vmem:[%s21955_s12 + $0x1f00] ss:$40 sps:$4 sm:$0xff]  }
 0x4e2   : > { %15256 = vmatprep.subr.bf16.mxu1 %v20942_v42  ;;  %v21006_v42 = vld [vmem:[%s21955_s12 + $0x2400] ss:$40 sps:$4 sm:$0xff]  }
 0x4e4   : > { %15216 = vmatpush1.bf16.msra.mxu0 %v20937_v43  ;;  %v21011_v43 = vld [vmem:[%s21955_s12 + $0x1f54] ss:$40 sps:$4 sm:$0xff]  }
 0x4e5   : > { %15257 = vmatpush1.bf16.msra.mxu1 %v20940_v44  ;;  %15217 = vmatprep.subr.bf16.mxu0 %v20945_v46  ;;  %v21014_v44 = vld [vmem:[%s21955_s12 + $0x2454] ss:$40 sps:$4 sm:$0xff]   ;;  %v21009_v46 = vld [vmem:[%s21955_s12 + $0x1f50] ss:$40 sps:$4 sm:$0xff]  }
 0x4e6   : > { %15258 = vmatprep.subr.bf16.mxu1 %v20948_v47  ;;  %v21012_v47 = vld [vmem:[%s21955_s12 + $0x2450] ss:$40 sps:$4 sm:$0xff]  }
 0x4e8   : > { %15218 = vmatpush1.bf16.msra.mxu0 %v20943_v5  ;;  %v21017_v5 = vld [vmem:[%s21955_s12 + $0x1fa4] ss:$40 sps:$4 sm:$0xff]  }
 0x4e9   : > { %15259 = vmatpush1.bf16.msra.mxu1 %v20946_v49  ;;  %15219 = vmatprep.subr.bf16.mxu0 %v20951_v50  ;;  %v21020_v49 = vld [vmem:[%s21955_s12 + $0x24a4] ss:$40 sps:$4 sm:$0xff]   ;;  %v21015_v50 = vld [vmem:[%s21955_s12 + $0x1fa0] ss:$40 sps:$4 sm:$0xff]  }
 0x4ea   : > { %15260 = vmatprep.subr.bf16.mxu1 %v20954_v11  ;;  %v21018_v11 = vld [vmem:[%s21955_s12 + $0x24a0] ss:$40 sps:$4 sm:$0xff]  }
 0x4ec   : > { %15220 = vmatpush1.bf16.msra.mxu0 %v20949_v57  ;;  %v21023_v57 = vld [vmem:[%s21955_s12 + $0x1ff4] ss:$40 sps:$4 sm:$0xff]  }
 0x4ed   : > { %15261 = vmatpush1.bf16.msra.mxu1 %v20952_v58  ;;  %15221 = vmatprep.subr.bf16.mxu0 %v20957_v60  ;;  %v21026_v58 = vld [vmem:[%s21955_s12 + $0x24f4] ss:$40 sps:$4 sm:$0xff]  }
 0x4ee   : > { %15262 = vmatprep.subr.bf16.mxu1 %v20960_v61 }
 0x4f0   : > { %15222 = vmatpush1.bf16.msra.mxu0 %v20955_v13 }
 0x4f1   : > { %15263 = vmatpush1.bf16.msra.mxu1 %v20958_v63  ;;  %15223 = vmatprep.subr.bf16.mxu0 %v20963_v15 }
 0x4f2   : > { %15264 = vmatprep.subr.bf16.mxu1 %v20966_v1  ;;  %v21021_v1 = vld [vmem:[%s21955_s12 + $0x1ff0] ss:$40 sps:$4 sm:$0xff]  }
 0x4f4   : > { %15224 = vmatpush1.bf16.msra.mxu0 %v20961_v3  ;;  %v6627_v3 = vld [vmem:[#allocation2 + $0x10] sm:$0xff] }
 0x4f5   : > { %15265 = vmatpush1.bf16.msra.mxu1 %v20964_v4  ;;  %15225 = vmatprep.subr.bf16.mxu0 %v20969_v6  ;;  %v6628_v6 = vld [vmem:[#allocation2 + $0x18] sm:$0xff] }
 0x4f6   : > { %15266 = vmatprep.subr.bf16.mxu1 %v20972_v7 }
 0x4f8   : > { %15226 = vmatpush1.bf16.msra.mxu0 %v20967_v25 }
 0x4f9   : > { %15267 = vmatpush1.bf16.msra.mxu1 %v20970_v8  ;;  %15227 = vmatprep.subr.bf16.mxu0 %v20975_v29  ;;  %v21024_v8 = vld [vmem:[%s21955_s12 + $0x24f0] ss:$40 sps:$4 sm:$0xff]  }
 0x4fa   : > { %15268 = vmatprep.subr.bf16.mxu1 %v20978_v12 }
 0x4fc   : > { %15228 = vmatpush1.bf16.msra.mxu0 %v20973_v14  ;;  %v21029_v14 = vld [vmem:[%s21955_s12 + $0x2044] ss:$40 sps:$4 sm:$0xff]  }
 0x4fd   : > { %15269 = vmatpush1.bf16.msra.mxu1 %v20976_v55  ;;  %15229 = vmatprep.subr.bf16.mxu0 %v20981_v56  ;;  %v21032_v55 = vld [vmem:[%s21955_s12 + $0x2544] ss:$40 sps:$4 sm:$0xff]  }
 0x4fe   : > { %15270 = vmatprep.subr.bf16.mxu1 %v20984_v16 }
 0x500   : > { %15230 = vmatpush1.bf16.msra.mxu0 %v20979_v17  ;;  %v21027_v17 = vld [vmem:[%s21955_s12 + $0x2040] ss:$40 sps:$4 sm:$0xff]  }
 0x501   : > { %15271 = vmatpush1.bf16.msra.mxu1 %v20982_v18  ;;  %15281 = vmatprep.subr.bf16.mxu0 %v20987_v19  ;;  %v21030_v18 = vld [vmem:[%s21955_s12 + $0x2540] ss:$40 sps:$4 sm:$0xff]   ;;  %v21035_v19 = vld [vmem:[%s21955_s12 + $0x2094] ss:$40 sps:$4 sm:$0xff]  }
 0x502   : > { %15322 = vmatprep.subr.bf16.mxu1 %v20990_v20  ;;  %v21038_v20 = vld [vmem:[%s21955_s12 + $0x2594] ss:$40 sps:$4 sm:$0xff]  }
 0x503   : > { %15232 = vmatmul.mubr.bf16.vlgmr.msra.gmra.mrb[40].mxu0 %v23980_v53 }
 0x504   : > { %15273 = vmatmul.mubr.bf16.vlgmr.msra.gmra.mrb[40].mxu1 %v23984_v54  ;;  %15282 = vmatpush1.bf16.msra.mxu0 %v20985_v23  ;;  %v21033_v23 = vld [vmem:[%s21955_s12 + $0x2090] ss:$40 sps:$4 sm:$0xff]  }
 0x505   : > { %15323 = vmatpush1.bf16.msra.mxu1 %v20988_v24  ;;  %15283 = vmatprep.subr.bf16.mxu0 %v20993_v26  ;;  %v21036_v24 = vld [vmem:[%s21955_s12 + $0x2590] ss:$40 sps:$4 sm:$0xff]   ;;  %v21041_v26 = vld [vmem:[%s21955_s12 + $0x20e4] ss:$40 sps:$4 sm:$0xff]  }
 0x506   : > { %15324 = vmatprep.subr.bf16.mxu1 %v20996_v27  ;;  %15313 = vmatprep.mubr.bf16.mxu0 %v23996_v37  ;;  %v21044_v27 = vld [vmem:[%s21955_s12 + $0x25e4] ss:$40 sps:$4 sm:$0xff]  }
 0x507   : > { %15354 = vmatprep.mubr.bf16.mxu1 %v24000_v38 }
 0x508   : > { %15284 = vmatpush1.bf16.msra.mxu0 %v20991_v45  ;;  %v21039_v45 = vld [vmem:[%s21955_s12 + $0x20e0] ss:$40 sps:$4 sm:$0xff]  }
 0x509   : > { %15325 = vmatpush1.bf16.msra.mxu1 %v20994_v28  ;;  %15285 = vmatprep.subr.bf16.mxu0 %v20999_v30  ;;  %v21042_v28 = vld [vmem:[%s21955_s12 + $0x25e0] ss:$40 sps:$4 sm:$0xff]   ;;  %v21047_v30 = vld [vmem:[%s21955_s12 + $0x2134] ss:$40 sps:$4 sm:$0xff]  }
 0x50a   : > { %15326 = vmatprep.subr.bf16.mxu1 %v21002_v33  ;;  %v21050_v33 = vld [vmem:[%s21955_s12 + $0x2634] ss:$40 sps:$4 sm:$0xff]  }
 0x50c   : > { %15286 = vmatpush1.bf16.msra.mxu0 %v20997_v59  ;;  %v21045_v59 = vld [vmem:[%s21955_s12 + $0x2130] ss:$40 sps:$4 sm:$0xff]  }
 0x50d   : > { %15327 = vmatpush1.bf16.msra.mxu1 %v21000_v34  ;;  %15287 = vmatprep.subr.bf16.mxu0 %v21005_v0  ;;  %v21048_v34 = vld [vmem:[%s21955_s12 + $0x2630] ss:$40 sps:$4 sm:$0xff]   ;;  %v21053_v0 = vld [vmem:[%s21955_s12 + $0x2184] ss:$40 sps:$4 sm:$0xff]  }
 0x50e   : > { %15328 = vmatprep.subr.bf16.mxu1 %v21008_v36  ;;  %v21056_v36 = vld [vmem:[%s21955_s12 + $0x2684] ss:$40 sps:$4 sm:$0xff]  }
 0x510   : > { %15288 = vmatpush1.bf16.msra.mxu0 %v21003_v41  ;;  %v21051_v41 = vld [vmem:[%s21955_s12 + $0x2180] ss:$40 sps:$4 sm:$0xff]  }
 0x511   : > { %15329 = vmatpush1.bf16.msra.mxu1 %v21006_v42  ;;  %15289 = vmatprep.subr.bf16.mxu0 %v21011_v43  ;;  %v21054_v42 = vld [vmem:[%s21955_s12 + $0x2680] ss:$40 sps:$4 sm:$0xff]   ;;  %v21059_v43 = vld [vmem:[%s21955_s12 + $0x21d4] ss:$40 sps:$4 sm:$0xff]  }
 0x512   : > { %15330 = vmatprep.subr.bf16.mxu1 %v21014_v44  ;;  %v21062_v44 = vld [vmem:[%s21955_s12 + $0x26d4] ss:$40 sps:$4 sm:$0xff]  }
 0x514   : > { %15290 = vmatpush1.bf16.msra.mxu0 %v21009_v46  ;;  %v21057_v46 = vld [vmem:[%s21955_s12 + $0x21d0] ss:$40 sps:$4 sm:$0xff]  }
 0x515   : > { %15331 = vmatpush1.bf16.msra.mxu1 %v21012_v47  ;;  %15291 = vmatprep.subr.bf16.mxu0 %v21017_v5  ;;  %v21060_v47 = vld [vmem:[%s21955_s12 + $0x26d0] ss:$40 sps:$4 sm:$0xff]   ;;  %v21065_v5 = vld [vmem:[%s21955_s12 + $0x2224] ss:$40 sps:$4 sm:$0xff]  }
 0x516   : > { %15332 = vmatprep.subr.bf16.mxu1 %v21020_v49  ;;  %v14987_v60 = vpop.f32.mrb[28].mxu0  ;;  %v21068_v49 = vld [vmem:[%s21955_s12 + $0x2724] ss:$40 sps:$4 sm:$0xff]  }
 0x517   : > { %v15028_v61 = vpop.f32.mrb[28].mxu1  ;;  %v14988_v13 = vadd.f32 %v14987_v60, %v24542_v48  ;;  %v14989_v63 = vpop.f32.mrb[29].mxu0  ;;  %v21069_v60 = vld [vmem:[%s21955_s12 + $0x2270] ss:$40 sps:$4 sm:$0xff]  }
 0x518   : > { %v15030_v15 = vpop.f32.mrb[29].mxu1  ;;  %v14990_v4 = vadd.f32 %v14989_v63, %v24546_v35  ;;  %v14991_v7 = vpop.f32.mrb[30].mxu0  ;;  %15292 = vmatpush1.bf16.msra.mxu0 %v21015_v50  ;;  %v21063_v50 = vld [vmem:[%s21955_s12 + $0x2220] ss:$40 sps:$4 sm:$0xff]   ;;  %v21080_v63 = vld [vmem:[%s21955_s12 + $0x27c4] ss:$40 sps:$4 sm:$0xff]  }
 0x519   : > { %v15032_v25 = vpop.f32.mrb[30].mxu1  ;;  %15333 = vmatpush1.bf16.msra.mxu1 %v21018_v11  ;;  %v15029_v29 = vadd.f32 %v15028_v61, %v14988_v13  ;;  %v14992_v12 = vpop.f32.mrb[31].mxu0  ;;  %15293 = vmatprep.subr.bf16.mxu0 %v21023_v57  ;;  %v21066_v11 = vld [vmem:[%s21955_s12 + $0x2720] ss:$40 sps:$4 sm:$0xff]   ;;  %v21071_v57 = vld [vmem:[%s21955_s12 + $0x2274] ss:$40 sps:$4 sm:$0xff]  }
 0x51a   : > { %v15033_v48 = vpop.f32.mrb[31].mxu1  ;;  %15334 = vmatprep.subr.bf16.mxu1 %v21026_v58  ;;  %v15031_v56 = vadd.f32 %v15030_v15, %v14990_v4  ;;  %v21074_v58 = vld [vmem:[%s21955_s12 + $0x2774] ss:$40 sps:$4 sm:$0xff]   ;;  %v21072_v61 = vld [vmem:[%s21955_s12 + $0x2770] ss:$40 sps:$4 sm:$0xff]  }
 0x51b   : > { %v16021_v35 = vadd.f32 %v15029_v29, %v6627_v3  ;;  %v21077_v13 = vld [vmem:[%s21955_s12 + $0x22c4] ss:$40 sps:$4 sm:$0xff]   ;;  %v21075_v15 = vld [vmem:[%s21955_s12 + $0x22c0] ss:$40 sps:$4 sm:$0xff]  }
 0x51c   : > { %v16022_v16 = vadd.f32 %v15031_v56, %v6628_v6  ;;  %15294 = vmatpush1.bf16.msra.mxu0 %v21021_v1  ;;  %v21078_v1 = vld [vmem:[%s21955_s12 + $0x27c0] ss:$40 sps:$4 sm:$0xff]   ;;  %v21083_v3 = vld [vmem:[%s21955_s12 + $0x1c] ss:$40 sps:$4 sm:$0xff]   ;;  %v21089_v25 = vld [vmem:[%s21955_s12 + $0x6c] ss:$40 sps:$4 sm:$0xff]  }
 0x51d   : > { %15335 = vmatpush1.bf16.msra.mxu1 %v21024_v8  ;;  %16031 = vst [vmem:[#allocation2 + $0x10] sm:$0xff] %v16021_v35  ;;  %15295 = vmatprep.subr.bf16.mxu0 %v21029_v14  ;;  %v21086_v4 = vld [vmem:[%s21955_s12 + $0x51c] ss:$40 sps:$4 sm:$0xff]   ;;  %v21081_v6 = vld [vmem:[%s21955_s12 + $0x18] ss:$40 sps:$4 sm:$0xff]  }
 0x51e   : > { %15336 = vmatprep.subr.bf16.mxu1 %v21032_v55  ;;  %16032 = vst [vmem:[#allocation2 + $0x18] sm:$0xff] %v16022_v16  ;;  %v21084_v7 = vld [vmem:[%s21955_s12 + $0x518] ss:$40 sps:$4 sm:$0xff]   ;;  %v21092_v8 = vld [vmem:[%s21955_s12 + $0x56c] ss:$40 sps:$4 sm:$0xff]  }
 0x51f   : > { %v21087_v29 = vld [vmem:[%s21955_s12 + $0x68] ss:$40 sps:$4 sm:$0xff]   ;;  %v21095_v48 = vld [vmem:[%s21955_s12 + $0xbc] ss:$40 sps:$4 sm:$0xff]   ;;  %v21093_v55 = vld [vmem:[%s21955_s12 + $0xb8] ss:$40 sps:$4 sm:$0xff]  }
 0x520   : > { %15296 = vmatpush1.bf16.msra.mxu0 %v21027_v17  ;;  %v21090_v12 = vld [vmem:[%s21955_s12 + $0x568] ss:$40 sps:$4 sm:$0xff]   ;;  %v21098_v14 = vld [vmem:[%s21955_s12 + $0x5bc] ss:$40 sps:$4 sm:$0xff]   ;;  %v21096_v56 = vld [vmem:[%s21955_s12 + $0x5b8] ss:$40 sps:$4 sm:$0xff]  }
 0x521   : > { %15337 = vmatpush1.bf16.msra.mxu1 %v21030_v18  ;;  %15297 = vmatprep.subr.bf16.mxu0 %v21035_v19  ;;  %v21101_v35 = vld [vmem:[%s21955_s12 + $0x10c] ss:$40 sps:$4 sm:$0xff]   ;;  %v21099_v17 = vld [vmem:[%s21955_s12 + $0x108] ss:$40 sps:$4 sm:$0xff]   ;;  %v21107_v19 = vld [vmem:[%s21955_s12 + $0x15c] ss:$40 sps:$4 sm:$0xff]  }
 0x522   : > { %15338 = vmatprep.subr.bf16.mxu1 %v21038_v20  ;;  %v21104_v16 = vld [vmem:[%s21955_s12 + $0x60c] ss:$40 sps:$4 sm:$0xff]   ;;  %v21102_v18 = vld [vmem:[%s21955_s12 + $0x608] ss:$40 sps:$4 sm:$0xff]   ;;  %v21110_v20 = vld [vmem:[%s21955_s12 + $0x65c] ss:$40 sps:$4 sm:$0xff]  }
 0x524   : > { %15298 = vmatpush1.bf16.msra.mxu0 %v21033_v23  ;;  %v21105_v23 = vld [vmem:[%s21955_s12 + $0x158] ss:$40 sps:$4 sm:$0xff]  }
 0x525   : > { %15339 = vmatpush1.bf16.msra.mxu1 %v21036_v24  ;;  %15299 = vmatprep.subr.bf16.mxu0 %v21041_v26  ;;  %v21108_v24 = vld [vmem:[%s21955_s12 + $0x658] ss:$40 sps:$4 sm:$0xff]   ;;  %v21113_v26 = vld [vmem:[%s21955_s12 + $0x1ac] ss:$40 sps:$4 sm:$0xff]  }
 0x526   : > { %15340 = vmatprep.subr.bf16.mxu1 %v21044_v27  ;;  %v21116_v27 = vld [vmem:[%s21955_s12 + $0x6ac] ss:$40 sps:$4 sm:$0xff]  }
 0x528   : > { %15300 = vmatpush1.bf16.msra.mxu0 %v21039_v45  ;;  %v21111_v45 = vld [vmem:[%s21955_s12 + $0x1a8] ss:$40 sps:$4 sm:$0xff]  }
 0x529   : > { %15341 = vmatpush1.bf16.msra.mxu1 %v21042_v28  ;;  %15301 = vmatprep.subr.bf16.mxu0 %v21047_v30  ;;  %v21114_v28 = vld [vmem:[%s21955_s12 + $0x6a8] ss:$40 sps:$4 sm:$0xff]   ;;  %v21119_v30 = vld [vmem:[%s21955_s12 + $0x1fc] ss:$40 sps:$4 sm:$0xff]  }
 0x52a   : > { %15342 = vmatprep.subr.bf16.mxu1 %v21050_v33  ;;  %v21122_v33 = vld [vmem:[%s21955_s12 + $0x6fc] ss:$40 sps:$4 sm:$0xff]  }
 0x52c   : > { %15302 = vmatpush1.bf16.msra.mxu0 %v21045_v59 }
 0x52d   : > { %15343 = vmatpush1.bf16.msra.mxu1 %v21048_v34  ;;  %15303 = vmatprep.subr.bf16.mxu0 %v21053_v0 }
 0x52e   : > { %15344 = vmatprep.subr.bf16.mxu1 %v21056_v36 }
 0x530   : > { %15304 = vmatpush1.bf16.msra.mxu0 %v21051_v41 }
 0x531   : > { %15345 = vmatpush1.bf16.msra.mxu1 %v21054_v42  ;;  %15305 = vmatprep.subr.bf16.mxu0 %v21059_v43 }
 0x532   : > { %15346 = vmatprep.subr.bf16.mxu1 %v21062_v44 }
 0x534   : > { %15306 = vmatpush1.bf16.msra.mxu0 %v21057_v46  ;;  %v21117_v46 = vld [vmem:[%s21955_s12 + $0x1f8] ss:$40 sps:$4 sm:$0xff]  }
 0x535   : > { %15347 = vmatpush1.bf16.msra.mxu1 %v21060_v47  ;;  %15307 = vmatprep.subr.bf16.mxu0 %v21065_v5  ;;  %v21120_v47 = vld [vmem:[%s21955_s12 + $0x6f8] ss:$40 sps:$4 sm:$0xff]  }
 0x536   : > { %15348 = vmatprep.subr.bf16.mxu1 %v21068_v49 }
 0x538   : > { %15308 = vmatpush1.bf16.msra.mxu0 %v21063_v50  ;;  %v21125_v50 = vld [vmem:[%s21955_s12 + $0x24c] ss:$40 sps:$4 sm:$0xff]  }
 0x539   : > { %15349 = vmatpush1.bf16.msra.mxu1 %v21066_v11  ;;  %15309 = vmatprep.subr.bf16.mxu0 %v21071_v57  ;;  %v21128_v11 = vld [vmem:[%s21955_s12 + $0x74c] ss:$40 sps:$4 sm:$0xff]   ;;  %v21123_v57 = vld [vmem:[%s21955_s12 + $0x248] ss:$40 sps:$4 sm:$0xff]  }
 0x53a   : > { %15350 = vmatprep.subr.bf16.mxu1 %v21074_v58  ;;  %v21126_v58 = vld [vmem:[%s21955_s12 + $0x748] ss:$40 sps:$4 sm:$0xff]  }
 0x53c   : > { %15310 = vmatpush1.bf16.msra.mxu0 %v21069_v60  ;;  %v21131_v60 = vld [vmem:[%s21955_s12 + $0x29c] ss:$40 sps:$4 sm:$0xff]  }
 0x53d   : > { %15351 = vmatpush1.bf16.msra.mxu1 %v21072_v61  ;;  %15311 = vmatprep.subr.bf16.mxu0 %v21077_v13  ;;  %v21134_v61 = vld [vmem:[%s21955_s12 + $0x79c] ss:$40 sps:$4 sm:$0xff]   ;;  %v21129_v13 = vld [vmem:[%s21955_s12 + $0x298] ss:$40 sps:$4 sm:$0xff]  }
 0x53e   : > { %15352 = vmatprep.subr.bf16.mxu1 %v21080_v63  ;;  %v21132_v63 = vld [vmem:[%s21955_s12 + $0x798] ss:$40 sps:$4 sm:$0xff]  }
 0x540   : > { %15312 = vmatpush1.bf16.msra.mxu0 %v21075_v15  ;;  %v21137_v15 = vld [vmem:[%s21955_s12 + $0x2ec] ss:$40 sps:$4 sm:$0xff]  }
 0x541   : > { %15353 = vmatpush1.bf16.msra.mxu1 %v21078_v1  ;;  %15363 = vmatprep.subr.bf16.mxu0 %v21083_v3  ;;  %v21140_v1 = vld [vmem:[%s21955_s12 + $0x7ec] ss:$40 sps:$4 sm:$0xff]   ;;  %v21135_v3 = vld [vmem:[%s21955_s12 + $0x2e8] ss:$40 sps:$4 sm:$0xff]  }
 0x542   : > { %15404 = vmatprep.subr.bf16.mxu1 %v21086_v4  ;;  %v21138_v4 = vld [vmem:[%s21955_s12 + $0x7e8] ss:$40 sps:$4 sm:$0xff]  }
 0x543   : > { %15314 = vmatmul.mubr.bf16.vlgmr.msra.gmra.mrb[44].mxu0 %v24068_v9 }
 0x544   : > { %15355 = vmatmul.mubr.bf16.vlgmr.msra.gmra.mrb[44].mxu1 %v24072_v10  ;;  %15364 = vmatpush1.bf16.msra.mxu0 %v21081_v6  ;;  %v21143_v6 = vld [vmem:[%s21955_s12 + $0x33c] ss:$40 sps:$4 sm:$0xff]  }
 0x545   : > { %15405 = vmatpush1.bf16.msra.mxu1 %v21084_v7  ;;  %15365 = vmatprep.subr.bf16.mxu0 %v21089_v25  ;;  %v21146_v7 = vld [vmem:[%s21955_s12 + $0x83c] ss:$40 sps:$4 sm:$0xff]   ;;  %v21141_v25 = vld [vmem:[%s21955_s12 + $0x338] ss:$40 sps:$4 sm:$0xff]  }
 0x546   : > { %15406 = vmatprep.subr.bf16.mxu1 %v21092_v8  ;;  %15395 = vmatprep.mubr.bf16.mxu0 %v23773_v62  ;;  %v21144_v8 = vld [vmem:[%s21955_s12 + $0x838] ss:$40 sps:$4 sm:$0xff]  }
 0x547   : > { %15436 = vmatprep.mubr.bf16.mxu1 %v23778_v2 }
 0x548   : > { %15366 = vmatpush1.bf16.msra.mxu0 %v21087_v29  ;;  %v21149_v29 = vld [vmem:[%s21955_s12 + $0x38c] ss:$40 sps:$4 sm:$0xff]  }
 0x549   : > { %15407 = vmatpush1.bf16.msra.mxu1 %v21090_v12  ;;  %15367 = vmatprep.subr.bf16.mxu0 %v21095_v48  ;;  %v21152_v12 = vld [vmem:[%s21955_s12 + $0x88c] ss:$40 sps:$4 sm:$0xff]   ;;  %v21147_v48 = vld [vmem:[%s21955_s12 + $0x388] ss:$40 sps:$4 sm:$0xff]  }
 0x54a   : > { %15408 = vmatprep.subr.bf16.mxu1 %v21098_v14  ;;  %v21150_v14 = vld [vmem:[%s21955_s12 + $0x888] ss:$40 sps:$4 sm:$0xff]  }
 0x54c   : > { %15368 = vmatpush1.bf16.msra.mxu0 %v21093_v55  ;;  %v21155_v55 = vld [vmem:[%s21955_s12 + $0x3dc] ss:$40 sps:$4 sm:$0xff]  }
 0x54d   : > { %15409 = vmatpush1.bf16.msra.mxu1 %v21096_v56  ;;  %15369 = vmatprep.subr.bf16.mxu0 %v21101_v35  ;;  %v21158_v56 = vld [vmem:[%s21955_s12 + $0x8dc] ss:$40 sps:$4 sm:$0xff]   ;;  %v21153_v35 = vld [vmem:[%s21955_s12 + $0x3d8] ss:$40 sps:$4 sm:$0xff]  }
 0x54e   : > { %15410 = vmatprep.subr.bf16.mxu1 %v21104_v16  ;;  %v21156_v16 = vld [vmem:[%s21955_s12 + $0x8d8] ss:$40 sps:$4 sm:$0xff]  }
 0x550   : > { %15370 = vmatpush1.bf16.msra.mxu0 %v21099_v17  ;;  %v21161_v17 = vld [vmem:[%s21955_s12 + $0x42c] ss:$40 sps:$4 sm:$0xff]  }
 0x551   : > { %15411 = vmatpush1.bf16.msra.mxu1 %v21102_v18  ;;  %15371 = vmatprep.subr.bf16.mxu0 %v21107_v19  ;;  %v21164_v18 = vld [vmem:[%s21955_s12 + $0x92c] ss:$40 sps:$4 sm:$0xff]   ;;  %v21159_v19 = vld [vmem:[%s21955_s12 + $0x428] ss:$40 sps:$4 sm:$0xff]  }
 0x552   : > { %15412 = vmatprep.subr.bf16.mxu1 %v21110_v20  ;;  %v21162_v20 = vld [vmem:[%s21955_s12 + $0x928] ss:$40 sps:$4 sm:$0xff]  }
 0x554   : > { %15372 = vmatpush1.bf16.msra.mxu0 %v21105_v23  ;;  %v21167_v23 = vld [vmem:[%s21955_s12 + $0x47c] ss:$40 sps:$4 sm:$0xff]  }
 0x555   : > { %15413 = vmatpush1.bf16.msra.mxu1 %v21108_v24  ;;  %15373 = vmatprep.subr.bf16.mxu0 %v21113_v26  ;;  %v21170_v24 = vld [vmem:[%s21955_s12 + $0x97c] ss:$40 sps:$4 sm:$0xff]   ;;  %v21165_v26 = vld [vmem:[%s21955_s12 + $0x478] ss:$40 sps:$4 sm:$0xff]  }
 0x556   : > { %15414 = vmatprep.subr.bf16.mxu1 %v21116_v27  ;;  %v15069_v59 = vpop.f32.mrb[32].mxu0  ;;  %v21168_v27 = vld [vmem:[%s21955_s12 + $0x978] ss:$40 sps:$4 sm:$0xff]  }
 0x557   : > { %v15110_v34 = vpop.f32.mrb[32].mxu1  ;;  %v15071_v36 = vpop.f32.mrb[33].mxu0 }
 0x558   : > { %v24682_v0 = vadd.f32 %v15110_v34, %v15069_v59  ;;  %v15112_v41 = vpop.f32.mrb[33].mxu1  ;;  %v15073_v43 = vpop.f32.mrb[34].mxu0  ;;  %15374 = vmatpush1.bf16.msra.mxu0 %v21111_v45  ;;  %v21173_v45 = vld [vmem:[%s21955_s12 + $0x4cc] ss:$40 sps:$4 sm:$0xff]   ;;  %v21179_v59 = vld [vmem:[%s21955_s12 + $0xa1c] ss:$40 sps:$4 sm:$0xff]  }
 0x559   : > { %v24684_v42 = vadd.f32 %v15112_v41, %v15071_v36  ;;  %v15114_v44 = vpop.f32.mrb[34].mxu1  ;;  %15415 = vmatpush1.bf16.msra.mxu1 %v21114_v28  ;;  %v15074_v5 = vpop.f32.mrb[35].mxu0  ;;  %15375 = vmatprep.subr.bf16.mxu0 %v21119_v30  ;;  %v21176_v28 = vld [vmem:[%s21955_s12 + $0x9cc] ss:$40 sps:$4 sm:$0xff]   ;;  %v21171_v30 = vld [vmem:[%s21955_s12 + $0x4c8] ss:$40 sps:$4 sm:$0xff]  }
 0x55a   : > { %v15115_v49 = vpop.f32.mrb[35].mxu1  ;;  %15416 = vmatprep.subr.bf16.mxu1 %v21122_v33  ;;  %v21174_v33 = vld [vmem:[%s21955_s12 + $0x9c8] ss:$40 sps:$4 sm:$0xff]   ;;  %v21182_v34 = vld [vmem:[%s21955_s12 + $0xf1c] ss:$40 sps:$4 sm:$0xff]  }
 0x55b   : > { %v21177_v36 = vld [vmem:[%s21955_s12 + $0xa18] ss:$40 sps:$4 sm:$0xff]   ;;  %v21185_v43 = vld [vmem:[%s21955_s12 + $0xa6c] ss:$40 sps:$4 sm:$0xff]   ;;  %v21191_v5 = vld [vmem:[%s21955_s12 + $0xabc] ss:$40 sps:$4 sm:$0xff]  }
 0x55c   : > { %15376 = vmatpush1.bf16.msra.mxu0 %v21117_v46  ;;  %v21180_v41 = vld [vmem:[%s21955_s12 + $0xf18] ss:$40 sps:$4 sm:$0xff]   ;;  %v21188_v44 = vld [vmem:[%s21955_s12 + $0xf6c] ss:$40 sps:$4 sm:$0xff]   ;;  %v21183_v46 = vld [vmem:[%s21955_s12 + $0xa68] ss:$40 sps:$4 sm:$0xff]  }
 0x55d   : > { %15417 = vmatpush1.bf16.msra.mxu1 %v21120_v47  ;;  %15377 = vmatprep.subr.bf16.mxu0 %v21125_v50  ;;  %v21186_v47 = vld [vmem:[%s21955_s12 + $0xf68] ss:$40 sps:$4 sm:$0xff]   ;;  %v21194_v49 = vld [vmem:[%s21955_s12 + $0xfbc] ss:$40 sps:$4 sm:$0xff]   ;;  %v21189_v50 = vld [vmem:[%s21955_s12 + $0xab8] ss:$40 sps:$4 sm:$0xff]  }
 0x55e   : > { %15418 = vmatprep.subr.bf16.mxu1 %v21128_v11  ;;  %v21192_v11 = vld [vmem:[%s21955_s12 + $0xfb8] ss:$40 sps:$4 sm:$0xff]  }
 0x560   : > { %15378 = vmatpush1.bf16.msra.mxu0 %v21123_v57  ;;  %v21197_v57 = vld [vmem:[%s21955_s12 + $0xb0c] ss:$40 sps:$4 sm:$0xff]  }
 0x561   : > { %15419 = vmatpush1.bf16.msra.mxu1 %v21126_v58  ;;  %15379 = vmatprep.subr.bf16.mxu0 %v21131_v60  ;;  %v21200_v58 = vld [vmem:[%s21955_s12 + $0x100c] ss:$40 sps:$4 sm:$0xff]   ;;  %v21195_v60 = vld [vmem:[%s21955_s12 + $0xb08] ss:$40 sps:$4 sm:$0xff]  }
 0x562   : > { %15420 = vmatprep.subr.bf16.mxu1 %v21134_v61  ;;  %v21198_v61 = vld [vmem:[%s21955_s12 + $0x1008] ss:$40 sps:$4 sm:$0xff]  }
 0x564   : > { %15380 = vmatpush1.bf16.msra.mxu0 %v21129_v13  ;;  %v21203_v13 = vld [vmem:[%s21955_s12 + $0xb5c] ss:$40 sps:$4 sm:$0xff]  }
 0x565   : > { %15421 = vmatpush1.bf16.msra.mxu1 %v21132_v63  ;;  %15381 = vmatprep.subr.bf16.mxu0 %v21137_v15  ;;  %v21206_v63 = vld [vmem:[%s21955_s12 + $0x105c] ss:$40 sps:$4 sm:$0xff]   ;;  %v21201_v15 = vld [vmem:[%s21955_s12 + $0xb58] ss:$40 sps:$4 sm:$0xff]  }
 0x566   : > { %15422 = vmatprep.subr.bf16.mxu1 %v21140_v1  ;;  %v21204_v1 = vld [vmem:[%s21955_s12 + $0x1058] ss:$40 sps:$4 sm:$0xff]  }
 0x568   : > { %15382 = vmatpush1.bf16.msra.mxu0 %v21135_v3  ;;  %v21209_v3 = vld [vmem:[%s21955_s12 + $0xbac] ss:$40 sps:$4 sm:$0xff]  }
 0x569   : > { %15423 = vmatpush1.bf16.msra.mxu1 %v21138_v4  ;;  %15383 = vmatprep.subr.bf16.mxu0 %v21143_v6  ;;  %v21212_v4 = vld [vmem:[%s21955_s12 + $0x10ac] ss:$40 sps:$4 sm:$0xff]   ;;  %v21207_v6 = vld [vmem:[%s21955_s12 + $0xba8] ss:$40 sps:$4 sm:$0xff]  }
 0x56a   : > { %15424 = vmatprep.subr.bf16.mxu1 %v21146_v7  ;;  %v21210_v7 = vld [vmem:[%s21955_s12 + $0x10a8] ss:$40 sps:$4 sm:$0xff]  }
 0x56c   : > { %15384 = vmatpush1.bf16.msra.mxu0 %v21141_v25  ;;  %v21215_v25 = vld [vmem:[%s21955_s12 + $0xbfc] ss:$40 sps:$4 sm:$0xff]  }
 0x56d   : > { %15425 = vmatpush1.bf16.msra.mxu1 %v21144_v8  ;;  %15385 = vmatprep.subr.bf16.mxu0 %v21149_v29  ;;  %v21218_v8 = vld [vmem:[%s21955_s12 + $0x10fc] ss:$40 sps:$4 sm:$0xff]  }
 0x56e   : > { %15426 = vmatprep.subr.bf16.mxu1 %v21152_v12 }
 0x570   : > { %15386 = vmatpush1.bf16.msra.mxu0 %v21147_v48 }
 0x571   : > { %15427 = vmatpush1.bf16.msra.mxu1 %v21150_v14  ;;  %15387 = vmatprep.subr.bf16.mxu0 %v21155_v55 }
 0x572   : > { %15428 = vmatprep.subr.bf16.mxu1 %v21158_v56 }
 0x574   : > { %15388 = vmatpush1.bf16.msra.mxu0 %v21153_v35 }
 0x575   : > { %15429 = vmatpush1.bf16.msra.mxu1 %v21156_v16  ;;  %15389 = vmatprep.subr.bf16.mxu0 %v21161_v17  ;;  %v21213_v17 = vld [vmem:[%s21955_s12 + $0xbf8] ss:$40 sps:$4 sm:$0xff]  }
 0x576   : > { %15430 = vmatprep.subr.bf16.mxu1 %v21164_v18  ;;  %v21216_v18 = vld [vmem:[%s21955_s12 + $0x10f8] ss:$40 sps:$4 sm:$0xff]  }
 0x578   : > { %15390 = vmatpush1.bf16.msra.mxu0 %v21159_v19 }
 0x579   : > { %15431 = vmatpush1.bf16.msra.mxu1 %v21162_v20  ;;  %15391 = vmatprep.subr.bf16.mxu0 %v21167_v23 }
 0x57a   : > { %15432 = vmatprep.subr.bf16.mxu1 %v21170_v24 }
 0x57c   : > { %15392 = vmatpush1.bf16.msra.mxu0 %v21165_v26  ;;  %v21219_v26 = vld [vmem:[%s21955_s12 + $0xc48] ss:$40 sps:$4 sm:$0xff]  }
 0x57d   : > { %15433 = vmatpush1.bf16.msra.mxu1 %v21168_v27  ;;  %15393 = vmatprep.subr.bf16.mxu0 %v21173_v45  ;;  %v21222_v27 = vld [vmem:[%s21955_s12 + $0x1148] ss:$40 sps:$4 sm:$0xff]   ;;  %v21227_v45 = vld [vmem:[%s21955_s12 + $0xc9c] ss:$40 sps:$4 sm:$0xff]  }
 0x57e   : > { %15434 = vmatprep.subr.bf16.mxu1 %v21176_v28  ;;  %v21230_v28 = vld [vmem:[%s21955_s12 + $0x119c] ss:$40 sps:$4 sm:$0xff]  }
 0x580   : > { %15394 = vmatpush1.bf16.msra.mxu0 %v21171_v30  ;;  %v21225_v30 = vld [vmem:[%s21955_s12 + $0xc98] ss:$40 sps:$4 sm:$0xff]  }
 0x581   : > { %15435 = vmatpush1.bf16.msra.mxu1 %v21174_v33  ;;  %15445 = vmatprep.subr.bf16.mxu0 %v21179_v59  ;;  %v21228_v33 = vld [vmem:[%s21955_s12 + $0x1198] ss:$40 sps:$4 sm:$0xff]   ;;  %v21233_v59 = vld [vmem:[%s21955_s12 + $0xcec] ss:$40 sps:$4 sm:$0xff]  }
 0x582   : > { %15486 = vmatprep.subr.bf16.mxu1 %v21182_v34  ;;  %v21236_v34 = vld [vmem:[%s21955_s12 + $0x11ec] ss:$40 sps:$4 sm:$0xff]  }
 0x583   : > { %15396 = vmatmul.mubr.bf16.vlgmr.msra.gmra.mrb[48].mxu0 %v23800_v21 }
 0x584   : > { %15437 = vmatmul.mubr.bf16.vlgmr.msra.gmra.mrb[48].mxu1 %v23802_v22  ;;  %15446 = vmatpush1.bf16.msra.mxu0 %v21177_v36  ;;  %v21231_v36 = vld [vmem:[%s21955_s12 + $0xce8] ss:$40 sps:$4 sm:$0xff]  }
 0x585   : > { %15487 = vmatpush1.bf16.msra.mxu1 %v21180_v41  ;;  %15447 = vmatprep.subr.bf16.mxu0 %v21185_v43  ;;  %v21234_v41 = vld [vmem:[%s21955_s12 + $0x11e8] ss:$40 sps:$4 sm:$0xff]   ;;  %v21239_v43 = vld [vmem:[%s21955_s12 + $0xd3c] ss:$40 sps:$4 sm:$0xff]  }
 0x586   : > { %15488 = vmatprep.subr.bf16.mxu1 %v21188_v44  ;;  %15477 = vmatprep.mubr.bf16.mxu0 %v23840_v51  ;;  %v21242_v44 = vld [vmem:[%s21955_s12 + $0x123c] ss:$40 sps:$4 sm:$0xff]  }
 0x587   : > { %15518 = vmatprep.mubr.bf16.mxu1 %v23844_v52 }
 0x588   : > { %15448 = vmatpush1.bf16.msra.mxu0 %v21183_v46  ;;  %v21237_v46 = vld [vmem:[%s21955_s12 + $0xd38] ss:$40 sps:$4 sm:$0xff]  }
 0x589   : > { %15489 = vmatpush1.bf16.msra.mxu1 %v21186_v47  ;;  %15449 = vmatprep.subr.bf16.mxu0 %v21191_v5  ;;  %v21240_v47 = vld [vmem:[%s21955_s12 + $0x1238] ss:$40 sps:$4 sm:$0xff]   ;;  %v21245_v5 = vld [vmem:[%s21955_s12 + $0xd8c] ss:$40 sps:$4 sm:$0xff]  }
 0x58a   : > { %15490 = vmatprep.subr.bf16.mxu1 %v21194_v49  ;;  %v21248_v49 = vld [vmem:[%s21955_s12 + $0x128c] ss:$40 sps:$4 sm:$0xff]  }
 0x58c   : > { %15450 = vmatpush1.bf16.msra.mxu0 %v21189_v50  ;;  %v21243_v50 = vld [vmem:[%s21955_s12 + $0xd88] ss:$40 sps:$4 sm:$0xff]  }
 0x58d   : > { %15491 = vmatpush1.bf16.msra.mxu1 %v21192_v11  ;;  %15451 = vmatprep.subr.bf16.mxu0 %v21197_v57  ;;  %v21246_v11 = vld [vmem:[%s21955_s12 + $0x1288] ss:$40 sps:$4 sm:$0xff]   ;;  %v21251_v57 = vld [vmem:[%s21955_s12 + $0xddc] ss:$40 sps:$4 sm:$0xff]  }
 0x58e   : > { %15492 = vmatprep.subr.bf16.mxu1 %v21200_v58  ;;  %v21254_v58 = vld [vmem:[%s21955_s12 + $0x12dc] ss:$40 sps:$4 sm:$0xff]  }
 0x590   : > { %15452 = vmatpush1.bf16.msra.mxu0 %v21195_v60  ;;  %v21249_v60 = vld [vmem:[%s21955_s12 + $0xdd8] ss:$40 sps:$4 sm:$0xff]  }
 0x591   : > { %15493 = vmatpush1.bf16.msra.mxu1 %v21198_v61  ;;  %15453 = vmatprep.subr.bf16.mxu0 %v21203_v13  ;;  %v21252_v61 = vld [vmem:[%s21955_s12 + $0x12d8] ss:$40 sps:$4 sm:$0xff]   ;;  %v21257_v13 = vld [vmem:[%s21955_s12 + $0xe2c] ss:$40 sps:$4 sm:$0xff]  }
 0x592   : > { %15494 = vmatprep.subr.bf16.mxu1 %v21206_v63  ;;  %v21260_v63 = vld [vmem:[%s21955_s12 + $0x132c] ss:$40 sps:$4 sm:$0xff]  }
 0x594   : > { %15454 = vmatpush1.bf16.msra.mxu0 %v21201_v15  ;;  %v21255_v15 = vld [vmem:[%s21955_s12 + $0xe28] ss:$40 sps:$4 sm:$0xff]  }
 0x595   : > { %15495 = vmatpush1.bf16.msra.mxu1 %v21204_v1  ;;  %15455 = vmatprep.subr.bf16.mxu0 %v21209_v3  ;;  %v21258_v1 = vld [vmem:[%s21955_s12 + $0x1328] ss:$40 sps:$4 sm:$0xff]   ;;  %v21263_v3 = vld [vmem:[%s21955_s12 + $0xe7c] ss:$40 sps:$4 sm:$0xff]  }
 0x596   : > { %15496 = vmatprep.subr.bf16.mxu1 %v21212_v4  ;;  %v15151_v29 = vpop.f32.mrb[36].mxu0  ;;  %v21266_v4 = vld [vmem:[%s21955_s12 + $0x137c] ss:$40 sps:$4 sm:$0xff]  }
 0x597   : > { %v15192_v12 = vpop.f32.mrb[36].mxu1  ;;  %v15152_v48 = vadd.f32 %v15151_v29, %v24682_v0  ;;  %v15153_v14 = vpop.f32.mrb[37].mxu0  ;;  %v21221_v0 = vld [vmem:[%s21955_s12 + $0xc4c] ss:$40 sps:$4 sm:$0xff]   ;;  %v21267_v29 = vld [vmem:[%s21955_s12 + $0xec8] ss:$40 sps:$4 sm:$0xff]  }
 0x598   : > { %v15194_v55 = vpop.f32.mrb[37].mxu1  ;;  %v15154_v56 = vadd.f32 %v15153_v14, %v24684_v42  ;;  %v15155_v35 = vpop.f32.mrb[38].mxu0  ;;  %15456 = vmatpush1.bf16.msra.mxu0 %v21207_v6  ;;  %v21224_v42 = vld [vmem:[%s21955_s12 + $0x114c] ss:$40 sps:$4 sm:$0xff]   ;;  %v21261_v6 = vld [vmem:[%s21955_s12 + $0xe78] ss:$40 sps:$4 sm:$0xff]  }
 0x599   : > { %v15196_v16 = vpop.f32.mrb[38].mxu1  ;;  %15497 = vmatpush1.bf16.msra.mxu1 %v21210_v7  ;;  %v24758_v19 = vadd.f32 %v15192_v12, %v15152_v48  ;;  %v15156_v20 = vpop.f32.mrb[39].mxu0  ;;  %15457 = vmatprep.subr.bf16.mxu0 %v21215_v25  ;;  %v21264_v7 = vld [vmem:[%s21955_s12 + $0x1378] ss:$40 sps:$4 sm:$0xff]   ;;  %v21269_v25 = vld [vmem:[%s21955_s12 + $0xecc] ss:$40 sps:$4 sm:$0xff]  }
 0x59a   : > { %v15197_v23 = vpop.f32.mrb[39].mxu1  ;;  %15498 = vmatprep.subr.bf16.mxu1 %v21218_v8  ;;  %v24762_v24 = vadd.f32 %v15194_v55, %v15154_v56  ;;  %v21272_v8 = vld [vmem:[%s21955_s12 + $0x13cc] ss:$40 sps:$4 sm:$0xff]   ;;  %v21270_v12 = vld [vmem:[%s21955_s12 + $0x13c8] ss:$40 sps:$4 sm:$0xff]  }
 0x59b   : > { %v21275_v48 = vld [vmem:[%s21955_s12 + $0x141c] ss:$40 sps:$4 sm:$0xff]   ;;  %v21273_v55 = vld [vmem:[%s21955_s12 + $0x1418] ss:$40 sps:$4 sm:$0xff]   ;;  %v21281_v35 = vld [vmem:[%s21955_s12 + $0x146c] ss:$40 sps:$4 sm:$0xff]  }
 0x59c   : > { %15458 = vmatpush1.bf16.msra.mxu0 %v21213_v17  ;;  %v21278_v14 = vld [vmem:[%s21955_s12 + $0x191c] ss:$40 sps:$4 sm:$0xff]   ;;  %v21276_v56 = vld [vmem:[%s21955_s12 + $0x1918] ss:$40 sps:$4 sm:$0xff]   ;;  %v21284_v16 = vld [vmem:[%s21955_s12 + $0x196c] ss:$40 sps:$4 sm:$0xff]  }
 0x59d   : > { %15499 = vmatpush1.bf16.msra.mxu1 %v21216_v18  ;;  %15459 = vmatprep.subr.bf16.mxu0 %v21221_v0  ;;  %v21279_v17 = vld [vmem:[%s21955_s12 + $0x1468] ss:$40 sps:$4 sm:$0xff]   ;;  %v21287_v20 = vld [vmem:[%s21955_s12 + $0x14bc] ss:$40 sps:$4 sm:$0xff]   ;;  %v21285_v0 = vld [vmem:[%s21955_s12 + $0x14b8] ss:$40 sps:$4 sm:$0xff]  }
 0x59e   : > { %15500 = vmatprep.subr.bf16.mxu1 %v21224_v42  ;;  %v21282_v18 = vld [vmem:[%s21955_s12 + $0x1968] ss:$40 sps:$4 sm:$0xff]   ;;  %v21290_v23 = vld [vmem:[%s21955_s12 + $0x19bc] ss:$40 sps:$4 sm:$0xff]   ;;  %v21288_v42 = vld [vmem:[%s21955_s12 + $0x19b8] ss:$40 sps:$4 sm:$0xff]  }
 0x5a0   : > { %15460 = vmatpush1.bf16.msra.mxu0 %v21219_v26  ;;  %v21293_v26 = vld [vmem:[%s21955_s12 + $0x150c] ss:$40 sps:$4 sm:$0xff]  }
 0x5a1   : > { %15501 = vmatpush1.bf16.msra.mxu1 %v21222_v27  ;;  %15461 = vmatprep.subr.bf16.mxu0 %v21227_v45  ;;  %v21296_v27 = vld [vmem:[%s21955_s12 + $0x1a0c] ss:$40 sps:$4 sm:$0xff]   ;;  %v21291_v45 = vld [vmem:[%s21955_s12 + $0x1508] ss:$40 sps:$4 sm:$0xff]  }
 0x5a2   : > { %15502 = vmatprep.subr.bf16.mxu1 %v21230_v28  ;;  %v21294_v28 = vld [vmem:[%s21955_s12 + $0x1a08] ss:$40 sps:$4 sm:$0xff]  }
 0x5a4   : > { %15462 = vmatpush1.bf16.msra.mxu0 %v21225_v30  ;;  %v21299_v30 = vld [vmem:[%s21955_s12 + $0x155c] ss:$40 sps:$4 sm:$0xff]  }
 0x5a5   : > { %15503 = vmatpush1.bf16.msra.mxu1 %v21228_v33  ;;  %15463 = vmatprep.subr.bf16.mxu0 %v21233_v59  ;;  %v21302_v33 = vld [vmem:[%s21955_s12 + $0x1a5c] ss:$40 sps:$4 sm:$0xff]   ;;  %v21297_v59 = vld [vmem:[%s21955_s12 + $0x1558] ss:$40 sps:$4 sm:$0xff]  }
 0x5a6   : > { %15504 = vmatprep.subr.bf16.mxu1 %v21236_v34  ;;  %v21300_v34 = vld [vmem:[%s21955_s12 + $0x1a58] ss:$40 sps:$4 sm:$0xff]  }
 0x5a8   : > { %15464 = vmatpush1.bf16.msra.mxu0 %v21231_v36  ;;  %v21305_v36 = vld [vmem:[%s21955_s12 + $0x15ac] ss:$40 sps:$4 sm:$0xff]  }
 0x5a9   : > { %15505 = vmatpush1.bf16.msra.mxu1 %v21234_v41  ;;  %15465 = vmatprep.subr.bf16.mxu0 %v21239_v43  ;;  %v21308_v41 = vld [vmem:[%s21955_s12 + $0x1aac] ss:$40 sps:$4 sm:$0xff]   ;;  %v21303_v43 = vld [vmem:[%s21955_s12 + $0x15a8] ss:$40 sps:$4 sm:$0xff]  }
 0x5aa   : > { %15506 = vmatprep.subr.bf16.mxu1 %v21242_v44  ;;  %v21306_v44 = vld [vmem:[%s21955_s12 + $0x1aa8] ss:$40 sps:$4 sm:$0xff]  }
 0x5ac   : > { %15466 = vmatpush1.bf16.msra.mxu0 %v21237_v46  ;;  %v21311_v46 = vld [vmem:[%s21955_s12 + $0x15fc] ss:$40 sps:$4 sm:$0xff]  }
 0x5ad   : > { %15507 = vmatpush1.bf16.msra.mxu1 %v21240_v47  ;;  %15467 = vmatprep.subr.bf16.mxu0 %v21245_v5  ;;  %v21314_v47 = vld [vmem:[%s21955_s12 + $0x1afc] ss:$40 sps:$4 sm:$0xff]  }
 0x5ae   : > { %15508 = vmatprep.subr.bf16.mxu1 %v21248_v49 }
 0x5b0   : > { %15468 = vmatpush1.bf16.msra.mxu0 %v21243_v50 }
 0x5b1   : > { %15509 = vmatpush1.bf16.msra.mxu1 %v21246_v11  ;;  %15469 = vmatprep.subr.bf16.mxu0 %v21251_v57 }
 0x5b2   : > { %15510 = vmatprep.subr.bf16.mxu1 %v21254_v58 }
 0x5b4   : > { %15470 = vmatpush1.bf16.msra.mxu0 %v21249_v60 }
 0x5b5   : > { %15511 = vmatpush1.bf16.msra.mxu1 %v21252_v61  ;;  %15471 = vmatprep.subr.bf16.mxu0 %v21257_v13  ;;  %v21309_v13 = vld [vmem:[%s21955_s12 + $0x15f8] ss:$40 sps:$4 sm:$0xff]  }
 0x5b6   : > { %15512 = vmatprep.subr.bf16.mxu1 %v21260_v63  ;;  %v21312_v63 = vld [vmem:[%s21955_s12 + $0x1af8] ss:$40 sps:$4 sm:$0xff]  }
 0x5b8   : > { %15472 = vmatpush1.bf16.msra.mxu0 %v21255_v15 }
 0x5b9   : > { %15513 = vmatpush1.bf16.msra.mxu1 %v21258_v1  ;;  %15473 = vmatprep.subr.bf16.mxu0 %v21263_v3 }
 0x5ba   : > { %15514 = vmatprep.subr.bf16.mxu1 %v21266_v4 }
 0x5bc   : > { %15474 = vmatpush1.bf16.msra.mxu0 %v21261_v6  ;;  %v21315_v6 = vld [vmem:[%s21955_s12 + $0x1648] ss:$40 sps:$4 sm:$0xff]  }
 0x5bd   : > { %15515 = vmatpush1.bf16.msra.mxu1 %v21264_v7  ;;  %15475 = vmatprep.subr.bf16.mxu0 %v21269_v25  ;;  %v21318_v7 = vld [vmem:[%s21955_s12 + $0x1b48] ss:$40 sps:$4 sm:$0xff]   ;;  %v21323_v25 = vld [vmem:[%s21955_s12 + $0x169c] ss:$40 sps:$4 sm:$0xff]  }
 0x5be   : > { %15516 = vmatprep.subr.bf16.mxu1 %v21272_v8  ;;  %v21326_v8 = vld [vmem:[%s21955_s12 + $0x1b9c] ss:$40 sps:$4 sm:$0xff]  }
 0x5c0   : > { %15476 = vmatpush1.bf16.msra.mxu0 %v21267_v29  ;;  %v21321_v29 = vld [vmem:[%s21955_s12 + $0x1698] ss:$40 sps:$4 sm:$0xff]  }
 0x5c1   : > { %15517 = vmatpush1.bf16.msra.mxu1 %v21270_v12  ;;  %15527 = vmatprep.subr.bf16.mxu0 %v21275_v48  ;;  %v21324_v12 = vld [vmem:[%s21955_s12 + $0x1b98] ss:$40 sps:$4 sm:$0xff]   ;;  %v21329_v48 = vld [vmem:[%s21955_s12 + $0x16ec] ss:$40 sps:$4 sm:$0xff]  }
 0x5c2   : > { %15568 = vmatprep.subr.bf16.mxu1 %v21278_v14  ;;  %v21332_v14 = vld [vmem:[%s21955_s12 + $0x1bec] ss:$40 sps:$4 sm:$0xff]  }
 0x5c3   : > { %15478 = vmatmul.mubr.bf16.vlgmr.msra.gmra.mrb[52].mxu0 %v23888_v31 }
 0x5c4   : > { %15519 = vmatmul.mubr.bf16.vlgmr.msra.gmra.mrb[52].mxu1 %v23892_v32  ;;  %15528 = vmatpush1.bf16.msra.mxu0 %v21273_v55  ;;  %v21327_v55 = vld [vmem:[%s21955_s12 + $0x16e8] ss:$40 sps:$4 sm:$0xff]  }
 0x5c5   : > { %15569 = vmatpush1.bf16.msra.mxu1 %v21276_v56  ;;  %15529 = vmatprep.subr.bf16.mxu0 %v21281_v35  ;;  %v21330_v56 = vld [vmem:[%s21955_s12 + $0x1be8] ss:$40 sps:$4 sm:$0xff]   ;;  %v21335_v35 = vld [vmem:[%s21955_s12 + $0x173c] ss:$40 sps:$4 sm:$0xff]  }
 0x5c6   : > { %15570 = vmatprep.subr.bf16.mxu1 %v21284_v16  ;;  %15559 = vmatprep.mubr.bf16.mxu0 %v23906_v39  ;;  %v21338_v16 = vld [vmem:[%s21955_s12 + $0x1c3c] ss:$40 sps:$4 sm:$0xff]  }
 0x5c7   : > { %15600 = vmatprep.mubr.bf16.mxu1 %v23910_v40 }
 0x5c8   : > { %15530 = vmatpush1.bf16.msra.mxu0 %v21279_v17  ;;  %v21333_v17 = vld [vmem:[%s21955_s12 + $0x1738] ss:$40 sps:$4 sm:$0xff]  }
 0x5c9   : > { %15571 = vmatpush1.bf16.msra.mxu1 %v21282_v18  ;;  %15531 = vmatprep.subr.bf16.mxu0 %v21287_v20  ;;  %v21336_v18 = vld [vmem:[%s21955_s12 + $0x1c38] ss:$40 sps:$4 sm:$0xff]   ;;  %v21341_v20 = vld [vmem:[%s21955_s12 + $0x178c] ss:$40 sps:$4 sm:$0xff]  }
 0x5ca   : > { %15572 = vmatprep.subr.bf16.mxu1 %v21290_v23  ;;  %v21344_v23 = vld [vmem:[%s21955_s12 + $0x1c8c] ss:$40 sps:$4 sm:$0xff]  }
 0x5cc   : > { %15532 = vmatpush1.bf16.msra.mxu0 %v21285_v0  ;;  %v21339_v0 = vld [vmem:[%s21955_s12 + $0x1788] ss:$40 sps:$4 sm:$0xff]  }
 0x5cd   : > { %15573 = vmatpush1.bf16.msra.mxu1 %v21288_v42  ;;  %15533 = vmatprep.subr.bf16.mxu0 %v21293_v26  ;;  %v21342_v42 = vld [vmem:[%s21955_s12 + $0x1c88] ss:$40 sps:$4 sm:$0xff]   ;;  %v21347_v26 = vld [vmem:[%s21955_s12 + $0x17dc] ss:$40 sps:$4 sm:$0xff]  }
 0x5ce   : > { %15574 = vmatprep.subr.bf16.mxu1 %v21296_v27  ;;  %v21350_v27 = vld [vmem:[%s21955_s12 + $0x1cdc] ss:$40 sps:$4 sm:$0xff]  }
 0x5d0   : > { %15534 = vmatpush1.bf16.msra.mxu0 %v21291_v45  ;;  %v21345_v45 = vld [vmem:[%s21955_s12 + $0x17d8] ss:$40 sps:$4 sm:$0xff]  }
 0x5d1   : > { %15575 = vmatpush1.bf16.msra.mxu1 %v21294_v28  ;;  %15535 = vmatprep.subr.bf16.mxu0 %v21299_v30  ;;  %v21348_v28 = vld [vmem:[%s21955_s12 + $0x1cd8] ss:$40 sps:$4 sm:$0xff]   ;;  %v21353_v30 = vld [vmem:[%s21955_s12 + $0x182c] ss:$40 sps:$4 sm:$0xff]  }
 0x5d2   : > { %15576 = vmatprep.subr.bf16.mxu1 %v21302_v33  ;;  %v21356_v33 = vld [vmem:[%s21955_s12 + $0x1d2c] ss:$40 sps:$4 sm:$0xff]  }
 0x5d4   : > { %15536 = vmatpush1.bf16.msra.mxu0 %v21297_v59  ;;  %v21351_v59 = vld [vmem:[%s21955_s12 + $0x1828] ss:$40 sps:$4 sm:$0xff]  }
 0x5d5   : > { %15577 = vmatpush1.bf16.msra.mxu1 %v21300_v34  ;;  %15537 = vmatprep.subr.bf16.mxu0 %v21305_v36  ;;  %v21354_v34 = vld [vmem:[%s21955_s12 + $0x1d28] ss:$40 sps:$4 sm:$0xff]   ;;  %v21359_v36 = vld [vmem:[%s21955_s12 + $0x187c] ss:$40 sps:$4 sm:$0xff]  }
 0x5d6   : > { %15578 = vmatprep.subr.bf16.mxu1 %v21308_v41  ;;  %v15233_v5 = vpop.f32.mrb[40].mxu0  ;;  %v21362_v41 = vld [vmem:[%s21955_s12 + $0x1d7c] ss:$40 sps:$4 sm:$0xff]  }
 0x5d7   : > { %v15274_v49 = vpop.f32.mrb[40].mxu1  ;;  %v15234_v50 = vadd.f32 %v15233_v5, %v24758_v19  ;;  %v15235_v11 = vpop.f32.mrb[41].mxu0  ;;  %v21317_v19 = vld [vmem:[%s21955_s12 + $0x164c] ss:$40 sps:$4 sm:$0xff]   ;;  %v21363_v5 = vld [vmem:[%s21955_s12 + $0x18c8] ss:$40 sps:$4 sm:$0xff]  }
 0x5d8   : > { %v15276_v57 = vpop.f32.mrb[41].mxu1  ;;  %v15236_v58 = vadd.f32 %v15235_v11, %v24762_v24  ;;  %v15237_v60 = vpop.f32.mrb[42].mxu0  ;;  %15538 = vmatpush1.bf16.msra.mxu0 %v21303_v43  ;;  %v21320_v24 = vld [vmem:[%s21955_s12 + $0x1b4c] ss:$40 sps:$4 sm:$0xff]   ;;  %v21357_v43 = vld [vmem:[%s21955_s12 + $0x1878] ss:$40 sps:$4 sm:$0xff]  }
 0x5d9   : > { %v15278_v61 = vpop.f32.mrb[42].mxu1  ;;  %15579 = vmatpush1.bf16.msra.mxu1 %v21306_v44  ;;  %v24832_v15 = vadd.f32 %v15274_v49, %v15234_v50  ;;  %v15238_v1 = vpop.f32.mrb[43].mxu0  ;;  %15539 = vmatprep.subr.bf16.mxu0 %v21311_v46  ;;  %v21360_v44 = vld [vmem:[%s21955_s12 + $0x1d78] ss:$40 sps:$4 sm:$0xff]   ;;  %v21365_v46 = vld [vmem:[%s21955_s12 + $0x18cc] ss:$40 sps:$4 sm:$0xff]  }
 0x5da   : > { %v15279_v3 = vpop.f32.mrb[43].mxu1  ;;  %15580 = vmatprep.subr.bf16.mxu1 %v21314_v47  ;;  %v24836_v4 = vadd.f32 %v15276_v57, %v15236_v58  ;;  %v21368_v47 = vld [vmem:[%s21955_s12 + $0x1dcc] ss:$40 sps:$4 sm:$0xff]   ;;  %v21366_v49 = vld [vmem:[%s21955_s12 + $0x1dc8] ss:$40 sps:$4 sm:$0xff]  }
 0x5db   : > { %v21371_v50 = vld [vmem:[%s21955_s12 + $0x1e1c] ss:$40 sps:$4 sm:$0xff]   ;;  %v21369_v57 = vld [vmem:[%s21955_s12 + $0x1e18] ss:$40 sps:$4 sm:$0xff]   ;;  %v21377_v60 = vld [vmem:[%s21955_s12 + $0x1e6c] ss:$40 sps:$4 sm:$0xff]  }
 0x5dc   : > { %15540 = vmatpush1.bf16.msra.mxu0 %v21309_v13  ;;  %v21374_v11 = vld [vmem:[%s21955_s12 + $0x231c] ss:$40 sps:$4 sm:$0xff]   ;;  %v21372_v58 = vld [vmem:[%s21955_s12 + $0x2318] ss:$40 sps:$4 sm:$0xff]   ;;  %v21380_v61 = vld [vmem:[%s21955_s12 + $0x236c] ss:$40 sps:$4 sm:$0xff]  }
 0x5dd   : > { %15581 = vmatpush1.bf16.msra.mxu1 %v21312_v63  ;;  %15541 = vmatprep.subr.bf16.mxu0 %v21317_v19  ;;  %v21375_v13 = vld [vmem:[%s21955_s12 + $0x1e68] ss:$40 sps:$4 sm:$0xff]   ;;  %v21383_v1 = vld [vmem:[%s21955_s12 + $0x1ebc] ss:$40 sps:$4 sm:$0xff]   ;;  %v21381_v19 = vld [vmem:[%s21955_s12 + $0x1eb8] ss:$40 sps:$4 sm:$0xff]  }
 0x5de   : > { %15582 = vmatprep.subr.bf16.mxu1 %v21320_v24  ;;  %v21378_v63 = vld [vmem:[%s21955_s12 + $0x2368] ss:$40 sps:$4 sm:$0xff]   ;;  %v21386_v3 = vld [vmem:[%s21955_s12 + $0x23bc] ss:$40 sps:$4 sm:$0xff]   ;;  %v21384_v24 = vld [vmem:[%s21955_s12 + $0x23b8] ss:$40 sps:$4 sm:$0xff]  }
 0x5e0   : > { %15542 = vmatpush1.bf16.msra.mxu0 %v21315_v6  ;;  %v21389_v6 = vld [vmem:[%s21955_s12 + $0x1f0c] ss:$40 sps:$4 sm:$0xff]  }
 0x5e1   : > { %15583 = vmatpush1.bf16.msra.mxu1 %v21318_v7  ;;  %15543 = vmatprep.subr.bf16.mxu0 %v21323_v25  ;;  %v21392_v7 = vld [vmem:[%s21955_s12 + $0x240c] ss:$40 sps:$4 sm:$0xff]   ;;  %v21387_v25 = vld [vmem:[%s21955_s12 + $0x1f08] ss:$40 sps:$4 sm:$0xff]  }
 0x5e2   : > { %15584 = vmatprep.subr.bf16.mxu1 %v21326_v8  ;;  %v21390_v8 = vld [vmem:[%s21955_s12 + $0x2408] ss:$40 sps:$4 sm:$0xff]  }
 0x5e4   : > { %15544 = vmatpush1.bf16.msra.mxu0 %v21321_v29  ;;  %v21395_v29 = vld [vmem:[%s21955_s12 + $0x1f5c] ss:$40 sps:$4 sm:$0xff]  }
 0x5e5   : > { %15585 = vmatpush1.bf16.msra.mxu1 %v21324_v12  ;;  %15545 = vmatprep.subr.bf16.mxu0 %v21329_v48  ;;  %v21398_v12 = vld [vmem:[%s21955_s12 + $0x245c] ss:$40 sps:$4 sm:$0xff]   ;;  %v21393_v48 = vld [vmem:[%s21955_s12 + $0x1f58] ss:$40 sps:$4 sm:$0xff]  }
 0x5e6   : > { %15586 = vmatprep.subr.bf16.mxu1 %v21332_v14  ;;  %v21396_v14 = vld [vmem:[%s21955_s12 + $0x2458] ss:$40 sps:$4 sm:$0xff]  }
 0x5e8   : > { %15546 = vmatpush1.bf16.msra.mxu0 %v21327_v55  ;;  %v21401_v55 = vld [vmem:[%s21955_s12 + $0x1fac] ss:$40 sps:$4 sm:$0xff]  }
 0x5e9   : > { %15587 = vmatpush1.bf16.msra.mxu1 %v21330_v56  ;;  %15547 = vmatprep.subr.bf16.mxu0 %v21335_v35  ;;  %v21404_v56 = vld [vmem:[%s21955_s12 + $0x24ac] ss:$40 sps:$4 sm:$0xff]   ;;  %v21399_v35 = vld [vmem:[%s21955_s12 + $0x1fa8] ss:$40 sps:$4 sm:$0xff]  }
 0x5ea   : > { %15588 = vmatprep.subr.bf16.mxu1 %v21338_v16  ;;  %v21402_v16 = vld [vmem:[%s21955_s12 + $0x24a8] ss:$40 sps:$4 sm:$0xff]  }
 0x5ec   : > { %15548 = vmatpush1.bf16.msra.mxu0 %v21333_v17  ;;  %v21407_v17 = vld [vmem:[%s21955_s12 + $0x1ffc] ss:$40 sps:$4 sm:$0xff]  }
 0x5ed   : > { %15589 = vmatpush1.bf16.msra.mxu1 %v21336_v18  ;;  %15549 = vmatprep.subr.bf16.mxu0 %v21341_v20  ;;  %v21410_v18 = vld [vmem:[%s21955_s12 + $0x24fc] ss:$40 sps:$4 sm:$0xff]  }
 0x5ee   : > { %15590 = vmatprep.subr.bf16.mxu1 %v21344_v23 }
 0x5f0   : > { %15550 = vmatpush1.bf16.msra.mxu0 %v21339_v0 }
 0x5f1   : > { %15591 = vmatpush1.bf16.msra.mxu1 %v21342_v42  ;;  %15551 = vmatprep.subr.bf16.mxu0 %v21347_v26 }
 0x5f2   : > { %15592 = vmatprep.subr.bf16.mxu1 %v21350_v27  ;;  %v21405_v27 = vld [vmem:[%s21955_s12 + $0x1ff8] ss:$40 sps:$4 sm:$0xff]  }
 0x5f4   : > { %15552 = vmatpush1.bf16.msra.mxu0 %v21345_v45  ;;  %v6629_v45 = vld [vmem:[#allocation2 + $0x20] sm:$0xff] }
 0x5f5   : > { %15593 = vmatpush1.bf16.msra.mxu1 %v21348_v28  ;;  %15553 = vmatprep.subr.bf16.mxu0 %v21353_v30  ;;  %v6630_v30 = vld [vmem:[#allocation2 + $0x28] sm:$0xff] }
 0x5f6   : > { %15594 = vmatprep.subr.bf16.mxu1 %v21356_v33 }
 0x5f8   : > { %15554 = vmatpush1.bf16.msra.mxu0 %v21351_v59 }
 0x5f9   : > { %15595 = vmatpush1.bf16.msra.mxu1 %v21354_v34  ;;  %15555 = vmatprep.subr.bf16.mxu0 %v21359_v36  ;;  %v21408_v34 = vld [vmem:[%s21955_s12 + $0x24f8] ss:$40 sps:$4 sm:$0xff]  }
 0x5fa   : > { %15596 = vmatprep.subr.bf16.mxu1 %v21362_v41 }
 0x5fc   : > { %15556 = vmatpush1.bf16.msra.mxu0 %v21357_v43  ;;  %v21413_v43 = vld [vmem:[%s21955_s12 + $0x204c] ss:$40 sps:$4 sm:$0xff]  }
 0x5fd   : > { %15597 = vmatpush1.bf16.msra.mxu1 %v21360_v44  ;;  %15557 = vmatprep.subr.bf16.mxu0 %v21365_v46  ;;  %v21416_v44 = vld [vmem:[%s21955_s12 + $0x254c] ss:$40 sps:$4 sm:$0xff]  }
 0x5fe   : > { %15598 = vmatprep.subr.bf16.mxu1 %v21368_v47 }
 0x600   : > { %15558 = vmatpush1.bf16.msra.mxu0 %v21363_v5  ;;  %v21411_v5 = vld [vmem:[%s21955_s12 + $0x2048] ss:$40 sps:$4 sm:$0xff]  }
 0x601   : > { %15599 = vmatpush1.bf16.msra.mxu1 %v21366_v49  ;;  %15609 = vmatprep.subr.bf16.mxu0 %v21371_v50  ;;  %v21414_v49 = vld [vmem:[%s21955_s12 + $0x2548] ss:$40 sps:$4 sm:$0xff]   ;;  %v21419_v50 = vld [vmem:[%s21955_s12 + $0x209c] ss:$40 sps:$4 sm:$0xff]  }
 0x602   : > { %15650 = vmatprep.subr.bf16.mxu1 %v21374_v11  ;;  %v21422_v11 = vld [vmem:[%s21955_s12 + $0x259c] ss:$40 sps:$4 sm:$0xff]  }
 0x603   : > { %15560 = vmatmul.mubr.bf16.vlgmr.msra.gmra.mrb[56].mxu0 %v23980_v53 }
 0x604   : > { %15601 = vmatmul.mubr.bf16.vlgmr.msra.gmra.mrb[56].mxu1 %v23984_v54  ;;  %15610 = vmatpush1.bf16.msra.mxu0 %v21369_v57  ;;  %v21417_v57 = vld [vmem:[%s21955_s12 + $0x2098] ss:$40 sps:$4 sm:$0xff]  }
 0x605   : > { %15651 = vmatpush1.bf16.msra.mxu1 %v21372_v58  ;;  %15611 = vmatprep.subr.bf16.mxu0 %v21377_v60  ;;  %v21420_v58 = vld [vmem:[%s21955_s12 + $0x2598] ss:$40 sps:$4 sm:$0xff]   ;;  %v21425_v60 = vld [vmem:[%s21955_s12 + $0x20ec] ss:$40 sps:$4 sm:$0xff]  }
 0x606   : > { %15652 = vmatprep.subr.bf16.mxu1 %v21380_v61  ;;  %15641 = vmatprep.mubr.bf16.mxu0 %v23996_v37  ;;  %v21428_v61 = vld [vmem:[%s21955_s12 + $0x25ec] ss:$40 sps:$4 sm:$0xff]  }
 0x607   : > { %15682 = vmatprep.mubr.bf16.mxu1 %v24000_v38 }
 0x608   : > { %15612 = vmatpush1.bf16.msra.mxu0 %v21375_v13  ;;  %v21423_v13 = vld [vmem:[%s21955_s12 + $0x20e8] ss:$40 sps:$4 sm:$0xff]  }
 0x609   : > { %15653 = vmatpush1.bf16.msra.mxu1 %v21378_v63  ;;  %15613 = vmatprep.subr.bf16.mxu0 %v21383_v1  ;;  %v21426_v63 = vld [vmem:[%s21955_s12 + $0x25e8] ss:$40 sps:$4 sm:$0xff]   ;;  %v21431_v1 = vld [vmem:[%s21955_s12 + $0x213c] ss:$40 sps:$4 sm:$0xff]  }
 0x60a   : > { %15654 = vmatprep.subr.bf16.mxu1 %v21386_v3  ;;  %v21434_v3 = vld [vmem:[%s21955_s12 + $0x263c] ss:$40 sps:$4 sm:$0xff]  }
 0x60c   : > { %15614 = vmatpush1.bf16.msra.mxu0 %v21381_v19  ;;  %v21429_v19 = vld [vmem:[%s21955_s12 + $0x2138] ss:$40 sps:$4 sm:$0xff]  }
 0x60d   : > { %15655 = vmatpush1.bf16.msra.mxu1 %v21384_v24  ;;  %15615 = vmatprep.subr.bf16.mxu0 %v21389_v6  ;;  %v21432_v24 = vld [vmem:[%s21955_s12 + $0x2638] ss:$40 sps:$4 sm:$0xff]   ;;  %v21437_v6 = vld [vmem:[%s21955_s12 + $0x218c] ss:$40 sps:$4 sm:$0xff]  }
 0x60e   : > { %15656 = vmatprep.subr.bf16.mxu1 %v21392_v7  ;;  %v21440_v7 = vld [vmem:[%s21955_s12 + $0x268c] ss:$40 sps:$4 sm:$0xff]  }
 0x610   : > { %15616 = vmatpush1.bf16.msra.mxu0 %v21387_v25  ;;  %v21435_v25 = vld [vmem:[%s21955_s12 + $0x2188] ss:$40 sps:$4 sm:$0xff]  }
 0x611   : > { %15657 = vmatpush1.bf16.msra.mxu1 %v21390_v8  ;;  %15617 = vmatprep.subr.bf16.mxu0 %v21395_v29  ;;  %v21438_v8 = vld [vmem:[%s21955_s12 + $0x2688] ss:$40 sps:$4 sm:$0xff]   ;;  %v21443_v29 = vld [vmem:[%s21955_s12 + $0x21dc] ss:$40 sps:$4 sm:$0xff]  }
 0x612   : > { %15658 = vmatprep.subr.bf16.mxu1 %v21398_v12  ;;  %v21446_v12 = vld [vmem:[%s21955_s12 + $0x26dc] ss:$40 sps:$4 sm:$0xff]  }
 0x614   : > { %15618 = vmatpush1.bf16.msra.mxu0 %v21393_v48  ;;  %v21441_v48 = vld [vmem:[%s21955_s12 + $0x21d8] ss:$40 sps:$4 sm:$0xff]  }
 0x615   : > { %15659 = vmatpush1.bf16.msra.mxu1 %v21396_v14  ;;  %15619 = vmatprep.subr.bf16.mxu0 %v21401_v55  ;;  %v21444_v14 = vld [vmem:[%s21955_s12 + $0x26d8] ss:$40 sps:$4 sm:$0xff]   ;;  %v21449_v55 = vld [vmem:[%s21955_s12 + $0x222c] ss:$40 sps:$4 sm:$0xff]  }
 0x616   : > { %15660 = vmatprep.subr.bf16.mxu1 %v21404_v56  ;;  %v15315_v20 = vpop.f32.mrb[44].mxu0  ;;  %v21452_v56 = vld [vmem:[%s21955_s12 + $0x272c] ss:$40 sps:$4 sm:$0xff]  }
 0x617   : > { %v15356_v23 = vpop.f32.mrb[44].mxu1  ;;  %v15316_v0 = vadd.f32 %v15315_v20, %v24832_v15  ;;  %v15317_v42 = vpop.f32.mrb[45].mxu0  ;;  %v21453_v20 = vld [vmem:[%s21955_s12 + $0x2278] ss:$40 sps:$4 sm:$0xff]  }
 0x618   : > { %v15358_v26 = vpop.f32.mrb[45].mxu1  ;;  %v15318_v28 = vadd.f32 %v15317_v42, %v24836_v4  ;;  %v15319_v33 = vpop.f32.mrb[46].mxu0  ;;  %15620 = vmatpush1.bf16.msra.mxu0 %v21399_v35  ;;  %v21447_v35 = vld [vmem:[%s21955_s12 + $0x2228] ss:$40 sps:$4 sm:$0xff]   ;;  %v21464_v42 = vld [vmem:[%s21955_s12 + $0x27cc] ss:$40 sps:$4 sm:$0xff]  }
 0x619   : > { %v15360_v59 = vpop.f32.mrb[46].mxu1  ;;  %15661 = vmatpush1.bf16.msra.mxu1 %v21402_v16  ;;  %v15357_v36 = vadd.f32 %v15356_v23, %v15316_v0  ;;  %v15320_v41 = vpop.f32.mrb[47].mxu0  ;;  %15621 = vmatprep.subr.bf16.mxu0 %v21407_v17  ;;  %v21450_v16 = vld [vmem:[%s21955_s12 + $0x2728] ss:$40 sps:$4 sm:$0xff]   ;;  %v21455_v17 = vld [vmem:[%s21955_s12 + $0x227c] ss:$40 sps:$4 sm:$0xff]  }
 0x61a   : > { %v15361_v15 = vpop.f32.mrb[47].mxu1  ;;  %15662 = vmatprep.subr.bf16.mxu1 %v21410_v18  ;;  %v15359_v46 = vadd.f32 %v15358_v26, %v15318_v28  ;;  %v21458_v18 = vld [vmem:[%s21955_s12 + $0x277c] ss:$40 sps:$4 sm:$0xff]   ;;  %v21456_v23 = vld [vmem:[%s21955_s12 + $0x2778] ss:$40 sps:$4 sm:$0xff]  }
 0x61b   : > { %v16023_v4 = vadd.f32 %v15357_v36, %v6629_v45  ;;  %v21461_v0 = vld [vmem:[%s21955_s12 + $0x22cc] ss:$40 sps:$4 sm:$0xff]   ;;  %v21459_v26 = vld [vmem:[%s21955_s12 + $0x22c8] ss:$40 sps:$4 sm:$0xff]  }
 0x61c   : > { %v16024_v47 = vadd.f32 %v15359_v46, %v6630_v30  ;;  %15622 = vmatpush1.bf16.msra.mxu0 %v21405_v27  ;;  %v21462_v27 = vld [vmem:[%s21955_s12 + $0x27c8] ss:$40 sps:$4 sm:$0xff]   ;;  %v21467_v45 = vld [vmem:[%s21955_s12 + $0x24] ss:$40 sps:$4 sm:$0xff]   ;;  %v21473_v59 = vld [vmem:[%s21955_s12 + $0x74] ss:$40 sps:$4 sm:$0xff]  }
 0x61d   : > { %15663 = vmatpush1.bf16.msra.mxu1 %v21408_v34  ;;  %16033 = vst [vmem:[#allocation2 + $0x20] sm:$0xff] %v16023_v4  ;;  %15623 = vmatprep.subr.bf16.mxu0 %v21413_v43  ;;  %v21470_v28 = vld [vmem:[%s21955_s12 + $0x524] ss:$40 sps:$4 sm:$0xff]   ;;  %v21465_v30 = vld [vmem:[%s21955_s12 + $0x20] ss:$40 sps:$4 sm:$0xff]  }
 0x61e   : > { %15664 = vmatprep.subr.bf16.mxu1 %v21416_v44  ;;  %16034 = vst [vmem:[#allocation2 + $0x28] sm:$0xff] %v16024_v47  ;;  %v21468_v33 = vld [vmem:[%s21955_s12 + $0x520] ss:$40 sps:$4 sm:$0xff]   ;;  %v21476_v34 = vld [vmem:[%s21955_s12 + $0x574] ss:$40 sps:$4 sm:$0xff]  }
 0x61f   : > { %v21471_v36 = vld [vmem:[%s21955_s12 + $0x70] ss:$40 sps:$4 sm:$0xff]   ;;  %v21479_v15 = vld [vmem:[%s21955_s12 + $0xc4] ss:$40 sps:$4 sm:$0xff]   ;;  %v21477_v44 = vld [vmem:[%s21955_s12 + $0xc0] ss:$40 sps:$4 sm:$0xff]  }
 0x620   : > { %15624 = vmatpush1.bf16.msra.mxu0 %v21411_v5  ;;  %v21474_v41 = vld [vmem:[%s21955_s12 + $0x570] ss:$40 sps:$4 sm:$0xff]   ;;  %v21482_v43 = vld [vmem:[%s21955_s12 + $0x5c4] ss:$40 sps:$4 sm:$0xff]   ;;  %v21480_v46 = vld [vmem:[%s21955_s12 + $0x5c0] ss:$40 sps:$4 sm:$0xff]  }
 0x621   : > { %15665 = vmatpush1.bf16.msra.mxu1 %v21414_v49  ;;  %15625 = vmatprep.subr.bf16.mxu0 %v21419_v50  ;;  %v21485_v4 = vld [vmem:[%s21955_s12 + $0x114] ss:$40 sps:$4 sm:$0xff]   ;;  %v21483_v5 = vld [vmem:[%s21955_s12 + $0x110] ss:$40 sps:$4 sm:$0xff]   ;;  %v21494_v49 = vld [vmem:[%s21955_s12 + $0x664] ss:$40 sps:$4 sm:$0xff]  }
 0x622   : > { %15666 = vmatprep.subr.bf16.mxu1 %v21422_v11  ;;  %v21488_v47 = vld [vmem:[%s21955_s12 + $0x614] ss:$40 sps:$4 sm:$0xff]   ;;  %v21489_v50 = vld [vmem:[%s21955_s12 + $0x160] ss:$40 sps:$4 sm:$0xff]  }
 0x623   : > { %v21492_v11 = vld [vmem:[%s21955_s12 + $0x660] ss:$40 sps:$4 sm:$0xff]  }
 0x624   : > { %15626 = vmatpush1.bf16.msra.mxu0 %v21417_v57  ;;  %v21497_v57 = vld [vmem:[%s21955_s12 + $0x1b4] ss:$40 sps:$4 sm:$0xff]  }
 0x625   : > { %15667 = vmatpush1.bf16.msra.mxu1 %v21420_v58  ;;  %15627 = vmatprep.subr.bf16.mxu0 %v21425_v60  ;;  %v21500_v58 = vld [vmem:[%s21955_s12 + $0x6b4] ss:$40 sps:$4 sm:$0xff]   ;;  %v21495_v60 = vld [vmem:[%s21955_s12 + $0x1b0] ss:$40 sps:$4 sm:$0xff]  }
 0x626   : > { %15668 = vmatprep.subr.bf16.mxu1 %v21428_v61  ;;  %v21498_v61 = vld [vmem:[%s21955_s12 + $0x6b0] ss:$40 sps:$4 sm:$0xff]  }
 0x628   : > { %15628 = vmatpush1.bf16.msra.mxu0 %v21423_v13  ;;  %v21503_v13 = vld [vmem:[%s21955_s12 + $0x204] ss:$40 sps:$4 sm:$0xff]  }
 0x629   : > { %15669 = vmatpush1.bf16.msra.mxu1 %v21426_v63  ;;  %15629 = vmatprep.subr.bf16.mxu0 %v21431_v1  ;;  %v21506_v63 = vld [vmem:[%s21955_s12 + $0x704] ss:$40 sps:$4 sm:$0xff]  }
 0x62a   : > { %15670 = vmatprep.subr.bf16.mxu1 %v21434_v3 }
 0x62c   : > { %15630 = vmatpush1.bf16.msra.mxu0 %v21429_v19 }
 0x62d   : > { %15671 = vmatpush1.bf16.msra.mxu1 %v21432_v24  ;;  %15631 = vmatprep.subr.bf16.mxu0 %v21437_v6 }
 0x62e   : > { %15672 = vmatprep.subr.bf16.mxu1 %v21440_v7 }
 0x630   : > { %15632 = vmatpush1.bf16.msra.mxu0 %v21435_v25 }
 0x631   : > { %15673 = vmatpush1.bf16.msra.mxu1 %v21438_v8  ;;  %15633 = vmatprep.subr.bf16.mxu0 %v21443_v29  ;;  %v21501_v29 = vld [vmem:[%s21955_s12 + $0x200] ss:$40 sps:$4 sm:$0xff]  }
 0x632   : > { %15674 = vmatprep.subr.bf16.mxu1 %v21446_v12  ;;  %v21504_v12 = vld [vmem:[%s21955_s12 + $0x700] ss:$40 sps:$4 sm:$0xff]  }
 0x634   : > { %15634 = vmatpush1.bf16.msra.mxu0 %v21441_v48 }
 0x635   : > { %15675 = vmatpush1.bf16.msra.mxu1 %v21444_v14  ;;  %15635 = vmatprep.subr.bf16.mxu0 %v21449_v55  ;;  %v21509_v55 = vld [vmem:[%s21955_s12 + $0x254] ss:$40 sps:$4 sm:$0xff]  }
 0x636   : > { %15676 = vmatprep.subr.bf16.mxu1 %v21452_v56  ;;  %v21512_v56 = vld [vmem:[%s21955_s12 + $0x754] ss:$40 sps:$4 sm:$0xff]  }
 0x638   : > { %15636 = vmatpush1.bf16.msra.mxu0 %v21447_v35  ;;  %v21507_v35 = vld [vmem:[%s21955_s12 + $0x250] ss:$40 sps:$4 sm:$0xff]  }
 0x639   : > { %15677 = vmatpush1.bf16.msra.mxu1 %v21450_v16  ;;  %15637 = vmatprep.subr.bf16.mxu0 %v21455_v17  ;;  %v21510_v16 = vld [vmem:[%s21955_s12 + $0x750] ss:$40 sps:$4 sm:$0xff]   ;;  %v21515_v17 = vld [vmem:[%s21955_s12 + $0x2a4] ss:$40 sps:$4 sm:$0xff]  }
 0x63a   : > { %15678 = vmatprep.subr.bf16.mxu1 %v21458_v18  ;;  %v21518_v18 = vld [vmem:[%s21955_s12 + $0x7a4] ss:$40 sps:$4 sm:$0xff]  }
 0x63c   : > { %15638 = vmatpush1.bf16.msra.mxu0 %v21453_v20  ;;  %v21513_v20 = vld [vmem:[%s21955_s12 + $0x2a0] ss:$40 sps:$4 sm:$0xff]  }
 0x63d   : > { %15679 = vmatpush1.bf16.msra.mxu1 %v21456_v23  ;;  %15639 = vmatprep.subr.bf16.mxu0 %v21461_v0  ;;  %v21516_v23 = vld [vmem:[%s21955_s12 + $0x7a0] ss:$40 sps:$4 sm:$0xff]   ;;  %v21521_v0 = vld [vmem:[%s21955_s12 + $0x2f4] ss:$40 sps:$4 sm:$0xff]  }
 0x63e   : > { %15680 = vmatprep.subr.bf16.mxu1 %v21464_v42  ;;  %v21524_v42 = vld [vmem:[%s21955_s12 + $0x7f4] ss:$40 sps:$4 sm:$0xff]  }
 0x640   : > { %15640 = vmatpush1.bf16.msra.mxu0 %v21459_v26  ;;  %v21519_v26 = vld [vmem:[%s21955_s12 + $0x2f0] ss:$40 sps:$4 sm:$0xff]  }
 0x641   : > { %15681 = vmatpush1.bf16.msra.mxu1 %v21462_v27  ;;  %15691 = vmatprep.subr.bf16.mxu0 %v21467_v45  ;;  %v21522_v27 = vld [vmem:[%s21955_s12 + $0x7f0] ss:$40 sps:$4 sm:$0xff]   ;;  %v21527_v45 = vld [vmem:[%s21955_s12 + $0x344] ss:$40 sps:$4 sm:$0xff]  }
 0x642   : > { %15732 = vmatprep.subr.bf16.mxu1 %v21470_v28  ;;  %v21530_v28 = vld [vmem:[%s21955_s12 + $0x844] ss:$40 sps:$4 sm:$0xff]  }
 0x643   : > { %15642 = vmatmul.mubr.bf16.vlgmr.msra.gmra.mrb[60].mxu0 %v24068_v9 }
 0x644   : > { %15683 = vmatmul.mubr.bf16.vlgmr.msra.gmra.mrb[60].mxu1 %v24072_v10  ;;  %15692 = vmatpush1.bf16.msra.mxu0 %v21465_v30  ;;  %v21525_v30 = vld [vmem:[%s21955_s12 + $0x340] ss:$40 sps:$4 sm:$0xff]  }
 0x645   : > { %15733 = vmatpush1.bf16.msra.mxu1 %v21468_v33  ;;  %15693 = vmatprep.subr.bf16.mxu0 %v21473_v59  ;;  %v21528_v33 = vld [vmem:[%s21955_s12 + $0x840] ss:$40 sps:$4 sm:$0xff]   ;;  %v21533_v59 = vld [vmem:[%s21955_s12 + $0x394] ss:$40 sps:$4 sm:$0xff]  }
 0x646   : > { %15734 = vmatprep.subr.bf16.mxu1 %v21476_v34  ;;  %15723 = vmatprep.mubr.bf16.mxu0 %v23773_v62  ;;  %v21486_v62 = vld [vmem:[%s21955_s12 + $0x610] ss:$40 sps:$4 sm:$0xff]   ;;  %v21536_v34 = vld [vmem:[%s21955_s12 + $0x894] ss:$40 sps:$4 sm:$0xff]  }
 0x647   : > { %15764 = vmatprep.mubr.bf16.mxu1 %v23778_v2  ;;  %v21491_v2 = vld [vmem:[%s21955_s12 + $0x164] ss:$40 sps:$4 sm:$0xff]  }
 0x648   : > { %15694 = vmatpush1.bf16.msra.mxu0 %v21471_v36  ;;  %v21531_v36 = vld [vmem:[%s21955_s12 + $0x390] ss:$40 sps:$4 sm:$0xff]  }
 0x649   : > { %15735 = vmatpush1.bf16.msra.mxu1 %v21474_v41  ;;  %15695 = vmatprep.subr.bf16.mxu0 %v21479_v15  ;;  %v21534_v41 = vld [vmem:[%s21955_s12 + $0x890] ss:$40 sps:$4 sm:$0xff]   ;;  %v21539_v15 = vld [vmem:[%s21955_s12 + $0x3e4] ss:$40 sps:$4 sm:$0xff]  }
 0x64a   : > { %15736 = vmatprep.subr.bf16.mxu1 %v21482_v43  ;;  %v21542_v43 = vld [vmem:[%s21955_s12 + $0x8e4] ss:$40 sps:$4 sm:$0xff]  }
 0x64c   : > { %15696 = vmatpush1.bf16.msra.mxu0 %v21477_v44  ;;  %v21537_v44 = vld [vmem:[%s21955_s12 + $0x3e0] ss:$40 sps:$4 sm:$0xff]  }
 0x64d   : > { %15737 = vmatpush1.bf16.msra.mxu1 %v21480_v46  ;;  %15697 = vmatprep.subr.bf16.mxu0 %v21485_v4  ;;  %v21540_v46 = vld [vmem:[%s21955_s12 + $0x8e0] ss:$40 sps:$4 sm:$0xff]   ;;  %v21545_v4 = vld [vmem:[%s21955_s12 + $0x434] ss:$40 sps:$4 sm:$0xff]  }
 0x64e   : > { %15738 = vmatprep.subr.bf16.mxu1 %v21488_v47  ;;  %v21548_v47 = vld [vmem:[%s21955_s12 + $0x934] ss:$40 sps:$4 sm:$0xff]  }
 0x650   : > { %15698 = vmatpush1.bf16.msra.mxu0 %v21483_v5  ;;  %v21543_v5 = vld [vmem:[%s21955_s12 + $0x430] ss:$40 sps:$4 sm:$0xff]  }
 0x651   : > { %15739 = vmatpush1.bf16.msra.mxu1 %v21486_v62  ;;  %15699 = vmatprep.subr.bf16.mxu0 %v21491_v2  ;;  %v21546_v62 = vld [vmem:[%s21955_s12 + $0x930] ss:$40 sps:$4 sm:$0xff]   ;;  %v21551_v2 = vld [vmem:[%s21955_s12 + $0x484] ss:$40 sps:$4 sm:$0xff]  }
 0x652   : > { %15740 = vmatprep.subr.bf16.mxu1 %v21494_v49  ;;  %v21554_v49 = vld [vmem:[%s21955_s12 + $0x984] ss:$40 sps:$4 sm:$0xff]  }
 0x654   : > { %15700 = vmatpush1.bf16.msra.mxu0 %v21489_v50  ;;  %v21549_v50 = vld [vmem:[%s21955_s12 + $0x480] ss:$40 sps:$4 sm:$0xff]  }
 0x655   : > { %15741 = vmatpush1.bf16.msra.mxu1 %v21492_v11  ;;  %15701 = vmatprep.subr.bf16.mxu0 %v21497_v57  ;;  %v21552_v11 = vld [vmem:[%s21955_s12 + $0x980] ss:$40 sps:$4 sm:$0xff]   ;;  %v21557_v57 = vld [vmem:[%s21955_s12 + $0x4d4] ss:$40 sps:$4 sm:$0xff]  }
 0x656   : > { %15742 = vmatprep.subr.bf16.mxu1 %v21500_v58  ;;  %v15397_v1 = vpop.f32.mrb[48].mxu0  ;;  %v21560_v58 = vld [vmem:[%s21955_s12 + $0x9d4] ss:$40 sps:$4 sm:$0xff]  }
 0x657   : > { %v15438_v3 = vpop.f32.mrb[48].mxu1  ;;  %v15399_v24 = vpop.f32.mrb[49].mxu0 }
 0x658   : > { %v24972_v19 = vadd.f32 %v15438_v3, %v15397_v1  ;;  %v15440_v6 = vpop.f32.mrb[49].mxu1  ;;  %v15401_v25 = vpop.f32.mrb[50].mxu0  ;;  %15702 = vmatpush1.bf16.msra.mxu0 %v21495_v60  ;;  %v21555_v60 = vld [vmem:[%s21955_s12 + $0x4d0] ss:$40 sps:$4 sm:$0xff]   ;;  %v21561_v1 = vld [vmem:[%s21955_s12 + $0xa20] ss:$40 sps:$4 sm:$0xff]  }
 0x659   : > { %v24974_v7 = vadd.f32 %v15440_v6, %v15399_v24  ;;  %v15442_v8 = vpop.f32.mrb[50].mxu1  ;;  %15743 = vmatpush1.bf16.msra.mxu1 %v21498_v61  ;;  %v15402_v48 = vpop.f32.mrb[51].mxu0  ;;  %15703 = vmatprep.subr.bf16.mxu0 %v21503_v13  ;;  %v21558_v61 = vld [vmem:[%s21955_s12 + $0x9d0] ss:$40 sps:$4 sm:$0xff]   ;;  %v21563_v13 = vld [vmem:[%s21955_s12 + $0xa24] ss:$40 sps:$4 sm:$0xff]  }
 0x65a   : > { %v15443_v14 = vpop.f32.mrb[51].mxu1  ;;  %15744 = vmatprep.subr.bf16.mxu1 %v21506_v63  ;;  %v21566_v63 = vld [vmem:[%s21955_s12 + $0xf24] ss:$40 sps:$4 sm:$0xff]   ;;  %v21564_v3 = vld [vmem:[%s21955_s12 + $0xf20] ss:$40 sps:$4 sm:$0xff]  }
 0x65b   : > { %v21569_v24 = vld [vmem:[%s21955_s12 + $0xa74] ss:$40 sps:$4 sm:$0xff]   ;;  %v21567_v25 = vld [vmem:[%s21955_s12 + $0xa70] ss:$40 sps:$4 sm:$0xff]  }
 0x65c   : > { %15704 = vmatpush1.bf16.msra.mxu0 %v21501_v29  ;;  %v21572_v6 = vld [vmem:[%s21955_s12 + $0xf74] ss:$40 sps:$4 sm:$0xff]   ;;  %v21570_v8 = vld [vmem:[%s21955_s12 + $0xf70] ss:$40 sps:$4 sm:$0xff]   ;;  %v21575_v29 = vld [vmem:[%s21955_s12 + $0xac4] ss:$40 sps:$4 sm:$0xff]  }
 0x65d   : > { %15745 = vmatpush1.bf16.msra.mxu1 %v21504_v12  ;;  %15705 = vmatprep.subr.bf16.mxu0 %v21509_v55  ;;  %v21578_v12 = vld [vmem:[%s21955_s12 + $0xfc4] ss:$40 sps:$4 sm:$0xff]   ;;  %v21581_v48 = vld [vmem:[%s21955_s12 + $0xb14] ss:$40 sps:$4 sm:$0xff]   ;;  %v21579_v55 = vld [vmem:[%s21955_s12 + $0xb10] ss:$40 sps:$4 sm:$0xff]  }
 0x65e   : > { %15746 = vmatprep.subr.bf16.mxu1 %v21512_v56  ;;  %v21584_v14 = vld [vmem:[%s21955_s12 + $0x1014] ss:$40 sps:$4 sm:$0xff]   ;;  %v21590_v56 = vld [vmem:[%s21955_s12 + $0x1064] ss:$40 sps:$4 sm:$0xff]  }
 0x660   : > { %15706 = vmatpush1.bf16.msra.mxu0 %v21507_v35  ;;  %v21585_v35 = vld [vmem:[%s21955_s12 + $0xb60] ss:$40 sps:$4 sm:$0xff]  }
 0x661   : > { %15747 = vmatpush1.bf16.msra.mxu1 %v21510_v16  ;;  %15707 = vmatprep.subr.bf16.mxu0 %v21515_v17  ;;  %v21588_v16 = vld [vmem:[%s21955_s12 + $0x1060] ss:$40 sps:$4 sm:$0xff]   ;;  %v21593_v17 = vld [vmem:[%s21955_s12 + $0xbb4] ss:$40 sps:$4 sm:$0xff]  }
 0x662   : > { %15748 = vmatprep.subr.bf16.mxu1 %v21518_v18  ;;  %v21596_v18 = vld [vmem:[%s21955_s12 + $0x10b4] ss:$40 sps:$4 sm:$0xff]  }
 0x664   : > { %15708 = vmatpush1.bf16.msra.mxu0 %v21513_v20  ;;  %v21591_v20 = vld [vmem:[%s21955_s12 + $0xbb0] ss:$40 sps:$4 sm:$0xff]  }
 0x665   : > { %15749 = vmatpush1.bf16.msra.mxu1 %v21516_v23  ;;  %15709 = vmatprep.subr.bf16.mxu0 %v21521_v0  ;;  %v21594_v23 = vld [vmem:[%s21955_s12 + $0x10b0] ss:$40 sps:$4 sm:$0xff]   ;;  %v21599_v0 = vld [vmem:[%s21955_s12 + $0xc04] ss:$40 sps:$4 sm:$0xff]  }
 0x666   : > { %15750 = vmatprep.subr.bf16.mxu1 %v21524_v42  ;;  %v21602_v42 = vld [vmem:[%s21955_s12 + $0x1104] ss:$40 sps:$4 sm:$0xff]  }
 0x668   : > { %15710 = vmatpush1.bf16.msra.mxu0 %v21519_v26 }
 0x669   : > { %15751 = vmatpush1.bf16.msra.mxu1 %v21522_v27  ;;  %15711 = vmatprep.subr.bf16.mxu0 %v21527_v45 }
 0x66a   : > { %15752 = vmatprep.subr.bf16.mxu1 %v21530_v28 }
 0x66c   : > { %15712 = vmatpush1.bf16.msra.mxu0 %v21525_v30 }
 0x66d   : > { %15753 = vmatpush1.bf16.msra.mxu1 %v21528_v33  ;;  %15713 = vmatprep.subr.bf16.mxu0 %v21533_v59 }
 0x66e   : > { %15754 = vmatprep.subr.bf16.mxu1 %v21536_v34 }
 0x670   : > { %15714 = vmatpush1.bf16.msra.mxu0 %v21531_v36  ;;  %v21597_v36 = vld [vmem:[%s21955_s12 + $0xc00] ss:$40 sps:$4 sm:$0xff]  }
 0x671   : > { %15755 = vmatpush1.bf16.msra.mxu1 %v21534_v41  ;;  %15715 = vmatprep.subr.bf16.mxu0 %v21539_v15  ;;  %v21600_v41 = vld [vmem:[%s21955_s12 + $0x1100] ss:$40 sps:$4 sm:$0xff]  }
 0x672   : > { %15756 = vmatprep.subr.bf16.mxu1 %v21542_v43 }
 0x674   : > { %15716 = vmatpush1.bf16.msra.mxu0 %v21537_v44 }
 0x675   : > { %15757 = vmatpush1.bf16.msra.mxu1 %v21540_v46  ;;  %15717 = vmatprep.subr.bf16.mxu0 %v21545_v4  ;;  %v21603_v4 = vld [vmem:[%s21955_s12 + $0xc50] ss:$40 sps:$4 sm:$0xff]  }
 0x676   : > { %15758 = vmatprep.subr.bf16.mxu1 %v21548_v47  ;;  %v21606_v47 = vld [vmem:[%s21955_s12 + $0x1150] ss:$40 sps:$4 sm:$0xff]  }
 0x678   : > { %15718 = vmatpush1.bf16.msra.mxu0 %v21543_v5  ;;  %v21611_v5 = vld [vmem:[%s21955_s12 + $0xca4] ss:$40 sps:$4 sm:$0xff]  }
 0x679   : > { %15759 = vmatpush1.bf16.msra.mxu1 %v21546_v62  ;;  %15719 = vmatprep.subr.bf16.mxu0 %v21551_v2  ;;  %v21614_v62 = vld [vmem:[%s21955_s12 + $0x11a4] ss:$40 sps:$4 sm:$0xff]   ;;  %v21609_v2 = vld [vmem:[%s21955_s12 + $0xca0] ss:$40 sps:$4 sm:$0xff]  }
 0x67a   : > { %15760 = vmatprep.subr.bf16.mxu1 %v21554_v49  ;;  %v21612_v49 = vld [vmem:[%s21955_s12 + $0x11a0] ss:$40 sps:$4 sm:$0xff]  }
 0x67c   : > { %15720 = vmatpush1.bf16.msra.mxu0 %v21549_v50  ;;  %v21617_v50 = vld [vmem:[%s21955_s12 + $0xcf4] ss:$40 sps:$4 sm:$0xff]  }
 0x67d   : > { %15761 = vmatpush1.bf16.msra.mxu1 %v21552_v11  ;;  %15721 = vmatprep.subr.bf16.mxu0 %v21557_v57  ;;  %v21620_v11 = vld [vmem:[%s21955_s12 + $0x11f4] ss:$40 sps:$4 sm:$0xff]   ;;  %v21615_v57 = vld [vmem:[%s21955_s12 + $0xcf0] ss:$40 sps:$4 sm:$0xff]  }
 0x67e   : > { %15762 = vmatprep.subr.bf16.mxu1 %v21560_v58  ;;  %v21618_v58 = vld [vmem:[%s21955_s12 + $0x11f0] ss:$40 sps:$4 sm:$0xff]  }
 0x680   : > { %15722 = vmatpush1.bf16.msra.mxu0 %v21555_v60  ;;  %v21623_v60 = vld [vmem:[%s21955_s12 + $0xd44] ss:$40 sps:$4 sm:$0xff]  }
 0x681   : > { %15763 = vmatpush1.bf16.msra.mxu1 %v21558_v61  ;;  %15773 = vmatprep.subr.bf16.mxu0 %v21563_v13  ;;  %v21626_v61 = vld [vmem:[%s21955_s12 + $0x1244] ss:$40 sps:$4 sm:$0xff]   ;;  %v21621_v13 = vld [vmem:[%s21955_s12 + $0xd40] ss:$40 sps:$4 sm:$0xff]  }
 0x682   : > { %15814 = vmatprep.subr.bf16.mxu1 %v21566_v63  ;;  %v21624_v63 = vld [vmem:[%s21955_s12 + $0x1240] ss:$40 sps:$4 sm:$0xff]  }
 0x683   : > { %15724 = vmatmul.mubr.bf16.vlgmr.msra.gmra.mrb[64].mxu0 %v23800_v21  ;;  %v21573_v21 = vld [vmem:[%s21955_s12 + $0xac0] ss:$40 sps:$4 sm:$0xff]  }
 0x684   : > { %15765 = vmatmul.mubr.bf16.vlgmr.msra.gmra.mrb[64].mxu1 %v23802_v22  ;;  %15774 = vmatpush1.bf16.msra.mxu0 %v21561_v1  ;;  %v21576_v22 = vld [vmem:[%s21955_s12 + $0xfc0] ss:$40 sps:$4 sm:$0xff]   ;;  %v21629_v1 = vld [vmem:[%s21955_s12 + $0xd94] ss:$40 sps:$4 sm:$0xff]  }
 0x685   : > { %15815 = vmatpush1.bf16.msra.mxu1 %v21564_v3  ;;  %15775 = vmatprep.subr.bf16.mxu0 %v21569_v24  ;;  %v21632_v3 = vld [vmem:[%s21955_s12 + $0x1294] ss:$40 sps:$4 sm:$0xff]   ;;  %v21627_v24 = vld [vmem:[%s21955_s12 + $0xd90] ss:$40 sps:$4 sm:$0xff]  }
 0x686   : > { %15816 = vmatprep.subr.bf16.mxu1 %v21572_v6  ;;  %15805 = vmatprep.mubr.bf16.mxu0 %v23840_v51  ;;  %v21582_v51 = vld [vmem:[%s21955_s12 + $0x1010] ss:$40 sps:$4 sm:$0xff]  }
 0x687   : > { %15846 = vmatprep.mubr.bf16.mxu1 %v23844_v52  ;;  %v21587_v52 = vld [vmem:[%s21955_s12 + $0xb64] ss:$40 sps:$4 sm:$0xff]   ;;  %v21630_v6 = vld [vmem:[%s21955_s12 + $0x1290] ss:$40 sps:$4 sm:$0xff]  }
 0x688   : > { %15776 = vmatpush1.bf16.msra.mxu0 %v21567_v25  ;;  %v21635_v25 = vld [vmem:[%s21955_s12 + $0xde4] ss:$40 sps:$4 sm:$0xff]  }
 0x689   : > { %15817 = vmatpush1.bf16.msra.mxu1 %v21570_v8  ;;  %15777 = vmatprep.subr.bf16.mxu0 %v21575_v29  ;;  %v21638_v8 = vld [vmem:[%s21955_s12 + $0x12e4] ss:$40 sps:$4 sm:$0xff]   ;;  %v21633_v29 = vld [vmem:[%s21955_s12 + $0xde0] ss:$40 sps:$4 sm:$0xff]  }
 0x68a   : > { %15818 = vmatprep.subr.bf16.mxu1 %v21578_v12  ;;  %v21636_v12 = vld [vmem:[%s21955_s12 + $0x12e0] ss:$40 sps:$4 sm:$0xff]  }
 0x68c   : > { %15778 = vmatpush1.bf16.msra.mxu0 %v21573_v21  ;;  %v21641_v21 = vld [vmem:[%s21955_s12 + $0xe34] ss:$40 sps:$4 sm:$0xff]  }
 0x68d   : > { %15819 = vmatpush1.bf16.msra.mxu1 %v21576_v22  ;;  %15779 = vmatprep.subr.bf16.mxu0 %v21581_v48  ;;  %v21644_v22 = vld [vmem:[%s21955_s12 + $0x1334] ss:$40 sps:$4 sm:$0xff]   ;;  %v21639_v48 = vld [vmem:[%s21955_s12 + $0xe30] ss:$40 sps:$4 sm:$0xff]  }
 0x68e   : > { %15820 = vmatprep.subr.bf16.mxu1 %v21584_v14  ;;  %v21642_v14 = vld [vmem:[%s21955_s12 + $0x1330] ss:$40 sps:$4 sm:$0xff]  }
 0x690   : > { %15780 = vmatpush1.bf16.msra.mxu0 %v21579_v55  ;;  %v21647_v55 = vld [vmem:[%s21955_s12 + $0xe84] ss:$40 sps:$4 sm:$0xff]  }
 0x691   : > { %15821 = vmatpush1.bf16.msra.mxu1 %v21582_v51  ;;  %15781 = vmatprep.subr.bf16.mxu0 %v21587_v52  ;;  %v21650_v51 = vld [vmem:[%s21955_s12 + $0x1384] ss:$40 sps:$4 sm:$0xff]   ;;  %v21645_v52 = vld [vmem:[%s21955_s12 + $0xe80] ss:$40 sps:$4 sm:$0xff]  }
 0x692   : > { %15822 = vmatprep.subr.bf16.mxu1 %v21590_v56  ;;  %v21648_v56 = vld [vmem:[%s21955_s12 + $0x1380] ss:$40 sps:$4 sm:$0xff]  }
 0x694   : > { %15782 = vmatpush1.bf16.msra.mxu0 %v21585_v35  ;;  %v21653_v35 = vld [vmem:[%s21955_s12 + $0xed4] ss:$40 sps:$4 sm:$0xff]  }
 0x695   : > { %15823 = vmatpush1.bf16.msra.mxu1 %v21588_v16  ;;  %15783 = vmatprep.subr.bf16.mxu0 %v21593_v17  ;;  %v21656_v16 = vld [vmem:[%s21955_s12 + $0x13d4] ss:$40 sps:$4 sm:$0xff]   ;;  %v21651_v17 = vld [vmem:[%s21955_s12 + $0xed0] ss:$40 sps:$4 sm:$0xff]  }
 0x696   : > { %15824 = vmatprep.subr.bf16.mxu1 %v21596_v18  ;;  %v15479_v26 = vpop.f32.mrb[52].mxu0  ;;  %v21654_v18 = vld [vmem:[%s21955_s12 + $0x13d0] ss:$40 sps:$4 sm:$0xff]  }
 0x697   : > { %v15520_v27 = vpop.f32.mrb[52].mxu1  ;;  %v15480_v45 = vadd.f32 %v15479_v26, %v24972_v19  ;;  %v15481_v28 = vpop.f32.mrb[53].mxu0  ;;  %v21605_v19 = vld [vmem:[%s21955_s12 + $0xc54] ss:$40 sps:$4 sm:$0xff]  }
 0x698   : > { %v15522_v30 = vpop.f32.mrb[53].mxu1  ;;  %v15482_v33 = vadd.f32 %v15481_v28, %v24974_v7  ;;  %v15483_v59 = vpop.f32.mrb[54].mxu0  ;;  %15784 = vmatpush1.bf16.msra.mxu0 %v21591_v20  ;;  %v21608_v7 = vld [vmem:[%s21955_s12 + $0x1154] ss:$40 sps:$4 sm:$0xff]   ;;  %v21659_v20 = vld [vmem:[%s21955_s12 + $0x1424] ss:$40 sps:$4 sm:$0xff]  }
 0x699   : > { %v15524_v34 = vpop.f32.mrb[54].mxu1  ;;  %15825 = vmatpush1.bf16.msra.mxu1 %v21594_v23  ;;  %v25048_v15 = vadd.f32 %v15520_v27, %v15480_v45  ;;  %v15484_v43 = vpop.f32.mrb[55].mxu0  ;;  %15785 = vmatprep.subr.bf16.mxu0 %v21599_v0  ;;  %v21662_v23 = vld [vmem:[%s21955_s12 + $0x1924] ss:$40 sps:$4 sm:$0xff]   ;;  %v21657_v0 = vld [vmem:[%s21955_s12 + $0x1420] ss:$40 sps:$4 sm:$0xff]  }
 0x69a   : > { %v15525_v44 = vpop.f32.mrb[55].mxu1  ;;  %15826 = vmatprep.subr.bf16.mxu1 %v21602_v42  ;;  %v25052_v46 = vadd.f32 %v15522_v30, %v15482_v33  ;;  %v21660_v42 = vld [vmem:[%s21955_s12 + $0x1920] ss:$40 sps:$4 sm:$0xff]   ;;  %v21665_v26 = vld [vmem:[%s21955_s12 + $0x1474] ss:$40 sps:$4 sm:$0xff]  }
 0x69b   : > { %v21668_v27 = vld [vmem:[%s21955_s12 + $0x1974] ss:$40 sps:$4 sm:$0xff]   ;;  %v21663_v45 = vld [vmem:[%s21955_s12 + $0x1470] ss:$40 sps:$4 sm:$0xff]   ;;  %v21671_v30 = vld [vmem:[%s21955_s12 + $0x14c4] ss:$40 sps:$4 sm:$0xff]  }
 0x69c   : > { %15786 = vmatpush1.bf16.msra.mxu0 %v21597_v36  ;;  %v21666_v28 = vld [vmem:[%s21955_s12 + $0x1970] ss:$40 sps:$4 sm:$0xff]   ;;  %v21674_v33 = vld [vmem:[%s21955_s12 + $0x19c4] ss:$40 sps:$4 sm:$0xff]   ;;  %v21677_v59 = vld [vmem:[%s21955_s12 + $0x1514] ss:$40 sps:$4 sm:$0xff]  }
 0x69d   : > { %15827 = vmatpush1.bf16.msra.mxu1 %v21600_v41  ;;  %15787 = vmatprep.subr.bf16.mxu0 %v21605_v19  ;;  %v21680_v34 = vld [vmem:[%s21955_s12 + $0x1a14] ss:$40 sps:$4 sm:$0xff]   ;;  %v21675_v36 = vld [vmem:[%s21955_s12 + $0x1510] ss:$40 sps:$4 sm:$0xff]   ;;  %v21686_v41 = vld [vmem:[%s21955_s12 + $0x1a64] ss:$40 sps:$4 sm:$0xff]  }
 0x69e   : > { %15828 = vmatprep.subr.bf16.mxu1 %v21608_v7  ;;  %v21681_v43 = vld [vmem:[%s21955_s12 + $0x1560] ss:$40 sps:$4 sm:$0xff]   ;;  %v21689_v19 = vld [vmem:[%s21955_s12 + $0x15b4] ss:$40 sps:$4 sm:$0xff]  }
 0x69f   : > { %v21684_v44 = vld [vmem:[%s21955_s12 + $0x1a60] ss:$40 sps:$4 sm:$0xff]   ;;  %v21692_v7 = vld [vmem:[%s21955_s12 + $0x1ab4] ss:$40 sps:$4 sm:$0xff]  }
 0x6a0   : > { %15788 = vmatpush1.bf16.msra.mxu0 %v21603_v4  ;;  %v21687_v4 = vld [vmem:[%s21955_s12 + $0x15b0] ss:$40 sps:$4 sm:$0xff]  }
 0x6a1   : > { %15829 = vmatpush1.bf16.msra.mxu1 %v21606_v47  ;;  %15789 = vmatprep.subr.bf16.mxu0 %v21611_v5  ;;  %v21690_v47 = vld [vmem:[%s21955_s12 + $0x1ab0] ss:$40 sps:$4 sm:$0xff]   ;;  %v21695_v5 = vld [vmem:[%s21955_s12 + $0x1604] ss:$40 sps:$4 sm:$0xff]  }
 0x6a2   : > { %15830 = vmatprep.subr.bf16.mxu1 %v21614_v62  ;;  %v21698_v62 = vld [vmem:[%s21955_s12 + $0x1b04] ss:$40 sps:$4 sm:$0xff]  }
 0x6a4   : > { %15790 = vmatpush1.bf16.msra.mxu0 %v21609_v2 }
 0x6a5   : > { %15831 = vmatpush1.bf16.msra.mxu1 %v21612_v49  ;;  %15791 = vmatprep.subr.bf16.mxu0 %v21617_v50 }
 0x6a6   : > { %15832 = vmatprep.subr.bf16.mxu1 %v21620_v11 }
 0x6a8   : > { %15792 = vmatpush1.bf16.msra.mxu0 %v21615_v57 }
 0x6a9   : > { %15833 = vmatpush1.bf16.msra.mxu1 %v21618_v58  ;;  %15793 = vmatprep.subr.bf16.mxu0 %v21623_v60 }
 0x6aa   : > { %15834 = vmatprep.subr.bf16.mxu1 %v21626_v61 }
 0x6ac   : > { %15794 = vmatpush1.bf16.msra.mxu0 %v21621_v13  ;;  %v21693_v13 = vld [vmem:[%s21955_s12 + $0x1600] ss:$40 sps:$4 sm:$0xff]  }
 0x6ad   : > { %15835 = vmatpush1.bf16.msra.mxu1 %v21624_v63  ;;  %15795 = vmatprep.subr.bf16.mxu0 %v21629_v1  ;;  %v21696_v63 = vld [vmem:[%s21955_s12 + $0x1b00] ss:$40 sps:$4 sm:$0xff]  }
 0x6ae   : > { %15836 = vmatprep.subr.bf16.mxu1 %v21632_v3 }
 0x6b0   : > { %15796 = vmatpush1.bf16.msra.mxu0 %v21627_v24 }
 0x6b1   : > { %15837 = vmatpush1.bf16.msra.mxu1 %v21630_v6  ;;  %15797 = vmatprep.subr.bf16.mxu0 %v21635_v25  ;;  %v21699_v25 = vld [vmem:[%s21955_s12 + $0x1650] ss:$40 sps:$4 sm:$0xff]  }
 0x6b2   : > { %15838 = vmatprep.subr.bf16.mxu1 %v21638_v8  ;;  %v21702_v8 = vld [vmem:[%s21955_s12 + $0x1b50] ss:$40 sps:$4 sm:$0xff]  }
 0x6b4   : > { %15798 = vmatpush1.bf16.msra.mxu0 %v21633_v29  ;;  %v21707_v29 = vld [vmem:[%s21955_s12 + $0x16a4] ss:$40 sps:$4 sm:$0xff]  }
 0x6b5   : > { %15839 = vmatpush1.bf16.msra.mxu1 %v21636_v12  ;;  %15799 = vmatprep.subr.bf16.mxu0 %v21641_v21  ;;  %v21710_v12 = vld [vmem:[%s21955_s12 + $0x1ba4] ss:$40 sps:$4 sm:$0xff]   ;;  %v21705_v21 = vld [vmem:[%s21955_s12 + $0x16a0] ss:$40 sps:$4 sm:$0xff]  }
 0x6b6   : > { %15840 = vmatprep.subr.bf16.mxu1 %v21644_v22  ;;  %v21708_v22 = vld [vmem:[%s21955_s12 + $0x1ba0] ss:$40 sps:$4 sm:$0xff]  }
 0x6b8   : > { %15800 = vmatpush1.bf16.msra.mxu0 %v21639_v48  ;;  %v21713_v48 = vld [vmem:[%s21955_s12 + $0x16f4] ss:$40 sps:$4 sm:$0xff]  }
 0x6b9   : > { %15841 = vmatpush1.bf16.msra.mxu1 %v21642_v14  ;;  %15801 = vmatprep.subr.bf16.mxu0 %v21647_v55  ;;  %v21716_v14 = vld [vmem:[%s21955_s12 + $0x1bf4] ss:$40 sps:$4 sm:$0xff]   ;;  %v21711_v55 = vld [vmem:[%s21955_s12 + $0x16f0] ss:$40 sps:$4 sm:$0xff]  }
 0x6ba   : > { %15842 = vmatprep.subr.bf16.mxu1 %v21650_v51  ;;  %v21714_v51 = vld [vmem:[%s21955_s12 + $0x1bf0] ss:$40 sps:$4 sm:$0xff]  }
 0x6bc   : > { %15802 = vmatpush1.bf16.msra.mxu0 %v21645_v52  ;;  %v21719_v52 = vld [vmem:[%s21955_s12 + $0x1744] ss:$40 sps:$4 sm:$0xff]  }
 0x6bd   : > { %15843 = vmatpush1.bf16.msra.mxu1 %v21648_v56  ;;  %15803 = vmatprep.subr.bf16.mxu0 %v21653_v35  ;;  %v21722_v56 = vld [vmem:[%s21955_s12 + $0x1c44] ss:$40 sps:$4 sm:$0xff]   ;;  %v21717_v35 = vld [vmem:[%s21955_s12 + $0x1740] ss:$40 sps:$4 sm:$0xff]  }
 0x6be   : > { %15844 = vmatprep.subr.bf16.mxu1 %v21656_v16  ;;  %v21720_v16 = vld [vmem:[%s21955_s12 + $0x1c40] ss:$40 sps:$4 sm:$0xff]  }
 0x6c0   : > { %15804 = vmatpush1.bf16.msra.mxu0 %v21651_v17  ;;  %v21725_v17 = vld [vmem:[%s21955_s12 + $0x1794] ss:$40 sps:$4 sm:$0xff]  }
 0x6c1   : > { %15845 = vmatpush1.bf16.msra.mxu1 %v21654_v18  ;;  %15855 = vmatprep.subr.bf16.mxu0 %v21659_v20  ;;  %v21728_v18 = vld [vmem:[%s21955_s12 + $0x1c94] ss:$40 sps:$4 sm:$0xff]   ;;  %v21723_v20 = vld [vmem:[%s21955_s12 + $0x1790] ss:$40 sps:$4 sm:$0xff]  }
 0x6c2   : > { %15896 = vmatprep.subr.bf16.mxu1 %v21662_v23  ;;  %v21726_v23 = vld [vmem:[%s21955_s12 + $0x1c90] ss:$40 sps:$4 sm:$0xff]  }
 0x6c3   : > { %15806 = vmatmul.mubr.bf16.vlgmr.msra.gmra.mrb[68].mxu0 %v23888_v31  ;;  %v21669_v31 = vld [vmem:[%s21955_s12 + $0x14c0] ss:$40 sps:$4 sm:$0xff]  }
 0x6c4   : > { %15847 = vmatmul.mubr.bf16.vlgmr.msra.gmra.mrb[68].mxu1 %v23892_v32  ;;  %15856 = vmatpush1.bf16.msra.mxu0 %v21657_v0  ;;  %v21672_v32 = vld [vmem:[%s21955_s12 + $0x19c0] ss:$40 sps:$4 sm:$0xff]   ;;  %v21731_v0 = vld [vmem:[%s21955_s12 + $0x17e4] ss:$40 sps:$4 sm:$0xff]  }
 0x6c5   : > { %15897 = vmatpush1.bf16.msra.mxu1 %v21660_v42  ;;  %15857 = vmatprep.subr.bf16.mxu0 %v21665_v26  ;;  %v21734_v42 = vld [vmem:[%s21955_s12 + $0x1ce4] ss:$40 sps:$4 sm:$0xff]   ;;  %v21729_v26 = vld [vmem:[%s21955_s12 + $0x17e0] ss:$40 sps:$4 sm:$0xff]  }
 0x6c6   : > { %15898 = vmatprep.subr.bf16.mxu1 %v21668_v27  ;;  %15887 = vmatprep.mubr.bf16.mxu0 %v23906_v39  ;;  %v21678_v39 = vld [vmem:[%s21955_s12 + $0x1a10] ss:$40 sps:$4 sm:$0xff]   ;;  %v21732_v27 = vld [vmem:[%s21955_s12 + $0x1ce0] ss:$40 sps:$4 sm:$0xff]  }
 0x6c7   : > { %15928 = vmatprep.mubr.bf16.mxu1 %v23910_v40  ;;  %v21683_v40 = vld [vmem:[%s21955_s12 + $0x1564] ss:$40 sps:$4 sm:$0xff]  }
 0x6c8   : > { %15858 = vmatpush1.bf16.msra.mxu0 %v21663_v45  ;;  %v21737_v45 = vld [vmem:[%s21955_s12 + $0x1834] ss:$40 sps:$4 sm:$0xff]  }
 0x6c9   : > { %15899 = vmatpush1.bf16.msra.mxu1 %v21666_v28  ;;  %15859 = vmatprep.subr.bf16.mxu0 %v21671_v30  ;;  %v21740_v28 = vld [vmem:[%s21955_s12 + $0x1d34] ss:$40 sps:$4 sm:$0xff]   ;;  %v21735_v30 = vld [vmem:[%s21955_s12 + $0x1830] ss:$40 sps:$4 sm:$0xff]  }
 0x6ca   : > { %15900 = vmatprep.subr.bf16.mxu1 %v21674_v33  ;;  %v21738_v33 = vld [vmem:[%s21955_s12 + $0x1d30] ss:$40 sps:$4 sm:$0xff]  }
 0x6cc   : > { %15860 = vmatpush1.bf16.msra.mxu0 %v21669_v31  ;;  %v21743_v31 = vld [vmem:[%s21955_s12 + $0x1884] ss:$40 sps:$4 sm:$0xff]  }
 0x6cd   : > { %15901 = vmatpush1.bf16.msra.mxu1 %v21672_v32  ;;  %15861 = vmatprep.subr.bf16.mxu0 %v21677_v59  ;;  %v21746_v32 = vld [vmem:[%s21955_s12 + $0x1d84] ss:$40 sps:$4 sm:$0xff]   ;;  %v21741_v59 = vld [vmem:[%s21955_s12 + $0x1880] ss:$40 sps:$4 sm:$0xff]  }
 0x6ce   : > { %15902 = vmatprep.subr.bf16.mxu1 %v21680_v34  ;;  %v21744_v34 = vld [vmem:[%s21955_s12 + $0x1d80] ss:$40 sps:$4 sm:$0xff]  }
 0x6d0   : > { %15862 = vmatpush1.bf16.msra.mxu0 %v21675_v36  ;;  %v21749_v36 = vld [vmem:[%s21955_s12 + $0x18d4] ss:$40 sps:$4 sm:$0xff]  }
 0x6d1   : > { %15903 = vmatpush1.bf16.msra.mxu1 %v21678_v39  ;;  %15863 = vmatprep.subr.bf16.mxu0 %v21683_v40  ;;  %v21752_v39 = vld [vmem:[%s21955_s12 + $0x1dd4] ss:$40 sps:$4 sm:$0xff]   ;;  %v21747_v40 = vld [vmem:[%s21955_s12 + $0x18d0] ss:$40 sps:$4 sm:$0xff]  }
 0x6d2   : > { %15904 = vmatprep.subr.bf16.mxu1 %v21686_v41  ;;  %v21750_v41 = vld [vmem:[%s21955_s12 + $0x1dd0] ss:$40 sps:$4 sm:$0xff]  }
 0x6d4   : > { %15864 = vmatpush1.bf16.msra.mxu0 %v21681_v43  ;;  %v21755_v43 = vld [vmem:[%s21955_s12 + $0x1e24] ss:$40 sps:$4 sm:$0xff]  }
 0x6d5   : > { %15905 = vmatpush1.bf16.msra.mxu1 %v21684_v44  ;;  %15865 = vmatprep.subr.bf16.mxu0 %v21689_v19  ;;  %v21758_v44 = vld [vmem:[%s21955_s12 + $0x2324] ss:$40 sps:$4 sm:$0xff]   ;;  %v21753_v19 = vld [vmem:[%s21955_s12 + $0x1e20] ss:$40 sps:$4 sm:$0xff]  }
 0x6d6   : > { %15906 = vmatprep.subr.bf16.mxu1 %v21692_v7  ;;  %v15561_v2 = vpop.f32.mrb[56].mxu0  ;;  %v21756_v7 = vld [vmem:[%s21955_s12 + $0x2320] ss:$40 sps:$4 sm:$0xff]  }
 0x6d7   : > { %v15602_v49 = vpop.f32.mrb[56].mxu1  ;;  %v15562_v50 = vadd.f32 %v15561_v2, %v25048_v15  ;;  %v15563_v11 = vpop.f32.mrb[57].mxu0  ;;  %v21701_v15 = vld [vmem:[%s21955_s12 + $0x1654] ss:$40 sps:$4 sm:$0xff]   ;;  %v21767_v2 = vld [vmem:[%s21955_s12 + $0x1ec4] ss:$40 sps:$4 sm:$0xff]  }
 0x6d8   : > { %v15604_v57 = vpop.f32.mrb[57].mxu1  ;;  %v15564_v58 = vadd.f32 %v15563_v11, %v25052_v46  ;;  %v15565_v60 = vpop.f32.mrb[58].mxu0  ;;  %15866 = vmatpush1.bf16.msra.mxu0 %v21687_v4  ;;  %v21704_v46 = vld [vmem:[%s21955_s12 + $0x1b54] ss:$40 sps:$4 sm:$0xff]  }
 0x6d9   : > { %v15606_v61 = vpop.f32.mrb[58].mxu1  ;;  %15907 = vmatpush1.bf16.msra.mxu1 %v21690_v47  ;;  %v25122_v1 = vadd.f32 %v15602_v49, %v15562_v50  ;;  %v15566_v3 = vpop.f32.mrb[59].mxu0  ;;  %15867 = vmatprep.subr.bf16.mxu0 %v21695_v5  ;;  %v21761_v4 = vld [vmem:[%s21955_s12 + $0x1e74] ss:$40 sps:$4 sm:$0xff]   ;;  %v21759_v5 = vld [vmem:[%s21955_s12 + $0x1e70] ss:$40 sps:$4 sm:$0xff]  }
 0x6da   : > { %v15607_v24 = vpop.f32.mrb[59].mxu1  ;;  %15908 = vmatprep.subr.bf16.mxu1 %v21698_v62  ;;  %v25126_v6 = vadd.f32 %v15604_v57, %v15564_v58  ;;  %v21764_v47 = vld [vmem:[%s21955_s12 + $0x2374] ss:$40 sps:$4 sm:$0xff]   ;;  %v21762_v62 = vld [vmem:[%s21955_s12 + $0x2370] ss:$40 sps:$4 sm:$0xff]  }
 0x6db   : > { %v21770_v49 = vld [vmem:[%s21955_s12 + $0x23c4] ss:$40 sps:$4 sm:$0xff]   ;;  %v21773_v50 = vld [vmem:[%s21955_s12 + $0x1f14] ss:$40 sps:$4 sm:$0xff]   ;;  %v21771_v57 = vld [vmem:[%s21955_s12 + $0x1f10] ss:$40 sps:$4 sm:$0xff]  }
 0x6dc   : > { %15868 = vmatpush1.bf16.msra.mxu0 %v21693_v13  ;;  %v21776_v11 = vld [vmem:[%s21955_s12 + $0x2414] ss:$40 sps:$4 sm:$0xff]   ;;  %v21782_v58 = vld [vmem:[%s21955_s12 + $0x2464] ss:$40 sps:$4 sm:$0xff]   ;;  %v21777_v60 = vld [vmem:[%s21955_s12 + $0x1f60] ss:$40 sps:$4 sm:$0xff]  }
 0x6dd   : > { %15909 = vmatpush1.bf16.msra.mxu1 %v21696_v63  ;;  %15869 = vmatprep.subr.bf16.mxu0 %v21701_v15  ;;  %v21780_v61 = vld [vmem:[%s21955_s12 + $0x2460] ss:$40 sps:$4 sm:$0xff]   ;;  %v21785_v13 = vld [vmem:[%s21955_s12 + $0x1fb4] ss:$40 sps:$4 sm:$0xff]   ;;  %v21783_v3 = vld [vmem:[%s21955_s12 + $0x1fb0] ss:$40 sps:$4 sm:$0xff]  }
 0x6de   : > { %15910 = vmatprep.subr.bf16.mxu1 %v21704_v46  ;;  %v21788_v63 = vld [vmem:[%s21955_s12 + $0x24b4] ss:$40 sps:$4 sm:$0xff]   ;;  %v21786_v24 = vld [vmem:[%s21955_s12 + $0x24b0] ss:$40 sps:$4 sm:$0xff]   ;;  %v21791_v15 = vld [vmem:[%s21955_s12 + $0x2004] ss:$40 sps:$4 sm:$0xff]  }
 0x6df   : > { %v21794_v46 = vld [vmem:[%s21955_s12 + $0x2504] ss:$40 sps:$4 sm:$0xff]  }
 0x6e0   : > { %15870 = vmatpush1.bf16.msra.mxu0 %v21699_v25 }
 0x6e1   : > { %15911 = vmatpush1.bf16.msra.mxu1 %v21702_v8  ;;  %15871 = vmatprep.subr.bf16.mxu0 %v21707_v29 }
 0x6e2   : > { %15912 = vmatprep.subr.bf16.mxu1 %v21710_v12 }
 0x6e4   : > { %15872 = vmatpush1.bf16.msra.mxu0 %v21705_v21 }
 0x6e5   : > { %15913 = vmatpush1.bf16.msra.mxu1 %v21708_v22  ;;  %15873 = vmatprep.subr.bf16.mxu0 %v21713_v48  ;;  %v21789_v22 = vld [vmem:[%s21955_s12 + $0x2000] ss:$40 sps:$4 sm:$0xff]   ;;  %v6631_v48 = vld [vmem:[#allocation2 + $0x30] sm:$0xff] }
 0x6e6   : > { %15914 = vmatprep.subr.bf16.mxu1 %v21716_v14 }
 0x6e8   : > { %15874 = vmatpush1.bf16.msra.mxu0 %v21711_v55  ;;  %v6632_v55 = vld [vmem:[#allocation2 + $0x38] sm:$0xff] }
 0x6e9   : > { %15915 = vmatpush1.bf16.msra.mxu1 %v21714_v51  ;;  %15875 = vmatprep.subr.bf16.mxu0 %v21719_v52 }
 0x6ea   : > { %15916 = vmatprep.subr.bf16.mxu1 %v21722_v56  ;;  %v21792_v56 = vld [vmem:[%s21955_s12 + $0x2500] ss:$40 sps:$4 sm:$0xff]  }
 0x6ec   : > { %15876 = vmatpush1.bf16.msra.mxu0 %v21717_v35 }
 0x6ed   : > { %15917 = vmatpush1.bf16.msra.mxu1 %v21720_v16  ;;  %15877 = vmatprep.subr.bf16.mxu0 %v21725_v17  ;;  %v21797_v17 = vld [vmem:[%s21955_s12 + $0x2054] ss:$40 sps:$4 sm:$0xff]  }
 0x6ee   : > { %15918 = vmatprep.subr.bf16.mxu1 %v21728_v18  ;;  %v21800_v18 = vld [vmem:[%s21955_s12 + $0x2554] ss:$40 sps:$4 sm:$0xff]  }
 0x6f0   : > { %15878 = vmatpush1.bf16.msra.mxu0 %v21723_v20 }
 0x6f1   : > { %15919 = vmatpush1.bf16.msra.mxu1 %v21726_v23  ;;  %15879 = vmatprep.subr.bf16.mxu0 %v21731_v0  ;;  %v21795_v0 = vld [vmem:[%s21955_s12 + $0x2050] ss:$40 sps:$4 sm:$0xff]  }
 0x6f2   : > { %15920 = vmatprep.subr.bf16.mxu1 %v21734_v42  ;;  %v21798_v42 = vld [vmem:[%s21955_s12 + $0x2550] ss:$40 sps:$4 sm:$0xff]  }
 0x6f4   : > { %15880 = vmatpush1.bf16.msra.mxu0 %v21729_v26  ;;  %v21803_v26 = vld [vmem:[%s21955_s12 + $0x20a4] ss:$40 sps:$4 sm:$0xff]  }
 0x6f5   : > { %15921 = vmatpush1.bf16.msra.mxu1 %v21732_v27  ;;  %15881 = vmatprep.subr.bf16.mxu0 %v21737_v45  ;;  %v21806_v27 = vld [vmem:[%s21955_s12 + $0x25a4] ss:$40 sps:$4 sm:$0xff]   ;;  %v21801_v45 = vld [vmem:[%s21955_s12 + $0x20a0] ss:$40 sps:$4 sm:$0xff]  }
 0x6f6   : > { %15922 = vmatprep.subr.bf16.mxu1 %v21740_v28  ;;  %v21804_v28 = vld [vmem:[%s21955_s12 + $0x25a0] ss:$40 sps:$4 sm:$0xff]  }
 0x6f8   : > { %15882 = vmatpush1.bf16.msra.mxu0 %v21735_v30  ;;  %v21809_v30 = vld [vmem:[%s21955_s12 + $0x20f4] ss:$40 sps:$4 sm:$0xff]  }
 0x6f9   : > { %15923 = vmatpush1.bf16.msra.mxu1 %v21738_v33  ;;  %15883 = vmatprep.subr.bf16.mxu0 %v21743_v31  ;;  %v21812_v33 = vld [vmem:[%s21955_s12 + $0x25f4] ss:$40 sps:$4 sm:$0xff]   ;;  %v21807_v31 = vld [vmem:[%s21955_s12 + $0x20f0] ss:$40 sps:$4 sm:$0xff]  }
 0x6fa   : > { %15924 = vmatprep.subr.bf16.mxu1 %v21746_v32  ;;  %v21810_v32 = vld [vmem:[%s21955_s12 + $0x25f0] ss:$40 sps:$4 sm:$0xff]  }
 0x6fc   : > { %15884 = vmatpush1.bf16.msra.mxu0 %v21741_v59  ;;  %v21815_v59 = vld [vmem:[%s21955_s12 + $0x2144] ss:$40 sps:$4 sm:$0xff]  }
 0x6fd   : > { %15925 = vmatpush1.bf16.msra.mxu1 %v21744_v34  ;;  %15885 = vmatprep.subr.bf16.mxu0 %v21749_v36  ;;  %v21818_v34 = vld [vmem:[%s21955_s12 + $0x2644] ss:$40 sps:$4 sm:$0xff]   ;;  %v21813_v36 = vld [vmem:[%s21955_s12 + $0x2140] ss:$40 sps:$4 sm:$0xff]  }
 0x6fe   : > { %15926 = vmatprep.subr.bf16.mxu1 %v21752_v39  ;;  %v21816_v39 = vld [vmem:[%s21955_s12 + $0x2640] ss:$40 sps:$4 sm:$0xff]  }
 0x700   : > { %15886 = vmatpush1.bf16.msra.mxu0 %v21747_v40  ;;  %v21821_v40 = vld [vmem:[%s21955_s12 + $0x2194] ss:$40 sps:$4 sm:$0xff]  }
 0x701   : > { %15927 = vmatpush1.bf16.msra.mxu1 %v21750_v41  ;;  %15937 = vmatprep.subr.bf16.mxu0 %v21755_v43  ;;  %v21824_v41 = vld [vmem:[%s21955_s12 + $0x2694] ss:$40 sps:$4 sm:$0xff]   ;;  %v21819_v43 = vld [vmem:[%s21955_s12 + $0x2190] ss:$40 sps:$4 sm:$0xff]  }
 0x702   : > { %15978 = vmatprep.subr.bf16.mxu1 %v21758_v44  ;;  %v21822_v44 = vld [vmem:[%s21955_s12 + $0x2690] ss:$40 sps:$4 sm:$0xff]  }
 0x703   : > { %15888 = vmatmul.mubr.bf16.vlgmr.msra.gmra.mrb[72].mxu0 %v23980_v53  ;;  %v21765_v53 = vld [vmem:[%s21955_s12 + $0x1ec0] ss:$40 sps:$4 sm:$0xff]  }
 0x704   : > { %15929 = vmatmul.mubr.bf16.vlgmr.msra.gmra.mrb[72].mxu1 %v23984_v54  ;;  %15938 = vmatpush1.bf16.msra.mxu0 %v21753_v19  ;;  %v21768_v54 = vld [vmem:[%s21955_s12 + $0x23c0] ss:$40 sps:$4 sm:$0xff]   ;;  %v21827_v19 = vld [vmem:[%s21955_s12 + $0x21e4] ss:$40 sps:$4 sm:$0xff]  }
 0x705   : > { %15979 = vmatpush1.bf16.msra.mxu1 %v21756_v7  ;;  %15939 = vmatprep.subr.bf16.mxu0 %v21761_v4  ;;  %v21830_v7 = vld [vmem:[%s21955_s12 + $0x26e4] ss:$40 sps:$4 sm:$0xff]   ;;  %v21825_v4 = vld [vmem:[%s21955_s12 + $0x21e0] ss:$40 sps:$4 sm:$0xff]  }
 0x706   : > { %15980 = vmatprep.subr.bf16.mxu1 %v21764_v47  ;;  %15969 = vmatprep.mubr.bf16.mxu0 %v23996_v37  ;;  %v21774_v37 = vld [vmem:[%s21955_s12 + $0x2410] ss:$40 sps:$4 sm:$0xff]   ;;  %v21828_v47 = vld [vmem:[%s21955_s12 + $0x26e0] ss:$40 sps:$4 sm:$0xff]  }
 0x707   : > { %16010 = vmatprep.mubr.bf16.mxu1 %v24000_v38  ;;  %v21779_v38 = vld [vmem:[%s21955_s12 + $0x1f64] ss:$40 sps:$4 sm:$0xff]  }
 0x708   : > { %15940 = vmatpush1.bf16.msra.mxu0 %v21759_v5  ;;  %v21833_v5 = vld [vmem:[%s21955_s12 + $0x2234] ss:$40 sps:$4 sm:$0xff]  }
 0x709   : > { %15981 = vmatpush1.bf16.msra.mxu1 %v21762_v62  ;;  %15941 = vmatprep.subr.bf16.mxu0 %v21767_v2  ;;  %v21836_v62 = vld [vmem:[%s21955_s12 + $0x2734] ss:$40 sps:$4 sm:$0xff]   ;;  %v21831_v2 = vld [vmem:[%s21955_s12 + $0x2230] ss:$40 sps:$4 sm:$0xff]  }
 0x70a   : > { %15982 = vmatprep.subr.bf16.mxu1 %v21770_v49  ;;  %v21834_v49 = vld [vmem:[%s21955_s12 + $0x2730] ss:$40 sps:$4 sm:$0xff]  }
 0x70c   : > { %15942 = vmatpush1.bf16.msra.mxu0 %v21765_v53  ;;  %v21839_v53 = vld [vmem:[%s21955_s12 + $0x2284] ss:$40 sps:$4 sm:$0xff]  }
 0x70d   : > { %15983 = vmatpush1.bf16.msra.mxu1 %v21768_v54  ;;  %15943 = vmatprep.subr.bf16.mxu0 %v21773_v50  ;;  %v21842_v54 = vld [vmem:[%s21955_s12 + $0x2784] ss:$40 sps:$4 sm:$0xff]   ;;  %v21837_v50 = vld [vmem:[%s21955_s12 + $0x2280] ss:$40 sps:$4 sm:$0xff]  }
 0x70e   : > { %15984 = vmatprep.subr.bf16.mxu1 %v21776_v11  ;;  %v21840_v11 = vld [vmem:[%s21955_s12 + $0x2780] ss:$40 sps:$4 sm:$0xff]  }
 0x710   : > { %15944 = vmatpush1.bf16.msra.mxu0 %v21771_v57  ;;  %v21845_v57 = vld [vmem:[%s21955_s12 + $0x22d4] ss:$40 sps:$4 sm:$0xff]  }
 0x711   : > { %15985 = vmatpush1.bf16.msra.mxu1 %v21774_v37  ;;  %15945 = vmatprep.subr.bf16.mxu0 %v21779_v38  ;;  %v21848_v37 = vld [vmem:[%s21955_s12 + $0x27d4] ss:$40 sps:$4 sm:$0xff]   ;;  %v21843_v38 = vld [vmem:[%s21955_s12 + $0x22d0] ss:$40 sps:$4 sm:$0xff]  }
 0x712   : > { %15986 = vmatprep.subr.bf16.mxu1 %v21782_v58  ;;  %v21846_v58 = vld [vmem:[%s21955_s12 + $0x27d0] ss:$40 sps:$4 sm:$0xff]  }
 0x714   : > { %15946 = vmatpush1.bf16.msra.mxu0 %v21777_v60 }
 0x715   : > { %15987 = vmatpush1.bf16.msra.mxu1 %v21780_v61  ;;  %15947 = vmatprep.subr.bf16.mxu0 %v21785_v13 }
 0x716   : > { %15988 = vmatprep.subr.bf16.mxu1 %v21788_v63  ;;  %v15643_v25 = vpop.f32.mrb[60].mxu0 }
 0x717   : > { %v15684_v8 = vpop.f32.mrb[60].mxu1  ;;  %v15644_v29 = vadd.f32 %v15643_v25, %v25122_v1  ;;  %v15645_v12 = vpop.f32.mrb[61].mxu0 }
 0x718   : > { %v15686_v21 = vpop.f32.mrb[61].mxu1  ;;  %v15646_v14 = vadd.f32 %v15645_v12, %v25126_v6  ;;  %v15647_v51 = vpop.f32.mrb[62].mxu0  ;;  %15948 = vmatpush1.bf16.msra.mxu0 %v21783_v3 }
 0x719   : > { %v15688_v52 = vpop.f32.mrb[62].mxu1  ;;  %15989 = vmatpush1.bf16.msra.mxu1 %v21786_v24  ;;  %v15685_v35 = vadd.f32 %v15684_v8, %v15644_v29  ;;  %v15648_v16 = vpop.f32.mrb[63].mxu0  ;;  %15949 = vmatprep.subr.bf16.mxu0 %v21791_v15 }
 0x71a   : > { %v15689_v1 = vpop.f32.mrb[63].mxu1  ;;  %15990 = vmatprep.subr.bf16.mxu1 %v21794_v46  ;;  %v15687_v20 = vadd.f32 %v15686_v21, %v15646_v14 }
 0x71b   : > { %v16025_v6 = vadd.f32 %v15685_v35, %v6631_v48 }
 0x71c   : > { %v16026_v23 = vadd.f32 %v15687_v20, %v6632_v55  ;;  %15950 = vmatpush1.bf16.msra.mxu0 %v21789_v22 }
 0x71d   : > { %15991 = vmatpush1.bf16.msra.mxu1 %v21792_v56  ;;  %16035 = vst [vmem:[#allocation2 + $0x30] sm:$0xff] %v16025_v6  ;;  %15951 = vmatprep.subr.bf16.mxu0 %v21797_v17 }
 0x71e   : > { %15992 = vmatprep.subr.bf16.mxu1 %v21800_v18  ;;  %16036 = vst [vmem:[#allocation2 + $0x38] sm:$0xff] %v16026_v23 }
 0x720   : > { %15952 = vmatpush1.bf16.msra.mxu0 %v21795_v0 }
 0x721   : > { %15993 = vmatpush1.bf16.msra.mxu1 %v21798_v42  ;;  %15953 = vmatprep.subr.bf16.mxu0 %v21803_v26 }
 0x722   : > { %15994 = vmatprep.subr.bf16.mxu1 %v21806_v27 }
 0x724   : > { %15954 = vmatpush1.bf16.msra.mxu0 %v21801_v45 }
 0x725   : > { %15995 = vmatpush1.bf16.msra.mxu1 %v21804_v28  ;;  %15955 = vmatprep.subr.bf16.mxu0 %v21809_v30 }
 0x726   : > { %15996 = vmatprep.subr.bf16.mxu1 %v21812_v33 }
 0x728   : > { %15956 = vmatpush1.bf16.msra.mxu0 %v21807_v31 }
 0x729   : > { %15997 = vmatpush1.bf16.msra.mxu1 %v21810_v32  ;;  %15957 = vmatprep.subr.bf16.mxu0 %v21815_v59  ;;  %v6633_v32 = vld [vmem:[#allocation2 + $0x40] sm:$0xff] }
 0x72a   : > { %15998 = vmatprep.subr.bf16.mxu1 %v21818_v34 }
 0x72c   : > { %15958 = vmatpush1.bf16.msra.mxu0 %v21813_v36 }
 0x72d   : > { %15999 = vmatpush1.bf16.msra.mxu1 %v21816_v39  ;;  %15959 = vmatprep.subr.bf16.mxu0 %v21821_v40  ;;  %v6634_v40 = vld [vmem:[#allocation2 + $0x48] sm:$0xff] }
 0x72e   : > { %16000 = vmatprep.subr.bf16.mxu1 %v21824_v41 }
 0x730   : > { %15960 = vmatpush1.bf16.msra.mxu0 %v21819_v43 }
 0x731   : > { %16001 = vmatpush1.bf16.msra.mxu1 %v21822_v44  ;;  %15961 = vmatprep.subr.bf16.mxu0 %v21827_v19 }
 0x732   : > { %16002 = vmatprep.subr.bf16.mxu1 %v21830_v7 }
 0x734   : > { %15962 = vmatpush1.bf16.msra.mxu0 %v21825_v4 }
 0x735   : > { %16003 = vmatpush1.bf16.msra.mxu1 %v21828_v47  ;;  %15963 = vmatprep.subr.bf16.mxu0 %v21833_v5 }
 0x736   : > { %16004 = vmatprep.subr.bf16.mxu1 %v21836_v62 }
 0x738   : > { %15964 = vmatpush1.bf16.msra.mxu0 %v21831_v2 }
 0x739   : > { %16005 = vmatpush1.bf16.msra.mxu1 %v21834_v49  ;;  %15965 = vmatprep.subr.bf16.mxu0 %v21839_v53 }
 0x73a   : > { %16006 = vmatprep.subr.bf16.mxu1 %v21842_v54 }
 0x73c   : > { %15966 = vmatpush1.bf16.msra.mxu0 %v21837_v50 }
 0x73d   : > { %16007 = vmatpush1.bf16.msra.mxu1 %v21840_v11  ;;  %15967 = vmatprep.subr.bf16.mxu0 %v21845_v57 }
 0x73e   : > { %16008 = vmatprep.subr.bf16.mxu1 %v21848_v37 }
 0x740   : > { %15968 = vmatpush1.bf16.msra.mxu0 %v21843_v38 }
 0x741   : > { %16009 = vmatpush1.bf16.msra.mxu1 %v21846_v58 }
 0x743   : > { %15970 = vmatmul.mubr.bf16.vlgmr.msra.gmra.mrb[76].mxu0 %v24068_v9 }
 0x744   : > { %16011 = vmatmul.mubr.bf16.vlgmr.msra.gmra.mrb[76].mxu1 %v24072_v10 }
 0x756   : > { %v15725_v60 = vpop.f32.mrb[64].mxu0 }
 0x757   : > { %v15766_v61 = vpop.f32.mrb[64].mxu1  ;;  %v15727_v63 = vpop.f32.mrb[65].mxu0 }
 0x758   : > { %v15767_v13 = vadd.f32 %v15766_v61, %v15725_v60  ;;  %v15768_v3 = vpop.f32.mrb[65].mxu1  ;;  %v15729_v15 = vpop.f32.mrb[66].mxu0 }
 0x759   : > { %v15769_v24 = vadd.f32 %v15768_v3, %v15727_v63  ;;  %v15770_v46 = vpop.f32.mrb[66].mxu1  ;;  %v15730_v25 = vpop.f32.mrb[67].mxu0 }
 0x75a   : > { %v15771_v8 = vpop.f32.mrb[67].mxu1 }
 0x796   : > { %v15807_v29 = vpop.f32.mrb[68].mxu0 }
 0x797   : > { %v15848_v12 = vpop.f32.mrb[68].mxu1  ;;  %v15808_v21 = vadd.f32 %v15807_v29, %v15767_v13  ;;  %v15809_v22 = vpop.f32.mrb[69].mxu0 }
 0x798   : > { %v15850_v48 = vpop.f32.mrb[69].mxu1  ;;  %v15810_v14 = vadd.f32 %v15809_v22, %v15769_v24  ;;  %v15811_v55 = vpop.f32.mrb[70].mxu0 }
 0x799   : > { %v15852_v9 = vpop.f32.mrb[70].mxu1  ;;  %v15849_v51 = vadd.f32 %v15848_v12, %v15808_v21  ;;  %v15812_v10 = vpop.f32.mrb[71].mxu0 }
 0x79a   : > { %v15853_v52 = vpop.f32.mrb[71].mxu1  ;;  %v15851_v56 = vadd.f32 %v15850_v48, %v15810_v14 }
 0x7d6   : > { %v15889_v35 = vpop.f32.mrb[72].mxu0 }
 0x7d7   : > { %v15930_v16 = vpop.f32.mrb[72].mxu1  ;;  %v15890_v1 = vadd.f32 %v15889_v35, %v15849_v51  ;;  %v15891_v17 = vpop.f32.mrb[73].mxu0 }
 0x7d8   : > { %v15932_v18 = vpop.f32.mrb[73].mxu1  ;;  %v15892_v20 = vadd.f32 %v15891_v17, %v15851_v56  ;;  %v15893_v6 = vpop.f32.mrb[74].mxu0 }
 0x7d9   : > { %v15934_v23 = vpop.f32.mrb[74].mxu1  ;;  %v15931_v0 = vadd.f32 %v15930_v16, %v15890_v1  ;;  %v15894_v42 = vpop.f32.mrb[75].mxu0 }
 0x7da   : > { %v15935_v26 = vpop.f32.mrb[75].mxu1  ;;  %v15933_v27 = vadd.f32 %v15932_v18, %v15892_v20 }
 0x816   : > { %v15971_v45 = vpop.f32.mrb[76].mxu0 }
 0x817   : > { %v16012_v28 = vpop.f32.mrb[76].mxu1  ;;  %v15972_v30 = vadd.f32 %v15971_v45, %v15931_v0  ;;  %v15973_v33 = vpop.f32.mrb[77].mxu0 }
 0x818   : > { %v16014_v31 = vpop.f32.mrb[77].mxu1  ;;  %v15974_v59 = vadd.f32 %v15973_v33, %v15933_v27  ;;  %v15975_v34 = vpop.f32.mrb[78].mxu0  ;;  %16043 = sbr.rel (%p19683_p8) target bundleno = 3355 (0xd1b), region = 130 }
 0x819   : > { %v16016_v36 = vpop.f32.mrb[78].mxu1  ;;  %v16013_v39 = vadd.f32 %v16012_v28, %v15972_v30  ;;  %v15976_v41 = vpop.f32.mrb[79].mxu0 }
 0x81a   : > { %v16017_v43 = vpop.f32.mrb[79].mxu1  ;;  %v16015_v44 = vadd.f32 %v16014_v31, %v15974_v59 }
 0x81b   : > { %v16027_v19 = vadd.f32 %v16013_v39, %v6633_v32 }
 0x81c   : > { %v16028_v7 = vadd.f32 %v16015_v44, %v6634_v40 }
 0x81d   : > { %16037 = vst [vmem:[#allocation2 + $0x40] sm:$0xff] %v16027_v19 }
 0x81e   : > { %16039 = vst.msk [vmem:[#allocation2 + $0x48] sm:$0xff] %vm16038_vm1, %v16028_v7 }
 0x81f   : > { %21870 = dma.done.wait [#allocation5], 96000 }
 0x820   : > { %21871 = vsyncadd [#allocation5], 4294871296 }
 0x821   : > { %21872 = dma.done.wait [#allocation5 + $0x1], 9600 }
 0x822   : > { %21873 = vsyncadd [#allocation5 + $0x1], 4294957696  ;;  %v16083_v4 = vld [vmem:[#allocation3 + $0x8] sm:$0xff]  ;;  %v16082_v5 = vld [vmem:[#allocation3] sm:$0xff]  ;;  %vm18219_vm2 = vcmask 261120  }
 0x823   : > { %v16243_v47 = vld [vmem:[#allocation3 + $0x508] sm:$0xff]  ;;  %16889 = vmatprep.subr.bf16.mxu1 %v16083_v4  ;;  %v16242_v62 = vld [vmem:[#allocation3 + $0x500] sm:$0xff]  ;;  %v16093_v2 = vld [vmem:[#allocation3 + $0x58] sm:$0xff] }
 0x824   : > { %16930 = vmatprep.subr.bf16.mxu0 %v16243_v47  ;;  %v16253_v49 = vld [vmem:[#allocation3 + $0x558] sm:$0xff]  ;;  %16890 = vmatpush1.bf16.msra.mxu1 %v16082_v5  ;;  %v16092_v53 = vld [vmem:[#allocation3 + $0x50] sm:$0xff]  ;;  %v16103_v50 = vld [vmem:[#allocation3 + $0xa8] sm:$0xff] }
 0x825   : > { %16931 = vmatpush1.bf16.msra.mxu0 %v16242_v62  ;;  %16891 = vmatprep.subr.bf16.mxu1 %v16093_v2  ;;  %v16252_v54 = vld [vmem:[#allocation3 + $0x550] sm:$0xff]  ;;  %v16263_v11 = vld [vmem:[#allocation3 + $0x5a8] sm:$0xff]  ;;  %v16102_v57 = vld [vmem:[#allocation3 + $0xa0] sm:$0xff] }
 0x826   : > { %16932 = vmatprep.subr.bf16.mxu0 %v16253_v49  ;;  %v16262_v37 = vld [vmem:[#allocation3 + $0x5a0] sm:$0xff]  ;;  %v16113_v38 = vld [vmem:[#allocation3 + $0xf8] sm:$0xff]  ;;  %v16112_v60 = vld [vmem:[#allocation3 + $0xf0] sm:$0xff] }
 0x827   : > { %v16273_v58 = vld [vmem:[#allocation3 + $0x5f8] sm:$0xff]  ;;  %v16272_v61 = vld [vmem:[#allocation3 + $0x5f0] sm:$0xff]  ;;  %v16123_v13 = vld [vmem:[#allocation3 + $0x148] sm:$0xff] }
 0x828   : > { %16892 = vmatpush1.bf16.msra.mxu1 %v16092_v53  ;;  %v16283_v63 = vld [vmem:[#allocation3 + $0x648] sm:$0xff]  ;;  %v16122_v3 = vld [vmem:[#allocation3 + $0x140] sm:$0xff]  ;;  %v16133_v15 = vld [vmem:[#allocation3 + $0x198] sm:$0xff] }
 0x829   : > { %16933 = vmatpush1.bf16.msra.mxu0 %v16252_v54  ;;  %16893 = vmatprep.subr.bf16.mxu1 %v16103_v50  ;;  %v16282_v24 = vld [vmem:[#allocation3 + $0x640] sm:$0xff]  ;;  %v16293_v46 = vld [vmem:[#allocation3 + $0x698] sm:$0xff]  ;;  %v16132_v25 = vld [vmem:[#allocation3 + $0x190] sm:$0xff] }
 0x82a   : > { %16934 = vmatprep.subr.bf16.mxu0 %v16263_v11  ;;  %v16292_v8 = vld [vmem:[#allocation3 + $0x690] sm:$0xff]  ;;  %v16143_v29 = vld [vmem:[#allocation3 + $0x1e8] sm:$0xff]  ;;  %v16053_v21 = vld [vmem:[#allocation2 + $0x8] sm:$0xff] }
 0x82b   : > { %v16303_v12 = vld [vmem:[#allocation3 + $0x6e8] sm:$0xff]  ;;  %v16063_v48 = vmax.f32 %v16053_v21, 0.0  ;;  %v16142_v55 = vld [vmem:[#allocation3 + $0x1e0] sm:$0xff]  ;;  %v16153_v51 = vld [vmem:[#allocation3 + $0x238] sm:$0xff] }
 0x82c   : > { %16894 = vmatpush1.bf16.msra.mxu1 %v16102_v57  ;;  %v16055_v22 = vld [vmem:[#allocation2 + $0x18] sm:$0xff]  ;;  %v16302_v9 = vld [vmem:[#allocation3 + $0x6e0] sm:$0xff]  ;;  %v16313_v10 = vld [vmem:[#allocation3 + $0x738] sm:$0xff] }
 0x82d   : > { %16935 = vmatpush1.bf16.msra.mxu0 %v16262_v37  ;;  %16895 = vmatprep.subr.bf16.mxu1 %v16113_v38  ;;  %v16065_v14 = vmax.f32 %v16055_v22, 0.0  ;;  %v25236_v52 = vpack.c.bf16 %v16063_v48, %v16063_v48  ;;  %v16152_v35 = vld [vmem:[#allocation3 + $0x230] sm:$0xff]  ;;  %v16163_v1 = vld [vmem:[#allocation3 + $0x288] sm:$0xff]  ;;  %v16162_v18 = vld [vmem:[#allocation3 + $0x280] sm:$0xff] }
 0x82e   : > { %16936 = vmatprep.subr.bf16.mxu0 %v16273_v58  ;;  %v16312_v16 = vld [vmem:[#allocation3 + $0x730] sm:$0xff]  ;;  %v16323_v17 = vld [vmem:[#allocation3 + $0x788] sm:$0xff]  ;;  %v16322_v20 = vld [vmem:[#allocation3 + $0x780] sm:$0xff] }
 0x82f   : > { %v25238_v56 = vpack.c.bf16 %v16065_v14, %v16065_v14  ;;  %16921 = vmatprep.mubr.bf16.mxu1 %v25236_v52  ;;  %v16173_v6 = vld [vmem:[#allocation3 + $0x2d8] sm:$0xff]  ;;  %v16172_v0 = vld [vmem:[#allocation3 + $0x2d0] sm:$0xff]  ;;  %v16183_v26 = vld [vmem:[#allocation3 + $0x328] sm:$0xff] }
 0x830   : > { %16896 = vmatpush1.bf16.msra.mxu1 %v16112_v60  ;;  %v16333_v23 = vld [vmem:[#allocation3 + $0x7d8] sm:$0xff]  ;;  %v16332_v42 = vld [vmem:[#allocation3 + $0x7d0] sm:$0xff]  ;;  %v16343_v27 = vld [vmem:[#allocation3 + $0x828] sm:$0xff] }
 0x831   : > { %16937 = vmatpush1.bf16.msra.mxu0 %v16272_v61  ;;  %16897 = vmatprep.subr.bf16.mxu1 %v16123_v13  ;;  %v16182_v45 = vld [vmem:[#allocation3 + $0x320] sm:$0xff]  ;;  %v16193_v30 = vld [vmem:[#allocation3 + $0x378] sm:$0xff]  ;;  %v16192_v31 = vld [vmem:[#allocation3 + $0x370] sm:$0xff] }
 0x832   : > { %16938 = vmatprep.subr.bf16.mxu0 %v16283_v63  ;;  %16962 = vmatprep.mubr.bf16.mxu0 %v25238_v56  ;;  %v16342_v28 = vld [vmem:[#allocation3 + $0x820] sm:$0xff]  ;;  %v16353_v33 = vld [vmem:[#allocation3 + $0x878] sm:$0xff]  ;;  %v16352_v32 = vld [vmem:[#allocation3 + $0x870] sm:$0xff] }
 0x833   : > { %v16203_v59 = vld [vmem:[#allocation3 + $0x3c8] sm:$0xff]  ;;  %v16202_v36 = vld [vmem:[#allocation3 + $0x3c0] sm:$0xff]  ;;  %v16213_v40 = vld [vmem:[#allocation3 + $0x418] sm:$0xff] }
 0x834   : > { %16898 = vmatpush1.bf16.msra.mxu1 %v16122_v3  ;;  %v16363_v34 = vld [vmem:[#allocation3 + $0x8c8] sm:$0xff]  ;;  %v16362_v39 = vld [vmem:[#allocation3 + $0x8c0] sm:$0xff]  ;;  %v16373_v41 = vld [vmem:[#allocation3 + $0x918] sm:$0xff] }
 0x835   : > { %16939 = vmatpush1.bf16.msra.mxu0 %v16282_v24  ;;  %16899 = vmatprep.subr.bf16.mxu1 %v16133_v15  ;;  %v16212_v43 = vld [vmem:[#allocation3 + $0x410] sm:$0xff]  ;;  %v16223_v19 = vld [vmem:[#allocation3 + $0x468] sm:$0xff]  ;;  %v16054_v47 = vld [vmem:[#allocation2 + $0x10] sm:$0xff] }
 0x836   : > { %16940 = vmatprep.subr.bf16.mxu0 %v16293_v46  ;;  %v16372_v44 = vld [vmem:[#allocation3 + $0x910] sm:$0xff]  ;;  %v16383_v7 = vld [vmem:[#allocation3 + $0x968] sm:$0xff]  ;;  %v16222_v5 = vld [vmem:[#allocation3 + $0x460] sm:$0xff]  ;;  %v16064_v54 = vmax.f32 %v16054_v47, 0.0 }
 0x837   : > { %v16052_v4 = vld [vmem:[#allocation2] sm:$0xff]  ;;  %v16382_v62 = vld [vmem:[#allocation3 + $0x960] sm:$0xff]  ;;  %v16233_v2 = vld [vmem:[#allocation3 + $0x4b8] sm:$0xff] }
 0x838   : > { %16900 = vmatpush1.bf16.msra.mxu1 %v16132_v25  ;;  %v16393_v49 = vld [vmem:[#allocation3 + $0x9b8] sm:$0xff]  ;;  %v16062_v53 = vmax.f32 %v16052_v4, 0.0  ;;  %v16232_v11 = vld [vmem:[#allocation3 + $0x4b0] sm:$0xff]  ;;  %v16403_v37 = vld [vmem:[#allocation3 + $0xa08] sm:$0xff]  ;;  %v25244_v61 = vpack.c.bf16 %v16064_v54, %v16064_v54 }
 0x839   : > { %16941 = vmatpush1.bf16.msra.mxu0 %v16292_v8  ;;  %16901 = vmatprep.subr.bf16.mxu1 %v16143_v29  ;;  %v16057_v50 = vld [vmem:[#allocation2 + $0x28] sm:$0xff]  ;;  %v16392_v57 = vld [vmem:[#allocation3 + $0x9b0] sm:$0xff]  ;;  %v16402_v13 = vld [vmem:[#allocation3 + $0xa00] sm:$0xff] }
 0x83a   : > { %16942 = vmatprep.subr.bf16.mxu0 %v16303_v12  ;;  %v16085_v38 = vld [vmem:[#allocation3 + $0x18] sm:$0xff]  ;;  %v16067_v58 = vmax.f32 %v16057_v50, 0.0  ;;  %v25242_v60 = vpack.c.bf16 %v16062_v53, %v16062_v53  ;;  %v16084_v63 = vld [vmem:[#allocation3 + $0x10] sm:$0xff]  ;;  %v16095_v24 = vld [vmem:[#allocation3 + $0x68] sm:$0xff] }
 0x83b   : > { %v16413_v3 = vld [vmem:[#allocation3 + $0xa58] sm:$0xff]  ;;  %v16412_v46 = vld [vmem:[#allocation3 + $0xa50] sm:$0xff]  ;;  %v16094_v25 = vld [vmem:[#allocation3 + $0x60] sm:$0xff] }
 0x83c   : > { %16902 = vmatpush1.bf16.msra.mxu1 %v16142_v55  ;;  %v25246_v15 = vpack.c.bf16 %v16067_v58, %v16067_v58  ;;  %v16423_v8 = vld [vmem:[#allocation3 + $0xaa8] sm:$0xff]  ;;  %v16105_v29 = vld [vmem:[#allocation3 + $0xb8] sm:$0xff]  ;;  %v16422_v12 = vld [vmem:[#allocation3 + $0xaa0] sm:$0xff] }
 0x83d   : > { %16943 = vmatpush1.bf16.msra.mxu0 %v16302_v9  ;;  %16903 = vmatprep.subr.bf16.mxu1 %v16153_v51  ;;  %v16104_v21 = vld [vmem:[#allocation3 + $0xb0] sm:$0xff]  ;;  %v16433_v22 = vld [vmem:[#allocation3 + $0xaf8] sm:$0xff]  ;;  %v16115_v48 = vld [vmem:[#allocation3 + $0x108] sm:$0xff] }
 0x83e   : > { %16944 = vmatprep.subr.bf16.mxu0 %v16313_v10  ;;  %v16432_v14 = vld [vmem:[#allocation3 + $0xaf0] sm:$0xff]  ;;  %v16114_v55 = vld [vmem:[#allocation3 + $0x100] sm:$0xff]  ;;  %v16443_v9 = vld [vmem:[#allocation3 + $0xb48] sm:$0xff] }
 0x83f   : > { %v16125_v51 = vld [vmem:[#allocation3 + $0x158] sm:$0xff]  ;;  %v16442_v10 = vld [vmem:[#allocation3 + $0xb40] sm:$0xff]  ;;  %v16523_v47 = vld [vmem:[#allocation3 + $0xdc8] sm:$0xff] }
 0x840   : > { %16904 = vmatpush1.bf16.msra.mxu1 %v16152_v35  ;;  %v16124_v35 = vld [vmem:[#allocation3 + $0x150] sm:$0xff]  ;;  %v16194_v4 = vld [vmem:[#allocation3 + $0x380] sm:$0xff]  ;;  %v16215_v53 = vld [vmem:[#allocation3 + $0x428] sm:$0xff] }
 0x841   : > { %16945 = vmatpush1.bf16.msra.mxu0 %v16312_v16  ;;  %16905 = vmatprep.subr.bf16.mxu1 %v16163_v1  ;;  %v16453_v16 = vld [vmem:[#allocation3 + $0xb98] sm:$0xff]  ;;  %v16135_v1 = vld [vmem:[#allocation3 + $0x1a8] sm:$0xff]  ;;  %v16532_v54 = vld [vmem:[#allocation3 + $0xe10] sm:$0xff] }
 0x842   : > { %16946 = vmatprep.subr.bf16.mxu0 %v16323_v17  ;;  %v16452_v17 = vld [vmem:[#allocation3 + $0xb90] sm:$0xff]  ;;  %v16214_v50 = vld [vmem:[#allocation3 + $0x420] sm:$0xff] }
 0x843   : > { %v16224_v58 = vld [vmem:[#allocation3 + $0x470] sm:$0xff] }
 0x844   : > { %16906 = vmatpush1.bf16.msra.mxu1 %v16162_v18  ;;  %v16134_v18 = vld [vmem:[#allocation3 + $0x1a0] sm:$0xff] }
 0x845   : > { %16947 = vmatpush1.bf16.msra.mxu0 %v16322_v20  ;;  %16907 = vmatprep.subr.bf16.mxu1 %v16173_v6  ;;  %v16463_v20 = vld [vmem:[#allocation3 + $0xbe8] sm:$0xff]  ;;  %v16145_v6 = vld [vmem:[#allocation3 + $0x1f8] sm:$0xff] }
 0x846   : > { %16948 = vmatprep.subr.bf16.mxu0 %v16333_v23  ;;  %v16462_v23 = vld [vmem:[#allocation3 + $0xbe0] sm:$0xff] }
 0x848   : > { %16908 = vmatpush1.bf16.msra.mxu1 %v16172_v0  ;;  %v16144_v0 = vld [vmem:[#allocation3 + $0x1f0] sm:$0xff] }
 0x849   : > { %16949 = vmatpush1.bf16.msra.mxu0 %v16332_v42  ;;  %16909 = vmatprep.subr.bf16.mxu1 %v16183_v26  ;;  %v16473_v42 = vld [vmem:[#allocation3 + $0xc38] sm:$0xff]  ;;  %v16155_v26 = vld [vmem:[#allocation3 + $0x248] sm:$0xff] }
 0x84a   : > { %16950 = vmatprep.subr.bf16.mxu0 %v16343_v27  ;;  %v16472_v27 = vld [vmem:[#allocation3 + $0xc30] sm:$0xff] }
 0x84c   : > { %16910 = vmatpush1.bf16.msra.mxu1 %v16182_v45  ;;  %v16154_v45 = vld [vmem:[#allocation3 + $0x240] sm:$0xff] }
 0x84d   : > { %16951 = vmatpush1.bf16.msra.mxu0 %v16342_v28  ;;  %16911 = vmatprep.subr.bf16.mxu1 %v16193_v30  ;;  %v16483_v28 = vld [vmem:[#allocation3 + $0xc88] sm:$0xff]  ;;  %v16165_v30 = vld [vmem:[#allocation3 + $0x298] sm:$0xff] }
 0x84e   : > { %16952 = vmatprep.subr.bf16.mxu0 %v16353_v33  ;;  %v16482_v33 = vld [vmem:[#allocation3 + $0xc80] sm:$0xff] }
 0x850   : > { %16912 = vmatpush1.bf16.msra.mxu1 %v16192_v31  ;;  %v16164_v31 = vld [vmem:[#allocation3 + $0x290] sm:$0xff] }
 0x851   : > { %16953 = vmatpush1.bf16.msra.mxu0 %v16352_v32  ;;  %16913 = vmatprep.subr.bf16.mxu1 %v16203_v59  ;;  %v16493_v32 = vld [vmem:[#allocation3 + $0xcd8] sm:$0xff]  ;;  %v16175_v59 = vld [vmem:[#allocation3 + $0x2e8] sm:$0xff] }
 0x852   : > { %16954 = vmatprep.subr.bf16.mxu0 %v16363_v34  ;;  %v16492_v34 = vld [vmem:[#allocation3 + $0xcd0] sm:$0xff] }
 0x854   : > { %16914 = vmatpush1.bf16.msra.mxu1 %v16202_v36  ;;  %v16174_v36 = vld [vmem:[#allocation3 + $0x2e0] sm:$0xff] }
 0x855   : > { %16955 = vmatpush1.bf16.msra.mxu0 %v16362_v39  ;;  %16915 = vmatprep.subr.bf16.mxu1 %v16213_v40  ;;  %v16503_v39 = vld [vmem:[#allocation3 + $0xd28] sm:$0xff]  ;;  %v16185_v40 = vld [vmem:[#allocation3 + $0x338] sm:$0xff] }
 0x856   : > { %16956 = vmatprep.subr.bf16.mxu0 %v16373_v41  ;;  %v16502_v41 = vld [vmem:[#allocation3 + $0xd20] sm:$0xff] }
 0x858   : > { %16916 = vmatpush1.bf16.msra.mxu1 %v16212_v43  ;;  %v16184_v43 = vld [vmem:[#allocation3 + $0x330] sm:$0xff] }
 0x859   : > { %16957 = vmatpush1.bf16.msra.mxu0 %v16372_v44  ;;  %16917 = vmatprep.subr.bf16.mxu1 %v16223_v19  ;;  %v16513_v44 = vld [vmem:[#allocation3 + $0xd78] sm:$0xff]  ;;  %v16195_v19 = vld [vmem:[#allocation3 + $0x388] sm:$0xff] }
 0x85a   : > { %16958 = vmatprep.subr.bf16.mxu0 %v16383_v7  ;;  %v16512_v7 = vld [vmem:[#allocation3 + $0xd70] sm:$0xff] }
 0x85c   : > { %16918 = vmatpush1.bf16.msra.mxu1 %v16222_v5  ;;  %v16205_v5 = vld [vmem:[#allocation3 + $0x3d8] sm:$0xff] }
 0x85d   : > { %16959 = vmatpush1.bf16.msra.mxu0 %v16382_v62  ;;  %16919 = vmatprep.subr.bf16.mxu1 %v16233_v2  ;;  %v16522_v62 = vld [vmem:[#allocation3 + $0xdc0] sm:$0xff]  ;;  %v16204_v2 = vld [vmem:[#allocation3 + $0x3d0] sm:$0xff] }
 0x85e   : > { %16960 = vmatprep.subr.bf16.mxu0 %v16393_v49  ;;  %v16533_v49 = vld [vmem:[#allocation3 + $0xe18] sm:$0xff] }
 0x860   : > { %16920 = vmatpush1.bf16.msra.mxu1 %v16232_v11  ;;  %v16543_v11 = vld [vmem:[#allocation3 + $0xe68] sm:$0xff] }
 0x861   : > { %16961 = vmatpush1.bf16.msra.mxu0 %v16392_v57  ;;  %17094 = vmatprep.subr.bf16.mxu1 %v16085_v38  ;;  %v16225_v57 = vld [vmem:[#allocation3 + $0x478] sm:$0xff]  ;;  %v16542_v38 = vld [vmem:[#allocation3 + $0xe60] sm:$0xff] }
 0x862   : > { %16971 = vmatprep.subr.bf16.mxu0 %v16403_v37  ;;  %v16056_v37 = vld [vmem:[#allocation2 + $0x20] sm:$0xff] }
 0x863   : > { %16922 = vmatmul.mubr.bf16.vlgmr.msra.gmra.mrb[0].mxu1 %v25242_v60 }
 0x864   : > { %16963 = vmatmul.mubr.bf16.vlgmr.msra.gmra.mrb[0].mxu0 %v25244_v61  ;;  %17095 = vmatpush1.bf16.msra.mxu1 %v16084_v63  ;;  %v16235_v63 = vld [vmem:[#allocation3 + $0x4c8] sm:$0xff] }
 0x865   : > { %16972 = vmatpush1.bf16.msra.mxu0 %v16402_v13  ;;  %17096 = vmatprep.subr.bf16.mxu1 %v16095_v24  ;;  %v16553_v13 = vld [vmem:[#allocation3 + $0xeb8] sm:$0xff]  ;;  %v16059_v24 = vld [vmem:[#allocation2 + $0x38] sm:$0xff] }
 0x866   : > { %16973 = vmatprep.subr.bf16.mxu0 %v16413_v3  ;;  %17003 = vmatprep.mubr.bf16.mxu0 %v25246_v15  ;;  %v16066_v3 = vmax.f32 %v16056_v37, 0.0  ;;  %v16354_v37 = vld [vmem:[#allocation3 + $0x880] sm:$0xff] }
 0x867   : > { %17126 = vmatprep.mubr.bf16.mxu1 %v25236_v52 }
 0x868   : > { %17097 = vmatpush1.bf16.msra.mxu1 %v16094_v25  ;;  %v16234_v25 = vld [vmem:[#allocation3 + $0x4c0] sm:$0xff] }
 0x869   : > { %16974 = vmatpush1.bf16.msra.mxu0 %v16412_v46  ;;  %17098 = vmatprep.subr.bf16.mxu1 %v16105_v29  ;;  %v16552_v46 = vld [vmem:[#allocation3 + $0xeb0] sm:$0xff]  ;;  %v16245_v29 = vld [vmem:[#allocation3 + $0x518] sm:$0xff] }
 0x86a   : > { %16975 = vmatprep.subr.bf16.mxu0 %v16423_v8  ;;  %v16563_v8 = vld [vmem:[#allocation3 + $0xf08] sm:$0xff] }
 0x86c   : > { %17099 = vmatpush1.bf16.msra.mxu1 %v16104_v21  ;;  %v25252_v21 = vpack.c.bf16 %v16066_v3, %v16066_v3  ;;  %v16693_v3 = vld [vmem:[#allocation3 + $0x1318] sm:$0xff] }
 0x86d   : > { %16976 = vmatpush1.bf16.msra.mxu0 %v16422_v12  ;;  %17100 = vmatprep.subr.bf16.mxu1 %v16115_v48  ;;  %v16069_v12 = vmax.f32 %v16059_v24, 0.0  ;;  %v16244_v48 = vld [vmem:[#allocation3 + $0x510] sm:$0xff]  ;;  %v16375_v24 = vld [vmem:[#allocation3 + $0x928] sm:$0xff] }
 0x86e   : > { %16977 = vmatprep.subr.bf16.mxu0 %v16433_v22  ;;  %v16562_v22 = vld [vmem:[#allocation3 + $0xf00] sm:$0xff] }
 0x870   : > { %17101 = vmatpush1.bf16.msra.mxu1 %v16114_v55  ;;  %v16255_v55 = vld [vmem:[#allocation3 + $0x568] sm:$0xff] }
 0x871   : > { %16978 = vmatpush1.bf16.msra.mxu0 %v16432_v14  ;;  %17102 = vmatprep.subr.bf16.mxu1 %v16125_v51  ;;  %v16573_v14 = vld [vmem:[#allocation3 + $0xf58] sm:$0xff]  ;;  %v16572_v51 = vld [vmem:[#allocation3 + $0xf50] sm:$0xff] }
 0x872   : > { %16979 = vmatprep.subr.bf16.mxu0 %v16443_v9  ;;  %v25254_v9 = vpack.c.bf16 %v16069_v12, %v16069_v12  ;;  %v16058_v12 = vld [vmem:[#allocation2 + $0x30] sm:$0xff] }
 0x874   : > { %17103 = vmatpush1.bf16.msra.mxu1 %v16124_v35  ;;  %v16583_v35 = vld [vmem:[#allocation3 + $0xfa8] sm:$0xff] }
 0x875   : > { %16980 = vmatpush1.bf16.msra.mxu0 %v16442_v10  ;;  %17104 = vmatprep.subr.bf16.mxu1 %v16135_v1  ;;  %v16254_v10 = vld [vmem:[#allocation3 + $0x560] sm:$0xff] }
 0x876   : > { %16981 = vmatprep.subr.bf16.mxu0 %v16453_v16  ;;  %v16265_v16 = vld [vmem:[#allocation3 + $0x5b8] sm:$0xff]  ;;  %v16582_v1 = vld [vmem:[#allocation3 + $0xfa0] sm:$0xff] }
 0x878   : > { %17105 = vmatpush1.bf16.msra.mxu1 %v16134_v18  ;;  %v16593_v18 = vld [vmem:[#allocation3 + $0xff8] sm:$0xff] }
 0x879   : > { %16982 = vmatpush1.bf16.msra.mxu0 %v16452_v17  ;;  %17106 = vmatprep.subr.bf16.mxu1 %v16145_v6  ;;  %v16264_v17 = vld [vmem:[#allocation3 + $0x5b0] sm:$0xff] }
 0x87a   : > { %16983 = vmatprep.subr.bf16.mxu0 %v16463_v20  ;;  %v16275_v20 = vld [vmem:[#allocation3 + $0x608] sm:$0xff]  ;;  %v16592_v6 = vld [vmem:[#allocation3 + $0xff0] sm:$0xff] }
 0x87c   : > { %17107 = vmatpush1.bf16.msra.mxu1 %v16144_v0  ;;  %v16603_v0 = vld [vmem:[#allocation3 + $0x1048] sm:$0xff] }
 0x87d   : > { %16984 = vmatpush1.bf16.msra.mxu0 %v16462_v23  ;;  %17108 = vmatprep.subr.bf16.mxu1 %v16155_v26  ;;  %v16274_v23 = vld [vmem:[#allocation3 + $0x600] sm:$0xff] }
 0x87e   : > { %16985 = vmatprep.subr.bf16.mxu0 %v16473_v42  ;;  %v16285_v42 = vld [vmem:[#allocation3 + $0x658] sm:$0xff]  ;;  %v16602_v26 = vld [vmem:[#allocation3 + $0x1040] sm:$0xff] }
 0x880   : > { %17109 = vmatpush1.bf16.msra.mxu1 %v16154_v45  ;;  %v16613_v45 = vld [vmem:[#allocation3 + $0x1098] sm:$0xff] }
 0x881   : > { %16986 = vmatpush1.bf16.msra.mxu0 %v16472_v27  ;;  %17110 = vmatprep.subr.bf16.mxu1 %v16165_v30  ;;  %v16284_v27 = vld [vmem:[#allocation3 + $0x650] sm:$0xff] }
 0x882   : > { %16987 = vmatprep.subr.bf16.mxu0 %v16483_v28  ;;  %v16295_v28 = vld [vmem:[#allocation3 + $0x6a8] sm:$0xff]  ;;  %v16612_v30 = vld [vmem:[#allocation3 + $0x1090] sm:$0xff] }
 0x884   : > { %17111 = vmatpush1.bf16.msra.mxu1 %v16164_v31  ;;  %v16623_v31 = vld [vmem:[#allocation3 + $0x10e8] sm:$0xff] }
 0x885   : > { %16988 = vmatpush1.bf16.msra.mxu0 %v16482_v33  ;;  %17112 = vmatprep.subr.bf16.mxu1 %v16175_v59  ;;  %v16294_v33 = vld [vmem:[#allocation3 + $0x6a0] sm:$0xff] }
 0x886   : > { %16989 = vmatprep.subr.bf16.mxu0 %v16493_v32  ;;  %v16305_v32 = vld [vmem:[#allocation3 + $0x6f8] sm:$0xff]  ;;  %v16622_v59 = vld [vmem:[#allocation3 + $0x10e0] sm:$0xff] }
 0x888   : > { %17113 = vmatpush1.bf16.msra.mxu1 %v16174_v36  ;;  %v16633_v36 = vld [vmem:[#allocation3 + $0x1138] sm:$0xff] }
 0x889   : > { %16990 = vmatpush1.bf16.msra.mxu0 %v16492_v34  ;;  %17114 = vmatprep.subr.bf16.mxu1 %v16185_v40  ;;  %v16304_v34 = vld [vmem:[#allocation3 + $0x6f0] sm:$0xff] }
 0x88a   : > { %16991 = vmatprep.subr.bf16.mxu0 %v16503_v39  ;;  %v16315_v39 = vld [vmem:[#allocation3 + $0x748] sm:$0xff]  ;;  %v16632_v40 = vld [vmem:[#allocation3 + $0x1130] sm:$0xff] }
 0x88c   : > { %17115 = vmatpush1.bf16.msra.mxu1 %v16184_v43  ;;  %v16643_v43 = vld [vmem:[#allocation3 + $0x1188] sm:$0xff] }
 0x88d   : > { %16992 = vmatpush1.bf16.msra.mxu0 %v16502_v41  ;;  %17116 = vmatprep.subr.bf16.mxu1 %v16195_v19  ;;  %v16314_v41 = vld [vmem:[#allocation3 + $0x740] sm:$0xff] }
 0x88e   : > { %16993 = vmatprep.subr.bf16.mxu0 %v16513_v44  ;;  %v16325_v44 = vld [vmem:[#allocation3 + $0x798] sm:$0xff]  ;;  %v16642_v19 = vld [vmem:[#allocation3 + $0x1180] sm:$0xff] }
 0x890   : > { %17117 = vmatpush1.bf16.msra.mxu1 %v16194_v4  ;;  %v16653_v4 = vld [vmem:[#allocation3 + $0x11d8] sm:$0xff] }
 0x891   : > { %16994 = vmatpush1.bf16.msra.mxu0 %v16512_v7  ;;  %17118 = vmatprep.subr.bf16.mxu1 %v16205_v5  ;;  %v16324_v7 = vld [vmem:[#allocation3 + $0x790] sm:$0xff] }
 0x892   : > { %16995 = vmatprep.subr.bf16.mxu0 %v16523_v47  ;;  %v16335_v47 = vld [vmem:[#allocation3 + $0x7e8] sm:$0xff]  ;;  %v16652_v5 = vld [vmem:[#allocation3 + $0x11d0] sm:$0xff] }
 0x894   : > { %17119 = vmatpush1.bf16.msra.mxu1 %v16204_v2  ;;  %v16663_v2 = vld [vmem:[#allocation3 + $0x1228] sm:$0xff] }
 0x895   : > { %16996 = vmatpush1.bf16.msra.mxu0 %v16522_v62  ;;  %17120 = vmatprep.subr.bf16.mxu1 %v16215_v53  ;;  %v16334_v62 = vld [vmem:[#allocation3 + $0x7e0] sm:$0xff] }
 0x896   : > { %16997 = vmatprep.subr.bf16.mxu0 %v16533_v49  ;;  %v16345_v49 = vld [vmem:[#allocation3 + $0x838] sm:$0xff]  ;;  %v16662_v53 = vld [vmem:[#allocation3 + $0x1220] sm:$0xff] }
 0x898   : > { %17121 = vmatpush1.bf16.msra.mxu1 %v16214_v50  ;;  %v16673_v50 = vld [vmem:[#allocation3 + $0x1278] sm:$0xff] }
 0x899   : > { %16998 = vmatpush1.bf16.msra.mxu0 %v16532_v54  ;;  %17122 = vmatprep.subr.bf16.mxu1 %v16225_v57  ;;  %v16344_v54 = vld [vmem:[#allocation3 + $0x830] sm:$0xff] }
 0x89a   : > { %16999 = vmatprep.subr.bf16.mxu0 %v16543_v11  ;;  %v16355_v11 = vld [vmem:[#allocation3 + $0x888] sm:$0xff]  ;;  %v16672_v57 = vld [vmem:[#allocation3 + $0x1270] sm:$0xff] }
 0x89c   : > { %17123 = vmatpush1.bf16.msra.mxu1 %v16224_v58  ;;  %v16365_v58 = vld [vmem:[#allocation3 + $0x8d8] sm:$0xff] }
 0x89d   : > { %17000 = vmatpush1.bf16.msra.mxu0 %v16542_v38  ;;  %17124 = vmatprep.subr.bf16.mxu1 %v16235_v63  ;;  %v16683_v38 = vld [vmem:[#allocation3 + $0x12c8] sm:$0xff]  ;;  %v16364_v63 = vld [vmem:[#allocation3 + $0x8d0] sm:$0xff] }
 0x89e   : > { %17001 = vmatprep.subr.bf16.mxu0 %v16553_v13  ;;  %v16682_v13 = vld [vmem:[#allocation3 + $0x12c0] sm:$0xff] }
 0x8a0   : > { %17125 = vmatpush1.bf16.msra.mxu1 %v16234_v25  ;;  %v16374_v25 = vld [vmem:[#allocation3 + $0x920] sm:$0xff] }
 0x8a1   : > { %17002 = vmatpush1.bf16.msra.mxu0 %v16552_v46  ;;  %17135 = vmatprep.subr.bf16.mxu1 %v16245_v29  ;;  %v16692_v46 = vld [vmem:[#allocation3 + $0x1310] sm:$0xff]  ;;  %v16385_v29 = vld [vmem:[#allocation3 + $0x978] sm:$0xff] }
 0x8a2   : > { %17012 = vmatprep.subr.bf16.mxu0 %v16563_v8  ;;  %v16703_v8 = vld [vmem:[#allocation3 + $0x1368] sm:$0xff] }
 0x8a3   : > { %17127 = vmatmul.mubr.bf16.vlgmr.msra.gmra.mrb[4].mxu1 %v25242_v60 }
 0x8a4   : > { %17004 = vmatmul.mubr.bf16.vlgmr.msra.gmra.mrb[0].mxu0 %v25252_v21  ;;  %17136 = vmatpush1.bf16.msra.mxu1 %v16244_v48  ;;  %v16384_v48 = vld [vmem:[#allocation3 + $0x970] sm:$0xff] }
 0x8a5   : > { %17013 = vmatpush1.bf16.msra.mxu0 %v16562_v22  ;;  %17137 = vmatprep.subr.bf16.mxu1 %v16255_v55  ;;  %v16702_v22 = vld [vmem:[#allocation3 + $0x1360] sm:$0xff]  ;;  %v16395_v55 = vld [vmem:[#allocation3 + $0x9c8] sm:$0xff] }
 0x8a6   : > { %17014 = vmatprep.subr.bf16.mxu0 %v16573_v14  ;;  %17044 = vmatprep.mubr.bf16.mxu0 %v25254_v9  ;;  %v16713_v14 = vld [vmem:[#allocation3 + $0x13b8] sm:$0xff] }
 0x8a7   : > { %17167 = vmatprep.mubr.bf16.mxu1 %v25238_v56 }
 0x8a8   : > { %17138 = vmatpush1.bf16.msra.mxu1 %v16254_v10  ;;  %v16061_v10 = vld [vmem:[#allocation2 + $0x48] sm:$0xff] }
 0x8a9   : > { %17015 = vmatpush1.bf16.msra.mxu0 %v16572_v51  ;;  %17139 = vmatprep.subr.bf16.mxu1 %v16265_v16  ;;  %v16068_v51 = vmax.f32 %v16058_v12, 0.0  ;;  %v16394_v16 = vld [vmem:[#allocation3 + $0x9c0] sm:$0xff]  ;;  %v16504_v12 = vld [vmem:[#allocation3 + $0xd30] sm:$0xff] }
 0x8aa   : > { %17016 = vmatprep.subr.bf16.mxu0 %v16583_v35  ;;  %v16712_v35 = vld [vmem:[#allocation3 + $0x13b0] sm:$0xff] }
 0x8ac   : > { %17140 = vmatpush1.bf16.msra.mxu1 %v16264_v17  ;;  %v16405_v17 = vld [vmem:[#allocation3 + $0xa18] sm:$0xff] }
 0x8ad   : > { %17017 = vmatpush1.bf16.msra.mxu0 %v16582_v1  ;;  %17141 = vmatprep.subr.bf16.mxu1 %v16275_v20  ;;  %v16723_v1 = vld [vmem:[#allocation3 + $0x1408] sm:$0xff]  ;;  %v25260_v20 = vpack.c.bf16 %v16068_v51, %v16068_v51  ;;  %v16086_v51 = vld [vmem:[#allocation3 + $0x20] sm:$0xff] }
 0x8ae   : > { %17018 = vmatprep.subr.bf16.mxu0 %v16593_v18  ;;  %v16071_v18 = vmax.f32 %v16061_v10, 0.0  ;;  %v16525_v10 = vld [vmem:[#allocation3 + $0xdd8] sm:$0xff] }
 0x8b0   : > { %17142 = vmatpush1.bf16.msra.mxu1 %v16274_v23  ;;  %v16404_v23 = vld [vmem:[#allocation3 + $0xa10] sm:$0xff] }
 0x8b1   : > { %17019 = vmatpush1.bf16.msra.mxu0 %v16592_v6  ;;  %17143 = vmatprep.subr.bf16.mxu1 %v16285_v42  ;;  %v16722_v6 = vld [vmem:[#allocation3 + $0x1400] sm:$0xff]  ;;  %v16415_v42 = vld [vmem:[#allocation3 + $0xa68] sm:$0xff] }
 0x8b2   : > { %17020 = vmatprep.subr.bf16.mxu0 %v16603_v0  ;;  %v16733_v0 = vld [vmem:[#allocation3 + $0x1458] sm:$0xff] }
 0x8b4   : > { %17144 = vmatpush1.bf16.msra.mxu1 %v16284_v27  ;;  %v16732_v27 = vld [vmem:[#allocation3 + $0x1450] sm:$0xff] }
 0x8b5   : > { %17021 = vmatpush1.bf16.msra.mxu0 %v16602_v26  ;;  %17145 = vmatprep.subr.bf16.mxu1 %v16295_v28  ;;  %v25262_v26 = vpack.c.bf16 %v16071_v18, %v16071_v18  ;;  %v16743_v28 = vld [vmem:[#allocation3 + $0x14a8] sm:$0xff] }
 0x8b6   : > { %17022 = vmatprep.subr.bf16.mxu0 %v16613_v45  ;;  %v16414_v45 = vld [vmem:[#allocation3 + $0xa60] sm:$0xff]  ;;  %v16107_v18 = vld [vmem:[#allocation3 + $0xc8] sm:$0xff] }
 0x8b8   : > { %17146 = vmatpush1.bf16.msra.mxu1 %v16294_v33  ;;  %v16742_v33 = vld [vmem:[#allocation3 + $0x14a0] sm:$0xff] }
 0x8b9   : > { %17023 = vmatpush1.bf16.msra.mxu0 %v16612_v30  ;;  %17147 = vmatprep.subr.bf16.mxu1 %v16305_v32  ;;  %v16425_v30 = vld [vmem:[#allocation3 + $0xab8] sm:$0xff] }
 0x8ba   : > { %17024 = vmatprep.subr.bf16.mxu0 %v16623_v31  ;;  %v16424_v31 = vld [vmem:[#allocation3 + $0xab0] sm:$0xff]  ;;  %v16753_v32 = vld [vmem:[#allocation3 + $0x14f8] sm:$0xff] }
 0x8bc   : > { %17148 = vmatpush1.bf16.msra.mxu1 %v16304_v34  ;;  %v16752_v34 = vld [vmem:[#allocation3 + $0x14f0] sm:$0xff] }
 0x8bd   : > { %17025 = vmatpush1.bf16.msra.mxu0 %v16622_v59  ;;  %17149 = vmatprep.subr.bf16.mxu1 %v16315_v39  ;;  %v16435_v59 = vld [vmem:[#allocation3 + $0xb08] sm:$0xff] }
 0x8be   : > { %17026 = vmatprep.subr.bf16.mxu0 %v16633_v36  ;;  %v16434_v36 = vld [vmem:[#allocation3 + $0xb00] sm:$0xff]  ;;  %v16763_v39 = vld [vmem:[#allocation3 + $0x1548] sm:$0xff] }
 0x8c0   : > { %17150 = vmatpush1.bf16.msra.mxu1 %v16314_v41  ;;  %v16762_v41 = vld [vmem:[#allocation3 + $0x1540] sm:$0xff] }
 0x8c1   : > { %17027 = vmatpush1.bf16.msra.mxu0 %v16632_v40  ;;  %17151 = vmatprep.subr.bf16.mxu1 %v16325_v44  ;;  %v16445_v40 = vld [vmem:[#allocation3 + $0xb58] sm:$0xff] }
 0x8c2   : > { %17028 = vmatprep.subr.bf16.mxu0 %v16643_v43  ;;  %v16444_v43 = vld [vmem:[#allocation3 + $0xb50] sm:$0xff]  ;;  %v16773_v44 = vld [vmem:[#allocation3 + $0x1598] sm:$0xff] }
 0x8c4   : > { %17152 = vmatpush1.bf16.msra.mxu1 %v16324_v7  ;;  %v16772_v7 = vld [vmem:[#allocation3 + $0x1590] sm:$0xff] }
 0x8c5   : > { %17029 = vmatpush1.bf16.msra.mxu0 %v16642_v19  ;;  %17153 = vmatprep.subr.bf16.mxu1 %v16335_v47  ;;  %v16455_v19 = vld [vmem:[#allocation3 + $0xba8] sm:$0xff] }
 0x8c6   : > { %17030 = vmatprep.subr.bf16.mxu0 %v16653_v4  ;;  %v16454_v4 = vld [vmem:[#allocation3 + $0xba0] sm:$0xff]  ;;  %v16783_v47 = vld [vmem:[#allocation3 + $0x15e8] sm:$0xff] }
 0x8c8   : > { %17154 = vmatpush1.bf16.msra.mxu1 %v16334_v62  ;;  %v16782_v62 = vld [vmem:[#allocation3 + $0x15e0] sm:$0xff] }
 0x8c9   : > { %17031 = vmatpush1.bf16.msra.mxu0 %v16652_v5  ;;  %17155 = vmatprep.subr.bf16.mxu1 %v16345_v49  ;;  %v16465_v5 = vld [vmem:[#allocation3 + $0xbf8] sm:$0xff] }
 0x8ca   : > { %17032 = vmatprep.subr.bf16.mxu0 %v16663_v2  ;;  %v16464_v2 = vld [vmem:[#allocation3 + $0xbf0] sm:$0xff]  ;;  %v16793_v49 = vld [vmem:[#allocation3 + $0x1638] sm:$0xff] }
 0x8cc   : > { %17156 = vmatpush1.bf16.msra.mxu1 %v16344_v54  ;;  %v16792_v54 = vld [vmem:[#allocation3 + $0x1630] sm:$0xff] }
 0x8cd   : > { %17033 = vmatpush1.bf16.msra.mxu0 %v16662_v53  ;;  %17157 = vmatprep.subr.bf16.mxu1 %v16355_v11  ;;  %v16475_v53 = vld [vmem:[#allocation3 + $0xc48] sm:$0xff] }
 0x8ce   : > { %17034 = vmatprep.subr.bf16.mxu0 %v16673_v50  ;;  %v16474_v50 = vld [vmem:[#allocation3 + $0xc40] sm:$0xff]  ;;  %v16803_v11 = vld [vmem:[#allocation3 + $0x1688] sm:$0xff] }
 0x8d0   : > { %17158 = vmatpush1.bf16.msra.mxu1 %v16354_v37  ;;  %v16802_v37 = vld [vmem:[#allocation3 + $0x1680] sm:$0xff] }
 0x8d1   : > { %17035 = vmatpush1.bf16.msra.mxu0 %v16672_v57  ;;  %17159 = vmatprep.subr.bf16.mxu1 %v16365_v58  ;;  %v16485_v57 = vld [vmem:[#allocation3 + $0xc98] sm:$0xff] }
 0x8d2   : > { %17036 = vmatprep.subr.bf16.mxu0 %v16683_v38  ;;  %v16484_v38 = vld [vmem:[#allocation3 + $0xc90] sm:$0xff]  ;;  %v16813_v58 = vld [vmem:[#allocation3 + $0x16d8] sm:$0xff] }
 0x8d4   : > { %17160 = vmatpush1.bf16.msra.mxu1 %v16364_v63  ;;  %v16060_v63 = vld [vmem:[#allocation2 + $0x40] sm:$0xff] }
 0x8d5   : > { %17037 = vmatpush1.bf16.msra.mxu0 %v16682_v13  ;;  %17161 = vmatprep.subr.bf16.mxu1 %v16375_v24  ;;  %v16495_v13 = vld [vmem:[#allocation3 + $0xce8] sm:$0xff]  ;;  %v16494_v24 = vld [vmem:[#allocation3 + $0xce0] sm:$0xff] }
 0x8d6   : > { %17038 = vmatprep.subr.bf16.mxu0 %v16693_v3  ;;  %v16812_v3 = vld [vmem:[#allocation3 + $0x16d0] sm:$0xff] }
 0x8d8   : > { %17162 = vmatpush1.bf16.msra.mxu1 %v16374_v25  ;;  %v16505_v25 = vld [vmem:[#allocation3 + $0xd38] sm:$0xff] }
 0x8d9   : > { %17039 = vmatpush1.bf16.msra.mxu0 %v16692_v46  ;;  %17163 = vmatprep.subr.bf16.mxu1 %v16385_v29  ;;  %v16823_v46 = vld [vmem:[#allocation3 + $0x1728] sm:$0xff]  ;;  %v16822_v29 = vld [vmem:[#allocation3 + $0x1720] sm:$0xff] }
 0x8da   : > { %17040 = vmatprep.subr.bf16.mxu0 %v16703_v8  ;;  %v16070_v8 = vmax.f32 %v16060_v63, 0.0 }
 0x8dc   : > { %17164 = vmatpush1.bf16.msra.mxu1 %v16384_v48  ;;  %v16087_v48 = vld [vmem:[#allocation3 + $0x28] sm:$0xff] }
 0x8dd   : > { %17041 = vmatpush1.bf16.msra.mxu0 %v16702_v22  ;;  %17165 = vmatprep.subr.bf16.mxu1 %v16395_v55  ;;  %v16515_v22 = vld [vmem:[#allocation3 + $0xd88] sm:$0xff]  ;;  %v16514_v55 = vld [vmem:[#allocation3 + $0xd80] sm:$0xff] }
 0x8de   : > { %17042 = vmatprep.subr.bf16.mxu0 %v16713_v14  ;;  %v25269_v14 = vpack.c.bf16 %v16070_v8, %v16070_v8 }
 0x8e0   : > { %17166 = vmatpush1.bf16.msra.mxu1 %v16394_v16  ;;  %v16524_v16 = vld [vmem:[#allocation3 + $0xdd0] sm:$0xff] }
 0x8e1   : > { %17043 = vmatpush1.bf16.msra.mxu0 %v16712_v35  ;;  %17176 = vmatprep.subr.bf16.mxu1 %v16405_v17  ;;  %v16097_v35 = vld [vmem:[#allocation3 + $0x78] sm:$0xff]  ;;  %v16535_v17 = vld [vmem:[#allocation3 + $0xe28] sm:$0xff] }
 0x8e2   : > { %17053 = vmatprep.subr.bf16.mxu0 %v16723_v1  ;;  %v16096_v1 = vld [vmem:[#allocation3 + $0x70] sm:$0xff] }
 0x8e3   : > { %17168 = vmatmul.mubr.bf16.vlgmr.msra.gmra.mrb[4].mxu1 %v25244_v61 }
 0x8e4   : > { %17045 = vmatmul.mubr.bf16.vlgmr.msra.gmra.mrb[0].mxu0 %v25260_v20  ;;  %17177 = vmatpush1.bf16.msra.mxu1 %v16404_v23  ;;  %v16106_v23 = vld [vmem:[#allocation3 + $0xc0] sm:$0xff] }
 0x8e5   : > { %17054 = vmatpush1.bf16.msra.mxu0 %v16722_v6  ;;  %17178 = vmatprep.subr.bf16.mxu1 %v16415_v42  ;;  %v16534_v6 = vld [vmem:[#allocation3 + $0xe20] sm:$0xff]  ;;  %v16117_v42 = vld [vmem:[#allocation3 + $0x118] sm:$0xff] }
 0x8e6   : > { %17055 = vmatprep.subr.bf16.mxu0 %v16733_v0  ;;  %19684 = vmatprep.mubr.msk.bf16.mxu0 %vm16038_vm1, %v25262_v26  ;;  %v16545_v0 = vld [vmem:[#allocation3 + $0xe78] sm:$0xff] }
 0x8e7   : > { %17208 = vmatprep.mubr.bf16.mxu1 %v25246_v15 }
 0x8e8   : > { %17179 = vmatpush1.bf16.msra.mxu1 %v16414_v45  ;;  %v16116_v45 = vld [vmem:[#allocation3 + $0x110] sm:$0xff] }
 0x8e9   : > { %17056 = vmatpush1.bf16.msra.mxu0 %v16732_v27  ;;  %17180 = vmatprep.subr.bf16.mxu1 %v16425_v30  ;;  %v16544_v27 = vld [vmem:[#allocation3 + $0xe70] sm:$0xff]  ;;  %v16127_v30 = vld [vmem:[#allocation3 + $0x168] sm:$0xff] }
 0x8ea   : > { %17057 = vmatprep.subr.bf16.mxu0 %v16743_v28  ;;  %v16555_v28 = vld [vmem:[#allocation3 + $0xec8] sm:$0xff] }
 0x8ec   : > { %17181 = vmatpush1.bf16.msra.mxu1 %v16424_v31  ;;  %v16126_v31 = vld [vmem:[#allocation3 + $0x160] sm:$0xff] }
 0x8ed   : > { %17058 = vmatpush1.bf16.msra.mxu0 %v16742_v33  ;;  %17182 = vmatprep.subr.bf16.mxu1 %v16435_v59  ;;  %v16554_v33 = vld [vmem:[#allocation3 + $0xec0] sm:$0xff]  ;;  %v16137_v59 = vld [vmem:[#allocation3 + $0x1b8] sm:$0xff] }
 0x8ee   : > { %17059 = vmatprep.subr.bf16.mxu0 %v16753_v32  ;;  %v16565_v32 = vld [vmem:[#allocation3 + $0xf18] sm:$0xff] }
 0x8f0   : > { %17183 = vmatpush1.bf16.msra.mxu1 %v16434_v36  ;;  %v16136_v36 = vld [vmem:[#allocation3 + $0x1b0] sm:$0xff] }
 0x8f1   : > { %17060 = vmatpush1.bf16.msra.mxu0 %v16752_v34  ;;  %17184 = vmatprep.subr.bf16.mxu1 %v16445_v40  ;;  %v16564_v34 = vld [vmem:[#allocation3 + $0xf10] sm:$0xff]  ;;  %v16147_v40 = vld [vmem:[#allocation3 + $0x208] sm:$0xff] }
 0x8f2   : > { %17061 = vmatprep.subr.bf16.mxu0 %v16763_v39  ;;  %v16575_v39 = vld [vmem:[#allocation3 + $0xf68] sm:$0xff] }
 0x8f4   : > { %17185 = vmatpush1.bf16.msra.mxu1 %v16444_v43  ;;  %v16146_v43 = vld [vmem:[#allocation3 + $0x200] sm:$0xff] }
 0x8f5   : > { %17062 = vmatpush1.bf16.msra.mxu0 %v16762_v41  ;;  %17186 = vmatprep.subr.bf16.mxu1 %v16455_v19  ;;  %v16574_v41 = vld [vmem:[#allocation3 + $0xf60] sm:$0xff]  ;;  %v16157_v19 = vld [vmem:[#allocation3 + $0x258] sm:$0xff] }
 0x8f6   : > { %17063 = vmatprep.subr.bf16.mxu0 %v16773_v44  ;;  %v16585_v44 = vld [vmem:[#allocation3 + $0xfb8] sm:$0xff] }
 0x8f8   : > { %17187 = vmatpush1.bf16.msra.mxu1 %v16454_v4  ;;  %v16156_v4 = vld [vmem:[#allocation3 + $0x250] sm:$0xff] }
 0x8f9   : > { %17064 = vmatpush1.bf16.msra.mxu0 %v16772_v7  ;;  %17188 = vmatprep.subr.bf16.mxu1 %v16465_v5  ;;  %v16584_v7 = vld [vmem:[#allocation3 + $0xfb0] sm:$0xff]  ;;  %v16167_v5 = vld [vmem:[#allocation3 + $0x2a8] sm:$0xff] }
 0x8fa   : > { %17065 = vmatprep.subr.bf16.mxu0 %v16783_v47  ;;  %v16595_v47 = vld [vmem:[#allocation3 + $0x1008] sm:$0xff] }
 0x8fc   : > { %17189 = vmatpush1.bf16.msra.mxu1 %v16464_v2  ;;  %v16166_v2 = vld [vmem:[#allocation3 + $0x2a0] sm:$0xff] }
 0x8fd   : > { %17066 = vmatpush1.bf16.msra.mxu0 %v16782_v62  ;;  %17190 = vmatprep.subr.bf16.mxu1 %v16475_v53  ;;  %v16594_v62 = vld [vmem:[#allocation3 + $0x1000] sm:$0xff]  ;;  %v16177_v53 = vld [vmem:[#allocation3 + $0x2f8] sm:$0xff] }
 0x8fe   : > { %17067 = vmatprep.subr.bf16.mxu0 %v16793_v49  ;;  %v16605_v49 = vld [vmem:[#allocation3 + $0x1058] sm:$0xff] }
 0x900   : > { %17191 = vmatpush1.bf16.msra.mxu1 %v16474_v50  ;;  %v16176_v50 = vld [vmem:[#allocation3 + $0x2f0] sm:$0xff] }
 0x901   : > { %17068 = vmatpush1.bf16.msra.mxu0 %v16792_v54  ;;  %17192 = vmatprep.subr.bf16.mxu1 %v16485_v57  ;;  %v16604_v54 = vld [vmem:[#allocation3 + $0x1050] sm:$0xff]  ;;  %v16187_v57 = vld [vmem:[#allocation3 + $0x348] sm:$0xff] }
 0x902   : > { %17069 = vmatprep.subr.bf16.mxu0 %v16803_v11  ;;  %v16615_v11 = vld [vmem:[#allocation3 + $0x10a8] sm:$0xff] }
 0x904   : > { %17193 = vmatpush1.bf16.msra.mxu1 %v16484_v38  ;;  %v16186_v38 = vld [vmem:[#allocation3 + $0x340] sm:$0xff] }
 0x905   : > { %17070 = vmatpush1.bf16.msra.mxu0 %v16802_v37  ;;  %17194 = vmatprep.subr.bf16.mxu1 %v16495_v13  ;;  %v16614_v37 = vld [vmem:[#allocation3 + $0x10a0] sm:$0xff]  ;;  %v16197_v13 = vld [vmem:[#allocation3 + $0x398] sm:$0xff] }
 0x906   : > { %17071 = vmatprep.subr.bf16.mxu0 %v16813_v58  ;;  %v16625_v58 = vld [vmem:[#allocation3 + $0x10f8] sm:$0xff] }
 0x908   : > { %17195 = vmatpush1.bf16.msra.mxu1 %v16494_v24 }
 0x909   : > { %17072 = vmatpush1.bf16.msra.mxu0 %v16812_v3  ;;  %17196 = vmatprep.subr.bf16.mxu1 %v16505_v25  ;;  %v16196_v25 = vld [vmem:[#allocation3 + $0x390] sm:$0xff] }
 0x90a   : > { %17073 = vmatprep.subr.bf16.mxu0 %v16823_v46  ;;  %v16624_v46 = vld [vmem:[#allocation3 + $0x10f0] sm:$0xff] }
 0x90c   : > { %17197 = vmatpush1.bf16.msra.mxu1 %v16504_v12  ;;  %v16207_v12 = vld [vmem:[#allocation3 + $0x3e8] sm:$0xff] }
 0x90d   : > { %17074 = vmatpush1.bf16.msra.mxu0 %v16822_v29  ;;  %17198 = vmatprep.subr.bf16.mxu1 %v16515_v22  ;;  %v16635_v29 = vld [vmem:[#allocation3 + $0x1148] sm:$0xff]  ;;  %v16634_v22 = vld [vmem:[#allocation3 + $0x1140] sm:$0xff] }
 0x90e   : > { %17299 = vmatprep.subr.bf16.mxu0 %v16087_v48  ;;  %v16206_v48 = vld [vmem:[#allocation3 + $0x3e0] sm:$0xff] }
 0x910   : > { %17086 = vmatmul.mubr.bf16.vlgmr.msra.gmra.mrb[0].mxu0 %v25269_v14  ;;  %17199 = vmatpush1.bf16.msra.mxu1 %v16514_v55  ;;  %v16645_v55 = vld [vmem:[#allocation3 + $0x1198] sm:$0xff] }
 0x911   : > { %17300 = vmatpush1.bf16.msra.mxu0 %v16086_v51  ;;  %17200 = vmatprep.subr.bf16.mxu1 %v16525_v10  ;;  %v16217_v51 = vld [vmem:[#allocation3 + $0x438] sm:$0xff]  ;;  %v16644_v10 = vld [vmem:[#allocation3 + $0x1190] sm:$0xff] }
 0x912   : > { %17301 = vmatprep.subr.bf16.mxu0 %v16097_v35  ;;  %17331 = vmatprep.mubr.bf16.mxu0 %v25236_v52  ;;  %v16216_v35 = vld [vmem:[#allocation3 + $0x430] sm:$0xff] }
 0x914   : > { %17201 = vmatpush1.bf16.msra.mxu1 %v16524_v16  ;;  %v16655_v16 = vld [vmem:[#allocation3 + $0x11e8] sm:$0xff] }
 0x915   : > { %17302 = vmatpush1.bf16.msra.mxu0 %v16096_v1  ;;  %17202 = vmatprep.subr.bf16.mxu1 %v16535_v17  ;;  %v16227_v1 = vld [vmem:[#allocation3 + $0x488] sm:$0xff]  ;;  %v16654_v17 = vld [vmem:[#allocation3 + $0x11e0] sm:$0xff] }
 0x916   : > { %17303 = vmatprep.subr.bf16.mxu0 %v16107_v18  ;;  %v16226_v18 = vld [vmem:[#allocation3 + $0x480] sm:$0xff] }
 0x918   : > { %17203 = vmatpush1.bf16.msra.mxu1 %v16534_v6  ;;  %v16665_v6 = vld [vmem:[#allocation3 + $0x1238] sm:$0xff] }
 0x919   : > { %17304 = vmatpush1.bf16.msra.mxu0 %v16106_v23  ;;  %17204 = vmatprep.subr.bf16.mxu1 %v16545_v0  ;;  %v16237_v23 = vld [vmem:[#allocation3 + $0x4d8] sm:$0xff]  ;;  %v16664_v0 = vld [vmem:[#allocation3 + $0x1230] sm:$0xff] }
 0x91a   : > { %17305 = vmatprep.subr.bf16.mxu0 %v16117_v42  ;;  %v16236_v42 = vld [vmem:[#allocation3 + $0x4d0] sm:$0xff] }
 0x91c   : > { %17205 = vmatpush1.bf16.msra.mxu1 %v16544_v27  ;;  %v16675_v27 = vld [vmem:[#allocation3 + $0x1288] sm:$0xff] }
 0x91d   : > { %17306 = vmatpush1.bf16.msra.mxu0 %v16116_v45  ;;  %17206 = vmatprep.subr.bf16.mxu1 %v16555_v28  ;;  %v16247_v45 = vld [vmem:[#allocation3 + $0x528] sm:$0xff]  ;;  %v16674_v28 = vld [vmem:[#allocation3 + $0x1280] sm:$0xff] }
 0x91e   : > { %17307 = vmatprep.subr.bf16.mxu0 %v16127_v30  ;;  %v16246_v30 = vld [vmem:[#allocation3 + $0x520] sm:$0xff] }
 0x920   : > { %17207 = vmatpush1.bf16.msra.mxu1 %v16554_v33  ;;  %v16685_v33 = vld [vmem:[#allocation3 + $0x12d8] sm:$0xff] }
 0x921   : > { %17308 = vmatpush1.bf16.msra.mxu0 %v16126_v31  ;;  %17217 = vmatprep.subr.bf16.mxu1 %v16565_v32  ;;  %v16257_v31 = vld [vmem:[#allocation3 + $0x578] sm:$0xff]  ;;  %v16684_v32 = vld [vmem:[#allocation3 + $0x12d0] sm:$0xff] }
 0x922   : > { %17309 = vmatprep.subr.bf16.mxu0 %v16137_v59  ;;  %v16256_v59 = vld [vmem:[#allocation3 + $0x570] sm:$0xff] }
 0x923   : > { %17209 = vmatmul.mubr.bf16.vlgmr.msra.gmra.mrb[4].mxu1 %v25252_v21 }
 0x924   : > { %17218 = vmatpush1.bf16.msra.mxu1 %v16564_v34  ;;  %17249 = vmatprep.mubr.bf16.mxu1 %v25254_v9  ;;  %v16695_v34 = vld [vmem:[#allocation3 + $0x1328] sm:$0xff] }
 0x925   : > { %17310 = vmatpush1.bf16.msra.mxu0 %v16136_v36  ;;  %17219 = vmatprep.subr.bf16.mxu1 %v16575_v39  ;;  %v16267_v36 = vld [vmem:[#allocation3 + $0x5c8] sm:$0xff]  ;;  %v16694_v39 = vld [vmem:[#allocation3 + $0x1320] sm:$0xff] }
 0x926   : > { %17311 = vmatprep.subr.bf16.mxu0 %v16147_v40  ;;  %v16266_v40 = vld [vmem:[#allocation3 + $0x5c0] sm:$0xff] }
 0x928   : > { %17220 = vmatpush1.bf16.msra.mxu1 %v16574_v41  ;;  %v16705_v41 = vld [vmem:[#allocation3 + $0x1378] sm:$0xff] }
 0x929   : > { %17312 = vmatpush1.bf16.msra.mxu0 %v16146_v43  ;;  %17221 = vmatprep.subr.bf16.mxu1 %v16585_v44  ;;  %v16277_v43 = vld [vmem:[#allocation3 + $0x618] sm:$0xff]  ;;  %v16704_v44 = vld [vmem:[#allocation3 + $0x1370] sm:$0xff] }
 0x92a   : > { %17313 = vmatprep.subr.bf16.mxu0 %v16157_v19  ;;  %v16276_v19 = vld [vmem:[#allocation3 + $0x610] sm:$0xff] }
 0x92c   : > { %17222 = vmatpush1.bf16.msra.mxu1 %v16584_v7  ;;  %v16715_v7 = vld [vmem:[#allocation3 + $0x13c8] sm:$0xff] }
 0x92d   : > { %17314 = vmatpush1.bf16.msra.mxu0 %v16156_v4  ;;  %17223 = vmatprep.subr.bf16.mxu1 %v16595_v47  ;;  %v16287_v4 = vld [vmem:[#allocation3 + $0x668] sm:$0xff]  ;;  %v16714_v47 = vld [vmem:[#allocation3 + $0x13c0] sm:$0xff] }
 0x92e   : > { %17315 = vmatprep.subr.bf16.mxu0 %v16167_v5  ;;  %v16286_v5 = vld [vmem:[#allocation3 + $0x660] sm:$0xff] }
 0x930   : > { %17224 = vmatpush1.bf16.msra.mxu1 %v16594_v62  ;;  %v16725_v62 = vld [vmem:[#allocation3 + $0x1418] sm:$0xff] }
 0x931   : > { %17316 = vmatpush1.bf16.msra.mxu0 %v16166_v2  ;;  %17225 = vmatprep.subr.bf16.mxu1 %v16605_v49  ;;  %v16297_v2 = vld [vmem:[#allocation3 + $0x6b8] sm:$0xff]  ;;  %v16724_v49 = vld [vmem:[#allocation3 + $0x1410] sm:$0xff] }
 0x932   : > { %17317 = vmatprep.subr.bf16.mxu0 %v16177_v53  ;;  %v16296_v53 = vld [vmem:[#allocation3 + $0x6b0] sm:$0xff] }
 0x934   : > { %17226 = vmatpush1.bf16.msra.mxu1 %v16604_v54  ;;  %v16735_v54 = vld [vmem:[#allocation3 + $0x1468] sm:$0xff] }
 0x935   : > { %17318 = vmatpush1.bf16.msra.mxu0 %v16176_v50  ;;  %17227 = vmatprep.subr.bf16.mxu1 %v16615_v11  ;;  %v16307_v50 = vld [vmem:[#allocation3 + $0x708] sm:$0xff]  ;;  %v16734_v11 = vld [vmem:[#allocation3 + $0x1460] sm:$0xff] }
 0x936   : > { %17319 = vmatprep.subr.bf16.mxu0 %v16187_v57  ;;  %v25275_v63 = vpop.f32.mrb[0].mxu1  ;;  %v16306_v57 = vld [vmem:[#allocation3 + $0x700] sm:$0xff] }
 0x937   : > { %v25277_v3 = vpop.f32.mrb[1].mxu1 }
 0x938   : > { %17228 = vmatpush1.bf16.msra.mxu1 %v16614_v37  ;;  %v16927_v24 = vpop.f32.mrb[2].mxu1  ;;  %v16745_v37 = vld [vmem:[#allocation3 + $0x14b8] sm:$0xff] }
 0x939   : > { %17320 = vmatpush1.bf16.msra.mxu0 %v16186_v38  ;;  %17229 = vmatprep.subr.bf16.mxu1 %v16625_v58  ;;  %v16928_v8 = vpop.f32.mrb[3].mxu1  ;;  %v16317_v38 = vld [vmem:[#allocation3 + $0x758] sm:$0xff]  ;;  %v16744_v58 = vld [vmem:[#allocation3 + $0x14b0] sm:$0xff]  ;;  %v16755_v24 = vld [vmem:[#allocation3 + $0x1508] sm:$0xff] }
 0x93a   : > { %17321 = vmatprep.subr.bf16.mxu0 %v16197_v13  ;;  %v16316_v13 = vld [vmem:[#allocation3 + $0x750] sm:$0xff]  ;;  %v16326_v8 = vld [vmem:[#allocation3 + $0x7a0] sm:$0xff] }
 0x93c   : > { %17230 = vmatpush1.bf16.msra.mxu1 %v16624_v46  ;;  %v16327_v46 = vld [vmem:[#allocation3 + $0x7a8] sm:$0xff] }
 0x93d   : > { %17322 = vmatpush1.bf16.msra.mxu0 %v16196_v25  ;;  %17231 = vmatprep.subr.bf16.mxu1 %v16635_v29  ;;  %v16754_v25 = vld [vmem:[#allocation3 + $0x1500] sm:$0xff]  ;;  %v16765_v29 = vld [vmem:[#allocation3 + $0x1558] sm:$0xff] }
 0x93e   : > { %17323 = vmatprep.subr.bf16.mxu0 %v16207_v12  ;;  %v16337_v12 = vld [vmem:[#allocation3 + $0x7f8] sm:$0xff] }
 0x940   : > { %17232 = vmatpush1.bf16.msra.mxu1 %v16634_v22  ;;  %v16764_v22 = vld [vmem:[#allocation3 + $0x1550] sm:$0xff] }
 0x941   : > { %17324 = vmatpush1.bf16.msra.mxu0 %v16206_v48  ;;  %17233 = vmatprep.subr.bf16.mxu1 %v16645_v55  ;;  %v16336_v48 = vld [vmem:[#allocation3 + $0x7f0] sm:$0xff]  ;;  %v16775_v55 = vld [vmem:[#allocation3 + $0x15a8] sm:$0xff] }
 0x942   : > { %17325 = vmatprep.subr.bf16.mxu0 %v16217_v51  ;;  %v16347_v51 = vld [vmem:[#allocation3 + $0x848] sm:$0xff] }
 0x944   : > { %17234 = vmatpush1.bf16.msra.mxu1 %v16644_v10  ;;  %v16774_v10 = vld [vmem:[#allocation3 + $0x15a0] sm:$0xff] }
 0x945   : > { %17326 = vmatpush1.bf16.msra.mxu0 %v16216_v35  ;;  %17235 = vmatprep.subr.bf16.mxu1 %v16655_v16  ;;  %v16346_v35 = vld [vmem:[#allocation3 + $0x840] sm:$0xff]  ;;  %v16785_v16 = vld [vmem:[#allocation3 + $0x15f8] sm:$0xff] }
 0x946   : > { %17327 = vmatprep.subr.bf16.mxu0 %v16227_v1  ;;  %v16357_v1 = vld [vmem:[#allocation3 + $0x898] sm:$0xff] }
 0x948   : > { %17236 = vmatpush1.bf16.msra.mxu1 %v16654_v17  ;;  %v16784_v17 = vld [vmem:[#allocation3 + $0x15f0] sm:$0xff] }
 0x949   : > { %17328 = vmatpush1.bf16.msra.mxu0 %v16226_v18  ;;  %17237 = vmatprep.subr.bf16.mxu1 %v16665_v6  ;;  %v16356_v18 = vld [vmem:[#allocation3 + $0x890] sm:$0xff]  ;;  %v16795_v6 = vld [vmem:[#allocation3 + $0x1648] sm:$0xff] }
 0x94a   : > { %17329 = vmatprep.subr.bf16.mxu0 %v16237_v23  ;;  %v16367_v23 = vld [vmem:[#allocation3 + $0x8e8] sm:$0xff] }
 0x94c   : > { %17238 = vmatpush1.bf16.msra.mxu1 %v16664_v0  ;;  %v16794_v0 = vld [vmem:[#allocation3 + $0x1640] sm:$0xff] }
 0x94d   : > { %17330 = vmatpush1.bf16.msra.mxu0 %v16236_v42  ;;  %17239 = vmatprep.subr.bf16.mxu1 %v16675_v27  ;;  %v16366_v42 = vld [vmem:[#allocation3 + $0x8e0] sm:$0xff]  ;;  %v16805_v27 = vld [vmem:[#allocation3 + $0x1698] sm:$0xff] }
 0x94e   : > { %17340 = vmatprep.subr.bf16.mxu0 %v16247_v45  ;;  %v16377_v45 = vld [vmem:[#allocation3 + $0x938] sm:$0xff] }
 0x950   : > { %17332 = vmatmul.mubr.bf16.vlgmr.msra.gmra.mrb[4].mxu0 %v25242_v60  ;;  %17240 = vmatpush1.bf16.msra.mxu1 %v16674_v28  ;;  %v16804_v28 = vld [vmem:[#allocation3 + $0x1690] sm:$0xff] }
 0x951   : > { %17341 = vmatpush1.bf16.msra.mxu0 %v16246_v30  ;;  %17241 = vmatprep.subr.bf16.mxu1 %v16685_v33  ;;  %v16376_v30 = vld [vmem:[#allocation3 + $0x930] sm:$0xff]  ;;  %v16815_v33 = vld [vmem:[#allocation3 + $0x16e8] sm:$0xff] }
 0x952   : > { %17342 = vmatprep.subr.bf16.mxu0 %v16257_v31  ;;  %17372 = vmatprep.mubr.bf16.mxu0 %v25238_v56  ;;  %v16387_v31 = vld [vmem:[#allocation3 + $0x988] sm:$0xff] }
 0x954   : > { %17242 = vmatpush1.bf16.msra.mxu1 %v16684_v32  ;;  %v16814_v32 = vld [vmem:[#allocation3 + $0x16e0] sm:$0xff] }
 0x955   : > { %17343 = vmatpush1.bf16.msra.mxu0 %v16256_v59  ;;  %17243 = vmatprep.subr.bf16.mxu1 %v16695_v34  ;;  %v16386_v59 = vld [vmem:[#allocation3 + $0x980] sm:$0xff]  ;;  %v16825_v34 = vld [vmem:[#allocation3 + $0x1738] sm:$0xff] }
 0x956   : > { %17344 = vmatprep.subr.bf16.mxu0 %v16267_v36  ;;  %v16397_v36 = vld [vmem:[#allocation3 + $0x9d8] sm:$0xff] }
 0x958   : > { %17244 = vmatpush1.bf16.msra.mxu1 %v16694_v39  ;;  %v16824_v39 = vld [vmem:[#allocation3 + $0x1730] sm:$0xff] }
 0x959   : > { %17345 = vmatpush1.bf16.msra.mxu0 %v16266_v40  ;;  %17245 = vmatprep.subr.bf16.mxu1 %v16705_v41  ;;  %v16396_v40 = vld [vmem:[#allocation3 + $0x9d0] sm:$0xff]  ;;  %v16407_v41 = vld [vmem:[#allocation3 + $0xa28] sm:$0xff] }
 0x95a   : > { %17346 = vmatprep.subr.bf16.mxu0 %v16277_v43  ;;  %v16089_v43 = vld [vmem:[#allocation3 + $0x38] sm:$0xff] }
 0x95c   : > { %17246 = vmatpush1.bf16.msra.mxu1 %v16704_v44  ;;  %v16406_v44 = vld [vmem:[#allocation3 + $0xa20] sm:$0xff] }
 0x95d   : > { %17347 = vmatpush1.bf16.msra.mxu0 %v16276_v19  ;;  %17247 = vmatprep.subr.bf16.mxu1 %v16715_v7  ;;  %v16088_v19 = vld [vmem:[#allocation3 + $0x30] sm:$0xff]  ;;  %v16417_v7 = vld [vmem:[#allocation3 + $0xa78] sm:$0xff] }
 0x95e   : > { %17348 = vmatprep.subr.bf16.mxu0 %v16287_v4  ;;  %v16099_v4 = vld [vmem:[#allocation3 + $0x88] sm:$0xff] }
 0x960   : > { %17248 = vmatpush1.bf16.msra.mxu1 %v16714_v47  ;;  %v16416_v47 = vld [vmem:[#allocation3 + $0xa70] sm:$0xff] }
 0x961   : > { %17349 = vmatpush1.bf16.msra.mxu0 %v16286_v5  ;;  %17258 = vmatprep.subr.bf16.mxu1 %v16725_v62  ;;  %v16098_v5 = vld [vmem:[#allocation3 + $0x80] sm:$0xff]  ;;  %v16427_v62 = vld [vmem:[#allocation3 + $0xac8] sm:$0xff] }
 0x962   : > { %17350 = vmatprep.subr.bf16.mxu0 %v16297_v2  ;;  %v16109_v2 = vld [vmem:[#allocation3 + $0xd8] sm:$0xff] }
 0x963   : > { %17250 = vmatmul.mubr.bf16.vlgmr.msra.gmra.mrb[4].mxu1 %v25260_v20 }
 0x964   : > { %17259 = vmatpush1.bf16.msra.mxu1 %v16724_v49  ;;  %19685 = vmatprep.mubr.msk.bf16.mxu1 %vm16038_vm1, %v25262_v26  ;;  %v16426_v49 = vld [vmem:[#allocation3 + $0xac0] sm:$0xff] }
 0x965   : > { %17351 = vmatpush1.bf16.msra.mxu0 %v16296_v53  ;;  %17260 = vmatprep.subr.bf16.mxu1 %v16735_v54  ;;  %v16108_v53 = vld [vmem:[#allocation3 + $0xd0] sm:$0xff]  ;;  %v16437_v54 = vld [vmem:[#allocation3 + $0xb18] sm:$0xff] }
 0x966   : > { %17352 = vmatprep.subr.bf16.mxu0 %v16307_v50  ;;  %v16119_v50 = vld [vmem:[#allocation3 + $0x128] sm:$0xff] }
 0x968   : > { %17261 = vmatpush1.bf16.msra.mxu1 %v16734_v11  ;;  %v16436_v11 = vld [vmem:[#allocation3 + $0xb10] sm:$0xff] }
 0x969   : > { %17353 = vmatpush1.bf16.msra.mxu0 %v16306_v57  ;;  %17262 = vmatprep.subr.bf16.mxu1 %v16745_v37  ;;  %v16118_v57 = vld [vmem:[#allocation3 + $0x120] sm:$0xff]  ;;  %v16447_v37 = vld [vmem:[#allocation3 + $0xb68] sm:$0xff] }
 0x96a   : > { %17354 = vmatprep.subr.bf16.mxu0 %v16317_v38  ;;  %v16129_v38 = vld [vmem:[#allocation3 + $0x178] sm:$0xff] }
 0x96c   : > { %17263 = vmatpush1.bf16.msra.mxu1 %v16744_v58  ;;  %v16446_v58 = vld [vmem:[#allocation3 + $0xb60] sm:$0xff] }
 0x96d   : > { %17355 = vmatpush1.bf16.msra.mxu0 %v16316_v13  ;;  %17264 = vmatprep.subr.bf16.mxu1 %v16755_v24  ;;  %v16128_v13 = vld [vmem:[#allocation3 + $0x170] sm:$0xff]  ;;  %v16457_v24 = vld [vmem:[#allocation3 + $0xbb8] sm:$0xff] }
 0x96e   : > { %17356 = vmatprep.subr.bf16.mxu0 %v16327_v46  ;;  %v16139_v46 = vld [vmem:[#allocation3 + $0x1c8] sm:$0xff] }
 0x970   : > { %17265 = vmatpush1.bf16.msra.mxu1 %v16754_v25  ;;  %v16456_v25 = vld [vmem:[#allocation3 + $0xbb0] sm:$0xff] }
 0x971   : > { %17357 = vmatpush1.bf16.msra.mxu0 %v16326_v8  ;;  %17266 = vmatprep.subr.bf16.mxu1 %v16765_v29  ;;  %v16138_v8 = vld [vmem:[#allocation3 + $0x1c0] sm:$0xff]  ;;  %v16467_v29 = vld [vmem:[#allocation3 + $0xc08] sm:$0xff] }
 0x972   : > { %17358 = vmatprep.subr.bf16.mxu0 %v16337_v12  ;;  %v16149_v12 = vld [vmem:[#allocation3 + $0x218] sm:$0xff] }
 0x974   : > { %17267 = vmatpush1.bf16.msra.mxu1 %v16764_v22  ;;  %v16466_v22 = vld [vmem:[#allocation3 + $0xc00] sm:$0xff] }
 0x975   : > { %17359 = vmatpush1.bf16.msra.mxu0 %v16336_v48  ;;  %17268 = vmatprep.subr.bf16.mxu1 %v16775_v55  ;;  %v16148_v48 = vld [vmem:[#allocation3 + $0x210] sm:$0xff]  ;;  %v16477_v55 = vld [vmem:[#allocation3 + $0xc58] sm:$0xff] }
 0x976   : > { %17360 = vmatprep.subr.bf16.mxu0 %v16347_v51  ;;  %v16159_v51 = vld [vmem:[#allocation3 + $0x268] sm:$0xff] }
 0x978   : > { %17269 = vmatpush1.bf16.msra.mxu1 %v16774_v10  ;;  %v16476_v10 = vld [vmem:[#allocation3 + $0xc50] sm:$0xff] }
 0x979   : > { %17361 = vmatpush1.bf16.msra.mxu0 %v16346_v35  ;;  %17270 = vmatprep.subr.bf16.mxu1 %v16785_v16  ;;  %v16158_v35 = vld [vmem:[#allocation3 + $0x260] sm:$0xff]  ;;  %v16487_v16 = vld [vmem:[#allocation3 + $0xca8] sm:$0xff] }
 0x97a   : > { %17362 = vmatprep.subr.bf16.mxu0 %v16357_v1  ;;  %v16169_v1 = vld [vmem:[#allocation3 + $0x2b8] sm:$0xff] }
 0x97c   : > { %17271 = vmatpush1.bf16.msra.mxu1 %v16784_v17  ;;  %v16486_v17 = vld [vmem:[#allocation3 + $0xca0] sm:$0xff] }
 0x97d   : > { %17363 = vmatpush1.bf16.msra.mxu0 %v16356_v18  ;;  %17272 = vmatprep.subr.bf16.mxu1 %v16795_v6  ;;  %v16168_v18 = vld [vmem:[#allocation3 + $0x2b0] sm:$0xff]  ;;  %v16497_v6 = vld [vmem:[#allocation3 + $0xcf8] sm:$0xff] }
 0x97e   : > { %17364 = vmatprep.subr.bf16.mxu0 %v16367_v23  ;;  %v16179_v23 = vld [vmem:[#allocation3 + $0x308] sm:$0xff] }
 0x980   : > { %17273 = vmatpush1.bf16.msra.mxu1 %v16794_v0  ;;  %v16496_v0 = vld [vmem:[#allocation3 + $0xcf0] sm:$0xff] }
 0x981   : > { %17365 = vmatpush1.bf16.msra.mxu0 %v16366_v42  ;;  %17274 = vmatprep.subr.bf16.mxu1 %v16805_v27  ;;  %v16178_v42 = vld [vmem:[#allocation3 + $0x300] sm:$0xff]  ;;  %v16507_v27 = vld [vmem:[#allocation3 + $0xd48] sm:$0xff] }
 0x982   : > { %17366 = vmatprep.subr.bf16.mxu0 %v16377_v45  ;;  %v16189_v45 = vld [vmem:[#allocation3 + $0x358] sm:$0xff] }
 0x984   : > { %17275 = vmatpush1.bf16.msra.mxu1 %v16804_v28  ;;  %v16506_v28 = vld [vmem:[#allocation3 + $0xd40] sm:$0xff] }
 0x985   : > { %17367 = vmatpush1.bf16.msra.mxu0 %v16376_v30  ;;  %17276 = vmatprep.subr.bf16.mxu1 %v16815_v33  ;;  %v16188_v30 = vld [vmem:[#allocation3 + $0x350] sm:$0xff]  ;;  %v16517_v33 = vld [vmem:[#allocation3 + $0xd98] sm:$0xff] }
 0x986   : > { %17368 = vmatprep.subr.bf16.mxu0 %v16387_v31  ;;  %v16199_v31 = vld [vmem:[#allocation3 + $0x3a8] sm:$0xff] }
 0x988   : > { %17277 = vmatpush1.bf16.msra.mxu1 %v16814_v32  ;;  %v16516_v32 = vld [vmem:[#allocation3 + $0xd90] sm:$0xff] }
 0x989   : > { %17369 = vmatpush1.bf16.msra.mxu0 %v16386_v59  ;;  %17278 = vmatprep.subr.bf16.mxu1 %v16825_v34  ;;  %v16198_v59 = vld [vmem:[#allocation3 + $0x3a0] sm:$0xff]  ;;  %v16527_v34 = vld [vmem:[#allocation3 + $0xde8] sm:$0xff] }
 0x98a   : > { %17370 = vmatprep.subr.bf16.mxu0 %v16397_v36  ;;  %v16209_v36 = vld [vmem:[#allocation3 + $0x3f8] sm:$0xff] }
 0x98c   : > { %17279 = vmatpush1.bf16.msra.mxu1 %v16824_v39  ;;  %v16526_v39 = vld [vmem:[#allocation3 + $0xde0] sm:$0xff] }
 0x98d   : > { %17371 = vmatpush1.bf16.msra.mxu0 %v16396_v40  ;;  %17504 = vmatprep.subr.bf16.mxu1 %v16089_v43  ;;  %v16208_v40 = vld [vmem:[#allocation3 + $0x3f0] sm:$0xff]  ;;  %v16219_v43 = vld [vmem:[#allocation3 + $0x448] sm:$0xff] }
 0x98e   : > { %17381 = vmatprep.subr.bf16.mxu0 %v16407_v41  ;;  %v16537_v41 = vld [vmem:[#allocation3 + $0xe38] sm:$0xff] }
 0x98f   : > { %17291 = vmatmul.mubr.bf16.vlgmr.msra.gmra.mrb[4].mxu1 %v25269_v14 }
 0x990   : > { %17373 = vmatmul.mubr.bf16.vlgmr.msra.gmra.mrb[4].mxu0 %v25244_v61  ;;  %17505 = vmatpush1.bf16.msra.mxu1 %v16088_v19  ;;  %v16218_v19 = vld [vmem:[#allocation3 + $0x440] sm:$0xff] }
 0x991   : > { %17382 = vmatpush1.bf16.msra.mxu0 %v16406_v44  ;;  %17506 = vmatprep.subr.bf16.mxu1 %v16099_v4  ;;  %v16536_v44 = vld [vmem:[#allocation3 + $0xe30] sm:$0xff]  ;;  %v16229_v4 = vld [vmem:[#allocation3 + $0x498] sm:$0xff] }
 0x992   : > { %17383 = vmatprep.subr.bf16.mxu0 %v16417_v7  ;;  %17413 = vmatprep.mubr.bf16.mxu0 %v25246_v15  ;;  %v16547_v7 = vld [vmem:[#allocation3 + $0xe88] sm:$0xff] }
 0x993   : > { %17536 = vmatprep.mubr.bf16.mxu1 %v25236_v52 }
 0x994   : > { %17507 = vmatpush1.bf16.msra.mxu1 %v16098_v5  ;;  %v16228_v5 = vld [vmem:[#allocation3 + $0x490] sm:$0xff] }
 0x995   : > { %17384 = vmatpush1.bf16.msra.mxu0 %v16416_v47  ;;  %17508 = vmatprep.subr.bf16.mxu1 %v16109_v2  ;;  %v16546_v47 = vld [vmem:[#allocation3 + $0xe80] sm:$0xff]  ;;  %v16239_v2 = vld [vmem:[#allocation3 + $0x4e8] sm:$0xff] }
 0x996   : > { %17385 = vmatprep.subr.bf16.mxu0 %v16427_v62  ;;  %v16557_v62 = vld [vmem:[#allocation3 + $0xed8] sm:$0xff] }
 0x998   : > { %17509 = vmatpush1.bf16.msra.mxu1 %v16108_v53  ;;  %v16238_v53 = vld [vmem:[#allocation3 + $0x4e0] sm:$0xff] }
 0x999   : > { %17386 = vmatpush1.bf16.msra.mxu0 %v16426_v49  ;;  %17510 = vmatprep.subr.bf16.mxu1 %v16119_v50  ;;  %v16556_v49 = vld [vmem:[#allocation3 + $0xed0] sm:$0xff]  ;;  %v16249_v50 = vld [vmem:[#allocation3 + $0x538] sm:$0xff] }
 0x99a   : > { %17387 = vmatprep.subr.bf16.mxu0 %v16437_v54  ;;  %v16567_v54 = vld [vmem:[#allocation3 + $0xf28] sm:$0xff] }
 0x99c   : > { %17511 = vmatpush1.bf16.msra.mxu1 %v16118_v57  ;;  %v16248_v57 = vld [vmem:[#allocation3 + $0x530] sm:$0xff] }
 0x99d   : > { %17388 = vmatpush1.bf16.msra.mxu0 %v16436_v11  ;;  %17512 = vmatprep.subr.bf16.mxu1 %v16129_v38  ;;  %v16566_v11 = vld [vmem:[#allocation3 + $0xf20] sm:$0xff]  ;;  %v16259_v38 = vld [vmem:[#allocation3 + $0x588] sm:$0xff] }
 0x99e   : > { %17389 = vmatprep.subr.bf16.mxu0 %v16447_v37  ;;  %v16577_v37 = vld [vmem:[#allocation3 + $0xf78] sm:$0xff] }
 0x9a0   : > { %17513 = vmatpush1.bf16.msra.mxu1 %v16128_v13  ;;  %v16576_v13 = vld [vmem:[#allocation3 + $0xf70] sm:$0xff] }
 0x9a1   : > { %17390 = vmatpush1.bf16.msra.mxu0 %v16446_v58  ;;  %17514 = vmatprep.subr.bf16.mxu1 %v16139_v46  ;;  %v16836_v58 = vlaneseq  ;;  %v16587_v46 = vld [vmem:[#allocation3 + $0xfc8] sm:$0xff] }
 0x9a2   : > { %17391 = vmatprep.subr.bf16.mxu0 %v16457_v24  ;;  %v16258_v24 = vld [vmem:[#allocation3 + $0x580] sm:$0xff] }
 0x9a4   : > { %17515 = vmatpush1.bf16.msra.mxu1 %v16138_v8  ;;  %v25292_v8 = vshrl.u32 %v16836_v58, 7  ;;  %v16359_v58 = vld [vmem:[#allocation3 + $0x8a8] sm:$0xff] }
 0x9a5   : > { %17392 = vmatpush1.bf16.msra.mxu0 %v16456_v25  ;;  %17516 = vmatprep.subr.bf16.mxu1 %v16149_v12  ;;  %v16269_v25 = vld [vmem:[#allocation3 + $0x5d8] sm:$0xff]  ;;  %v16268_v12 = vld [vmem:[#allocation3 + $0x5d0] sm:$0xff] }
 0x9a6   : > { %17393 = vmatprep.subr.bf16.mxu0 %v16467_v29  ;;  %v16586_v29 = vld [vmem:[#allocation3 + $0xfc0] sm:$0xff] }
 0x9a8   : > { %17517 = vmatpush1.bf16.msra.mxu1 %v16148_v48  ;;  %v16279_v48 = vld [vmem:[#allocation3 + $0x628] sm:$0xff] }
 0x9a9   : > { %17394 = vmatpush1.bf16.msra.mxu0 %v16466_v22  ;;  %17518 = vmatprep.subr.bf16.mxu1 %v16159_v51  ;;  %v16597_v22 = vld [vmem:[#allocation3 + $0x1018] sm:$0xff]  ;;  %v16596_v51 = vld [vmem:[#allocation3 + $0x1010] sm:$0xff] }
 0x9aa   : > { %17395 = vmatprep.subr.bf16.mxu0 %v16477_v55  ;;  %v16838_v55 = vsub.s32 0, %v25292_v8 }
 0x9ac   : > { %17519 = vmatpush1.bf16.msra.mxu1 %v16158_v35  ;;  %v16832_v35 = vld [vmem:[%s25378_s4] sm:$0xff] }
 0x9ad   : > { %17396 = vmatpush1.bf16.msra.mxu0 %v16476_v10  ;;  %17520 = vmatprep.subr.bf16.mxu1 %v16169_v1  ;;  %v16278_v10 = vld [vmem:[#allocation3 + $0x620] sm:$0xff]  ;;  %v16607_v1 = vld [vmem:[#allocation3 + $0x1068] sm:$0xff] }
 0x9ae   : > { %17397 = vmatprep.subr.bf16.mxu0 %v16487_v16  ;;  %v16842_v16 = vsub.s32 1, %v25292_v8 }
 0x9b0   : > { %17521 = vmatpush1.bf16.msra.mxu1 %v16168_v18  ;;  %v16839_v18 = vrot.slane %v16832_v35, %v16838_v55 }
 0x9b1   : > { %17398 = vmatpush1.bf16.msra.mxu0 %v16486_v17  ;;  %17522 = vmatprep.subr.bf16.mxu1 %v16179_v23  ;;  %v16289_v17 = vld [vmem:[#allocation3 + $0x678] sm:$0xff]  ;;  %v16288_v23 = vld [vmem:[#allocation3 + $0x670] sm:$0xff] }
 0x9b2   : > { %17399 = vmatprep.subr.bf16.mxu0 %v16497_v6  ;;  %v16606_v6 = vld [vmem:[#allocation3 + $0x1060] sm:$0xff] }
 0x9b4   : > { %17523 = vmatpush1.bf16.msra.mxu1 %v16178_v42  ;;  %v16617_v42 = vld [vmem:[#allocation3 + $0x10b8] sm:$0xff] }
 0x9b5   : > { %17400 = vmatpush1.bf16.msra.mxu0 %v16496_v0  ;;  %17524 = vmatprep.subr.bf16.mxu1 %v16189_v45  ;;  %v16843_v0 = vrot.slane %v16832_v35, %v16842_v16  ;;  %v16924_v45 = vadd.f32 %v25275_v63, %v16839_v18  ;;  %v16626_v63 = vld [vmem:[#allocation3 + $0x1100] sm:$0xff]  ;;  %v16707_v35 = vld [vmem:[#allocation3 + $0x1388] sm:$0xff]  ;;  %v16388_v18 = vld [vmem:[#allocation3 + $0x990] sm:$0xff] }
 0x9b6   : > { %17401 = vmatprep.subr.bf16.mxu0 %v16507_v27  ;;  %v16299_v27 = vld [vmem:[#allocation3 + $0x6c8] sm:$0xff] }
 0x9b8   : > { %17525 = vmatpush1.bf16.msra.mxu1 %v16188_v30  ;;  %v16298_v30 = vld [vmem:[#allocation3 + $0x6c0] sm:$0xff] }
 0x9b9   : > { %17402 = vmatpush1.bf16.msra.mxu0 %v16506_v28  ;;  %17526 = vmatprep.subr.bf16.mxu1 %v16199_v31  ;;  %v16616_v28 = vld [vmem:[#allocation3 + $0x10b0] sm:$0xff] }
 0x9ba   : > { %17403 = vmatprep.subr.bf16.mxu0 %v16517_v33  ;;  %v16926_v33 = vadd.f32 %v25277_v3, %v16843_v0  ;;  %v16636_v3 = vld [vmem:[#allocation3 + $0x1150] sm:$0xff] }
 0x9bb   : > { %v16716_v0 = vld [vmem:[#allocation3 + $0x13d0] sm:$0xff] }
 0x9bc   : > { %17527 = vmatpush1.bf16.msra.mxu1 %v16198_v59  ;;  %v16309_v59 = vld [vmem:[#allocation3 + $0x718] sm:$0xff] }
 0x9bd   : > { %17404 = vmatpush1.bf16.msra.mxu0 %v16516_v32  ;;  %17528 = vmatprep.subr.bf16.mxu1 %v16209_v36  ;;  %v16627_v32 = vld [vmem:[#allocation3 + $0x1108] sm:$0xff] }
 0x9be   : > { %17405 = vmatprep.subr.bf16.mxu0 %v16527_v34 }
 0x9c0   : > { %17529 = vmatpush1.bf16.msra.mxu1 %v16208_v40 }
 0x9c1   : > { %17406 = vmatpush1.bf16.msra.mxu0 %v16526_v39  ;;  %17530 = vmatprep.subr.bf16.mxu1 %v16219_v43  ;;  %v16308_v43 = vld [vmem:[#allocation3 + $0x710] sm:$0xff] }
 0x9c2   : > { %17407 = vmatprep.subr.bf16.mxu0 %v16537_v41 }
 0x9c4   : > { %17531 = vmatpush1.bf16.msra.mxu1 %v16218_v19  ;;  %v16319_v19 = vld [vmem:[#allocation3 + $0x768] sm:$0xff] }
 0x9c5   : > { %17408 = vmatpush1.bf16.msra.mxu0 %v16536_v44  ;;  %17532 = vmatprep.subr.bf16.mxu1 %v16229_v4  ;;  %v16637_v44 = vld [vmem:[#allocation3 + $0x1158] sm:$0xff]  ;;  %v16647_v4 = vld [vmem:[#allocation3 + $0x11a8] sm:$0xff] }
 0x9c6   : > { %17409 = vmatprep.subr.bf16.mxu0 %v16547_v7  ;;  %v16318_v7 = vld [vmem:[#allocation3 + $0x760] sm:$0xff] }
 0x9c8   : > { %17533 = vmatpush1.bf16.msra.mxu1 %v16228_v5  ;;  %v16646_v5 = vld [vmem:[#allocation3 + $0x11a0] sm:$0xff] }
 0x9c9   : > { %17410 = vmatpush1.bf16.msra.mxu0 %v16546_v47  ;;  %17534 = vmatprep.subr.bf16.mxu1 %v16239_v2  ;;  %v16329_v47 = vld [vmem:[#allocation3 + $0x7b8] sm:$0xff] }
 0x9ca   : > { %17411 = vmatprep.subr.bf16.mxu0 %v16557_v62  ;;  %v16328_v62 = vld [vmem:[#allocation3 + $0x7b0] sm:$0xff]  ;;  %v16657_v2 = vld [vmem:[#allocation3 + $0x11f8] sm:$0xff] }
 0x9cc   : > { %17535 = vmatpush1.bf16.msra.mxu1 %v16238_v53  ;;  %v16656_v53 = vld [vmem:[#allocation3 + $0x11f0] sm:$0xff] }
 0x9cd   : > { %17412 = vmatpush1.bf16.msra.mxu0 %v16556_v49  ;;  %17545 = vmatprep.subr.bf16.mxu1 %v16249_v50  ;;  %v16339_v49 = vld [vmem:[#allocation3 + $0x808] sm:$0xff] }
 0x9ce   : > { %17422 = vmatprep.subr.bf16.mxu0 %v16567_v54  ;;  %v16338_v54 = vld [vmem:[#allocation3 + $0x800] sm:$0xff]  ;;  %v16667_v50 = vld [vmem:[#allocation3 + $0x1248] sm:$0xff] }
 0x9cf   : > { %17537 = vmatmul.mubr.bf16.vlgmr.msra.gmra.mrb[8].mxu1 %v25242_v60 }
 0x9d0   : > { %17414 = vmatmul.mubr.bf16.vlgmr.msra.gmra.mrb[4].mxu0 %v25252_v21  ;;  %17546 = vmatpush1.bf16.msra.mxu1 %v16248_v57  ;;  %v16666_v57 = vld [vmem:[#allocation3 + $0x1240] sm:$0xff] }
 0x9d1   : > { %17423 = vmatpush1.bf16.msra.mxu0 %v16566_v11  ;;  %17547 = vmatprep.subr.bf16.mxu1 %v16259_v38  ;;  %v16349_v11 = vld [vmem:[#allocation3 + $0x858] sm:$0xff] }
 0x9d2   : > { %17424 = vmatprep.subr.bf16.mxu0 %v16577_v37  ;;  %17454 = vmatprep.mubr.bf16.mxu0 %v25254_v9  ;;  %v16348_v37 = vld [vmem:[#allocation3 + $0x850] sm:$0xff]  ;;  %v16677_v38 = vld [vmem:[#allocation3 + $0x1298] sm:$0xff] }
 0x9d3   : > { %17577 = vmatprep.mubr.bf16.mxu1 %v25238_v56 }
 0x9d4   : > { %17548 = vmatpush1.bf16.msra.mxu1 %v16258_v24  ;;  %v16358_v24 = vld [vmem:[#allocation3 + $0x8a0] sm:$0xff] }
 0x9d5   : > { %17425 = vmatpush1.bf16.msra.mxu0 %v16576_v13  ;;  %17549 = vmatprep.subr.bf16.mxu1 %v16269_v25  ;;  %v16676_v13 = vld [vmem:[#allocation3 + $0x1290] sm:$0xff]  ;;  %v16369_v25 = vld [vmem:[#allocation3 + $0x8f8] sm:$0xff] }
 0x9d6   : > { %17426 = vmatprep.subr.bf16.mxu0 %v16587_v46  ;;  %v16687_v46 = vld [vmem:[#allocation3 + $0x12e8] sm:$0xff] }
 0x9d8   : > { %17550 = vmatpush1.bf16.msra.mxu1 %v16268_v12  ;;  %v16368_v12 = vld [vmem:[#allocation3 + $0x8f0] sm:$0xff] }
 0x9d9   : > { %17427 = vmatpush1.bf16.msra.mxu0 %v16586_v29  ;;  %17551 = vmatprep.subr.bf16.mxu1 %v16279_v48  ;;  %v16686_v29 = vld [vmem:[#allocation3 + $0x12e0] sm:$0xff]  ;;  %v16379_v48 = vld [vmem:[#allocation3 + $0x948] sm:$0xff] }
 0x9da   : > { %17428 = vmatprep.subr.bf16.mxu0 %v16597_v22  ;;  %v16697_v22 = vld [vmem:[#allocation3 + $0x1338] sm:$0xff] }
 0x9dc   : > { %17552 = vmatpush1.bf16.msra.mxu1 %v16278_v10  ;;  %v16378_v10 = vld [vmem:[#allocation3 + $0x940] sm:$0xff] }
 0x9dd   : > { %17429 = vmatpush1.bf16.msra.mxu0 %v16596_v51  ;;  %17553 = vmatprep.subr.bf16.mxu1 %v16289_v17  ;;  %v16696_v51 = vld [vmem:[#allocation3 + $0x1330] sm:$0xff]  ;;  %v16706_v17 = vld [vmem:[#allocation3 + $0x1380] sm:$0xff] }
 0x9de   : > { %17430 = vmatprep.subr.bf16.mxu0 %v16607_v1  ;;  %v16389_v1 = vld [vmem:[#allocation3 + $0x998] sm:$0xff] }
 0x9e0   : > { %17554 = vmatpush1.bf16.msra.mxu1 %v16288_v23  ;;  %v16399_v23 = vld [vmem:[#allocation3 + $0x9e8] sm:$0xff] }
 0x9e1   : > { %17431 = vmatpush1.bf16.msra.mxu0 %v16606_v6  ;;  %17555 = vmatprep.subr.bf16.mxu1 %v16299_v27  ;;  %v16717_v6 = vld [vmem:[#allocation3 + $0x13d8] sm:$0xff]  ;;  %v16727_v27 = vld [vmem:[#allocation3 + $0x1428] sm:$0xff] }
 0x9e2   : > { %17432 = vmatprep.subr.bf16.mxu0 %v16617_v42  ;;  %v16398_v42 = vld [vmem:[#allocation3 + $0x9e0] sm:$0xff] }
 0x9e3   : > { %v17087_v31 = vpop.f32.mrb[0].mxu0 }
 0x9e4   : > { %v25305_v34 = vadd.f32 %v17087_v31, %v16924_v45  ;;  %v17089_v36 = vpop.f32.mrb[1].mxu0  ;;  %17556 = vmatpush1.bf16.msra.mxu1 %v16298_v30  ;;  %v16409_v45 = vld [vmem:[#allocation3 + $0xa38] sm:$0xff]  ;;  %v16408_v30 = vld [vmem:[#allocation3 + $0xa30] sm:$0xff]  ;;  %v16419_v31 = vld [vmem:[#allocation3 + $0xa88] sm:$0xff] }
 0x9e5   : > { %v25307_v39 = vadd.f32 %v17089_v36, %v16926_v33  ;;  %v17091_v40 = vpop.f32.mrb[2].mxu0  ;;  %17433 = vmatpush1.bf16.msra.mxu0 %v16616_v28  ;;  %17557 = vmatprep.subr.bf16.mxu1 %v16309_v59  ;;  %v16726_v28 = vld [vmem:[#allocation3 + $0x1420] sm:$0xff]  ;;  %v16737_v33 = vld [vmem:[#allocation3 + $0x1478] sm:$0xff]  ;;  %v16747_v36 = vld [vmem:[#allocation3 + $0x14c8] sm:$0xff] }
 0x9e6   : > { %v17092_v41 = vpop.f32.mrb[3].mxu0  ;;  %17434 = vmatprep.subr.bf16.mxu0 %v16627_v32  ;;  %v16736_v32 = vld [vmem:[#allocation3 + $0x1470] sm:$0xff]  ;;  %v16418_v59 = vld [vmem:[#allocation3 + $0xa80] sm:$0xff]  ;;  %v16429_v40 = vld [vmem:[#allocation3 + $0xad8] sm:$0xff] }
 0x9e7   : > { %v16746_v41 = vld [vmem:[#allocation3 + $0x14c0] sm:$0xff] }
 0x9e8   : > { %17558 = vmatpush1.bf16.msra.mxu1 %v16308_v43  ;;  %v16757_v43 = vld [vmem:[#allocation3 + $0x1518] sm:$0xff] }
 0x9e9   : > { %17435 = vmatpush1.bf16.msra.mxu0 %v16626_v63  ;;  %17559 = vmatprep.subr.bf16.mxu1 %v16319_v19  ;;  %v16428_v63 = vld [vmem:[#allocation3 + $0xad0] sm:$0xff] }
 0x9ea   : > { %17436 = vmatprep.subr.bf16.mxu0 %v16637_v44  ;;  %v16439_v44 = vld [vmem:[#allocation3 + $0xb28] sm:$0xff]  ;;  %v16756_v19 = vld [vmem:[#allocation3 + $0x1510] sm:$0xff] }
 0x9ec   : > { %17560 = vmatpush1.bf16.msra.mxu1 %v16318_v7  ;;  %v16767_v7 = vld [vmem:[#allocation3 + $0x1568] sm:$0xff] }
 0x9ed   : > { %17437 = vmatpush1.bf16.msra.mxu0 %v16636_v3  ;;  %17561 = vmatprep.subr.bf16.mxu1 %v16329_v47  ;;  %v16438_v3 = vld [vmem:[#allocation3 + $0xb20] sm:$0xff] }
 0x9ee   : > { %17438 = vmatprep.subr.bf16.mxu0 %v16647_v4  ;;  %v16449_v4 = vld [vmem:[#allocation3 + $0xb78] sm:$0xff]  ;;  %v16766_v47 = vld [vmem:[#allocation3 + $0x1560] sm:$0xff] }
 0x9f0   : > { %17562 = vmatpush1.bf16.msra.mxu1 %v16328_v62  ;;  %v16777_v62 = vld [vmem:[#allocation3 + $0x15b8] sm:$0xff] }
 0x9f1   : > { %17439 = vmatpush1.bf16.msra.mxu0 %v16646_v5  ;;  %17563 = vmatprep.subr.bf16.mxu1 %v16339_v49  ;;  %v16448_v5 = vld [vmem:[#allocation3 + $0xb70] sm:$0xff] }
 0x9f2   : > { %17440 = vmatprep.subr.bf16.mxu0 %v16657_v2  ;;  %v16459_v2 = vld [vmem:[#allocation3 + $0xbc8] sm:$0xff]  ;;  %v16776_v49 = vld [vmem:[#allocation3 + $0x15b0] sm:$0xff] }
 0x9f4   : > { %17564 = vmatpush1.bf16.msra.mxu1 %v16338_v54  ;;  %v16787_v54 = vld [vmem:[#allocation3 + $0x1608] sm:$0xff] }
 0x9f5   : > { %17441 = vmatpush1.bf16.msra.mxu0 %v16656_v53  ;;  %17565 = vmatprep.subr.bf16.mxu1 %v16349_v11  ;;  %v16458_v53 = vld [vmem:[#allocation3 + $0xbc0] sm:$0xff] }
 0x9f6   : > { %17442 = vmatprep.subr.bf16.mxu0 %v16667_v50  ;;  %v16469_v50 = vld [vmem:[#allocation3 + $0xc18] sm:$0xff]  ;;  %v16786_v11 = vld [vmem:[#allocation3 + $0x1600] sm:$0xff] }
 0x9f8   : > { %17566 = vmatpush1.bf16.msra.mxu1 %v16348_v37  ;;  %v16797_v37 = vld [vmem:[#allocation3 + $0x1658] sm:$0xff] }
 0x9f9   : > { %17443 = vmatpush1.bf16.msra.mxu0 %v16666_v57  ;;  %17567 = vmatprep.subr.bf16.mxu1 %v16359_v58  ;;  %v16468_v57 = vld [vmem:[#allocation3 + $0xc10] sm:$0xff] }
 0x9fa   : > { %17444 = vmatprep.subr.bf16.mxu0 %v16677_v38  ;;  %v16479_v38 = vld [vmem:[#allocation3 + $0xc68] sm:$0xff]  ;;  %v16796_v58 = vld [vmem:[#allocation3 + $0x1650] sm:$0xff] }
 0x9fc   : > { %17568 = vmatpush1.bf16.msra.mxu1 %v16358_v24  ;;  %v16807_v24 = vld [vmem:[#allocation3 + $0x16a8] sm:$0xff] }
 0x9fd   : > { %17445 = vmatpush1.bf16.msra.mxu0 %v16676_v13  ;;  %17569 = vmatprep.subr.bf16.mxu1 %v16369_v25  ;;  %v16478_v13 = vld [vmem:[#allocation3 + $0xc60] sm:$0xff] }
 0x9fe   : > { %17446 = vmatprep.subr.bf16.mxu0 %v16687_v46  ;;  %v16489_v46 = vld [vmem:[#allocation3 + $0xcb8] sm:$0xff]  ;;  %v16806_v25 = vld [vmem:[#allocation3 + $0x16a0] sm:$0xff] }
 0xa00   : > { %17570 = vmatpush1.bf16.msra.mxu1 %v16368_v12  ;;  %v16817_v12 = vld [vmem:[#allocation3 + $0x16f8] sm:$0xff] }
 0xa01   : > { %17447 = vmatpush1.bf16.msra.mxu0 %v16686_v29  ;;  %17571 = vmatprep.subr.bf16.mxu1 %v16379_v48  ;;  %v16488_v29 = vld [vmem:[#allocation3 + $0xcb0] sm:$0xff] }
 0xa02   : > { %17448 = vmatprep.subr.bf16.mxu0 %v16697_v22  ;;  %v16499_v22 = vld [vmem:[#allocation3 + $0xd08] sm:$0xff]  ;;  %v16816_v48 = vld [vmem:[#allocation3 + $0x16f0] sm:$0xff] }
 0xa04   : > { %17572 = vmatpush1.bf16.msra.mxu1 %v16378_v10  ;;  %v16827_v10 = vld [vmem:[#allocation3 + $0x1748] sm:$0xff] }
 0xa05   : > { %17449 = vmatpush1.bf16.msra.mxu0 %v16696_v51  ;;  %17573 = vmatprep.subr.bf16.mxu1 %v16389_v1  ;;  %v16498_v51 = vld [vmem:[#allocation3 + $0xd00] sm:$0xff] }
 0xa06   : > { %17450 = vmatprep.subr.bf16.mxu0 %v16707_v35  ;;  %v16509_v35 = vld [vmem:[#allocation3 + $0xd58] sm:$0xff]  ;;  %v16826_v1 = vld [vmem:[#allocation3 + $0x1740] sm:$0xff] }
 0xa08   : > { %17574 = vmatpush1.bf16.msra.mxu1 %v16388_v18  ;;  %v16519_v18 = vld [vmem:[#allocation3 + $0xda8] sm:$0xff] }
 0xa09   : > { %17451 = vmatpush1.bf16.msra.mxu0 %v16706_v17  ;;  %17575 = vmatprep.subr.bf16.mxu1 %v16399_v23  ;;  %v16508_v17 = vld [vmem:[#allocation3 + $0xd50] sm:$0xff]  ;;  %v16518_v23 = vld [vmem:[#allocation3 + $0xda0] sm:$0xff] }
 0xa0a   : > { %17452 = vmatprep.subr.bf16.mxu0 %v16717_v6  ;;  %v16091_v6 = vld [vmem:[#allocation3 + $0x48] sm:$0xff] }
 0xa0c   : > { %17576 = vmatpush1.bf16.msra.mxu1 %v16398_v42  ;;  %v16529_v42 = vld [vmem:[#allocation3 + $0xdf8] sm:$0xff] }
 0xa0d   : > { %17453 = vmatpush1.bf16.msra.mxu0 %v16716_v0  ;;  %17586 = vmatprep.subr.bf16.mxu1 %v16409_v45  ;;  %v16090_v0 = vld [vmem:[#allocation3 + $0x40] sm:$0xff]  ;;  %v16528_v45 = vld [vmem:[#allocation3 + $0xdf0] sm:$0xff] }
 0xa0e   : > { %17463 = vmatprep.subr.bf16.mxu0 %v16727_v27  ;;  %v16101_v27 = vld [vmem:[#allocation3 + $0x98] sm:$0xff] }
 0xa0f   : > { %17578 = vmatmul.mubr.bf16.vlgmr.msra.gmra.mrb[8].mxu1 %v25244_v61 }
 0xa10   : > { %17455 = vmatmul.mubr.bf16.vlgmr.msra.gmra.mrb[4].mxu0 %v25260_v20  ;;  %17587 = vmatpush1.bf16.msra.mxu1 %v16408_v30  ;;  %v16539_v30 = vld [vmem:[#allocation3 + $0xe48] sm:$0xff] }
 0xa11   : > { %17464 = vmatpush1.bf16.msra.mxu0 %v16726_v28  ;;  %17588 = vmatprep.subr.bf16.mxu1 %v16419_v31  ;;  %v16100_v28 = vld [vmem:[#allocation3 + $0x90] sm:$0xff]  ;;  %v16538_v31 = vld [vmem:[#allocation3 + $0xe40] sm:$0xff] }
 0xa12   : > { %17465 = vmatprep.subr.bf16.mxu0 %v16737_v33  ;;  %19686 = vmatprep.mubr.msk.bf16.mxu0 %vm16038_vm1, %v25262_v26  ;;  %v16111_v33 = vld [vmem:[#allocation3 + $0xe8] sm:$0xff] }
 0xa13   : > { %17618 = vmatprep.mubr.bf16.mxu1 %v25246_v15 }
 0xa14   : > { %17589 = vmatpush1.bf16.msra.mxu1 %v16418_v59  ;;  %v16549_v59 = vld [vmem:[#allocation3 + $0xe98] sm:$0xff] }
 0xa15   : > { %17466 = vmatpush1.bf16.msra.mxu0 %v16736_v32  ;;  %17590 = vmatprep.subr.bf16.mxu1 %v16429_v40  ;;  %v16110_v32 = vld [vmem:[#allocation3 + $0xe0] sm:$0xff]  ;;  %v16548_v40 = vld [vmem:[#allocation3 + $0xe90] sm:$0xff] }
 0xa16   : > { %17467 = vmatprep.subr.bf16.mxu0 %v16747_v36  ;;  %v16121_v36 = vld [vmem:[#allocation3 + $0x138] sm:$0xff] }
 0xa18   : > { %17591 = vmatpush1.bf16.msra.mxu1 %v16428_v63  ;;  %v16559_v63 = vld [vmem:[#allocation3 + $0xee8] sm:$0xff] }
 0xa19   : > { %17468 = vmatpush1.bf16.msra.mxu0 %v16746_v41  ;;  %17592 = vmatprep.subr.bf16.mxu1 %v16439_v44  ;;  %v16120_v41 = vld [vmem:[#allocation3 + $0x130] sm:$0xff]  ;;  %v16130_v44 = vld [vmem:[#allocation3 + $0x180] sm:$0xff] }
 0xa1a   : > { %17469 = vmatprep.subr.bf16.mxu0 %v16757_v43  ;;  %v16131_v43 = vld [vmem:[#allocation3 + $0x188] sm:$0xff] }
 0xa1c   : > { %17593 = vmatpush1.bf16.msra.mxu1 %v16438_v3  ;;  %v16141_v3 = vld [vmem:[#allocation3 + $0x1d8] sm:$0xff] }
 0xa1d   : > { %17470 = vmatpush1.bf16.msra.mxu0 %v16756_v19  ;;  %17594 = vmatprep.subr.bf16.mxu1 %v16449_v4  ;;  %v16569_v19 = vld [vmem:[#allocation3 + $0xf38] sm:$0xff]  ;;  %v16140_v4 = vld [vmem:[#allocation3 + $0x1d0] sm:$0xff] }
 0xa1e   : > { %17471 = vmatprep.subr.bf16.mxu0 %v16767_v7  ;;  %v16568_v7 = vld [vmem:[#allocation3 + $0xf30] sm:$0xff] }
 0xa20   : > { %17595 = vmatpush1.bf16.msra.mxu1 %v16448_v5  ;;  %v16151_v5 = vld [vmem:[#allocation3 + $0x228] sm:$0xff] }
 0xa21   : > { %17472 = vmatpush1.bf16.msra.mxu0 %v16766_v47  ;;  %17596 = vmatprep.subr.bf16.mxu1 %v16459_v2  ;;  %v16579_v47 = vld [vmem:[#allocation3 + $0xf88] sm:$0xff]  ;;  %v16150_v2 = vld [vmem:[#allocation3 + $0x220] sm:$0xff] }
 0xa22   : > { %17473 = vmatprep.subr.bf16.mxu0 %v16777_v62  ;;  %v16578_v62 = vld [vmem:[#allocation3 + $0xf80] sm:$0xff] }
 0xa24   : > { %17597 = vmatpush1.bf16.msra.mxu1 %v16458_v53  ;;  %v16161_v53 = vld [vmem:[#allocation3 + $0x278] sm:$0xff] }
 0xa25   : > { %17474 = vmatpush1.bf16.msra.mxu0 %v16776_v49  ;;  %17598 = vmatprep.subr.bf16.mxu1 %v16469_v50  ;;  %v16589_v49 = vld [vmem:[#allocation3 + $0xfd8] sm:$0xff]  ;;  %v16160_v50 = vld [vmem:[#allocation3 + $0x270] sm:$0xff] }
 0xa26   : > { %17475 = vmatprep.subr.bf16.mxu0 %v16787_v54  ;;  %v16588_v54 = vld [vmem:[#allocation3 + $0xfd0] sm:$0xff] }
 0xa28   : > { %17599 = vmatpush1.bf16.msra.mxu1 %v16468_v57  ;;  %v16171_v57 = vld [vmem:[#allocation3 + $0x2c8] sm:$0xff] }
 0xa29   : > { %17476 = vmatpush1.bf16.msra.mxu0 %v16786_v11  ;;  %17600 = vmatprep.subr.bf16.mxu1 %v16479_v38  ;;  %v16599_v11 = vld [vmem:[#allocation3 + $0x1028] sm:$0xff]  ;;  %v16170_v38 = vld [vmem:[#allocation3 + $0x2c0] sm:$0xff] }
 0xa2a   : > { %17477 = vmatprep.subr.bf16.mxu0 %v16797_v37  ;;  %v16598_v37 = vld [vmem:[#allocation3 + $0x1020] sm:$0xff] }
 0xa2c   : > { %17601 = vmatpush1.bf16.msra.mxu1 %v16478_v13  ;;  %v16181_v13 = vld [vmem:[#allocation3 + $0x318] sm:$0xff] }
 0xa2d   : > { %17478 = vmatpush1.bf16.msra.mxu0 %v16796_v58  ;;  %17602 = vmatprep.subr.bf16.mxu1 %v16489_v46  ;;  %v16609_v58 = vld [vmem:[#allocation3 + $0x1078] sm:$0xff]  ;;  %v16180_v46 = vld [vmem:[#allocation3 + $0x310] sm:$0xff] }
 0xa2e   : > { %17479 = vmatprep.subr.bf16.mxu0 %v16807_v24  ;;  %v16608_v24 = vld [vmem:[#allocation3 + $0x1070] sm:$0xff] }
 0xa30   : > { %17603 = vmatpush1.bf16.msra.mxu1 %v16488_v29  ;;  %v16191_v29 = vld [vmem:[#allocation3 + $0x368] sm:$0xff] }
 0xa31   : > { %17480 = vmatpush1.bf16.msra.mxu0 %v16806_v25  ;;  %17604 = vmatprep.subr.bf16.mxu1 %v16499_v22  ;;  %v16619_v25 = vld [vmem:[#allocation3 + $0x10c8] sm:$0xff]  ;;  %v16190_v22 = vld [vmem:[#allocation3 + $0x360] sm:$0xff] }
 0xa32   : > { %17481 = vmatprep.subr.bf16.mxu0 %v16817_v12  ;;  %v16618_v12 = vld [vmem:[#allocation3 + $0x10c0] sm:$0xff] }
 0xa34   : > { %17605 = vmatpush1.bf16.msra.mxu1 %v16498_v51  ;;  %v16629_v51 = vld [vmem:[#allocation3 + $0x1118] sm:$0xff] }
 0xa35   : > { %17482 = vmatpush1.bf16.msra.mxu0 %v16816_v48  ;;  %17606 = vmatprep.subr.bf16.mxu1 %v16509_v35 }
 0xa36   : > { %17483 = vmatprep.subr.bf16.mxu0 %v16827_v10  ;;  %v16201_v10 = vld [vmem:[#allocation3 + $0x3b8] sm:$0xff] }
 0xa38   : > { %17607 = vmatpush1.bf16.msra.mxu1 %v16508_v17 }
 0xa39   : > { %17484 = vmatpush1.bf16.msra.mxu0 %v16826_v1  ;;  %17608 = vmatprep.subr.bf16.mxu1 %v16519_v18  ;;  %v16628_v18 = vld [vmem:[#allocation3 + $0x1110] sm:$0xff] }
 0xa3a   : > { %17709 = vmatprep.subr.bf16.mxu0 %v16091_v6  ;;  %v16200_v6 = vld [vmem:[#allocation3 + $0x3b0] sm:$0xff] }
 0xa3c   : > { %17496 = vmatmul.mubr.bf16.vlgmr.msra.gmra.mrb[4].mxu0 %v25269_v14  ;;  %17609 = vmatpush1.bf16.msra.mxu1 %v16518_v23  ;;  %v16639_v23 = vld [vmem:[#allocation3 + $0x1168] sm:$0xff] }
 0xa3d   : > { %17710 = vmatpush1.bf16.msra.mxu0 %v16090_v0  ;;  %17610 = vmatprep.subr.bf16.mxu1 %v16529_v42  ;;  %v16211_v0 = vld [vmem:[#allocation3 + $0x408] sm:$0xff]  ;;  %v16638_v42 = vld [vmem:[#allocation3 + $0x1160] sm:$0xff] }
 0xa3e   : > { %17711 = vmatprep.subr.bf16.mxu0 %v16101_v27  ;;  %17741 = vmatprep.mubr.bf16.mxu0 %v25236_v52  ;;  %v16558_v52 = vld [vmem:[#allocation3 + $0xee0] sm:$0xff] }
 0xa3f   : > { %v16210_v27 = vld [vmem:[#allocation3 + $0x400] sm:$0xff] }
 0xa40   : > { %17611 = vmatpush1.bf16.msra.mxu1 %v16528_v45  ;;  %v16649_v45 = vld [vmem:[#allocation3 + $0x11b8] sm:$0xff] }
 0xa41   : > { %17712 = vmatpush1.bf16.msra.mxu0 %v16100_v28  ;;  %17612 = vmatprep.subr.bf16.mxu1 %v16539_v30  ;;  %v16221_v28 = vld [vmem:[#allocation3 + $0x458] sm:$0xff]  ;;  %v16648_v30 = vld [vmem:[#allocation3 + $0x11b0] sm:$0xff] }
 0xa42   : > { %17713 = vmatprep.subr.bf16.mxu0 %v16111_v33  ;;  %v16220_v33 = vld [vmem:[#allocation3 + $0x450] sm:$0xff] }
 0xa44   : > { %17613 = vmatpush1.bf16.msra.mxu1 %v16538_v31  ;;  %v16659_v31 = vld [vmem:[#allocation3 + $0x1208] sm:$0xff] }
 0xa45   : > { %17714 = vmatpush1.bf16.msra.mxu0 %v16110_v32  ;;  %17614 = vmatprep.subr.bf16.mxu1 %v16549_v59  ;;  %v16231_v32 = vld [vmem:[#allocation3 + $0x4a8] sm:$0xff]  ;;  %v16658_v59 = vld [vmem:[#allocation3 + $0x1200] sm:$0xff] }
 0xa46   : > { %17715 = vmatprep.subr.bf16.mxu0 %v16121_v36  ;;  %v16230_v36 = vld [vmem:[#allocation3 + $0x4a0] sm:$0xff] }
 0xa48   : > { %17615 = vmatpush1.bf16.msra.mxu1 %v16548_v40  ;;  %v16669_v40 = vld [vmem:[#allocation3 + $0x1258] sm:$0xff] }
 0xa49   : > { %17716 = vmatpush1.bf16.msra.mxu0 %v16120_v41  ;;  %17616 = vmatprep.subr.bf16.mxu1 %v16559_v63  ;;  %v16241_v41 = vld [vmem:[#allocation3 + $0x4f8] sm:$0xff]  ;;  %v16668_v63 = vld [vmem:[#allocation3 + $0x1250] sm:$0xff] }
 0xa4a   : > { %17717 = vmatprep.subr.bf16.mxu0 %v16131_v43  ;;  %v16240_v43 = vld [vmem:[#allocation3 + $0x4f0] sm:$0xff] }
 0xa4c   : > { %17617 = vmatpush1.bf16.msra.mxu1 %v16558_v52  ;;  %v16679_v52 = vld [vmem:[#allocation3 + $0x12a8] sm:$0xff] }
 0xa4d   : > { %17718 = vmatpush1.bf16.msra.mxu0 %v16130_v44  ;;  %17627 = vmatprep.subr.bf16.mxu1 %v16569_v19  ;;  %v16251_v44 = vld [vmem:[#allocation3 + $0x548] sm:$0xff]  ;;  %v16678_v19 = vld [vmem:[#allocation3 + $0x12a0] sm:$0xff] }
 0xa4e   : > { %17719 = vmatprep.subr.bf16.mxu0 %v16141_v3  ;;  %v16250_v3 = vld [vmem:[#allocation3 + $0x540] sm:$0xff] }
 0xa4f   : > { %17619 = vmatmul.mubr.bf16.vlgmr.msra.gmra.mrb[8].mxu1 %v25252_v21 }
 0xa50   : > { %17628 = vmatpush1.bf16.msra.mxu1 %v16568_v7  ;;  %17659 = vmatprep.mubr.bf16.mxu1 %v25254_v9  ;;  %v16689_v7 = vld [vmem:[#allocation3 + $0x12f8] sm:$0xff] }
 0xa51   : > { %17720 = vmatpush1.bf16.msra.mxu0 %v16140_v4  ;;  %17629 = vmatprep.subr.bf16.mxu1 %v16579_v47  ;;  %v16261_v4 = vld [vmem:[#allocation3 + $0x598] sm:$0xff]  ;;  %v16688_v47 = vld [vmem:[#allocation3 + $0x12f0] sm:$0xff] }
 0xa52   : > { %17721 = vmatprep.subr.bf16.mxu0 %v16151_v5  ;;  %v16260_v5 = vld [vmem:[#allocation3 + $0x590] sm:$0xff] }
 0xa54   : > { %17630 = vmatpush1.bf16.msra.mxu1 %v16578_v62  ;;  %v16699_v62 = vld [vmem:[#allocation3 + $0x1348] sm:$0xff] }
 0xa55   : > { %17722 = vmatpush1.bf16.msra.mxu0 %v16150_v2  ;;  %17631 = vmatprep.subr.bf16.mxu1 %v16589_v49  ;;  %v16271_v2 = vld [vmem:[#allocation3 + $0x5e8] sm:$0xff]  ;;  %v16698_v49 = vld [vmem:[#allocation3 + $0x1340] sm:$0xff] }
 0xa56   : > { %17723 = vmatprep.subr.bf16.mxu0 %v16161_v53  ;;  %v16270_v53 = vld [vmem:[#allocation3 + $0x5e0] sm:$0xff] }
 0xa58   : > { %17632 = vmatpush1.bf16.msra.mxu1 %v16588_v54  ;;  %v16709_v54 = vld [vmem:[#allocation3 + $0x1398] sm:$0xff] }
 0xa59   : > { %17724 = vmatpush1.bf16.msra.mxu0 %v16160_v50  ;;  %17633 = vmatprep.subr.bf16.mxu1 %v16599_v11  ;;  %v16281_v50 = vld [vmem:[#allocation3 + $0x638] sm:$0xff]  ;;  %v16280_v11 = vld [vmem:[#allocation3 + $0x630] sm:$0xff] }
 0xa5a   : > { %17725 = vmatprep.subr.bf16.mxu0 %v16171_v57  ;;  %v16719_v57 = vld [vmem:[#allocation3 + $0x13e8] sm:$0xff] }
 0xa5c   : > { %17634 = vmatpush1.bf16.msra.mxu1 %v16598_v37  ;;  %v16291_v37 = vld [vmem:[#allocation3 + $0x688] sm:$0xff] }
 0xa5d   : > { %17726 = vmatpush1.bf16.msra.mxu0 %v16170_v38  ;;  %17635 = vmatprep.subr.bf16.mxu1 %v16609_v58  ;;  %v16290_v38 = vld [vmem:[#allocation3 + $0x680] sm:$0xff]  ;;  %v16729_v58 = vld [vmem:[#allocation3 + $0x1438] sm:$0xff] }
 0xa5e   : > { %17727 = vmatprep.subr.bf16.mxu0 %v16181_v13  ;;  %v16301_v13 = vld [vmem:[#allocation3 + $0x6d8] sm:$0xff] }
 0xa60   : > { %17636 = vmatpush1.bf16.msra.mxu1 %v16608_v24  ;;  %v16728_v24 = vld [vmem:[#allocation3 + $0x1430] sm:$0xff] }
 0xa61   : > { %17728 = vmatpush1.bf16.msra.mxu0 %v16180_v46  ;;  %17637 = vmatprep.subr.bf16.mxu1 %v16619_v25  ;;  %v16300_v46 = vld [vmem:[#allocation3 + $0x6d0] sm:$0xff]  ;;  %v16739_v25 = vld [vmem:[#allocation3 + $0x1488] sm:$0xff] }
 0xa62   : > { %17729 = vmatprep.subr.bf16.mxu0 %v16191_v29  ;;  %v25318_v48 = vpop.f32.mrb[4].mxu1  ;;  %v16311_v29 = vld [vmem:[#allocation3 + $0x728] sm:$0xff] }
 0xa63   : > { %v25320_v35 = vpop.f32.mrb[5].mxu1 }
 0xa64   : > { %v17296_v1 = vpop.f32.mrb[6].mxu1  ;;  %17638 = vmatpush1.bf16.msra.mxu1 %v16618_v12  ;;  %v16738_v12 = vld [vmem:[#allocation3 + $0x1480] sm:$0xff] }
 0xa65   : > { %17730 = vmatpush1.bf16.msra.mxu0 %v16190_v22  ;;  %v17297_v17 = vpop.f32.mrb[7].mxu1  ;;  %17639 = vmatprep.subr.bf16.mxu1 %v16629_v51  ;;  %v16310_v22 = vld [vmem:[#allocation3 + $0x720] sm:$0xff]  ;;  %v16749_v51 = vld [vmem:[#allocation3 + $0x14d8] sm:$0xff]  ;;  %v16748_v1 = vld [vmem:[#allocation3 + $0x14d0] sm:$0xff] }
 0xa66   : > { %17731 = vmatprep.subr.bf16.mxu0 %v16201_v10  ;;  %v16321_v10 = vld [vmem:[#allocation3 + $0x778] sm:$0xff]  ;;  %v16320_v17 = vld [vmem:[#allocation3 + $0x770] sm:$0xff] }
 0xa68   : > { %17640 = vmatpush1.bf16.msra.mxu1 %v16628_v18  ;;  %v16759_v18 = vld [vmem:[#allocation3 + $0x1528] sm:$0xff] }
 0xa69   : > { %17732 = vmatpush1.bf16.msra.mxu0 %v16200_v6  ;;  %17641 = vmatprep.subr.bf16.mxu1 %v16639_v23  ;;  %v16331_v6 = vld [vmem:[#allocation3 + $0x7c8] sm:$0xff]  ;;  %v16758_v23 = vld [vmem:[#allocation3 + $0x1520] sm:$0xff] }
 0xa6a   : > { %17733 = vmatprep.subr.bf16.mxu0 %v16211_v0  ;;  %v16330_v0 = vld [vmem:[#allocation3 + $0x7c0] sm:$0xff] }
 0xa6c   : > { %17642 = vmatpush1.bf16.msra.mxu1 %v16638_v42  ;;  %v16769_v42 = vld [vmem:[#allocation3 + $0x1578] sm:$0xff] }
 0xa6d   : > { %17734 = vmatpush1.bf16.msra.mxu0 %v16210_v27  ;;  %17643 = vmatprep.subr.bf16.mxu1 %v16649_v45  ;;  %v16341_v27 = vld [vmem:[#allocation3 + $0x818] sm:$0xff]  ;;  %v16768_v45 = vld [vmem:[#allocation3 + $0x1570] sm:$0xff] }
 0xa6e   : > { %17735 = vmatprep.subr.bf16.mxu0 %v16221_v28  ;;  %v16340_v28 = vld [vmem:[#allocation3 + $0x810] sm:$0xff] }
 0xa70   : > { %17644 = vmatpush1.bf16.msra.mxu1 %v16648_v30  ;;  %v16779_v30 = vld [vmem:[#allocation3 + $0x15c8] sm:$0xff] }
 0xa71   : > { %17736 = vmatpush1.bf16.msra.mxu0 %v16220_v33  ;;  %17645 = vmatprep.subr.bf16.mxu1 %v16659_v31  ;;  %v16351_v33 = vld [vmem:[#allocation3 + $0x868] sm:$0xff]  ;;  %v16778_v31 = vld [vmem:[#allocation3 + $0x15c0] sm:$0xff] }
 0xa72   : > { %17737 = vmatprep.subr.bf16.mxu0 %v16231_v32  ;;  %v16350_v32 = vld [vmem:[#allocation3 + $0x860] sm:$0xff] }
 0xa74   : > { %17646 = vmatpush1.bf16.msra.mxu1 %v16658_v59  ;;  %v16789_v59 = vld [vmem:[#allocation3 + $0x1618] sm:$0xff] }
 0xa75   : > { %17738 = vmatpush1.bf16.msra.mxu0 %v16230_v36  ;;  %17647 = vmatprep.subr.bf16.mxu1 %v16669_v40  ;;  %v16361_v36 = vld [vmem:[#allocation3 + $0x8b8] sm:$0xff]  ;;  %v16788_v40 = vld [vmem:[#allocation3 + $0x1610] sm:$0xff] }
 0xa76   : > { %17739 = vmatprep.subr.bf16.mxu0 %v16241_v41  ;;  %v16360_v41 = vld [vmem:[#allocation3 + $0x8b0] sm:$0xff] }
 0xa78   : > { %17648 = vmatpush1.bf16.msra.mxu1 %v16668_v63  ;;  %v16799_v63 = vld [vmem:[#allocation3 + $0x1668] sm:$0xff] }
 0xa79   : > { %17740 = vmatpush1.bf16.msra.mxu0 %v16240_v43  ;;  %17649 = vmatprep.subr.bf16.mxu1 %v16679_v52  ;;  %v16371_v43 = vld [vmem:[#allocation3 + $0x908] sm:$0xff]  ;;  %v16798_v52 = vld [vmem:[#allocation3 + $0x1660] sm:$0xff] }
 0xa7a   : > { %17750 = vmatprep.subr.bf16.mxu0 %v16251_v44  ;;  %v16370_v44 = vld [vmem:[#allocation3 + $0x900] sm:$0xff] }
 0xa7c   : > { %17742 = vmatmul.mubr.bf16.vlgmr.msra.gmra.mrb[8].mxu0 %v25242_v60  ;;  %17650 = vmatpush1.bf16.msra.mxu1 %v16678_v19  ;;  %v16708_v60 = vld [vmem:[#allocation3 + $0x1390] sm:$0xff]  ;;  %v16809_v19 = vld [vmem:[#allocation3 + $0x16b8] sm:$0xff] }
 0xa7d   : > { %17751 = vmatpush1.bf16.msra.mxu0 %v16250_v3  ;;  %17651 = vmatprep.subr.bf16.mxu1 %v16689_v7  ;;  %v16381_v3 = vld [vmem:[#allocation3 + $0x958] sm:$0xff]  ;;  %v16808_v7 = vld [vmem:[#allocation3 + $0x16b0] sm:$0xff] }
 0xa7e   : > { %17752 = vmatprep.subr.bf16.mxu0 %v16261_v4  ;;  %17782 = vmatprep.mubr.bf16.mxu0 %v25238_v56  ;;  %v16718_v56 = vld [vmem:[#allocation3 + $0x13e0] sm:$0xff]  ;;  %v16380_v4 = vld [vmem:[#allocation3 + $0x950] sm:$0xff] }
 0xa80   : > { %17652 = vmatpush1.bf16.msra.mxu1 %v16688_v47  ;;  %v16819_v47 = vld [vmem:[#allocation3 + $0x1708] sm:$0xff] }
 0xa81   : > { %17753 = vmatpush1.bf16.msra.mxu0 %v16260_v5  ;;  %17653 = vmatprep.subr.bf16.mxu1 %v16699_v62  ;;  %v16391_v5 = vld [vmem:[#allocation3 + $0x9a8] sm:$0xff]  ;;  %v16818_v62 = vld [vmem:[#allocation3 + $0x1700] sm:$0xff] }
 0xa82   : > { %17754 = vmatprep.subr.bf16.mxu0 %v16271_v2  ;;  %v16390_v2 = vld [vmem:[#allocation3 + $0x9a0] sm:$0xff] }
 0xa84   : > { %17654 = vmatpush1.bf16.msra.mxu1 %v16698_v49  ;;  %v16829_v49 = vld [vmem:[#allocation3 + $0x1758] sm:$0xff] }
 0xa85   : > { %17755 = vmatpush1.bf16.msra.mxu0 %v16270_v53  ;;  %17655 = vmatprep.subr.bf16.mxu1 %v16709_v54  ;;  %v16401_v53 = vld [vmem:[#allocation3 + $0x9f8] sm:$0xff]  ;;  %v16828_v54 = vld [vmem:[#allocation3 + $0x1750] sm:$0xff] }
 0xa86   : > { %17756 = vmatprep.subr.bf16.mxu0 %v16281_v50  ;;  %v16400_v50 = vld [vmem:[#allocation3 + $0x9f0] sm:$0xff] }
 0xa88   : > { %17656 = vmatpush1.bf16.msra.mxu1 %v16708_v60  ;;  %v16411_v60 = vld [vmem:[#allocation3 + $0xa48] sm:$0xff] }
 0xa89   : > { %17757 = vmatpush1.bf16.msra.mxu0 %v16280_v11  ;;  %17657 = vmatprep.subr.bf16.mxu1 %v16719_v57  ;;  %v17942_v11 = vld [vmem:[#allocation4 + $0x40] sm:$0xff]  ;;  %v17915_v57 = vmax.f32 %v25307_v39, 0.0  ;;  %v16431_v39 = vld [vmem:[#allocation3 + $0xae8] sm:$0xff] }
 0xa8a   : > { %17758 = vmatprep.subr.bf16.mxu0 %v16291_v37  ;;  %v16410_v37 = vld [vmem:[#allocation3 + $0xa40] sm:$0xff] }
 0xa8c   : > { %17658 = vmatpush1.bf16.msra.mxu1 %v16718_v56  ;;  %v17934_v56 = vld [vmem:[#allocation4] sm:$0xff] }
 0xa8d   : > { %17759 = vmatpush1.bf16.msra.mxu0 %v16290_v38  ;;  %17668 = vmatprep.subr.bf16.mxu1 %v16729_v58  ;;  %v16421_v38 = vld [vmem:[#allocation3 + $0xa98] sm:$0xff]  ;;  %v17925_v58 = vpack.c.bf16 %v17915_v57, %v17915_v57  ;;  %v17953_v57 = vld [vmem:[#allocation4 + $0x98] sm:$0xff] }
 0xa8e   : > { %17760 = vmatprep.subr.bf16.mxu0 %v16301_v13  ;;  %v17943_v13 = vld [vmem:[#allocation4 + $0x48] sm:$0xff] }
 0xa8f   : > { %17660 = vmatmul.mubr.bf16.vlgmr.msra.gmra.mrb[8].mxu1 %v25260_v20 }
 0xa90   : > { %17669 = vmatpush1.bf16.msra.mxu1 %v16728_v24  ;;  %19687 = vmatprep.mubr.msk.bf16.mxu1 %vm16038_vm1, %v25262_v26  ;;  %v16420_v24 = vld [vmem:[#allocation3 + $0xa90] sm:$0xff] }
 0xa91   : > { %17761 = vmatpush1.bf16.msra.mxu0 %v16300_v46  ;;  %17670 = vmatprep.subr.bf16.mxu1 %v16739_v25  ;;  %v17935_v46 = vld [vmem:[#allocation4 + $0x8] sm:$0xff]  ;;  %v17944_v25 = vld [vmem:[#allocation4 + $0x50] sm:$0xff] }
 0xa92   : > { %17762 = vmatprep.subr.bf16.mxu0 %v16311_v29  ;;  %v16430_v29 = vld [vmem:[#allocation3 + $0xae0] sm:$0xff] }
 0xa94   : > { %17671 = vmatpush1.bf16.msra.mxu1 %v16738_v12  ;;  %v17936_v12 = vld [vmem:[#allocation4 + $0x10] sm:$0xff] }
 0xa95   : > { %17763 = vmatpush1.bf16.msra.mxu0 %v16310_v22  ;;  %17672 = vmatprep.subr.bf16.mxu1 %v16749_v51  ;;  %v16441_v22 = vld [vmem:[#allocation3 + $0xb38] sm:$0xff]  ;;  %v16440_v51 = vld [vmem:[#allocation3 + $0xb30] sm:$0xff] }
 0xa96   : > { %17764 = vmatprep.subr.bf16.mxu0 %v16321_v10  ;;  %v17937_v10 = vld [vmem:[#allocation4 + $0x18] sm:$0xff] }
 0xa98   : > { %17673 = vmatpush1.bf16.msra.mxu1 %v16748_v1  ;;  %v16451_v1 = vld [vmem:[#allocation3 + $0xb88] sm:$0xff] }
 0xa99   : > { %17765 = vmatpush1.bf16.msra.mxu0 %v16320_v17  ;;  %17674 = vmatprep.subr.bf16.mxu1 %v16759_v18  ;;  %v17946_v17 = vld [vmem:[#allocation4 + $0x60] sm:$0xff] }
 0xa9a   : > { %17766 = vmatprep.subr.bf16.mxu0 %v16331_v6  ;;  %v17938_v18 = vld [vmem:[#allocation4 + $0x20] sm:$0xff]  ;;  %v16461_v6 = vld [vmem:[#allocation3 + $0xbd8] sm:$0xff] }
 0xa9c   : > { %17675 = vmatpush1.bf16.msra.mxu1 %v16758_v23  ;;  %v17947_v23 = vld [vmem:[#allocation4 + $0x68] sm:$0xff] }
 0xa9d   : > { %17767 = vmatpush1.bf16.msra.mxu0 %v16330_v0  ;;  %17676 = vmatprep.subr.bf16.mxu1 %v16769_v42  ;;  %v16850_v0 = vsub.s32 3, %v25292_v8  ;;  %v16460_v42 = vld [vmem:[#allocation3 + $0xbd0] sm:$0xff] }
 0xa9e   : > { %17768 = vmatprep.subr.bf16.mxu0 %v16341_v27  ;;  %v17939_v27 = vld [vmem:[#allocation4 + $0x28] sm:$0xff] }
 0xaa0   : > { %17677 = vmatpush1.bf16.msra.mxu1 %v16768_v45  ;;  %v16471_v45 = vld [vmem:[#allocation3 + $0xc28] sm:$0xff] }
 0xaa1   : > { %17769 = vmatpush1.bf16.msra.mxu0 %v16340_v28  ;;  %17678 = vmatprep.subr.bf16.mxu1 %v16779_v30  ;;  %v17948_v28 = vld [vmem:[#allocation4 + $0x70] sm:$0xff]  ;;  %v25335_v30 = vld [vmem:[%s25378_s4] sm:$0xff] }
 0xaa2   : > { %17770 = vmatprep.subr.bf16.mxu0 %v16351_v33  ;;  %v16851_v33 = vrot.slane %v25335_v30, %v16850_v0  ;;  %v17974_v0 = vld [vmem:[#allocation4 + $0x140] sm:$0xff] }
 0xaa4   : > { %17679 = vmatpush1.bf16.msra.mxu1 %v16778_v31  ;;  %v16470_v31 = vld [vmem:[#allocation3 + $0xc20] sm:$0xff] }
 0xaa5   : > { %17771 = vmatpush1.bf16.msra.mxu0 %v16350_v32  ;;  %17680 = vmatprep.subr.bf16.mxu1 %v16789_v59  ;;  %v17940_v32 = vld [vmem:[#allocation4 + $0x30] sm:$0xff]  ;;  %v16481_v59 = vld [vmem:[#allocation3 + $0xc78] sm:$0xff] }
 0xaa6   : > { %17772 = vmatprep.subr.bf16.mxu0 %v16361_v36  ;;  %v17949_v36 = vld [vmem:[#allocation4 + $0x78] sm:$0xff] }
 0xaa8   : > { %17681 = vmatpush1.bf16.msra.mxu1 %v16788_v40  ;;  %v19788_v40 = vadd.f32 %v25320_v35, %v16851_v33  ;;  %v16580_v33 = vld [vmem:[#allocation3 + $0xf90] sm:$0xff] }
 0xaa9   : > { %17773 = vmatpush1.bf16.msra.mxu0 %v16360_v41  ;;  %17682 = vmatprep.subr.bf16.mxu1 %v16799_v63  ;;  %v17914_v41 = vmax.f32 %v25305_v34, 0.0  ;;  %v16480_v63 = vld [vmem:[#allocation3 + $0xc70] sm:$0xff] }
 0xaaa   : > { %17774 = vmatprep.subr.bf16.mxu0 %v16371_v43  ;;  %v17941_v43 = vld [vmem:[#allocation4 + $0x38] sm:$0xff]  ;;  %v16500_v34 = vld [vmem:[#allocation3 + $0xd10] sm:$0xff] }
 0xaac   : > { %17683 = vmatpush1.bf16.msra.mxu1 %v16798_v52  ;;  %v16491_v52 = vld [vmem:[#allocation3 + $0xcc8] sm:$0xff] }
 0xaad   : > { %17775 = vmatpush1.bf16.msra.mxu0 %v16370_v44  ;;  %17684 = vmatprep.subr.bf16.mxu1 %v16809_v19  ;;  %v17958_v44 = vld [vmem:[#allocation4 + $0xc0] sm:$0xff]  ;;  %v17917_v19 = vmax.f32 %v19788_v40, 0.0  ;;  %v17968_v40 = vld [vmem:[#allocation4 + $0x110] sm:$0xff] }
 0xaae   : > { %17776 = vmatprep.subr.bf16.mxu0 %v16381_v3  ;;  %v17924_v3 = vpack.c.bf16 %v17914_v41, %v17914_v41  ;;  %v16601_v41 = vld [vmem:[#allocation3 + $0x1038] sm:$0xff] }
 0xaaf   : > { %v17927_v35 = vpack.c.bf16 %v17917_v19, %v17917_v19  ;;  %v16610_v19 = vld [vmem:[#allocation3 + $0x1080] sm:$0xff] }
 0xab0   : > { %17685 = vmatpush1.bf16.msra.mxu1 %v16808_v7  ;;  %v16490_v7 = vld [vmem:[#allocation3 + $0xcc0] sm:$0xff] }
 0xab1   : > { %17777 = vmatpush1.bf16.msra.mxu0 %v16380_v4  ;;  %17686 = vmatprep.subr.bf16.mxu1 %v16819_v47  ;;  %v17950_v4 = vld [vmem:[#allocation4 + $0x80] sm:$0xff]  ;;  %v16501_v47 = vld [vmem:[#allocation3 + $0xd18] sm:$0xff] }
 0xab2   : > { %17778 = vmatprep.subr.bf16.mxu0 %v16391_v5  ;;  %v17959_v5 = vld [vmem:[#allocation4 + $0xc8] sm:$0xff] }
 0xab4   : > { %17687 = vmatpush1.bf16.msra.mxu1 %v16818_v62  ;;  %v17951_v62 = vld [vmem:[#allocation4 + $0x88] sm:$0xff] }
 0xab5   : > { %17779 = vmatpush1.bf16.msra.mxu0 %v16390_v2  ;;  %17688 = vmatprep.subr.bf16.mxu1 %v16829_v49  ;;  %v16511_v2 = vld [vmem:[#allocation3 + $0xd68] sm:$0xff]  ;;  %v17960_v49 = vld [vmem:[#allocation4 + $0xd0] sm:$0xff] }
 0xab6   : > { %17780 = vmatprep.subr.bf16.mxu0 %v16401_v53  ;;  %v16510_v53 = vld [vmem:[#allocation3 + $0xd60] sm:$0xff] }
 0xab8   : > { %17689 = vmatpush1.bf16.msra.mxu1 %v16828_v54  ;;  %v17952_v54 = vld [vmem:[#allocation4 + $0x90] sm:$0xff] }
 0xab9   : > { %17781 = vmatpush1.bf16.msra.mxu0 %v16400_v50  ;;  %19695 = vmatprep.subr.bf16.mxu1 %v17942_v11  ;;  %v16521_v50 = vld [vmem:[#allocation3 + $0xdb8] sm:$0xff]  ;;  %v16520_v11 = vld [vmem:[#allocation3 + $0xdb0] sm:$0xff] }
 0xaba   : > { %17791 = vmatprep.subr.bf16.mxu0 %v16411_v60  ;;  %v17961_v60 = vld [vmem:[#allocation4 + $0xd8] sm:$0xff] }
 0xabb   : > { %17701 = vmatmul.mubr.bf16.vlgmr.msra.gmra.mrb[8].mxu1 %v25269_v14 }
 0xabc   : > { %17783 = vmatmul.mubr.bf16.vlgmr.msra.gmra.mrb[8].mxu0 %v25244_v61  ;;  %19696 = vmatpush3.bf16.msra.mxu1 %v17934_v56  ;;  %v17945_v61 = vld [vmem:[#allocation4 + $0x58] sm:$0xff]  ;;  %v17962_v56 = vld [vmem:[#allocation4 + $0xe0] sm:$0xff] }
 0xabd   : > { %17792 = vmatpush1.bf16.msra.mxu0 %v16410_v37  ;;  %18051 = vmatprep.mubr.bf16.mxu1 %v17925_v58  ;;  %v16531_v37 = vld [vmem:[#allocation3 + $0xe08] sm:$0xff]  ;;  %v16530_v58 = vld [vmem:[#allocation3 + $0xe00] sm:$0xff] }
 0xabe   : > { %17793 = vmatprep.subr.bf16.mxu0 %v16421_v38  ;;  %19697 = vmatprep.subr.bf16.mxu1 %v17943_v13  ;;  %v16846_v38 = vsub.s32 2, %v25292_v8  ;;  %v17954_v13 = vld [vmem:[#allocation4 + $0xa0] sm:$0xff] }
 0xabf   : > { %17823 = vmatprep.mubr.bf16.mxu0 %v25246_v15  ;;  %v16450_v15 = vld [vmem:[#allocation3 + $0xb80] sm:$0xff] }
 0xac0   : > { %19698 = vmatpush3.bf16.msra.mxu1 %v17935_v46  ;;  %v17963_v46 = vld [vmem:[#allocation4 + $0xe8] sm:$0xff] }
 0xac1   : > { %17794 = vmatpush1.bf16.msra.mxu0 %v16420_v24  ;;  %19699 = vmatprep.subr.bf16.mxu1 %v17944_v25  ;;  %v16541_v24 = vld [vmem:[#allocation3 + $0xe58] sm:$0xff]  ;;  %v16540_v25 = vld [vmem:[#allocation3 + $0xe50] sm:$0xff] }
 0xac2   : > { %17795 = vmatprep.subr.bf16.mxu0 %v16431_v39  ;;  %v16847_v39 = vrot.slane %v25335_v30, %v16846_v38 }
 0xac4   : > { %19700 = vmatpush3.bf16.msra.mxu1 %v17936_v12  ;;  %v16551_v12 = vld [vmem:[#allocation3 + $0xea8] sm:$0xff] }
 0xac5   : > { %17796 = vmatpush1.bf16.msra.mxu0 %v16430_v29  ;;  %19701 = vmatprep.subr.bf16.mxu1 %v17945_v61  ;;  %v17955_v29 = vld [vmem:[#allocation4 + $0xa8] sm:$0xff]  ;;  %v19787_v61 = vadd.f32 %v25318_v48, %v16847_v39  ;;  %v16570_v48 = vld [vmem:[#allocation3 + $0xf40] sm:$0xff]  ;;  %v16640_v39 = vld [vmem:[#allocation3 + $0x1170] sm:$0xff] }
 0xac6   : > { %17797 = vmatprep.subr.bf16.mxu0 %v16441_v22  ;;  %v17964_v22 = vld [vmem:[#allocation4 + $0xf0] sm:$0xff] }
 0xac8   : > { %19702 = vmatpush3.bf16.msra.mxu1 %v17937_v10  ;;  %v17956_v10 = vld [vmem:[#allocation4 + $0xb0] sm:$0xff] }
 0xac9   : > { %17798 = vmatpush1.bf16.msra.mxu0 %v16440_v51  ;;  %19703 = vmatprep.subr.bf16.mxu1 %v17946_v17  ;;  %v16550_v51 = vld [vmem:[#allocation3 + $0xea0] sm:$0xff]  ;;  %v17965_v17 = vld [vmem:[#allocation4 + $0xf8] sm:$0xff] }
 0xaca   : > { %17799 = vmatprep.subr.bf16.mxu0 %v16451_v1  ;;  %v16561_v1 = vld [vmem:[#allocation3 + $0xef8] sm:$0xff] }
 0xacc   : > { %19704 = vmatpush3.bf16.msra.mxu1 %v17938_v18  ;;  %v16560_v18 = vld [vmem:[#allocation3 + $0xef0] sm:$0xff] }
 0xacd   : > { %17800 = vmatpush1.bf16.msra.mxu0 %v16450_v15  ;;  %19705 = vmatprep.subr.bf16.mxu1 %v17947_v23  ;;  %v17916_v15 = vmax.f32 %v19787_v61, 0.0  ;;  %v16571_v23 = vld [vmem:[#allocation3 + $0xf48] sm:$0xff]  ;;  %v16650_v61 = vld [vmem:[#allocation3 + $0x11c0] sm:$0xff] }
 0xace   : > { %17801 = vmatprep.subr.bf16.mxu0 %v16461_v6  ;;  %v17957_v6 = vld [vmem:[#allocation4 + $0xb8] sm:$0xff] }
 0xad0   : > { %19706 = vmatpush3.bf16.msra.mxu1 %v17939_v27  ;;  %v17966_v27 = vld [vmem:[#allocation4 + $0x100] sm:$0xff] }
 0xad1   : > { %17802 = vmatpush1.bf16.msra.mxu0 %v16460_v42  ;;  %19707 = vmatprep.subr.bf16.mxu1 %v17948_v28  ;;  %v17926_v42 = vpack.c.bf16 %v17916_v15, %v17916_v15  ;;  %v17975_v28 = vld [vmem:[#allocation4 + $0x148] sm:$0xff] }
 0xad2   : > { %17803 = vmatprep.subr.bf16.mxu0 %v16471_v45  ;;  %v16581_v45 = vld [vmem:[#allocation3 + $0xf98] sm:$0xff] }
 0xad3   : > { %v17983_v15 = vld [vmem:[#allocation4 + $0x188] sm:$0xff] }
 0xad4   : > { %19708 = vmatpush3.bf16.msra.mxu1 %v17940_v32  ;;  %v16591_v32 = vld [vmem:[#allocation3 + $0xfe8] sm:$0xff] }
 0xad5   : > { %17804 = vmatpush1.bf16.msra.mxu0 %v16470_v31  ;;  %19709 = vmatprep.subr.bf16.mxu1 %v17949_v36  ;;  %v17967_v31 = vld [vmem:[#allocation4 + $0x108] sm:$0xff]  ;;  %v16590_v36 = vld [vmem:[#allocation3 + $0xfe0] sm:$0xff] }
 0xad6   : > { %17805 = vmatprep.subr.bf16.mxu0 %v16481_v59  ;;  %v17976_v59 = vld [vmem:[#allocation4 + $0x150] sm:$0xff] }
 0xad8   : > { %19710 = vmatpush3.bf16.msra.mxu1 %v17941_v43  ;;  %v17969_v43 = vld [vmem:[#allocation4 + $0x118] sm:$0xff] }
 0xad9   : > { %17806 = vmatpush1.bf16.msra.mxu0 %v16480_v63  ;;  %19717 = vmatprep.subr.bf16.mxu1 %v17958_v44  ;;  %v17977_v63 = vld [vmem:[#allocation4 + $0x158] sm:$0xff]  ;;  %v17978_v44 = vld [vmem:[#allocation4 + $0x160] sm:$0xff] }
 0xada   : > { %17807 = vmatprep.subr.bf16.mxu0 %v16491_v52  ;;  %v16611_v52 = vld [vmem:[#allocation3 + $0x1088] sm:$0xff] }
 0xadb   : > { %18052 = vmatmul.mubr.bf16.vlgmr.msra.gmra.mrb[12].mxu1 %v17924_v3  ;;  %v17970_v3 = vld [vmem:[#allocation4 + $0x120] sm:$0xff] }
 0xadc   : > { %19718 = vmatpush3.bf16.msra.mxu1 %v17950_v4  ;;  %18091 = vmatprep.mubr.bf16.mxu1 %v17927_v35  ;;  %v16621_v4 = vld [vmem:[#allocation3 + $0x10d8] sm:$0xff] }
 0xadd   : > { %17808 = vmatpush1.bf16.msra.mxu0 %v16490_v7  ;;  %19719 = vmatprep.subr.bf16.mxu1 %v17959_v5  ;;  %v16854_v7 = vsub.s32 4, %v25292_v8 }
 0xade   : > { %17809 = vmatprep.subr.bf16.mxu0 %v16501_v47  ;;  %v17979_v47 = vld [vmem:[#allocation4 + $0x168] sm:$0xff] }
 0xadf   : > { %v16855_v5 = vrot.slane %v25335_v30, %v16854_v7  ;;  %v16731_v7 = vld [vmem:[#allocation3 + $0x1448] sm:$0xff] }
 0xae0   : > { %19720 = vmatpush3.bf16.msra.mxu1 %v17951_v62  ;;  %v17971_v62 = vld [vmem:[#allocation4 + $0x128] sm:$0xff] }
 0xae1   : > { %17810 = vmatpush1.bf16.msra.mxu0 %v16500_v34  ;;  %19721 = vmatprep.subr.bf16.mxu1 %v17960_v49  ;;  %v16620_v34 = vld [vmem:[#allocation3 + $0x10d0] sm:$0xff]  ;;  %v16631_v49 = vld [vmem:[#allocation3 + $0x1128] sm:$0xff] }
 0xae2   : > { %17811 = vmatprep.subr.bf16.mxu0 %v16511_v2 }
 0xae4   : > { %19722 = vmatpush3.bf16.msra.mxu1 %v17952_v54 }
 0xae5   : > { %17812 = vmatpush1.bf16.msra.mxu0 %v16510_v53  ;;  %19723 = vmatprep.subr.bf16.mxu1 %v17961_v60  ;;  %v17980_v53 = vld [vmem:[#allocation4 + $0x170] sm:$0xff] }
 0xae6   : > { %17813 = vmatprep.subr.bf16.mxu0 %v16521_v50 }
 0xae8   : > { %19724 = vmatpush3.bf16.msra.mxu1 %v17953_v57 }
 0xae9   : > { %17814 = vmatpush1.bf16.msra.mxu0 %v16520_v11  ;;  %19725 = vmatprep.subr.bf16.mxu1 %v17962_v56  ;;  %v17972_v56 = vld [vmem:[#allocation4 + $0x130] sm:$0xff] }
 0xaea   : > { %17815 = vmatprep.subr.bf16.mxu0 %v16531_v37  ;;  %v16630_v37 = vld [vmem:[#allocation3 + $0x1120] sm:$0xff] }
 0xaec   : > { %19726 = vmatpush3.bf16.msra.mxu1 %v17954_v13  ;;  %v17981_v13 = vld [vmem:[#allocation4 + $0x178] sm:$0xff] }
 0xaed   : > { %17816 = vmatpush1.bf16.msra.mxu0 %v16530_v58  ;;  %19727 = vmatprep.subr.bf16.mxu1 %v17963_v46  ;;  %v16641_v58 = vld [vmem:[#allocation3 + $0x1178] sm:$0xff] }
 0xaee   : > { %17817 = vmatprep.subr.bf16.mxu0 %v16541_v24 }
 0xaf0   : > { %19728 = vmatpush3.bf16.msra.mxu1 %v17955_v29  ;;  %v16651_v29 = vld [vmem:[#allocation3 + $0x11c8] sm:$0xff] }
 0xaf1   : > { %17818 = vmatpush1.bf16.msra.mxu0 %v16540_v25  ;;  %19729 = vmatprep.subr.bf16.mxu1 %v17964_v22  ;;  %v17973_v25 = vld [vmem:[#allocation4 + $0x138] sm:$0xff] }
 0xaf2   : > { %17819 = vmatprep.subr.bf16.mxu0 %v16551_v12  ;;  %v17990_v12 = vld [vmem:[#allocation4 + $0x1c0] sm:$0xff] }
 0xaf4   : > { %19730 = vmatpush3.bf16.msra.mxu1 %v17956_v10  ;;  %v16661_v10 = vld [vmem:[#allocation3 + $0x1218] sm:$0xff] }
 0xaf5   : > { %17820 = vmatpush1.bf16.msra.mxu0 %v16550_v51  ;;  %19731 = vmatprep.subr.bf16.mxu1 %v17965_v17  ;;  %v17982_v51 = vld [vmem:[#allocation4 + $0x180] sm:$0xff] }
 0xaf6   : > { %17821 = vmatprep.subr.bf16.mxu0 %v16561_v1  ;;  %v17991_v1 = vld [vmem:[#allocation4 + $0x1c8] sm:$0xff]  ;;  %v16660_v17 = vld [vmem:[#allocation3 + $0x1210] sm:$0xff] }
 0xaf8   : > { %19732 = vmatpush3.bf16.msra.mxu1 %v17957_v6  ;;  %v17992_v6 = vld [vmem:[#allocation4 + $0x1d0] sm:$0xff] }
 0xaf9   : > { %17822 = vmatpush1.bf16.msra.mxu0 %v16560_v18  ;;  %19739 = vmatprep.subr.bf16.mxu1 %v17974_v0  ;;  %v16671_v18 = vld [vmem:[#allocation3 + $0x1268] sm:$0xff]  ;;  %v17984_v0 = vld [vmem:[#allocation4 + $0x190] sm:$0xff] }
 0xafa   : > { %17832 = vmatprep.subr.bf16.mxu0 %v16571_v23  ;;  %v16670_v23 = vld [vmem:[#allocation3 + $0x1260] sm:$0xff] }
 0xafb   : > { %18092 = vmatmul.mubr.bf16.vlgmr.msra.gmra.mrb[16].mxu1 %v17926_v42  ;;  %v16681_v42 = vld [vmem:[#allocation3 + $0x12b8] sm:$0xff] }
 0xafc   : > { %17824 = vmatmul.mubr.bf16.vlgmr.msra.gmra.mrb[8].mxu0 %v25252_v21  ;;  %19740 = vmatpush3.bf16.msra.mxu1 %v17966_v27  ;;  %v16600_v21 = vld [vmem:[#allocation3 + $0x1030] sm:$0xff] }
 0xafd   : > { %17833 = vmatpush1.bf16.msra.mxu0 %v16570_v48  ;;  %19741 = vmatprep.subr.bf16.mxu1 %v17975_v28  ;;  %v17993_v48 = vld [vmem:[#allocation4 + $0x1d8] sm:$0xff]  ;;  %v16680_v27 = vld [vmem:[#allocation3 + $0x12b0] sm:$0xff] }
 0xafe   : > { %17834 = vmatprep.subr.bf16.mxu0 %v16581_v45  ;;  %17864 = vmatprep.mubr.bf16.mxu0 %v25254_v9  ;;  %v16858_v9 = vsub.s32 5, %v25292_v8  ;;  %v17985_v45 = vld [vmem:[#allocation4 + $0x198] sm:$0xff] }
 0xaff   : > { %v16691_v28 = vld [vmem:[#allocation3 + $0x1308] sm:$0xff] }
 0xb00   : > { %19742 = vmatpush3.bf16.msra.mxu1 %v17967_v31  ;;  %v16859_v35 = vrot.slane %v25335_v30, %v16858_v9  ;;  %v16690_v31 = vld [vmem:[#allocation3 + $0x1300] sm:$0xff]  ;;  %v17997_v9 = vld [vmem:[#allocation4 + $0x1f8] sm:$0xff] }
 0xb01   : > { %17835 = vmatpush1.bf16.msra.mxu0 %v16580_v33  ;;  %19743 = vmatprep.subr.bf16.mxu1 %v17976_v59  ;;  %v17994_v33 = vld [vmem:[#allocation4 + $0x1e0] sm:$0xff]  ;;  %v16701_v59 = vld [vmem:[#allocation3 + $0x1358] sm:$0xff] }
 0xb02   : > { %17836 = vmatprep.subr.bf16.mxu0 %v16591_v32  ;;  %v17986_v32 = vld [vmem:[#allocation4 + $0x1a0] sm:$0xff] }
 0xb04   : > { %19744 = vmatpush3.bf16.msra.mxu1 %v17968_v40  ;;  %v16700_v40 = vld [vmem:[#allocation3 + $0x1350] sm:$0xff] }
 0xb05   : > { %17837 = vmatpush1.bf16.msra.mxu0 %v16590_v36  ;;  %19745 = vmatprep.subr.bf16.mxu1 %v17977_v63  ;;  %v17995_v36 = vld [vmem:[#allocation4 + $0x1e8] sm:$0xff]  ;;  %v16711_v63 = vld [vmem:[#allocation3 + $0x13a8] sm:$0xff] }
 0xb06   : > { %17838 = vmatprep.subr.bf16.mxu0 %v16601_v41  ;;  %v17987_v41 = vld [vmem:[#allocation4 + $0x1a8] sm:$0xff] }
 0xb08   : > { %19746 = vmatpush3.bf16.msra.mxu1 %v17969_v43  ;;  %v16710_v43 = vld [vmem:[#allocation3 + $0x13a0] sm:$0xff] }
 0xb09   : > { %17839 = vmatpush1.bf16.msra.mxu0 %v16600_v21  ;;  %19747 = vmatprep.subr.bf16.mxu1 %v17978_v44  ;;  %v17996_v21 = vld [vmem:[#allocation4 + $0x1f0] sm:$0xff]  ;;  %v16721_v44 = vld [vmem:[#allocation3 + $0x13f8] sm:$0xff] }
 0xb0a   : > { %17840 = vmatprep.subr.bf16.mxu0 %v16611_v52  ;;  %v17988_v52 = vld [vmem:[#allocation4 + $0x1b0] sm:$0xff] }
 0xb0c   : > { %19748 = vmatpush3.bf16.msra.mxu1 %v17970_v3  ;;  %v17989_v3 = vld [vmem:[#allocation4 + $0x1b8] sm:$0xff] }
 0xb0d   : > { %17841 = vmatpush1.bf16.msra.mxu0 %v16610_v19  ;;  %19749 = vmatprep.subr.bf16.mxu1 %v17979_v47  ;;  %v16720_v19 = vld [vmem:[#allocation3 + $0x13f0] sm:$0xff]  ;;  %v16741_v47 = vld [vmem:[#allocation3 + $0x1498] sm:$0xff] }
 0xb0e   : > { %17842 = vmatprep.subr.bf16.mxu0 %v16621_v4  ;;  %v16730_v4 = vld [vmem:[#allocation3 + $0x1440] sm:$0xff] }
 0xb0f   : > { %v17497_v2 = vpop.f32.mrb[4].mxu0 }
 0xb10   : > { %v17499_v54 = vpop.f32.mrb[5].mxu0  ;;  %19750 = vmatpush3.bf16.msra.mxu1 %v17971_v62  ;;  %v19789_v11 = vadd.f32 %v17497_v2, %v16855_v5  ;;  %v16751_v5 = vld [vmem:[#allocation3 + $0x14e8] sm:$0xff]  ;;  %v16761_v62 = vld [vmem:[#allocation3 + $0x1538] sm:$0xff]  ;;  %v16760_v2 = vld [vmem:[#allocation3 + $0x1530] sm:$0xff] }
 0xb11   : > { %v19790_v50 = vadd.f32 %v17499_v54, %v16859_v35  ;;  %v17501_v60 = vpop.f32.mrb[6].mxu0  ;;  %17843 = vmatpush1.bf16.msra.mxu0 %v16620_v34  ;;  %19751 = vmatprep.subr.bf16.mxu1 %v17980_v53  ;;  %v16740_v35 = vld [vmem:[#allocation3 + $0x1490] sm:$0xff]  ;;  %v16750_v34 = vld [vmem:[#allocation3 + $0x14e0] sm:$0xff]  ;;  %v16781_v54 = vld [vmem:[#allocation3 + $0x15d8] sm:$0xff] }
 0xb12   : > { %v17502_v57 = vpop.f32.mrb[7].mxu0  ;;  %17844 = vmatprep.subr.bf16.mxu0 %v16631_v49  ;;  %v17918_v46 = vmax.f32 %v19789_v11, 0.0  ;;  %v16771_v49 = vld [vmem:[#allocation3 + $0x1588] sm:$0xff]  ;;  %v16770_v53 = vld [vmem:[#allocation3 + $0x1580] sm:$0xff]  ;;  %v16801_v60 = vld [vmem:[#allocation3 + $0x1678] sm:$0xff] }
 0xb13   : > { %v17919_v38 = vmax.f32 %v19790_v50, 0.0  ;;  %v16791_v50 = vld [vmem:[#allocation3 + $0x1628] sm:$0xff]  ;;  %v16800_v11 = vld [vmem:[#allocation3 + $0x1670] sm:$0xff] }
 0xb14   : > { %19752 = vmatpush3.bf16.msra.mxu1 %v17972_v56  ;;  %v17928_v22 = vpack.c.bf16 %v17918_v46, %v17918_v46  ;;  %v16811_v57 = vld [vmem:[#allocation3 + $0x16c8] sm:$0xff]  ;;  %v16821_v56 = vld [vmem:[#allocation3 + $0x1718] sm:$0xff]  ;;  %v16862_v46 = vsub.s32 6, %v25292_v8 }
 0xb15   : > { %v17929_v24 = vpack.c.bf16 %v17919_v38, %v17919_v38  ;;  %17845 = vmatpush1.bf16.msra.mxu0 %v16630_v37  ;;  %19753 = vmatprep.subr.bf16.mxu1 %v17981_v13  ;;  %v16810_v37 = vld [vmem:[#allocation3 + $0x16c0] sm:$0xff]  ;;  %v16820_v38 = vld [vmem:[#allocation3 + $0x1710] sm:$0xff] }
 0xb16   : > { %17846 = vmatprep.subr.bf16.mxu0 %v16641_v58  ;;  %v16831_v58 = vld [vmem:[#allocation3 + $0x1768] sm:$0xff]  ;;  %v16830_v13 = vld [vmem:[#allocation3 + $0x1760] sm:$0xff] }
 0xb17   : > { %18131 = vmatprep.mubr.bf16.mxu1 %v17929_v24  ;;  %v21894_v24 = vmov 0  }
 0xb18   : > { %19754 = vmatpush3.bf16.msra.mxu1 %v17973_v25  ;;  %v16863_v25 = vrot.slane %v25335_v30, %v16862_v46 }
 0xb19   : > { %17847 = vmatpush1.bf16.msra.mxu0 %v16640_v39  ;;  %19761 = vmatprep.subr.bf16.mxu1 %v17990_v12  ;;  %v16866_v39 = vsub.s32 7, %v25292_v8 }
 0xb1a   : > { %17848 = vmatprep.subr.bf16.mxu0 %v16651_v29 }
 0xb1b   : > { %18132 = vmatmul.mubr.bf16.vlgmr.msra.gmra.mrb[20].mxu1 %v17928_v22  ;;  %v16867_v29 = vrot.slane %v25335_v30, %v16866_v39  ;;  %v18001_v30 = vld [vmem:[#allocation4 + $0x218] sm:$0xff] }
 0xb1c   : > { %19762 = vmatpush3.bf16.msra.mxu1 %v17982_v51 }
 0xb1d   : > { %17849 = vmatpush1.bf16.msra.mxu0 %v16650_v61  ;;  %19763 = vmatprep.subr.bf16.mxu1 %v17991_v1 }
 0xb1e   : > { %17850 = vmatprep.subr.bf16.mxu0 %v16661_v10 }
 0xb20   : > { %19764 = vmatpush3.bf16.msra.mxu1 %v17983_v15 }
 0xb21   : > { %17851 = vmatpush1.bf16.msra.mxu0 %v16660_v17  ;;  %19765 = vmatprep.subr.bf16.mxu1 %v17992_v6  ;;  %v17998_v6 = vld [vmem:[#allocation4 + $0x200] sm:$0xff] }
 0xb22   : > { %17852 = vmatprep.subr.bf16.mxu0 %v16671_v18 }
 0xb24   : > { %19766 = vmatpush3.bf16.msra.mxu1 %v17984_v0  ;;  %v18000_v0 = vld [vmem:[#allocation4 + $0x210] sm:$0xff] }
 0xb25   : > { %17853 = vmatpush1.bf16.msra.mxu0 %v16670_v23  ;;  %19767 = vmatprep.subr.bf16.mxu1 %v17993_v48  ;;  %v17999_v23 = vld [vmem:[#allocation4 + $0x208] sm:$0xff] }
 0xb26   : > { %17854 = vmatprep.subr.bf16.mxu0 %v16681_v42  ;;  %v18002_v42 = vld [vmem:[#allocation4 + $0x220] sm:$0xff]  ;;  %v18003_v48 = vld [vmem:[#allocation4 + $0x228] sm:$0xff] }
 0xb28   : > { %19768 = vmatpush3.bf16.msra.mxu1 %v17985_v45 }
 0xb29   : > { %17855 = vmatpush1.bf16.msra.mxu0 %v16680_v27  ;;  %19769 = vmatprep.subr.bf16.mxu1 %v17994_v33  ;;  %v18004_v27 = vld [vmem:[#allocation4 + $0x230] sm:$0xff] }
 0xb2a   : > { %17856 = vmatprep.subr.bf16.mxu0 %v16691_v28 }
 0xb2c   : > { %19770 = vmatpush3.bf16.msra.mxu1 %v17986_v32 }
 0xb2d   : > { %17857 = vmatpush1.bf16.msra.mxu0 %v16690_v31  ;;  %19771 = vmatprep.subr.bf16.mxu1 %v17995_v36  ;;  %v18006_v36 = vld [vmem:[#allocation4 + $0x240] sm:$0xff] }
 0xb2e   : > { %17858 = vmatprep.subr.bf16.mxu0 %v16701_v59  ;;  %v18005_v59 = vld [vmem:[#allocation4 + $0x238] sm:$0xff] }
 0xb30   : > { %19772 = vmatpush3.bf16.msra.mxu1 %v17987_v41  ;;  %v18008_v41 = vld [vmem:[#allocation4 + $0x250] sm:$0xff] }
 0xb31   : > { %17859 = vmatpush1.bf16.msra.mxu0 %v16700_v40  ;;  %19773 = vmatprep.subr.bf16.mxu1 %v17996_v21  ;;  %v18007_v40 = vld [vmem:[#allocation4 + $0x248] sm:$0xff] }
 0xb32   : > { %17860 = vmatprep.subr.bf16.mxu0 %v16711_v63  ;;  %v19689_v63 = vld [vmem:[%s25380_s6] ss:$0 sm:$0xff] }
 0xb34   : > { %19774 = vmatpush3.bf16.msra.mxu1 %v17988_v52 }
 0xb35   : > { %17861 = vmatpush1.bf16.msra.mxu0 %v16710_v43  ;;  %19775 = vmatprep.subr.bf16.mxu1 %v17997_v9 }
 0xb36   : > { %17862 = vmatprep.subr.bf16.mxu0 %v16721_v44 }
 0xb38   : > { %19776 = vmatpush3.bf16.msra.mxu1 %v17989_v3 }
 0xb39   : > { %17863 = vmatpush1.bf16.msra.mxu0 %v16720_v19  ;;  %18179 = vmatprep.subr.bf16.mxu1 %v21894_v24 }
 0xb3a   : > { %17873 = vmatprep.subr.bf16.mxu0 %v16731_v7 }
 0xb3c   : > { %17865 = vmatmul.mubr.bf16.vlgmr.msra.gmra.mrb[8].mxu0 %v25260_v20  ;;  %v16780_v20 = vld [vmem:[#allocation3 + $0x15d0] sm:$0xff] }
 0xb3d   : > { %17874 = vmatpush1.bf16.msra.mxu0 %v16730_v4  ;;  %19688 = vmatprep.mubr.msk.bf16.mxu0 %vm16038_vm1, %v25262_v26  ;;  %v16790_v26 = vld [vmem:[#allocation3 + $0x1620] sm:$0xff] }
 0xb3e   : > { %17875 = vmatprep.subr.bf16.mxu0 %v16741_v47 }
 0xb41   : > { %17876 = vmatpush1.bf16.msra.mxu0 %v16740_v35 }
 0xb42   : > { %17877 = vmatprep.subr.bf16.mxu0 %v16751_v5 }
 0xb45   : > { %17878 = vmatpush1.bf16.msra.mxu0 %v16750_v34 }
 0xb46   : > { %17879 = vmatprep.subr.bf16.mxu0 %v16761_v62  ;;  %v16833_v62 = vld [vmem:[%s25378_s4 + $0x8] sm:$0x3] }
 0xb49   : > { %17880 = vmatpush1.bf16.msra.mxu0 %v16760_v2  ;;  %v16871_v2 = vrot.slane %v16833_v62, %v16838_v55 }
 0xb4a   : > { %17881 = vmatprep.subr.bf16.mxu0 %v16771_v49  ;;  %v16875_v49 = vrot.slane %v16833_v62, %v16842_v16 }
 0xb4d   : > { %17882 = vmatpush1.bf16.msra.mxu0 %v16770_v53 }
 0xb4e   : > { %17883 = vmatprep.subr.bf16.mxu0 %v16781_v54 }
 0xb51   : > { %17884 = vmatpush1.bf16.msra.mxu0 %v16780_v20 }
 0xb52   : > { %17885 = vmatprep.subr.bf16.mxu0 %v16791_v50 }
 0xb55   : > { %17886 = vmatpush1.bf16.msra.mxu0 %v16790_v26 }
 0xb56   : > { %17887 = vmatprep.subr.bf16.mxu0 %v16801_v60 }
 0xb59   : > { %17888 = vmatpush1.bf16.msra.mxu0 %v16800_v11 }
 0xb5a   : > { %17889 = vmatprep.subr.bf16.mxu0 %v16811_v57 }
 0xb5d   : > { %17890 = vmatpush1.bf16.msra.mxu0 %v16810_v37 }
 0xb5e   : > { %17891 = vmatprep.subr.bf16.mxu0 %v16821_v56 }
 0xb61   : > { %17892 = vmatpush1.bf16.msra.mxu0 %v16820_v38 }
 0xb62   : > { %17893 = vmatprep.subr.bf16.mxu0 %v16831_v58 }
 0xb65   : > { %17894 = vmatpush1.bf16.msra.mxu0 %v16830_v13 }
 0xb68   : > { %17906 = vmatmul.mubr.bf16.vlgmr.msra.gmra.mrb[8].mxu0 %v25269_v14 }
 0xb8e   : > { %v17702_v12 = vpop.f32.mrb[8].mxu1 }
 0xb8f   : > { %v19791_v22 = vadd.f32 %v17702_v12, %v16863_v25  ;;  %v17704_v61 = vpop.f32.mrb[9].mxu1 }
 0xb90   : > { %v19792_v51 = vadd.f32 %v17704_v61, %v16867_v29  ;;  %v17706_v10 = vpop.f32.mrb[10].mxu1 }
 0xb91   : > { %v17920_v1 = vmax.f32 %v19791_v22, 0.0  ;;  %v17707_v17 = vpop.f32.mrb[11].mxu1 }
 0xb92   : > { %v17921_v15 = vmax.f32 %v19792_v51, 0.0 }
 0xb93   : > { %v17930_v14 = vpack.c.bf16 %v17920_v1, %v17920_v1 }
 0xb94   : > { %v17931_v18 = vpack.c.bf16 %v17921_v15, %v17921_v15 }
 0xb96   : > { %18171 = vmatprep.mubr.bf16.mxu1 %v17931_v18 }
 0xb97   : > { %18172 = vmatmul.mubr.bf16.vlgmr.msra.gmra.mrb[24].mxu1 %v17930_v14 }
 0xb98   : > { %18180 = vmatpush1.bf16.msra.mxu1 %v17998_v6 }
 0xb99   : > { %18181 = vmatprep.subr.bf16.mxu1 %v21894_v24 }
 0xb9c   : > { %18182 = vmatpush1.bf16.msra.mxu1 %v17999_v23 }
 0xb9d   : > { %18183 = vmatprep.subr.bf16.mxu1 %v21894_v24 }
 0xba0   : > { %18184 = vmatpush1.bf16.msra.mxu1 %v18000_v0 }
 0xba1   : > { %18185 = vmatprep.subr.bf16.mxu1 %v21894_v24 }
 0xba4   : > { %18186 = vmatpush1.bf16.msra.mxu1 %v18001_v30 }
 0xba5   : > { %18187 = vmatprep.subr.bf16.mxu1 %v21894_v24 }
 0xba8   : > { %18188 = vmatpush1.bf16.msra.mxu1 %v18002_v42 }
 0xba9   : > { %18189 = vmatprep.subr.bf16.mxu1 %v21894_v24 }
 0xbac   : > { %18190 = vmatpush1.bf16.msra.mxu1 %v18003_v48 }
 0xbad   : > { %18191 = vmatprep.subr.bf16.mxu1 %v21894_v24 }
 0xbae   : > { %v19711_v45 = vpop.f32.mrb[12].mxu1 }
 0xbaf   : > { %v19712_v28 = vpop.f32.mrb[13].mxu1 }
 0xbb0   : > { %v19713_v33 = vadd.f32 %v19712_v28, %v19711_v45  ;;  %v19714_v31 = vpop.f32.mrb[14].mxu1  ;;  %18192 = vmatpush1.bf16.msra.mxu1 %v18004_v27 }
 0xbb1   : > { %v19715_v32 = vpop.f32.mrb[15].mxu1  ;;  %18193 = vmatprep.subr.bf16.mxu1 %v21894_v24 }
 0xbb2   : > { %v18054_v52 = vadd.f32 %v19713_v33, %v19689_v63 }
 0xbb4   : > { %18194 = vmatpush1.bf16.msra.mxu1 %v18005_v59 }
 0xbb5   : > { %18195 = vmatprep.subr.bf16.mxu1 %v21894_v24 }
 0xbb8   : > { %18196 = vmatpush1.bf16.msra.mxu1 %v18006_v36 }
 0xbb9   : > { %18197 = vmatprep.subr.bf16.mxu1 %v21894_v24 }
 0xbbc   : > { %18198 = vmatpush1.bf16.msra.mxu1 %v18007_v40 }
 0xbbd   : > { %18199 = vmatprep.subr.bf16.mxu1 %v21894_v24 }
 0xbc0   : > { %18200 = vmatpush1.bf16.msra.mxu1 %v18008_v41 }
 0xbce   : > { %v19733_v21 = vpop.f32.mrb[16].mxu1 }
 0xbcf   : > { %v19734_v43 = vpop.f32.mrb[17].mxu1 }
 0xbd0   : > { %v19735_v44 = vadd.f32 %v19734_v43, %v19733_v21  ;;  %v19736_v9 = vpop.f32.mrb[18].mxu1 }
 0xbd1   : > { %v19737_v19 = vpop.f32.mrb[19].mxu1 }
 0xbd2   : > { %v18094_v3 = vadd.f32 %v19735_v44, %v18054_v52 }
 0xbee   : > { %v19755_v7 = vpop.f32.mrb[20].mxu1 }
 0xbef   : > { %v19756_v4 = vpop.f32.mrb[21].mxu1 }
 0xbf0   : > { %v19757_v47 = vadd.f32 %v19756_v4, %v19755_v7  ;;  %v19758_v35 = vpop.f32.mrb[22].mxu1 }
 0xbf1   : > { %v19759_v5 = vpop.f32.mrb[23].mxu1 }
 0xbf2   : > { %v18134_v34 = vadd.f32 %v19757_v47, %v18094_v3 }
 0xc3b   : > { %v17907_v53 = vpop.f32.mrb[8].mxu0 }
 0xc3c   : > { %v19793_v54 = vadd.f32 %v17907_v53, %v16871_v2  ;;  %v17909_v20 = vpop.f32.mrb[9].mxu0 }
 0xc3d   : > { %v19794_v50 = vadd.f32 %v17909_v20, %v16875_v49  ;;  %v17911_v26 = vpop.f32.mrb[10].mxu0 }
 0xc3e   : > { %v17922_v60 = vmax.f32 %v19793_v54, 0.0  ;;  %v17912_v11 = vpop.f32.mrb[11].mxu0 }
 0xc3f   : > { %v17923_v57 = vmax.f32 %v19794_v50, 0.0 }
 0xc40   : > { %v17932_v56 = vpack.c.bf16 %v17922_v60, %v17922_v60 }
 0xc41   : > { %v17933_v37 = vpack.c.bf16 %v17923_v57, %v17923_v57 }
 0xc43   : > { %19690 = vmatprep.mubr.msk.bf16.mxu1 %vm16038_vm1, %v17933_v37 }
 0xc44   : > { %18212 = vmatmul.mubr.bf16.vlgmr.msra.gmra.mrb[28].mxu1 %v17932_v56 }
 0xc6a   : > { %v19777_v38 = vpop.f32.mrb[24].mxu1 }
 0xc6b   : > { %v19778_v58 = vpop.f32.mrb[25].mxu1 }
 0xc6c   : > { %v19779_v13 = vadd.f32 %v19778_v58, %v19777_v38  ;;  %v19780_v55 = vpop.f32.mrb[26].mxu1 }
 0xc6d   : > { %v19781_v24 = vpop.f32.mrb[27].mxu1 }
 0xc6e   : > { %v18174_v8 = vadd.f32 %v19779_v13, %v18134_v34 }
 0xd17   : > { %v18213_v16 = vpop.f32.mrb[28].mxu1 }
 0xd18   : > { %v18214_v46 = vadd.f32 %v18213_v16, %v18174_v8  ;;  %v18215_v39 = vpop.f32.mrb[29].mxu1 }
 0xd19   : > { %v18216_v25 = vpop.f32.mrb[30].mxu1 }
 0xd1a   : > { %18220 = vst.msk [vmem:[%s25381_s7] sm:$0xff] %vm18219_vm2, %v18214_v46  ;;  %v18217_v29 = vpop.f32.mrb[31].mxu1 }
 0xd1b PF: > { %s17_s24 = sadd.s32 1, %s21876_s24  }
 0xd1c   : > { %p14_p9 = scmp.ge.s32.totalorder %s17_s24, 4  }
 0xd1e   :  { %16 = sbr.rel (!%p14_p9) target bundleno = 1 (0x1), region = 224 }
 0xd25   :  { %18232 = vsyncmov [#allocation5] }
 0xd28   :  { %s18233_s14 = vpop.sfrf %18232 }
 0xd29   :  { %p19693_p10 = scmp.ne.s32.totalorder %s18233_s14, 0 }
 0xd2b   :  { %18237 = shalt.err (%p19693_p10)  }
 0xd2c   :  { %18239 = vsyncmov [#allocation5 + $0x1] }
 0xd2f   :  { %s18240_s15 = vpop.sfrf %18239 }
 0xd30   :  { %p19694_p11 = scmp.ne.s32.totalorder %s18240_s15, 0 }
 0xd32   :  { %18244 = shalt.err (%p19694_p11)  }

</bundles_post_ra>
